<compile_context>
chip_gen: v6e
topology: v6e:2x2x1
jax: 0.10.0
libtpu: 0.0.40
codegen_flags: <defaults>
</compile_context>

<pallas_src>
import jax
import jax.numpy as jnp
import numpy as np
from jax.experimental import pallas as pl
from jax.experimental.pallas import tpu as pltpu

# ----------------------------------------------------------------------------
# Static geometry (forced by fc1's 6976 = 4 * 16 * 109 input features)
# ----------------------------------------------------------------------------
H_IN, W_IN = 18, 111                 # input image
HP1, WP1 = H_IN + 2, W_IN + 2        # 20, 113  conv1 zero-padded input
HO, WO = 16, 109                     # spatial dims of every conv output
C1, C2, C3 = 32, 16, 4               # conv output channels
RS = 128                             # lane stride of one image row in every flat buffer
NW = HO * RS                         # 2048  conv-output slab width (full-width overcompute)
LX = (HP1 + 1) * RS                  # 2688  flat conv1 input (20 data rows + 1 zero row)
LS = (HO + 3) * RS                   # 2432  flat conv2/3 padded inputs (18 rows + halo)
LEFT = RS + 1                        # 129   flat offset of output pixel (0,0) inside s2/s3
K1 = 32                              # conv1 im2col K (25 taps zero-padded to 32)
K2, K3 = 9 * C1, 9 * C2              # 288, 144  conv2/3 im2col K
NF = 112                             # compacted per-row feature stride  (>= WO)
NCF = HO * NF                        # 1792  per-channel feature length (14*128)
KFC = C3 * NCF                       # 7168  fc1 input features (56*128)
FC1_OUT, NCLASS = 1024, 6
NC_PAD = 128                         # fc2 output columns padded to one lane tile
FC_TN = 128                          # fc1 output-column tile (bf16 weight tile ~1.8 MiB)
NCORES = 2                           # fc1 weight stream split across TCs (v7x megacore)
NTH = (FC1_OUT // FC_TN) // NCORES   # 4 column tiles per core


# ----------------------------------------------------------------------------
# Kernel 1: fused conv1 -> relu -> conv2 -> relu -> conv3 -> relu (+ compaction)
# ----------------------------------------------------------------------------
def _conv_kernel(x_ref, w1_ref, b1_ref, w2_ref, b2_ref, w3_ref, b3_ref,
                 feat_ref, slab1, s2, s3, slab2, slab3, featc):
    bb = x_ref.shape[0]

    # Zero only what is read but never written: the conv1-slab pad rows and the
    # halo/tail columns of the padded conv2/conv3 inputs (~100 KB per step).
    # Doing it every step keeps the batch grid axis safely "parallel".
    slab1[25:, :] = jnp.zeros((K1 - 25, NW), jnp.float32)
    s2[:, :LEFT] = jnp.zeros((C1, LEFT), jnp.bfloat16)
    s2[:, LEFT + NW:] = jnp.zeros((C1, LS - LEFT - NW), jnp.bfloat16)
    s3[:, :LEFT] = jnp.zeros((C2, LEFT), jnp.bfloat16)
    s3[:, LEFT + NW:] = jnp.zeros((C2, LS - LEFT - NW), jnp.bfloat16)

    # lanes w >= WO of every 128-wide output row are overcompute garbage
    w_of_col = jax.lax.broadcasted_iota(jnp.int32, (1, NW), 1) % RS
    valid = w_of_col < WO
    b1 = b1_ref[...]
    b2 = b2_ref[...]
    b3 = b3_ref[...]

    @pl.loop(0, bb)
    def _sample(b):
        x = x_ref[b]                                             # (1, LX) f32

        # ---- conv1: 25-tap im2col slab + one (32,32)@(32,2048) f32 MXU matmul
        for i in range(5):
            for j in range(5):
                k = i * 5 + j
                s = i * RS + j
                slab1[k:k + 1, :] = x[:, s:s + NW]
        a1 = jnp.dot(w1_ref[...], slab1[...], preferred_element_type=jnp.float32)
        a1 = jnp.where(valid, jnp.maximum(a1 + b1, 0.0), 0.0)
        # bulk re-pad: output pixel (h, w) -> padded row h+1, col w+1  (== +129)
        s2[:, LEFT:LEFT + NW] = a1.astype(jnp.bfloat16)

        # ---- conv2: (9*32)-K im2col slab + one (16,288)@(288,2048) bf16 matmul
        for i in range(3):
            for j in range(3):
                k = i * 3 + j
                s = i * RS + j
                slab2[k * C1:(k + 1) * C1, :] = s2[:, s:s + NW]
        a2 = jnp.dot(w2_ref[...], slab2[...], preferred_element_type=jnp.float32)
        a2 = jnp.where(valid, jnp.maximum(a2 + b2, 0.0), 0.0)
        s3[:, LEFT:LEFT + NW] = a2.astype(jnp.bfloat16)

        # ---- conv3: one (4,144)@(144,2048) bf16 matmul
        for i in range(3):
            for j in range(3):
                k = i * 3 + j
                s = i * RS + j
                slab3[k * C2:(k + 1) * C2, :] = s3[:, s:s + NW]
        a3 = jnp.dot(w3_ref[...], slab3[...], preferred_element_type=jnp.float32)
        a3 = jnp.maximum(a3 + b3, 0.0).astype(jnp.bfloat16)      # (4, 2048)

        # compact rows from stride 128 to stride 112 -> lane-aligned fc1 K=7168
        # (cols w in [109,112) stay garbage; they hit zero rows of the fc1 weight)
        for h in range(HO):
            featc[:, h * NF:(h + 1) * NF] = a3[:, h * RS:h * RS + NF]
        feat_ref[b] = featc[...]


def conv_fused(xb, prep, bb):
    bp = xb.shape[0]
    assert bp % bb == 0
    flops = 2 * bp * NW * (K1 * C1 + K2 * C2 + K3 * C3)
    bytes_accessed = (bp * (LX * 4 + C3 * NCF * 2)
                      + C1 * K1 * 4 + C2 * K2 * 2 + C3 * K3 * 2
                      + (C1 + C2 + C3) * 4)
    return pl.pallas_call(
        _conv_kernel,
        out_shape=jax.ShapeDtypeStruct((bp, C3, NCF), jnp.bfloat16),
        grid=(bp // bb,),
        in_specs=[
            pl.BlockSpec((bb, 1, LX), lambda g: (g, 0, 0)),      # flat padded inputs
            pl.BlockSpec((C1, K1), lambda g: (0, 0)),            # conv1 weights (f32, resident)
            pl.BlockSpec((C1, 1), lambda g: (0, 0)),
            pl.BlockSpec((C2, K2), lambda g: (0, 0)),            # conv2 weights (bf16)
            pl.BlockSpec((C2, 1), lambda g: (0, 0)),
            pl.BlockSpec((C3, K3), lambda g: (0, 0)),            # conv3 weights (bf16)
            pl.BlockSpec((C3, 1), lambda g: (0, 0)),
        ],
        out_specs=pl.BlockSpec((bb, C3, NCF), lambda g: (g, 0, 0)),
        scratch_shapes=[
            pltpu.VMEM((K1, NW), jnp.float32),                   # conv1 im2col slab
            pltpu.VMEM((C1, LS), jnp.bfloat16),                  # conv2 padded input
            pltpu.VMEM((C2, LS), jnp.bfloat16),                  # conv3 padded input
            pltpu.VMEM((K2, NW), jnp.bfloat16),                  # conv2 im2col slab
            pltpu.VMEM((K3, NW), jnp.bfloat16),                  # conv3 im2col slab
            pltpu.VMEM((C3, NCF), jnp.bfloat16),                 # compacted per-sample features
        ],
        compiler_params=pltpu.CompilerParams(dimension_semantics=("parallel",)),
        cost_estimate=pl.CostEstimate(flops=flops, transcendentals=0,
                                      bytes_accessed=bytes_accessed),
    )(xb, prep["w1"], prep["b1"], prep["w2"], prep["b2"], prep["w3"], prep["b3"])


# ----------------------------------------------------------------------------
# Kernel 2: fused fc1 (bf16 weights/activations, f32 accum) + ReLU + fc2
# ----------------------------------------------------------------------------
def _fc_kernel(feat_ref, w1_ref, b1_ref, w2_ref, out_ref):
    j = pl.program_id(1)

    @pl.when(j == 0)
    def _init():
        out_ref[...] = jnp.zeros_like(out_ref)

    # fc1 column tile: one long-K bf16 matmul, f32 accumulate
    h = jnp.dot(feat_ref[...], w1_ref[...], preferred_element_type=jnp.float32)
    h = jnp.maximum(h + b1_ref[...], 0.0)                        # (B, FC_TN) f32

    # fc2 accumulated tile-by-tile into the resident per-core partial output
    out_ref[...] += jnp.dot(h, w2_ref[...],
                            preferred_element_type=jnp.float32)[None]


def fc_fused(feat, prep):
    bp = feat.shape[0]
    flops = 2 * bp * KFC * FC1_OUT + 2 * bp * FC1_OUT * NC_PAD
    bytes_accessed = (KFC * FC1_OUT * 2 + NCORES * bp * KFC * 2
                      + FC1_OUT * NC_PAD * 4 + FC1_OUT * 4
                      + NCORES * bp * NC_PAD * 4)
    # NOTE: the feature block is kept fully resident (bf16, B*14 KB); for very
    # large batch it could be tiled along a third grid axis, not needed here.
    return pl.pallas_call(
        _fc_kernel,
        out_shape=jax.ShapeDtypeStruct((NCORES, bp, NC_PAD), jnp.float32),
        grid=(NCORES, NTH),
        in_specs=[
            pl.BlockSpec((bp, KFC), lambda g, j: (0, 0)),               # bf16 features, resident
            pl.BlockSpec((KFC, FC_TN), lambda g, j: (0, g * NTH + j)),  # bf16 fc1 weight, streamed
            pl.BlockSpec((1, FC_TN), lambda g, j: (0, g * NTH + j)),
            pl.BlockSpec((FC_TN, NC_PAD), lambda g, j: (g * NTH + j, 0)),  # fc2 weight row tile
        ],
        out_specs=pl.BlockSpec((1, bp, NC_PAD), lambda g, j: (g, 0, 0)),
        compiler_params=pltpu.CompilerParams(
            dimension_semantics=("parallel", "arbitrary")),
        cost_estimate=pl.CostEstimate(flops=flops, transcendentals=0,
                                      bytes_accessed=bytes_accessed),
    )(feat, prep["fc1w"], prep["fc1b"], prep["fc2w"])


# ----------------------------------------------------------------------------
# One-time parameter re-layout (folds flatten order / padding into the weights)
# ----------------------------------------------------------------------------
def prepare_params(p):
    assert p["f1w"].shape[1] == C3 * HO * WO
    f1 = jnp.transpose(p["f1w"], (1, 0)).reshape(C3, HO, WO, FC1_OUT)
    f1 = jnp.pad(f1, ((0, 0), (0, 0), (0, NF - WO), (0, 0)))     # zero rows at garbage cols
    fc2w = jnp.pad(jnp.transpose(p["f2w"], (1, 0)),
                   ((0, 0), (0, NC_PAD - NCLASS)))               # (1024, 128) f32
    return {
        "w1": jnp.pad(p["c1w"].reshape(C1, 25), ((0, 0), (0, K1 - 25))),   # (32, 32) f32
        "b1": p["c1b"].reshape(C1, 1),
        "w2": jnp.transpose(p["c2w"], (0, 2, 3, 1)).reshape(C2, K2).astype(jnp.bfloat16),
        "b2": p["c2b"].reshape(C2, 1),
        "w3": jnp.transpose(p["c3w"], (0, 2, 3, 1)).reshape(C3, K3).astype(jnp.bfloat16),
        "b3": p["c3b"].reshape(C3, 1),
        "fc1w": f1.reshape(KFC, FC1_OUT).astype(jnp.bfloat16),   # (7168, 1024) bf16
        "fc1b": p["f1b"].reshape(1, FC1_OUT),
        "fc2w": fc2w,
        "fc2b": p["f2b"].reshape(1, NCLASS),
    }


# ----------------------------------------------------------------------------
# Forward pass (matches the PyTorch module semantics)
# ----------------------------------------------------------------------------
def cnn_forward(x_nchw, prep):
    b = x_nchw.shape[0]
    bb = min(8, b)                            # samples per conv grid step
    bp = ((b + bb - 1) // bb) * bb
    x = x_nchw[:, 0]
    if bp != b:
        x = jnp.pad(x, ((0, bp - b), (0, 0), (0, 0)))
    xpad = jnp.pad(x, ((0, 0), (1, 1), (1, 1)))                  # (bp, 20, 113)
    xb = jnp.pad(xpad, ((0, 0), (0, 1), (0, RS - WP1)))          # (bp, 21, 128)
    xb = xb.reshape(bp, 1, LX).astype(jnp.float32)
    feat = conv_fused(xb, prep, bb)                              # (bp, 4, 1792) bf16
    part = fc_fused(feat.reshape(bp, KFC), prep)                 # (2, bp, 128) f32
    return part.sum(axis=0)[:b, :NCLASS] + prep["fc2b"]


# ----------------------------------------------------------------------------
# Pure-JAX reference (mirrors the intentional bf16-operand / f32-accum compute)
# ----------------------------------------------------------------------------
def ref_forward(x, params):
    dn = ("NCHW", "OIHW", "NCHW")
    hi = jax.lax.Precision.HIGHEST

    def conv(x, w, b, bf16):
        if bf16:                              # mirror kernel's bf16 conv2/conv3
            x = x.astype(jnp.bfloat16)
            w = w.astype(jnp.bfloat16)
        y = jax.lax.conv_general_dilated(
            x, w, (1, 1), [(1, 1), (1, 1)], dimension_numbers=dn,
            precision=None if bf16 else hi,
            preferred_element_type=jnp.float32)
        return jax.nn.relu(y + b[None, :, None, None])

    y = conv(x, params["c1w"], params["c1b"], False)
    y = conv(y, params["c2w"], params["c2b"], True)
    y = conv(y, params["c3w"], params["c3b"], True)
    flat = y.reshape(y.shape[0], -1)
    h = jnp.dot(flat.astype(jnp.bfloat16),
                jnp.transpose(params["f1w"]).astype(jnp.bfloat16),
                preferred_element_type=jnp.float32)
    h = jax.nn.relu(h + params["f1b"])
    return jnp.dot(h, jnp.transpose(params["f2w"]), precision=hi) + params["f2b"]


# ----------------------------------------------------------------------------
if __name__ == "__main__":
    B = 2
    key = jax.random.PRNGKey(0)
    ks = jax.random.split(key, 11)
    params = {
        "c1w": jax.random.normal(ks[0], (C1, 1, 5, 5), jnp.float32) * 0.10,
        "c1b": jax.random.normal(ks[1], (C1,), jnp.float32) * 0.01,
        "c2w": jax.random.normal(ks[2], (C2, C1, 3, 3), jnp.float32) * 0.05,
        "c2b": jax.random.normal(ks[3], (C2,), jnp.float32) * 0.01,
        "c3w": jax.random.normal(ks[4], (C3, C2, 3, 3), jnp.float32) * 0.05,
        "c3b": jax.random.normal(ks[5], (C3,), jnp.float32) * 0.01,
        "f1w": jax.random.normal(ks[6], (FC1_OUT, C3 * HO * WO), jnp.float32) * 0.01,
        "f1b": jax.random.normal(ks[7], (FC1_OUT,), jnp.float32) * 0.01,
        "f2w": jax.random.normal(ks[8], (NCLASS, FC1_OUT), jnp.float32) * 0.02,
        "f2b": jax.random.normal(ks[9], (NCLASS,), jnp.float32) * 0.01,
    }
    x = jax.random.normal(ks[10], (B, 1, H_IN, W_IN), jnp.float32)

    prep = prepare_params(params)             # one-time weight re-layout / bf16 cast
    fwd = jax.jit(cnn_forward)
    out = jax.block_until_ready(fwd(x, prep))
    assert out.shape == (B, NCLASS), out.shape
    assert bool(jnp.all(jnp.isfinite(out)))

    ref = jax.block_until_ready(ref_forward(x, params))
    # conv2/conv3/fc1 intentionally run with bf16 operands + f32 accumulation
    # (mirrored in the reference), so the remaining mismatch is accumulation
    # order / matmul decomposition only.
    np.testing.assert_allclose(np.asarray(out), np.asarray(ref), rtol=1e-2, atol=1e-2)

    print("KERNEL_OK")
</pallas_src>

<mosaic_0001>
module attributes {stable_mosaic.version = 11 : i64} {
  func.func @_fc_kernel(%arg0: i32, %arg1: i32, %arg2: memref<2x7168xbf16, #tpu.memory_space<vmem>>, %arg3: memref<7168x128xbf16, #tpu.memory_space<vmem>>, %arg4: memref<1x128xf32, #tpu.memory_space<vmem>>, %arg5: memref<128x128xf32, #tpu.memory_space<vmem>>, %arg6: memref<1x2x128xf32, #tpu.memory_space<vmem>>) attributes {dimension_semantics = [#tpu.dimension_semantics<parallel>, #tpu.dimension_semantics<arbitrary>], iteration_bounds = array<i64: 2, 4>, scalar_prefetch = 0 : i64, scratch_operands = 0 : i64, tpu.core_type = #tpu.core_type<tc>, window_params = [{pipeline_mode = #tpu.pipeline_mode<synchronous>, transform_indices = @transform_0, window_bounds = array<i64: 2, 7168>}, {transform_indices = @transform_1, window_bounds = array<i64: 7168, 128>}, {transform_indices = @transform_2, window_bounds = array<i64: 1, 128>}, {transform_indices = @transform_3, window_bounds = array<i64: 128, 128>}, {transform_indices = @transform_4, window_bounds = array<i64: 1, 2, 128>}]} {
    %c0_i32 = arith.constant 0 : i32
    %0 = arith.cmpi eq, %arg1, %c0_i32 : i32
    %1 = arith.extui %0 : i1 to i32
    %c0_i32_0 = arith.constant 0 : i32
    %2 = arith.cmpi ne, %1, %c0_i32_0 : i32
    scf.if %2 {
      %cst_16 = arith.constant 0.000000e+00 : f32
      %17 = vector.broadcast %cst_16 : f32 to vector<1x2x128xf32>
      %c0_17 = arith.constant 0 : index
      %c0_18 = arith.constant 0 : index
      %c0_19 = arith.constant 0 : index
      %18 = vector.load %arg6[%c0_17, %c0_18, %c0_19] : memref<1x2x128xf32, #tpu.memory_space<vmem>>, vector<1x2x128xf32>
      tpu.vector_store %arg6[%c0_17, %c0_18, %c0_19], %17 {strides = array<i32>} : memref<1x2x128xf32, #tpu.memory_space<vmem>>, vector<1x2x128xf32>,
    } else {
    }
    %c0 = arith.constant 0 : index
    %c0_1 = arith.constant 0 : index
    %3 = vector.load %arg2[%c0, %c0_1] : memref<2x7168xbf16, #tpu.memory_space<vmem>>, vector<2x7168xbf16>
    %c0_2 = arith.constant 0 : index
    %c0_3 = arith.constant 0 : index
    %4 = vector.load %arg3[%c0_2, %c0_3] : memref<7168x128xbf16, #tpu.memory_space<vmem>>, vector<7168x128xbf16>
    %cst = arith.constant dense<0.000000e+00> : vector<2x128xf32>
    %5 = tpu.matmul %3, %4, %cst {dimension_numbers = #tpu.dot_dimension_numbers<[1], [0], [0], [1], [0, 0, 1, 1], [], []>} : vector<2x7168xbf16>, vector<7168x128xbf16>, vector<2x128xf32> -> vector<2x128xf32>
    %c0_4 = arith.constant 0 : index
    %c0_5 = arith.constant 0 : index
    %6 = vector.load %arg4[%c0_4, %c0_5] : memref<1x128xf32, #tpu.memory_space<vmem>>, vector<1x128xf32>
    %7 = vector.broadcast %6 : vector<1x128xf32> to vector<2x128xf32>
    %8 = arith.addf %5, %7 : vector<2x128xf32>
    %cst_6 = arith.constant 0.000000e+00 : f32
    %9 = vector.broadcast %cst_6 : f32 to vector<2x128xf32>
    %10 = arith.maximumf %8, %9 : vector<2x128xf32>
    %c0_7 = arith.constant 0 : index
    %c0_8 = arith.constant 0 : index
    %c0_9 = arith.constant 0 : index
    %11 = vector.load %arg6[%c0_7, %c0_8, %c0_9] : memref<1x2x128xf32, #tpu.memory_space<vmem>>, vector<1x2x128xf32>
    %c0_10 = arith.constant 0 : index
    %c0_11 = arith.constant 0 : index
    %12 = vector.load %arg5[%c0_10, %c0_11] : memref<128x128xf32, #tpu.memory_space<vmem>>, vector<128x128xf32>
    %cst_12 = arith.constant dense<0.000000e+00> : vector<2x128xf32>
    %13 = tpu.matmul %10, %12, %cst_12 {dimension_numbers = #tpu.dot_dimension_numbers<[1], [0], [0], [1], [0, 0, 1, 1], [], []>} : vector<2x128xf32>, vector<128x128xf32>, vector<2x128xf32> -> vector<2x128xf32>
    %14 = vector.shape_cast %13 : vector<2x128xf32> to vector<1x2x128xf32>
    %15 = arith.addf %11, %14 : vector<1x2x128xf32>
    %c0_13 = arith.constant 0 : index
    %c0_14 = arith.constant 0 : index
    %c0_15 = arith.constant 0 : index
    %16 = vector.load %arg6[%c0_13, %c0_14, %c0_15] : memref<1x2x128xf32, #tpu.memory_space<vmem>>, vector<1x2x128xf32>
    tpu.vector_store %arg6[%c0_13, %c0_14, %c0_15], %15 {strides = array<i32>} : memref<1x2x128xf32, #tpu.memory_space<vmem>>, vector<1x2x128xf32>,
    return
  }
  func.func @transform_0(%arg0: i32, %arg1: i32) -> (i32, i32) {
    %c0_i32 = arith.constant 0 : i32
    %c0_i32_0 = arith.constant 0 : i32
    %c0_i32_1 = arith.constant 0 : i32
    return %c0_i32, %c0_i32_0 : i32, i32
  }
  func.func @transform_1(%arg0: i32, %arg1: i32) -> (i32, i32) {
    %c4_i32 = arith.constant 4 : i32
    %0 = arith.muli %arg0, %c4_i32 : i32
    %1 = arith.addi %0, %arg1 : i32
    %c0_i32 = arith.constant 0 : i32
    %c0_i32_0 = arith.constant 0 : i32
    return %c0_i32, %1 : i32, i32
  }
  func.func @transform_2(%arg0: i32, %arg1: i32) -> (i32, i32) {
    %c4_i32 = arith.constant 4 : i32
    %0 = arith.muli %arg0, %c4_i32 : i32
    %1 = arith.addi %0, %arg1 : i32
    %c0_i32 = arith.constant 0 : i32
    %c0_i32_0 = arith.constant 0 : i32
    return %c0_i32, %1 : i32, i32
  }
  func.func @transform_3(%arg0: i32, %arg1: i32) -> (i32, i32) {
    %c4_i32 = arith.constant 4 : i32
    %0 = arith.muli %arg0, %c4_i32 : i32
    %1 = arith.addi %0, %arg1 : i32
    %c0_i32 = arith.constant 0 : i32
    %c0_i32_0 = arith.constant 0 : i32
    return %1, %c0_i32 : i32, i32
  }
  func.func @transform_4(%arg0: i32, %arg1: i32) -> (i32, i32, i32) {
    %c0_i32 = arith.constant 0 : i32
    %c0_i32_0 = arith.constant 0 : i32
    %c0_i32_1 = arith.constant 0 : i32
    return %arg0, %c0_i32, %c0_i32_0 : i32, i32, i32
  }
}

module attributes {stable_mosaic.version = 11 : i64} {
  func.func @_conv_kernel(%arg0: i32, %arg1: memref<2x1x2688xf32, #tpu.memory_space<vmem>>, %arg2: memref<32x32xf32, #tpu.memory_space<vmem>>, %arg3: memref<32x1xf32, #tpu.memory_space<vmem>>, %arg4: memref<16x288xbf16, #tpu.memory_space<vmem>>, %arg5: memref<16x1xf32, #tpu.memory_space<vmem>>, %arg6: memref<4x144xbf16, #tpu.memory_space<vmem>>, %arg7: memref<4x1xf32, #tpu.memory_space<vmem>>, %arg8: memref<2x4x1792xbf16, #tpu.memory_space<vmem>>, %arg9: memref<32x2048xf32, #tpu.memory_space<vmem>>, %arg10: memref<32x2432xbf16, #tpu.memory_space<vmem>>, %arg11: memref<16x2432xbf16, #tpu.memory_space<vmem>>, %arg12: memref<288x2048xbf16, #tpu.memory_space<vmem>>, %arg13: memref<144x2048xbf16, #tpu.memory_space<vmem>>, %arg14: memref<4x1792xbf16, #tpu.memory_space<vmem>>) attributes {dimension_semantics = [#tpu.dimension_semantics<parallel>], iteration_bounds = array<i64: 1>, scalar_prefetch = 0 : i64, scratch_operands = 6 : i64, tpu.core_type = #tpu.core_type<tc>, window_params = [{transform_indices = @transform_0, window_bounds = array<i64: 2, 1, 2688>}, {pipeline_mode = #tpu.pipeline_mode<synchronous>, transform_indices = @transform_1, window_bounds = array<i64: 32, 32>}, {pipeline_mode = #tpu.pipeline_mode<synchronous>, transform_indices = @transform_2, window_bounds = array<i64: 32, 1>}, {pipeline_mode = #tpu.pipeline_mode<synchronous>, transform_indices = @transform_3, window_bounds = array<i64: 16, 288>}, {pipeline_mode = #tpu.pipeline_mode<synchronous>, transform_indices = @transform_4, window_bounds = array<i64: 16, 1>}, {pipeline_mode = #tpu.pipeline_mode<synchronous>, transform_indices = @transform_5, window_bounds = array<i64: 4, 144>}, {pipeline_mode = #tpu.pipeline_mode<synchronous>, transform_indices = @transform_6, window_bounds = array<i64: 4, 1>}, {transform_indices = @transform_7, window_bounds = array<i64: 2, 4, 1792>}]} {
    %cst = arith.constant 0.000000e+00 : f32
    %0 = vector.broadcast %cst : f32 to vector<7x2048xf32>
    %c25 = arith.constant 25 : index
    %c0 = arith.constant 0 : index
    %1 = vector.load %arg9[%c25, %c0] : memref<32x2048xf32, #tpu.memory_space<vmem>>, vector<7x2048xf32>
    tpu.vector_store %arg9[%c25, %c0], %0 {strides = array<i32>} : memref<32x2048xf32, #tpu.memory_space<vmem>>, vector<7x2048xf32>,
    %cst_0 = arith.constant 0.000000e+00 : bf16
    %2 = vector.broadcast %cst_0 : bf16 to vector<32x129xbf16>
    %c0_1 = arith.constant 0 : index
    %c0_2 = arith.constant 0 : index
    %3 = vector.load %arg10[%c0_1, %c0_2] : memref<32x2432xbf16, #tpu.memory_space<vmem>>, vector<32x129xbf16>
    tpu.vector_store %arg10[%c0_1, %c0_2], %2 {strides = array<i32>} : memref<32x2432xbf16, #tpu.memory_space<vmem>>, vector<32x129xbf16>,
    %cst_3 = arith.constant 0.000000e+00 : bf16
    %4 = vector.broadcast %cst_3 : bf16 to vector<32x255xbf16>
    %c0_4 = arith.constant 0 : index
    %c2177 = arith.constant 2177 : index
    %5 = vector.load %arg10[%c0_4, %c2177] : memref<32x2432xbf16, #tpu.memory_space<vmem>>, vector<32x255xbf16>
    tpu.vector_store %arg10[%c0_4, %c2177], %4 {strides = array<i32>} : memref<32x2432xbf16, #tpu.memory_space<vmem>>, vector<32x255xbf16>,
    %cst_5 = arith.constant 0.000000e+00 : bf16
    %6 = vector.broadcast %cst_5 : bf16 to vector<16x129xbf16>
    %c0_6 = arith.constant 0 : index
    %c0_7 = arith.constant 0 : index
    %7 = vector.load %arg11[%c0_6, %c0_7] : memref<16x2432xbf16, #tpu.memory_space<vmem>>, vector<16x129xbf16>
    tpu.vector_store %arg11[%c0_6, %c0_7], %6 {strides = array<i32>} : memref<16x2432xbf16, #tpu.memory_space<vmem>>, vector<16x129xbf16>,
    %cst_8 = arith.constant 0.000000e+00 : bf16
    %8 = vector.broadcast %cst_8 : bf16 to vector<16x255xbf16>
    %c0_9 = arith.constant 0 : index
    %c2177_10 = arith.constant 2177 : index
    %9 = vector.load %arg11[%c0_9, %c2177_10] : memref<16x2432xbf16, #tpu.memory_space<vmem>>, vector<16x255xbf16>
    tpu.vector_store %arg11[%c0_9, %c2177_10], %8 {strides = array<i32>} : memref<16x2432xbf16, #tpu.memory_space<vmem>>, vector<16x255xbf16>,
    %10 = tpu.iota {dimensions = array<i32: 1>} : vector<1x2048xi32>
    %c128_i32 = arith.constant 128 : i32
    %c0_i32 = arith.constant 0 : i32
    %11 = arith.cmpi eq, %c128_i32, %c0_i32 : i32
    %c1_i32 = arith.constant 1 : i32
    %12 = arith.select %11, %c1_i32, %c128_i32 : i32
    %13 = vector.broadcast %12 : i32 to vector<1x2048xi32>
    %14 = arith.remsi %10, %13 : vector<1x2048xi32>
    %c0_i32_11 = arith.constant 0 : i32
    %15 = vector.broadcast %c0_i32_11 : i32 to vector<1x2048xi32>
    %16 = arith.cmpi ne, %14, %15 : vector<1x2048xi32>
    %c0_i32_12 = arith.constant 0 : i32
    %17 = vector.broadcast %c0_i32_12 : i32 to vector<1x2048xi32>
    %18 = arith.cmpi slt, %14, %17 : vector<1x2048xi32>
    %c0_i32_13 = arith.constant 0 : i32
    %19 = arith.cmpi slt, %12, %c0_i32_13 : i32
    %20 = vector.broadcast %19 : i1 to vector<1x2048xi1>
    %21 = vector.broadcast %20 : vector<1x2048xi1> to vector<1x2048xi1>
    %22 = arith.xori %18, %21 : vector<1x2048xi1>
    %23 = arith.andi %22, %16 : vector<1x2048xi1>
    %24 = vector.broadcast %12 : i32 to vector<1x2048xi32>
    %25 = arith.addi %14, %24 : vector<1x2048xi32>
    %26 = arith.select %23, %25, %14 : vector<1x2048xi1>, vector<1x2048xi32>
    %c109_i32 = arith.constant 109 : i32
    %27 = vector.broadcast %c109_i32 : i32 to vector<1x2048xi32>
    %28 = arith.cmpi slt, %26, %27 : vector<1x2048xi32>
    %c0_14 = arith.constant 0 : index
    %c0_15 = arith.constant 0 : index
    %29 = vector.load %arg3[%c0_14, %c0_15] : memref<32x1xf32, #tpu.memory_space<vmem>>, vector<32x1xf32>
    %c0_16 = arith.constant 0 : index
    %c0_17 = arith.constant 0 : index
    %30 = vector.load %arg5[%c0_16, %c0_17] : memref<16x1xf32, #tpu.memory_space<vmem>>, vector<16x1xf32>
    %c0_18 = arith.constant 0 : index
    %c0_19 = arith.constant 0 : index
    %31 = vector.load %arg7[%c0_18, %c0_19] : memref<4x1xf32, #tpu.memory_space<vmem>>, vector<4x1xf32>
    %c0_i32_20 = arith.constant 0 : i32
    %c2_i32 = arith.constant 2 : i32
    %32 = arith.addi %c0_i32_20, %c2_i32 : i32
    %c1_i32_21 = arith.constant 1 : i32
    scf.for %arg15 = %c0_i32_20 to %32 step %c1_i32_21  : i32 {
      %c1_i32_23 = arith.constant 1 : i32
      %33 = arith.muli %arg15, %c1_i32_23 : i32
      %c0_i32_24 = arith.constant 0 : i32
      %34 = arith.addi %c0_i32_24, %33 : i32
      %35 = arith.index_cast %34 : i32 to index
      %c0_25 = arith.constant 0 : index
      %c0_26 = arith.constant 0 : index
      %36 = vector.load %arg1[%35, %c0_25, %c0_26] : memref<2x1x2688xf32, #tpu.memory_space<vmem>>, vector<1x1x2688xf32>
      %37 = vector.shape_cast %36 : vector<1x1x2688xf32> to vector<1x2688xf32>
      %38 = vector.extract_strided_slice %37 {offsets = [0, 0], sizes = [1, 2048], strides = [1, 1]} : vector<1x2688xf32> to vector<1x2048xf32>
      %c0_27 = arith.constant 0 : index
      %c0_28 = arith.constant 0 : index
      %39 = vector.load %arg9[%c0_27, %c0_28] : memref<32x2048xf32, #tpu.memory_space<vmem>>, vector<1x2048xf32>
      tpu.vector_store %arg9[%c0_27, %c0_28], %38 {strides = array<i32>} : memref<32x2048xf32, #tpu.memory_space<vmem>>, vector<1x2048xf32>,
      %40 = vector.extract_strided_slice %37 {offsets = [0, 1], sizes = [1, 2048], strides = [1, 1]} : vector<1x2688xf32> to vector<1x2048xf32>
      %c1 = arith.constant 1 : index
      %c0_29 = arith.constant 0 : index
      %41 = vector.load %arg9[%c1, %c0_29] : memref<32x2048xf32, #tpu.memory_space<vmem>>, vector<1x2048xf32>
      tpu.vector_store %arg9[%c1, %c0_29], %40 {strides = array<i32>} : memref<32x2048xf32, #tpu.memory_space<vmem>>, vector<1x2048xf32>,
      %42 = vector.extract_strided_slice %37 {offsets = [0, 2], sizes = [1, 2048], strides = [1, 1]} : vector<1x2688xf32> to vector<1x2048xf32>
      %c2 = arith.constant 2 : index
      %c0_30 = arith.constant 0 : index
      %43 = vector.load %arg9[%c2, %c0_30] : memref<32x2048xf32, #tpu.memory_space<vmem>>, vector<1x2048xf32>
      tpu.vector_store %arg9[%c2, %c0_30], %42 {strides = array<i32>} : memref<32x2048xf32, #tpu.memory_space<vmem>>, vector<1x2048xf32>,
      %44 = vector.extract_strided_slice %37 {offsets = [0, 3], sizes = [1, 2048], strides = [1, 1]} : vector<1x2688xf32> to vector<1x2048xf32>
      %c3 = arith.constant 3 : index
      %c0_31 = arith.constant 0 : index
      %45 = vector.load %arg9[%c3, %c0_31] : memref<32x2048xf32, #tpu.memory_space<vmem>>, vector<1x2048xf32>
      tpu.vector_store %arg9[%c3, %c0_31], %44 {strides = array<i32>} : memref<32x2048xf32, #tpu.memory_space<vmem>>, vector<1x2048xf32>,
      %46 = vector.extract_strided_slice %37 {offsets = [0, 4], sizes = [1, 2048], strides = [1, 1]} : vector<1x2688xf32> to vector<1x2048xf32>
      %c4 = arith.constant 4 : index
      %c0_32 = arith.constant 0 : index
      %47 = vector.load %arg9[%c4, %c0_32] : memref<32x2048xf32, #tpu.memory_space<vmem>>, vector<1x2048xf32>
      tpu.vector_store %arg9[%c4, %c0_32], %46 {strides = array<i32>} : memref<32x2048xf32, #tpu.memory_space<vmem>>, vector<1x2048xf32>,
      %48 = vector.extract_strided_slice %37 {offsets = [0, 128], sizes = [1, 2048], strides = [1, 1]} : vector<1x2688xf32> to vector<1x2048xf32>
      %c5 = arith.constant 5 : index
      %c0_33 = arith.constant 0 : index
      %49 = vector.load %arg9[%c5, %c0_33] : memref<32x2048xf32, #tpu.memory_space<vmem>>, vector<1x2048xf32>
      tpu.vector_store %arg9[%c5, %c0_33], %48 {strides = array<i32>} : memref<32x2048xf32, #tpu.memory_space<vmem>>, vector<1x2048xf32>,
      %50 = vector.extract_strided_slice %37 {offsets = [0, 129], sizes = [1, 2048], strides = [1, 1]} : vector<1x2688xf32> to vector<1x2048xf32>
      %c6 = arith.constant 6 : index
      %c0_34 = arith.constant 0 : index
      %51 = vector.load %arg9[%c6, %c0_34] : memref<32x2048xf32, #tpu.memory_space<vmem>>, vector<1x2048xf32>
      tpu.vector_store %arg9[%c6, %c0_34], %50 {strides = array<i32>} : memref<32x2048xf32, #tpu.memory_space<vmem>>, vector<1x2048xf32>,
      %52 = vector.extract_strided_slice %37 {offsets = [0, 130], sizes = [1, 2048], strides = [1, 1]} : vector<1x2688xf32> to vector<1x2048xf32>
      %c7 = arith.constant 7 : index
      %c0_35 = arith.constant 0 : index
      %53 = vector.load %arg9[%c7, %c0_35] : memref<32x2048xf32, #tpu.memory_space<vmem>>, vector<1x2048xf32>
      tpu.vector_store %arg9[%c7, %c0_35], %52 {strides = array<i32>} : memref<32x2048xf32, #tpu.memory_space<vmem>>, vector<1x2048xf32>,
      %54 = vector.extract_strided_slice %37 {offsets = [0, 131], sizes = [1, 2048], strides = [1, 1]} : vector<1x2688xf32> to vector<1x2048xf32>
      %c8 = arith.constant 8 : index
      %c0_36 = arith.constant 0 : index
      %55 = vector.load %arg9[%c8, %c0_36] : memref<32x2048xf32, #tpu.memory_space<vmem>>, vector<1x2048xf32>
      tpu.vector_store %arg9[%c8, %c0_36], %54 {strides = array<i32>} : memref<32x2048xf32, #tpu.memory_space<vmem>>, vector<1x2048xf32>,
      %56 = vector.extract_strided_slice %37 {offsets = [0, 132], sizes = [1, 2048], strides = [1, 1]} : vector<1x2688xf32> to vector<1x2048xf32>
      %c9 = arith.constant 9 : index
      %c0_37 = arith.constant 0 : index
      %57 = vector.load %arg9[%c9, %c0_37] : memref<32x2048xf32, #tpu.memory_space<vmem>>, vector<1x2048xf32>
      tpu.vector_store %arg9[%c9, %c0_37], %56 {strides = array<i32>} : memref<32x2048xf32, #tpu.memory_space<vmem>>, vector<1x2048xf32>,
      %58 = vector.extract_strided_slice %37 {offsets = [0, 256], sizes = [1, 2048], strides = [1, 1]} : vector<1x2688xf32> to vector<1x2048xf32>
      %c10 = arith.constant 10 : index
      %c0_38 = arith.constant 0 : index
      %59 = vector.load %arg9[%c10, %c0_38] : memref<32x2048xf32, #tpu.memory_space<vmem>>, vector<1x2048xf32>
      tpu.vector_store %arg9[%c10, %c0_38], %58 {strides = array<i32>} : memref<32x2048xf32, #tpu.memory_space<vmem>>, vector<1x2048xf32>,
      %60 = vector.extract_strided_slice %37 {offsets = [0, 257], sizes = [1, 2048], strides = [1, 1]} : vector<1x2688xf32> to vector<1x2048xf32>
      %c11 = arith.constant 11 : index
      %c0_39 = arith.constant 0 : index
      %61 = vector.load %arg9[%c11, %c0_39] : memref<32x2048xf32, #tpu.memory_space<vmem>>, vector<1x2048xf32>
      tpu.vector_store %arg9[%c11, %c0_39], %60 {strides = array<i32>} : memref<32x2048xf32, #tpu.memory_space<vmem>>, vector<1x2048xf32>,
      %62 = vector.extract_strided_slice %37 {offsets = [0, 258], sizes = [1, 2048], strides = [1, 1]} : vector<1x2688xf32> to vector<1x2048xf32>
      %c12 = arith.constant 12 : index
      %c0_40 = arith.constant 0 : index
      %63 = vector.load %arg9[%c12, %c0_40] : memref<32x2048xf32, #tpu.memory_space<vmem>>, vector<1x2048xf32>
      tpu.vector_store %arg9[%c12, %c0_40], %62 {strides = array<i32>} : memref<32x2048xf32, #tpu.memory_space<vmem>>, vector<1x2048xf32>,
      %64 = vector.extract_strided_slice %37 {offsets = [0, 259], sizes = [1, 2048], strides = [1, 1]} : vector<1x2688xf32> to vector<1x2048xf32>
      %c13 = arith.constant 13 : index
      %c0_41 = arith.constant 0 : index
      %65 = vector.load %arg9[%c13, %c0_41] : memref<32x2048xf32, #tpu.memory_space<vmem>>, vector<1x2048xf32>
      tpu.vector_store %arg9[%c13, %c0_41], %64 {strides = array<i32>} : memref<32x2048xf32, #tpu.memory_space<vmem>>, vector<1x2048xf32>,
      %66 = vector.extract_strided_slice %37 {offsets = [0, 260], sizes = [1, 2048], strides = [1, 1]} : vector<1x2688xf32> to vector<1x2048xf32>
      %c14 = arith.constant 14 : index
      %c0_42 = arith.constant 0 : index
      %67 = vector.load %arg9[%c14, %c0_42] : memref<32x2048xf32, #tpu.memory_space<vmem>>, vector<1x2048xf32>
      tpu.vector_store %arg9[%c14, %c0_42], %66 {strides = array<i32>} : memref<32x2048xf32, #tpu.memory_space<vmem>>, vector<1x2048xf32>,
      %68 = vector.extract_strided_slice %37 {offsets = [0, 384], sizes = [1, 2048], strides = [1, 1]} : vector<1x2688xf32> to vector<1x2048xf32>
      %c15 = arith.constant 15 : index
      %c0_43 = arith.constant 0 : index
      %69 = vector.load %arg9[%c15, %c0_43] : memref<32x2048xf32, #tpu.memory_space<vmem>>, vector<1x2048xf32>
      tpu.vector_store %arg9[%c15, %c0_43], %68 {strides = array<i32>} : memref<32x2048xf32, #tpu.memory_space<vmem>>, vector<1x2048xf32>,
      %70 = vector.extract_strided_slice %37 {offsets = [0, 385], sizes = [1, 2048], strides = [1, 1]} : vector<1x2688xf32> to vector<1x2048xf32>
      %c16 = arith.constant 16 : index
      %c0_44 = arith.constant 0 : index
      %71 = vector.load %arg9[%c16, %c0_44] : memref<32x2048xf32, #tpu.memory_space<vmem>>, vector<1x2048xf32>
      tpu.vector_store %arg9[%c16, %c0_44], %70 {strides = array<i32>} : memref<32x2048xf32, #tpu.memory_space<vmem>>, vector<1x2048xf32>,
      %72 = vector.extract_strided_slice %37 {offsets = [0, 386], sizes = [1, 2048], strides = [1, 1]} : vector<1x2688xf32> to vector<1x2048xf32>
      %c17 = arith.constant 17 : index
      %c0_45 = arith.constant 0 : index
      %73 = vector.load %arg9[%c17, %c0_45] : memref<32x2048xf32, #tpu.memory_space<vmem>>, vector<1x2048xf32>
      tpu.vector_store %arg9[%c17, %c0_45], %72 {strides = array<i32>} : memref<32x2048xf32, #tpu.memory_space<vmem>>, vector<1x2048xf32>,
      %74 = vector.extract_strided_slice %37 {offsets = [0, 387], sizes = [1, 2048], strides = [1, 1]} : vector<1x2688xf32> to vector<1x2048xf32>
      %c18 = arith.constant 18 : index
      %c0_46 = arith.constant 0 : index
      %75 = vector.load %arg9[%c18, %c0_46] : memref<32x2048xf32, #tpu.memory_space<vmem>>, vector<1x2048xf32>
      tpu.vector_store %arg9[%c18, %c0_46], %74 {strides = array<i32>} : memref<32x2048xf32, #tpu.memory_space<vmem>>, vector<1x2048xf32>,
      %76 = vector.extract_strided_slice %37 {offsets = [0, 388], sizes = [1, 2048], strides = [1, 1]} : vector<1x2688xf32> to vector<1x2048xf32>
      %c19 = arith.constant 19 : index
      %c0_47 = arith.constant 0 : index
      %77 = vector.load %arg9[%c19, %c0_47] : memref<32x2048xf32, #tpu.memory_space<vmem>>, vector<1x2048xf32>
      tpu.vector_store %arg9[%c19, %c0_47], %76 {strides = array<i32>} : memref<32x2048xf32, #tpu.memory_space<vmem>>, vector<1x2048xf32>,
      %78 = vector.extract_strided_slice %37 {offsets = [0, 512], sizes = [1, 2048], strides = [1, 1]} : vector<1x2688xf32> to vector<1x2048xf32>
      %c20 = arith.constant 20 : index
      %c0_48 = arith.constant 0 : index
      %79 = vector.load %arg9[%c20, %c0_48] : memref<32x2048xf32, #tpu.memory_space<vmem>>, vector<1x2048xf32>
      tpu.vector_store %arg9[%c20, %c0_48], %78 {strides = array<i32>} : memref<32x2048xf32, #tpu.memory_space<vmem>>, vector<1x2048xf32>,
      %80 = vector.extract_strided_slice %37 {offsets = [0, 513], sizes = [1, 2048], strides = [1, 1]} : vector<1x2688xf32> to vector<1x2048xf32>
      %c21 = arith.constant 21 : index
      %c0_49 = arith.constant 0 : index
      %81 = vector.load %arg9[%c21, %c0_49] : memref<32x2048xf32, #tpu.memory_space<vmem>>, vector<1x2048xf32>
      tpu.vector_store %arg9[%c21, %c0_49], %80 {strides = array<i32>} : memref<32x2048xf32, #tpu.memory_space<vmem>>, vector<1x2048xf32>,
      %82 = vector.extract_strided_slice %37 {offsets = [0, 514], sizes = [1, 2048], strides = [1, 1]} : vector<1x2688xf32> to vector<1x2048xf32>
      %c22 = arith.constant 22 : index
      %c0_50 = arith.constant 0 : index
      %83 = vector.load %arg9[%c22, %c0_50] : memref<32x2048xf32, #tpu.memory_space<vmem>>, vector<1x2048xf32>
      tpu.vector_store %arg9[%c22, %c0_50], %82 {strides = array<i32>} : memref<32x2048xf32, #tpu.memory_space<vmem>>, vector<1x2048xf32>,
      %84 = vector.extract_strided_slice %37 {offsets = [0, 515], sizes = [1, 2048], strides = [1, 1]} : vector<1x2688xf32> to vector<1x2048xf32>
      %c23 = arith.constant 23 : index
      %c0_51 = arith.constant 0 : index
      %85 = vector.load %arg9[%c23, %c0_51] : memref<32x2048xf32, #tpu.memory_space<vmem>>, vector<1x2048xf32>
      tpu.vector_store %arg9[%c23, %c0_51], %84 {strides = array<i32>} : memref<32x2048xf32, #tpu.memory_space<vmem>>, vector<1x2048xf32>,
      %86 = vector.extract_strided_slice %37 {offsets = [0, 516], sizes = [1, 2048], strides = [1, 1]} : vector<1x2688xf32> to vector<1x2048xf32>
      %c24 = arith.constant 24 : index
      %c0_52 = arith.constant 0 : index
      %87 = vector.load %arg9[%c24, %c0_52] : memref<32x2048xf32, #tpu.memory_space<vmem>>, vector<1x2048xf32>
      tpu.vector_store %arg9[%c24, %c0_52], %86 {strides = array<i32>} : memref<32x2048xf32, #tpu.memory_space<vmem>>, vector<1x2048xf32>,
      %c0_53 = arith.constant 0 : index
      %c0_54 = arith.constant 0 : index
      %88 = vector.load %arg2[%c0_53, %c0_54] : memref<32x32xf32, #tpu.memory_space<vmem>>, vector<32x32xf32>
      %c0_55 = arith.constant 0 : index
      %c0_56 = arith.constant 0 : index
      %89 = vector.load %arg9[%c0_55, %c0_56] : memref<32x2048xf32, #tpu.memory_space<vmem>>, vector<32x2048xf32>
      %cst_57 = arith.constant dense<0.000000e+00> : vector<32x2048xf32>
      %90 = tpu.matmul %88, %89, %cst_57 {dimension_numbers = #tpu.dot_dimension_numbers<[1], [0], [0], [1], [0, 0, 1, 1], [], []>} : vector<32x32xf32>, vector<32x2048xf32>, vector<32x2048xf32> -> vector<32x2048xf32>
      %91 = vector.broadcast %29 : vector<32x1xf32> to vector<32x2048xf32>
      %92 = arith.addf %90, %91 : vector<32x2048xf32>
      %cst_58 = arith.constant 0.000000e+00 : f32
      %93 = vector.broadcast %cst_58 : f32 to vector<32x2048xf32>
      %94 = arith.maximumf %92, %93 : vector<32x2048xf32>
      %cst_59 = arith.constant 0.000000e+00 : f32
      %95 = vector.shape_cast %28 : vector<1x2048xi1> to vector<1x2048xi1>
      %96 = vector.broadcast %95 : vector<1x2048xi1> to vector<32x2048xi1>
      %97 = vector.broadcast %cst_59 : f32 to vector<32x2048xf32>
      %98 = arith.select %96, %94, %97 : vector<32x2048xi1>, vector<32x2048xf32>
      %99 = arith.truncf %98 : vector<32x2048xf32> to vector<32x2048xbf16>
      %c0_60 = arith.constant 0 : index
      %c129 = arith.constant 129 : index
      %100 = vector.load %arg10[%c0_60, %c129] : memref<32x2432xbf16, #tpu.memory_space<vmem>>, vector<32x2048xbf16>
      tpu.vector_store %arg10[%c0_60, %c129], %99 {strides = array<i32>} : memref<32x2432xbf16, #tpu.memory_space<vmem>>, vector<32x2048xbf16>,
      %c0_61 = arith.constant 0 : index
      %c0_62 = arith.constant 0 : index
      %101 = vector.load %arg10[%c0_61, %c0_62] : memref<32x2432xbf16, #tpu.memory_space<vmem>>, vector<32x2048xbf16>
      %c0_63 = arith.constant 0 : index
      %c0_64 = arith.constant 0 : index
      %102 = vector.load %arg12[%c0_63, %c0_64] : memref<288x2048xbf16, #tpu.memory_space<vmem>>, vector<32x2048xbf16>
      tpu.vector_store %arg12[%c0_63, %c0_64], %101 {strides = array<i32>} : memref<288x2048xbf16, #tpu.memory_space<vmem>>, vector<32x2048xbf16>,
      %c0_65 = arith.constant 0 : index
      %c1_66 = arith.constant 1 : index
      %103 = vector.load %arg10[%c0_65, %c1_66] : memref<32x2432xbf16, #tpu.memory_space<vmem>>, vector<32x2048xbf16>
      %c32 = arith.constant 32 : index
      %c0_67 = arith.constant 0 : index
      %104 = vector.load %arg12[%c32, %c0_67] : memref<288x2048xbf16, #tpu.memory_space<vmem>>, vector<32x2048xbf16>
      tpu.vector_store %arg12[%c32, %c0_67], %103 {strides = array<i32>} : memref<288x2048xbf16, #tpu.memory_space<vmem>>, vector<32x2048xbf16>,
      %c0_68 = arith.constant 0 : index
      %c2_69 = arith.constant 2 : index
      %105 = vector.load %arg10[%c0_68, %c2_69] : memref<32x2432xbf16, #tpu.memory_space<vmem>>, vector<32x2048xbf16>
      %c64 = arith.constant 64 : index
      %c0_70 = arith.constant 0 : index
      %106 = vector.load %arg12[%c64, %c0_70] : memref<288x2048xbf16, #tpu.memory_space<vmem>>, vector<32x2048xbf16>
      tpu.vector_store %arg12[%c64, %c0_70], %105 {strides = array<i32>} : memref<288x2048xbf16, #tpu.memory_space<vmem>>, vector<32x2048xbf16>,
      %c0_71 = arith.constant 0 : index
      %c128 = arith.constant 128 : index
      %107 = vector.load %arg10[%c0_71, %c128] : memref<32x2432xbf16, #tpu.memory_space<vmem>>, vector<32x2048xbf16>
      %c96 = arith.constant 96 : index
      %c0_72 = arith.constant 0 : index
      %108 = vector.load %arg12[%c96, %c0_72] : memref<288x2048xbf16, #tpu.memory_space<vmem>>, vector<32x2048xbf16>
      tpu.vector_store %arg12[%c96, %c0_72], %107 {strides = array<i32>} : memref<288x2048xbf16, #tpu.memory_space<vmem>>, vector<32x2048xbf16>,
      %c0_73 = arith.constant 0 : index
      %c129_74 = arith.constant 129 : index
      %109 = vector.load %arg10[%c0_73, %c129_74] : memref<32x2432xbf16, #tpu.memory_space<vmem>>, vector<32x2048xbf16>
      %c128_75 = arith.constant 128 : index
      %c0_76 = arith.constant 0 : index
      %110 = vector.load %arg12[%c128_75, %c0_76] : memref<288x2048xbf16, #tpu.memory_space<vmem>>, vector<32x2048xbf16>
      tpu.vector_store %arg12[%c128_75, %c0_76], %109 {strides = array<i32>} : memref<288x2048xbf16, #tpu.memory_space<vmem>>, vector<32x2048xbf16>,
      %c0_77 = arith.constant 0 : index
      %c130 = arith.constant 130 : index
      %111 = vector.load %arg10[%c0_77, %c130] : memref<32x2432xbf16, #tpu.memory_space<vmem>>, vector<32x2048xbf16>
      %c160 = arith.constant 160 : index
      %c0_78 = arith.constant 0 : index
      %112 = vector.load %arg12[%c160, %c0_78] : memref<288x2048xbf16, #tpu.memory_space<vmem>>, vector<32x2048xbf16>
      tpu.vector_store %arg12[%c160, %c0_78], %111 {strides = array<i32>} : memref<288x2048xbf16, #tpu.memory_space<vmem>>, vector<32x2048xbf16>,
      %c0_79 = arith.constant 0 : index
      %c256 = arith.constant 256 : index
      %113 = vector.load %arg10[%c0_79, %c256] : memref<32x2432xbf16, #tpu.memory_space<vmem>>, vector<32x2048xbf16>
      %c192 = arith.constant 192 : index
      %c0_80 = arith.constant 0 : index
      %114 = vector.load %arg12[%c192, %c0_80] : memref<288x2048xbf16, #tpu.memory_space<vmem>>, vector<32x2048xbf16>
      tpu.vector_store %arg12[%c192, %c0_80], %113 {strides = array<i32>} : memref<288x2048xbf16, #tpu.memory_space<vmem>>, vector<32x2048xbf16>,
      %c0_81 = arith.constant 0 : index
      %c257 = arith.constant 257 : index
      %115 = vector.load %arg10[%c0_81, %c257] : memref<32x2432xbf16, #tpu.memory_space<vmem>>, vector<32x2048xbf16>
      %c224 = arith.constant 224 : index
      %c0_82 = arith.constant 0 : index
      %116 = vector.load %arg12[%c224, %c0_82] : memref<288x2048xbf16, #tpu.memory_space<vmem>>, vector<32x2048xbf16>
      tpu.vector_store %arg12[%c224, %c0_82], %115 {strides = array<i32>} : memref<288x2048xbf16, #tpu.memory_space<vmem>>, vector<32x2048xbf16>,
      %c0_83 = arith.constant 0 : index
      %c258 = arith.constant 258 : index
      %117 = vector.load %arg10[%c0_83, %c258] : memref<32x2432xbf16, #tpu.memory_space<vmem>>, vector<32x2048xbf16>
      %c256_84 = arith.constant 256 : index
      %c0_85 = arith.constant 0 : index
      %118 = vector.load %arg12[%c256_84, %c0_85] : memref<288x2048xbf16, #tpu.memory_space<vmem>>, vector<32x2048xbf16>
      tpu.vector_store %arg12[%c256_84, %c0_85], %117 {strides = array<i32>} : memref<288x2048xbf16, #tpu.memory_space<vmem>>, vector<32x2048xbf16>,
      %c0_86 = arith.constant 0 : index
      %c0_87 = arith.constant 0 : index
      %119 = vector.load %arg4[%c0_86, %c0_87] : memref<16x288xbf16, #tpu.memory_space<vmem>>, vector<16x288xbf16>
      %c0_88 = arith.constant 0 : index
      %c0_89 = arith.constant 0 : index
      %120 = vector.load %arg12[%c0_88, %c0_89] : memref<288x2048xbf16, #tpu.memory_space<vmem>>, vector<288x2048xbf16>
      %cst_90 = arith.constant dense<0.000000e+00> : vector<16x2048xf32>
      %121 = tpu.matmul %119, %120, %cst_90 {dimension_numbers = #tpu.dot_dimension_numbers<[1], [0], [0], [1], [0, 0, 1, 1], [], []>} : vector<16x288xbf16>, vector<288x2048xbf16>, vector<16x2048xf32> -> vector<16x2048xf32>
      %122 = vector.broadcast %30 : vector<16x1xf32> to vector<16x2048xf32>
      %123 = arith.addf %121, %122 : vector<16x2048xf32>
      %cst_91 = arith.constant 0.000000e+00 : f32
      %124 = vector.broadcast %cst_91 : f32 to vector<16x2048xf32>
      %125 = arith.maximumf %123, %124 : vector<16x2048xf32>
      %cst_92 = arith.constant 0.000000e+00 : f32
      %126 = vector.shape_cast %28 : vector<1x2048xi1> to vector<1x2048xi1>
      %127 = vector.broadcast %126 : vector<1x2048xi1> to vector<16x2048xi1>
      %128 = vector.broadcast %cst_92 : f32 to vector<16x2048xf32>
      %129 = arith.select %127, %125, %128 : vector<16x2048xi1>, vector<16x2048xf32>
      %130 = arith.truncf %129 : vector<16x2048xf32> to vector<16x2048xbf16>
      %c0_93 = arith.constant 0 : index
      %c129_94 = arith.constant 129 : index
      %131 = vector.load %arg11[%c0_93, %c129_94] : memref<16x2432xbf16, #tpu.memory_space<vmem>>, vector<16x2048xbf16>
      tpu.vector_store %arg11[%c0_93, %c129_94], %130 {strides = array<i32>} : memref<16x2432xbf16, #tpu.memory_space<vmem>>, vector<16x2048xbf16>,
      %c0_95 = arith.constant 0 : index
      %c0_96 = arith.constant 0 : index
      %132 = vector.load %arg11[%c0_95, %c0_96] : memref<16x2432xbf16, #tpu.memory_space<vmem>>, vector<16x2048xbf16>
      %c0_97 = arith.constant 0 : index
      %c0_98 = arith.constant 0 : index
      %133 = vector.load %arg13[%c0_97, %c0_98] : memref<144x2048xbf16, #tpu.memory_space<vmem>>, vector<16x2048xbf16>
      tpu.vector_store %arg13[%c0_97, %c0_98], %132 {strides = array<i32>} : memref<144x2048xbf16, #tpu.memory_space<vmem>>, vector<16x2048xbf16>,
      %c0_99 = arith.constant 0 : index
      %c1_100 = arith.constant 1 : index
      %134 = vector.load %arg11[%c0_99, %c1_100] : memref<16x2432xbf16, #tpu.memory_space<vmem>>, vector<16x2048xbf16>
      %c16_101 = arith.constant 16 : index
      %c0_102 = arith.constant 0 : index
      %135 = vector.load %arg13[%c16_101, %c0_102] : memref<144x2048xbf16, #tpu.memory_space<vmem>>, vector<16x2048xbf16>
      tpu.vector_store %arg13[%c16_101, %c0_102], %134 {strides = array<i32>} : memref<144x2048xbf16, #tpu.memory_space<vmem>>, vector<16x2048xbf16>,
      %c0_103 = arith.constant 0 : index
      %c2_104 = arith.constant 2 : index
      %136 = vector.load %arg11[%c0_103, %c2_104] : memref<16x2432xbf16, #tpu.memory_space<vmem>>, vector<16x2048xbf16>
      %c32_105 = arith.constant 32 : index
      %c0_106 = arith.constant 0 : index
      %137 = vector.load %arg13[%c32_105, %c0_106] : memref<144x2048xbf16, #tpu.memory_space<vmem>>, vector<16x2048xbf16>
      tpu.vector_store %arg13[%c32_105, %c0_106], %136 {strides = array<i32>} : memref<144x2048xbf16, #tpu.memory_space<vmem>>, vector<16x2048xbf16>,
      %c0_107 = arith.constant 0 : index
      %c128_108 = arith.constant 128 : index
      %138 = vector.load %arg11[%c0_107, %c128_108] : memref<16x2432xbf16, #tpu.memory_space<vmem>>, vector<16x2048xbf16>
      %c48 = arith.constant 48 : index
      %c0_109 = arith.constant 0 : index
      %139 = vector.load %arg13[%c48, %c0_109] : memref<144x2048xbf16, #tpu.memory_space<vmem>>, vector<16x2048xbf16>
      tpu.vector_store %arg13[%c48, %c0_109], %138 {strides = array<i32>} : memref<144x2048xbf16, #tpu.memory_space<vmem>>, vector<16x2048xbf16>,
      %c0_110 = arith.constant 0 : index
      %c129_111 = arith.constant 129 : index
      %140 = vector.load %arg11[%c0_110, %c129_111] : memref<16x2432xbf16, #tpu.memory_space<vmem>>, vector<16x2048xbf16>
      %c64_112 = arith.constant 64 : index
      %c0_113 = arith.constant 0 : index
      %141 = vector.load %arg13[%c64_112, %c0_113] : memref<144x2048xbf16, #tpu.memory_space<vmem>>, vector<16x2048xbf16>
      tpu.vector_store %arg13[%c64_112, %c0_113], %140 {strides = array<i32>} : memref<144x2048xbf16, #tpu.memory_space<vmem>>, vector<16x2048xbf16>,
      %c0_114 = arith.constant 0 : index
      %c130_115 = arith.constant 130 : index
      %142 = vector.load %arg11[%c0_114, %c130_115] : memref<16x2432xbf16, #tpu.memory_space<vmem>>, vector<16x2048xbf16>
      %c80 = arith.constant 80 : index
      %c0_116 = arith.constant 0 : index
      %143 = vector.load %arg13[%c80, %c0_116] : memref<144x2048xbf16, #tpu.memory_space<vmem>>, vector<16x2048xbf16>
      tpu.vector_store %arg13[%c80, %c0_116], %142 {strides = array<i32>} : memref<144x2048xbf16, #tpu.memory_space<vmem>>, vector<16x2048xbf16>,
      %c0_117 = arith.constant 0 : index
      %c256_118 = arith.constant 256 : index
      %144 = vector.load %arg11[%c0_117, %c256_118] : memref<16x2432xbf16, #tpu.memory_space<vmem>>, vector<16x2048xbf16>
      %c96_119 = arith.constant 96 : index
      %c0_120 = arith.constant 0 : index
      %145 = vector.load %arg13[%c96_119, %c0_120] : memref<144x2048xbf16, #tpu.memory_space<vmem>>, vector<16x2048xbf16>
      tpu.vector_store %arg13[%c96_119, %c0_120], %144 {strides = array<i32>} : memref<144x2048xbf16, #tpu.memory_space<vmem>>, vector<16x2048xbf16>,
      %c0_121 = arith.constant 0 : index
      %c257_122 = arith.constant 257 : index
      %146 = vector.load %arg11[%c0_121, %c257_122] : memref<16x2432xbf16, #tpu.memory_space<vmem>>, vector<16x2048xbf16>
      %c112 = arith.constant 112 : index
      %c0_123 = arith.constant 0 : index
      %147 = vector.load %arg13[%c112, %c0_123] : memref<144x2048xbf16, #tpu.memory_space<vmem>>, vector<16x2048xbf16>
      tpu.vector_store %arg13[%c112, %c0_123], %146 {strides = array<i32>} : memref<144x2048xbf16, #tpu.memory_space<vmem>>, vector<16x2048xbf16>,
      %c0_124 = arith.constant 0 : index
      %c258_125 = arith.constant 258 : index
      %148 = vector.load %arg11[%c0_124, %c258_125] : memref<16x2432xbf16, #tpu.memory_space<vmem>>, vector<16x2048xbf16>
      %c128_126 = arith.constant 128 : index
      %c0_127 = arith.constant 0 : index
      %149 = vector.load %arg13[%c128_126, %c0_127] : memref<144x2048xbf16, #tpu.memory_space<vmem>>, vector<16x2048xbf16>
      tpu.vector_store %arg13[%c128_126, %c0_127], %148 {strides = array<i32>} : memref<144x2048xbf16, #tpu.memory_space<vmem>>, vector<16x2048xbf16>,
      %c0_128 = arith.constant 0 : index
      %c0_129 = arith.constant 0 : index
      %150 = vector.load %arg6[%c0_128, %c0_129] : memref<4x144xbf16, #tpu.memory_space<vmem>>, vector<4x144xbf16>
      %c0_130 = arith.constant 0 : index
      %c0_131 = arith.constant 0 : index
      %151 = vector.load %arg13[%c0_130, %c0_131] : memref<144x2048xbf16, #tpu.memory_space<vmem>>, vector<144x2048xbf16>
      %cst_132 = arith.constant dense<0.000000e+00> : vector<4x2048xf32>
      %152 = tpu.matmul %150, %151, %cst_132 {dimension_numbers = #tpu.dot_dimension_numbers<[1], [0], [0], [1], [0, 0, 1, 1], [], []>} : vector<4x144xbf16>, vector<144x2048xbf16>, vector<4x2048xf32> -> vector<4x2048xf32>
      %153 = vector.broadcast %31 : vector<4x1xf32> to vector<4x2048xf32>
      %154 = arith.addf %152, %153 : vector<4x2048xf32>
      %cst_133 = arith.constant 0.000000e+00 : f32
      %155 = vector.broadcast %cst_133 : f32 to vector<4x2048xf32>
      %156 = arith.maximumf %154, %155 : vector<4x2048xf32>
      %157 = arith.truncf %156 : vector<4x2048xf32> to vector<4x2048xbf16>
      %158 = vector.extract_strided_slice %157 {offsets = [0, 0], sizes = [4, 112], strides = [1, 1]} : vector<4x2048xbf16> to vector<4x112xbf16>
      %c0_134 = arith.constant 0 : index
      %c0_135 = arith.constant 0 : index
      %159 = vector.load %arg14[%c0_134, %c0_135] : memref<4x1792xbf16, #tpu.memory_space<vmem>>, vector<4x112xbf16>
      tpu.vector_store %arg14[%c0_134, %c0_135], %158 {strides = array<i32>} : memref<4x1792xbf16, #tpu.memory_space<vmem>>, vector<4x112xbf16>,
      %160 = vector.extract_strided_slice %157 {offsets = [0, 128], sizes = [4, 112], strides = [1, 1]} : vector<4x2048xbf16> to vector<4x112xbf16>
      %c0_136 = arith.constant 0 : index
      %c112_137 = arith.constant 112 : index
      %161 = vector.load %arg14[%c0_136, %c112_137] : memref<4x1792xbf16, #tpu.memory_space<vmem>>, vector<4x112xbf16>
      tpu.vector_store %arg14[%c0_136, %c112_137], %160 {strides = array<i32>} : memref<4x1792xbf16, #tpu.memory_space<vmem>>, vector<4x112xbf16>,
      %162 = vector.extract_strided_slice %157 {offsets = [0, 256], sizes = [4, 112], strides = [1, 1]} : vector<4x2048xbf16> to vector<4x112xbf16>
      %c0_138 = arith.constant 0 : index
      %c224_139 = arith.constant 224 : index
      %163 = vector.load %arg14[%c0_138, %c224_139] : memref<4x1792xbf16, #tpu.memory_space<vmem>>, vector<4x112xbf16>
      tpu.vector_store %arg14[%c0_138, %c224_139], %162 {strides = array<i32>} : memref<4x1792xbf16, #tpu.memory_space<vmem>>, vector<4x112xbf16>,
      %164 = vector.extract_strided_slice %157 {offsets = [0, 384], sizes = [4, 112], strides = [1, 1]} : vector<4x2048xbf16> to vector<4x112xbf16>
      %c0_140 = arith.constant 0 : index
      %c336 = arith.constant 336 : index
      %165 = vector.load %arg14[%c0_140, %c336] : memref<4x1792xbf16, #tpu.memory_space<vmem>>, vector<4x112xbf16>
      tpu.vector_store %arg14[%c0_140, %c336], %164 {strides = array<i32>} : memref<4x1792xbf16, #tpu.memory_space<vmem>>, vector<4x112xbf16>,
      %166 = vector.extract_strided_slice %157 {offsets = [0, 512], sizes = [4, 112], strides = [1, 1]} : vector<4x2048xbf16> to vector<4x112xbf16>
      %c0_141 = arith.constant 0 : index
      %c448 = arith.constant 448 : index
      %167 = vector.load %arg14[%c0_141, %c448] : memref<4x1792xbf16, #tpu.memory_space<vmem>>, vector<4x112xbf16>
      tpu.vector_store %arg14[%c0_141, %c448], %166 {strides = array<i32>} : memref<4x1792xbf16, #tpu.memory_space<vmem>>, vector<4x112xbf16>,
      %168 = vector.extract_strided_slice %157 {offsets = [0, 640], sizes = [4, 112], strides = [1, 1]} : vector<4x2048xbf16> to vector<4x112xbf16>
      %c0_142 = arith.constant 0 : index
      %c560 = arith.constant 560 : index
      %169 = vector.load %arg14[%c0_142, %c560] : memref<4x1792xbf16, #tpu.memory_space<vmem>>, vector<4x112xbf16>
      tpu.vector_store %arg14[%c0_142, %c560], %168 {strides = array<i32>} : memref<4x1792xbf16, #tpu.memory_space<vmem>>, vector<4x112xbf16>,
      %170 = vector.extract_strided_slice %157 {offsets = [0, 768], sizes = [4, 112], strides = [1, 1]} : vector<4x2048xbf16> to vector<4x112xbf16>
      %c0_143 = arith.constant 0 : index
      %c672 = arith.constant 672 : index
      %171 = vector.load %arg14[%c0_143, %c672] : memref<4x1792xbf16, #tpu.memory_space<vmem>>, vector<4x112xbf16>
      tpu.vector_store %arg14[%c0_143, %c672], %170 {strides = array<i32>} : memref<4x1792xbf16, #tpu.memory_space<vmem>>, vector<4x112xbf16>,
      %172 = vector.extract_strided_slice %157 {offsets = [0, 896], sizes = [4, 112], strides = [1, 1]} : vector<4x2048xbf16> to vector<4x112xbf16>
      %c0_144 = arith.constant 0 : index
      %c784 = arith.constant 784 : index
      %173 = vector.load %arg14[%c0_144, %c784] : memref<4x1792xbf16, #tpu.memory_space<vmem>>, vector<4x112xbf16>
      tpu.vector_store %arg14[%c0_144, %c784], %172 {strides = array<i32>} : memref<4x1792xbf16, #tpu.memory_space<vmem>>, vector<4x112xbf16>,
      %174 = vector.extract_strided_slice %157 {offsets = [0, 1024], sizes = [4, 112], strides = [1, 1]} : vector<4x2048xbf16> to vector<4x112xbf16>
      %c0_145 = arith.constant 0 : index
      %c896 = arith.constant 896 : index
      %175 = vector.load %arg14[%c0_145, %c896] : memref<4x1792xbf16, #tpu.memory_space<vmem>>, vector<4x112xbf16>
      tpu.vector_store %arg14[%c0_145, %c896], %174 {strides = array<i32>} : memref<4x1792xbf16, #tpu.memory_space<vmem>>, vector<4x112xbf16>,
      %176 = vector.extract_strided_slice %157 {offsets = [0, 1152], sizes = [4, 112], strides = [1, 1]} : vector<4x2048xbf16> to vector<4x112xbf16>
      %c0_146 = arith.constant 0 : index
      %c1008 = arith.constant 1008 : index
      %177 = vector.load %arg14[%c0_146, %c1008] : memref<4x1792xbf16, #tpu.memory_space<vmem>>, vector<4x112xbf16>
      tpu.vector_store %arg14[%c0_146, %c1008], %176 {strides = array<i32>} : memref<4x1792xbf16, #tpu.memory_space<vmem>>, vector<4x112xbf16>,
      %178 = vector.extract_strided_slice %157 {offsets = [0, 1280], sizes = [4, 112], strides = [1, 1]} : vector<4x2048xbf16> to vector<4x112xbf16>
      %c0_147 = arith.constant 0 : index
      %c1120 = arith.constant 1120 : index
      %179 = vector.load %arg14[%c0_147, %c1120] : memref<4x1792xbf16, #tpu.memory_space<vmem>>, vector<4x112xbf16>
      tpu.vector_store %arg14[%c0_147, %c1120], %178 {strides = array<i32>} : memref<4x1792xbf16, #tpu.memory_space<vmem>>, vector<4x112xbf16>,
      %180 = vector.extract_strided_slice %157 {offsets = [0, 1408], sizes = [4, 112], strides = [1, 1]} : vector<4x2048xbf16> to vector<4x112xbf16>
      %c0_148 = arith.constant 0 : index
      %c1232 = arith.constant 1232 : index
      %181 = vector.load %arg14[%c0_148, %c1232] : memref<4x1792xbf16, #tpu.memory_space<vmem>>, vector<4x112xbf16>
      tpu.vector_store %arg14[%c0_148, %c1232], %180 {strides = array<i32>} : memref<4x1792xbf16, #tpu.memory_space<vmem>>, vector<4x112xbf16>,
      %182 = vector.extract_strided_slice %157 {offsets = [0, 1536], sizes = [4, 112], strides = [1, 1]} : vector<4x2048xbf16> to vector<4x112xbf16>
      %c0_149 = arith.constant 0 : index
      %c1344 = arith.constant 1344 : index
      %183 = vector.load %arg14[%c0_149, %c1344] : memref<4x1792xbf16, #tpu.memory_space<vmem>>, vector<4x112xbf16>
      tpu.vector_store %arg14[%c0_149, %c1344], %182 {strides = array<i32>} : memref<4x1792xbf16, #tpu.memory_space<vmem>>, vector<4x112xbf16>,
      %184 = vector.extract_strided_slice %157 {offsets = [0, 1664], sizes = [4, 112], strides = [1, 1]} : vector<4x2048xbf16> to vector<4x112xbf16>
      %c0_150 = arith.constant 0 : index
      %c1456 = arith.constant 1456 : index
      %185 = vector.load %arg14[%c0_150, %c1456] : memref<4x1792xbf16, #tpu.memory_space<vmem>>, vector<4x112xbf16>
      tpu.vector_store %arg14[%c0_150, %c1456], %184 {strides = array<i32>} : memref<4x1792xbf16, #tpu.memory_space<vmem>>, vector<4x112xbf16>,
      %186 = vector.extract_strided_slice %157 {offsets = [0, 1792], sizes = [4, 112], strides = [1, 1]} : vector<4x2048xbf16> to vector<4x112xbf16>
      %c0_151 = arith.constant 0 : index
      %c1568 = arith.constant 1568 : index
      %187 = vector.load %arg14[%c0_151, %c1568] : memref<4x1792xbf16, #tpu.memory_space<vmem>>, vector<4x112xbf16>
      tpu.vector_store %arg14[%c0_151, %c1568], %186 {strides = array<i32>} : memref<4x1792xbf16, #tpu.memory_space<vmem>>, vector<4x112xbf16>,
      %188 = vector.extract_strided_slice %157 {offsets = [0, 1920], sizes = [4, 112], strides = [1, 1]} : vector<4x2048xbf16> to vector<4x112xbf16>
      %c0_152 = arith.constant 0 : index
      %c1680 = arith.constant 1680 : index
      %189 = vector.load %arg14[%c0_152, %c1680] : memref<4x1792xbf16, #tpu.memory_space<vmem>>, vector<4x112xbf16>
      tpu.vector_store %arg14[%c0_152, %c1680], %188 {strides = array<i32>} : memref<4x1792xbf16, #tpu.memory_space<vmem>>, vector<4x112xbf16>,
      %c0_153 = arith.constant 0 : index
      %c0_154 = arith.constant 0 : index
      %190 = vector.load %arg14[%c0_153, %c0_154] : memref<4x1792xbf16, #tpu.memory_space<vmem>>, vector<4x1792xbf16>
      %191 = arith.index_cast %34 : i32 to index
      %c0_155 = arith.constant 0 : index
      %c0_156 = arith.constant 0 : index
      %192 = vector.load %arg8[%191, %c0_155, %c0_156] : memref<2x4x1792xbf16, #tpu.memory_space<vmem>>, vector<1x4x1792xbf16>
      %193 = vector.shape_cast %192 : vector<1x4x1792xbf16> to vector<4x1792xbf16>
      %194 = vector.shape_cast %190 : vector<4x1792xbf16> to vector<1x4x1792xbf16>
      tpu.vector_store %arg8[%191, %c0_155, %c0_156], %194 {strides = array<i32>} : memref<2x4x1792xbf16, #tpu.memory_space<vmem>>, vector<1x4x1792xbf16>,
    }
    %c2_i32_22 = arith.constant 2 : i32
    return
  }
  func.func @transform_0(%arg0: i32) -> (i32, i32, i32) {
    %c0_i32 = arith.constant 0 : i32
    %c0_i32_0 = arith.constant 0 : i32
    %c0_i32_1 = arith.constant 0 : i32
    return %arg0, %c0_i32, %c0_i32_0 : i32, i32, i32
  }
  func.func @transform_1(%arg0: i32) -> (i32, i32) {
    %c0_i32 = arith.constant 0 : i32
    %c0_i32_0 = arith.constant 0 : i32
    %c0_i32_1 = arith.constant 0 : i32
    return %c0_i32, %c0_i32_0 : i32, i32
  }
  func.func @transform_2(%arg0: i32) -> (i32, i32) {
    %c0_i32 = arith.constant 0 : i32
    %c0_i32_0 = arith.constant 0 : i32
    %c0_i32_1 = arith.constant 0 : i32
    return %c0_i32, %c0_i32_0 : i32, i32
  }
  func.func @transform_3(%arg0: i32) -> (i32, i32) {
    %c0_i32 = arith.constant 0 : i32
    %c0_i32_0 = arith.constant 0 : i32
    %c0_i32_1 = arith.constant 0 : i32
    return %c0_i32, %c0_i32_0 : i32, i32
  }
  func.func @transform_4(%arg0: i32) -> (i32, i32) {
    %c0_i32 = arith.constant 0 : i32
    %c0_i32_0 = arith.constant 0 : i32
    %c0_i32_1 = arith.constant 0 : i32
    return %c0_i32, %c0_i32_0 : i32, i32
  }
  func.func @transform_5(%arg0: i32) -> (i32, i32) {
    %c0_i32 = arith.constant 0 : i32
    %c0_i32_0 = arith.constant 0 : i32
    %c0_i32_1 = arith.constant 0 : i32
    return %c0_i32, %c0_i32_0 : i32, i32
  }
  func.func @transform_6(%arg0: i32) -> (i32, i32) {
    %c0_i32 = arith.constant 0 : i32
    %c0_i32_0 = arith.constant 0 : i32
    %c0_i32_1 = arith.constant 0 : i32
    return %c0_i32, %c0_i32_0 : i32, i32
  }
  func.func @transform_7(%arg0: i32) -> (i32, i32, i32) {
    %c0_i32 = arith.constant 0 : i32
    %c0_i32_0 = arith.constant 0 : i32
    %c0_i32_1 = arith.constant 0 : i32
    return %arg0, %c0_i32, %c0_i32_0 : i32, i32, i32
  }
}

</mosaic_0001>

<bundles_post_ra>
// kernel: cnn_forward.3
= control target key start
LH: loop header
LB: loop body
LE: loop exit
PB: predicated region body
PF: predicated region fallthrough
CT: control target
= control target key end

     0   :  { %s8316_s0 = inlined_call_operand.vmem [shape: bf16[2,7168], index: 0, kind: input, shape index: {}]   ;;  %s8317_s1 = inlined_call_operand.hbm [shape: bf16[7168,1024], index: 1, kind: input, shape index: {}]   ;;  %s8318_s2 = inlined_call_operand.hbm [shape: f32[1,1024], index: 2, kind: input, shape index: {}]   ;;  %s8319_s3 = inlined_call_operand.hbm [shape: f32[1024,128], index: 3, kind: input, shape index: {}]   ;;  %s8320_s4 = inlined_call_operand.vmem [shape: f32[2,2,128], index: 4, kind: output, shape index: {}]  }
   0x1   :  { %8326 = sst [smem:[#allocation14_spill]] %s8317_s1 }
   0x2   :  { %8327 = sst [smem:[#allocation15_spill]] %s8318_s2 }
   0x3   :  { %9 = vsyncpa [#allocation3], 0 }
   0x4   :  { %11 = vsyncpa [#allocation3 + $0x1], 0 }
   0x5   :  { %12 = vsyncpa [#allocation5], 0 }
   0x6   :  { %14 = vsyncpa [#allocation5 + $0x1], 0  ;;  %s7547_s15 = smov 0   ;;  %s7549_s16 = smov 0  }
   0x7   :  { %s7551_s17 = smov 0   ;;  %s7553_s18 = smov 0  }
   0x8   :  { %s7555_s19 = smov 0   ;;  %s7557_s20 = smov 0  }
   0x9   :  { %s7559_s21 = smov 0   ;;  %s7561_s22 = smov 0  }
   0xa LB: > { %8328 = sst [smem:[#allocation9_spill]] %s7500_s20  ;;  %s8321_s23 = sadd.s32 4294967295, %s7508_s22   ;;  %s7508_s22 = sphi %s7561_s22, %s20_s22   ;;  %s7504_s21 = sphi %s7559_s21, %s8346_s21   ;;  %s7500_s20 = sphi %s7557_s20, %s8345_s20   ;;  %s7496_s19 = sphi %s7555_s19, %s8344_s19   ;;  %s7492_s18 = sphi %s7553_s18, %s8343_s18   ;;  %s7488_s17 = sphi %s7551_s17, %s8349_s17   ;;  %s7484_s16 = sphi %s7549_s16, %s8348_s16   ;;  %s7480_s15 = sphi %s7547_s15, %s8347_s15  }
   0xb   : > { %8329 = sst [smem:[#allocation10_spill]] %s7504_s21  ;;  %s29_s24 = sadd.s32 1, %s7500_s20 }
   0xc   : > { %p30_p0 = scmp.ge.s32.totalorder %s29_s24, 4  ;;  %s32_s25 = sadd.s32 1, %s7504_s21 }
   0xd   : > { %s5667_s26 = sshll.u32 %s7504_s21, 2  ;;  %s64_s27 = sadd.s32 1, %s7488_s17 }
   0xe   : > { %s8351_s24 = smov (%p30_p0, %s29_s24), 0  ;;  %s8353_s25 = smov (!%p30_p0, %s32_s25), %s7504_s21 }
   0xf   : > { %8330 = sst [smem:[#allocation11_spill]] %s8351_s24  ;;  %s7594_s28 = sadd.s32 %s7500_s20, %s5667_s26 }
  0x10   : > { %p71_p1 = scmp.ne.s32.totalorder %s7488_s17, %s7484_s16  ;;  %p34_p2 = scmp.ge.s32.totalorder %s8353_s25, 2 }
  0x11   : > { %p72_p3 = scmp.eq.s32.totalorder %s7508_s22, 0  ;;  %p77_p4 = scmp.ne.s32.totalorder %s7484_s16, %s7480_s15 }
  0x12   : > { %p78_p5 = scmp.eq.s32.totalorder %s8321_s23, 0  ;;  %s8355_s25 = smov (%p34_p2, %s8353_s25), 0 }
  0x13   : > { %8331 = sst [smem:[#allocation12_spill]] %s8355_s25  ;;  %p73_p6 = por %p72_p3, %p71_p1 }
  0x14   : > { %p7604_p7 = por %p78_p5, %p77_p4  ;;  %s5668_s30 = sshll.u32 %s8355_s25, 2 }
  0x15   : > { %s60_s5 = sadd.s32 %s5668_s30, %s8351_s24  ;;  %p6825_p8 = scmp.lt.s32.totalorder %s7508_s22, 8 }
  0x16   : > { %s61_s6 = ssub.s32 %s7594_s28, %s60_s5  ;;  %s7613_s7 = sand.u32 1, %s7488_s17  }
  0x17   : > { %p62_p9 = scmp.eq.s32.totalorder %s61_s6, 0  ;;  %p7617_p10 = pnand %p6825_p8, %p73_p6 }
  0x18   : > { %s212_s12 = sand.u32 1, %s7508_s22   ;;  %s5678_s13 = sshll.u32 %s7594_s28, 4 }
  0x19   : > { %s7622_s11 = scalar_select %p62_p9, %s7488_s17, %s64_s27  }
  0x1a   : > { %s215_s14 = scalar_lea.vmem [#allocation4], %s7613_s7  ;;  %s8335_s2 = sld [smem:[#allocation15_spill]] }
  0x1b   : > { %8334 = sst [smem:[#allocation13_spill]] %s7622_s11  ;;  %s224_s15 = sshll.u32 %s215_s14, 4  ;;  %s225_s15 = int_to_ptr.vmem [resolvable:$true] %s224_s15 }
  0x1c   : > { %s7630_s6 = scalar_lea.sflag [#allocation5], %s212_s12  ;;  %p7356_p11 = pneg %p7617_p10 }
  0x1d   : > { %s7367_s23 = scalar_lea.vmem %s225_s15, 16  ;;  %s7510_s27 = smov [#allocation4]  }
  0x1e   : > { %p7368_p12 = scmp.ne.s32.totalorder %s225_s15, %s7367_s23  ;;  %s7372_s8 = sshll.u32 %s7510_s27, 4  ;;  %s7373_s8 = int_to_ptr.vmem [resolvable:$false] %s7372_s8 }
  0x1f   : > { %s7374_s9 = scalar_lea.vmem %s7373_s8, 32  ;;  %p7375_p1 = scmp.lt.s32.totalorder %s225_s15, %s7373_s8 }
  0x20   : > { %s222_s5 = scalar_lea.hbm %s8335_s2, %s5678_s13  ;;  %p7370_p13 = pnand %p7368_p12, %p7356_p11 }
  0x21   : > { %p7376_p2 = scmp.lt.s32.totalorder %s7374_s9, %s7367_s23 }
  0x22   : > { %p7371_p0 = pneg %p7370_p13 }
  0x23   : > { %p7377_p3 = por %p7376_p2, %p7375_p1 }
  0x25   : > { %p7378_p4 = pnand %p7377_p3, %p7371_p0 }
  0x27   : > { %7381 = shalt.err (!%p7378_p4)
}
  0x28   : > { %6821 = dma.hbm_to_vmem [thread:$0]  (!%p7617_p10), %s222_s5, 16, %s225_s15, %s7630_s6  }
  0x29   : > { %s6138_s13 = sshll.u32 %s7594_s28, 11  ;;  %p5683_p5 = scmp.ge.s32.totalorder %s7508_s22, 1 }
  0x2a   : > { %p252_p6 = scmp.lt.s32.totalorder %s7508_s22, 9  ;;  %s8337_s8 = sshll.u32 %s7594_s28, 6 }
  0x2b   : > { %s8338_s1 = sld [smem:[#allocation14_spill]]  ;;  %s8339_s30 = smul.u32 3584, %s7613_s7 }
  0x2c   : > { %p7644_p8 = pnand %p5683_p5, %p252_p6  ;;  %s191_s25 = scalar_lea.sflag [#allocation3], %s7613_s7 }
  0x2d   : > { %s194_s27 = scalar_lea.vmem [#allocation2], %s8339_s30  ;;  %s7511_s15 = smov [#allocation2]  }
  0x2e   : > { %s202_s2 = sshll.u32 %s194_s27, 4  ;;  %s7400_s5 = sshll.u32 %s7511_s15, 4  ;;  %s203_s2 = int_to_ptr.vmem [resolvable:$true] %s202_s2  ;;  %s7401_s5 = int_to_ptr.vmem [resolvable:$false] %s7400_s5 }
  0x2f   : > { %s7395_s24 = scalar_lea.vmem %s203_s2, 57344  ;;  %s7402_s12 = scalar_lea.vmem %s7401_s5, 114688 }
  0x30   : > { %p7396_p9 = scmp.ne.s32.totalorder %s203_s2, %s7395_s24  ;;  %p7403_p0 = scmp.lt.s32.totalorder %s203_s2, %s7401_s5 }
  0x31   : > { %s201_s26 = scalar_lea.hbm %s8338_s1, %s8337_s8  ;;  %p7404_p1 = scmp.lt.s32.totalorder %s7402_s12, %s7395_s24 }
  0x32   : > { %p7398_p12 = pnand %p7396_p9, %p7356_p11 }
  0x33   : > { %p7405_p2 = por %p7404_p1, %p7403_p0 }
  0x34   : > { %p7399_p13 = pneg %p7398_p12 }
  0x36   : > { %p7406_p3 = pnand %p7405_p2, %p7399_p13 }
  0x38   : > { %7409 = shalt.err (!%p7406_p3)
}
  0x39   : > { %s7512_s8 = smov 512   ;;  %s7513_s9 = smov 64  }
  0x3a   : > { %s7514_s14 = smov 4   ;;  %s243_s15 = scalar_lea.hbm %s8319_s3, %s6138_s13 }
  0x3b   : > { %6818 = dma.hbm_to_vmem [thread:$0]  (!%p7617_p10), %s201_s26, 57344, %s203_s2, %s191_s25, %s7512_s8, %s7513_s9, %s7514_s14  }
  0x3c   : > { %s8340_s1 = sshll.u32 %s7613_s7, 7  ;;  %s7515_s21 = smov [#allocation6]  }
  0x3d   : > { %s235_s5 = scalar_lea.vmem [#allocation6], %s8340_s1  ;;  %s7428_s20 = sshll.u32 %s7515_s21, 4  ;;  %s7429_s20 = int_to_ptr.vmem [resolvable:$false] %s7428_s20 }
  0x3e   : > { %s244_s24 = sshll.u32 %s235_s5, 4  ;;  %s7430_s11 = scalar_lea.vmem %s7429_s20, 4096  ;;  %s245_s24 = int_to_ptr.vmem [resolvable:$true] %s244_s24 }
  0x3f   : > { %s7423_s12 = scalar_lea.vmem %s245_s24, 2048  ;;  %p7431_p9 = scmp.lt.s32.totalorder %s245_s24, %s7429_s20 }
  0x40   : > { %p7424_p4 = scmp.ne.s32.totalorder %s245_s24, %s7423_s12  ;;  %p7432_p12 = scmp.lt.s32.totalorder %s7430_s11, %s7423_s12 }
  0x42   : > { %p7426_p5 = pnand %p7424_p4, %p7356_p11  ;;  %p7433_p13 = por %p7432_p12, %p7431_p9 }
  0x44   : > { %p7427_p6 = pneg %p7426_p5 }
  0x46   : > { %p7434_p0 = pnand %p7433_p13, %p7427_p6 }
  0x48   : > { %7437 = shalt.err (!%p7434_p0)
}
  0x49   : > { %s7516_s2 = smov 128   ;;  %s7517_s1 = smov 8  }
  0x4a   : > { %6824 = dma.hbm_to_vmem [thread:$0]  (!%p7617_p10), %s243_s15, 2048, %s245_s24, %s7630_s6, %s7516_s2, %s7516_s2, %s7517_s1  }
  0x4b   : > { %256 = sbr.rel (%p7644_p8) target bundleno = 944 (0x3b0), region = 36  ;;  %s7677_s25 = sand.u32 (!%p7644_p8), 1, %s7484_s16  }
  0x4c   : > { %s6808_s20 = smul.u32 (!%p7644_p8), 3584, %s7677_s25  ;;  %s259_s21 = scalar_lea.sflag (!%p7644_p8), [#allocation3], %s7677_s25 }
  0x4e   : > { %s7681_s28 = scalar_lea.vmem (!%p7644_p8), [#allocation2], %s6808_s20 }
  0x50   : > { %7471 = dma.done.wait (%p7604_p7), %s259_s21, 57344  }
  0x51   : > { %7473 = vsyncadd (%p7604_p7), %s259_s21, 4294909952  ;;  %s8341_s7 = sadd.s32 4294967295, %s7508_s22   ;;  %s270_s6 = scalar_lea.vmem [#allocation4], %s7677_s25 }
  0x52   : > { %s267_s10 = sand.u32 1, %s8341_s7  }
  0x53   : > { %s268_s11 = scalar_lea.sflag [#allocation5], %s267_s10 }
  0x54   : > { %7475 = dma.done.wait (%p7604_p7), %s268_s11, 2064  }
  0x55   : > { %7477 = vsyncadd (%p7604_p7), %s268_s11, 4294965232  ;;  %s5684_s13 = sshll.u32 %s7677_s25, 7  ;;  %p319_p10 = scmp.lt.s32.totalorder %s7496_s19, 1 }
  0x56   : > { %s7702_s14 = scalar_lea.vmem [#allocation6], %s5684_s13  ;;  %p5686_p11 = scmp.ne.s32.totalorder %s7492_s18, 0 }
  0x57   : > { %s8357_s19 = smov (!%p319_p10, %s7496_s19), 1 }
  0x58   : > { %s5685_s23 = sshll.u32 %s8357_s19, 1  ;;  %327 = sbr.rel (%p5686_p11) target bundleno = 95 (0x5f), region = 52 }
  0x59   : > { %s7700_s9 = scalar_lea.vmem %s8320_s4, %s5685_s23 }
  0x5d   : > { %v7518_v0 = vmov 0.0  }
  0x5e   : > { %328 = vst [vmem:[%s7700_s9] sm:$0x3] %v7518_v0 }
  0x5f PF: > { %v6899_v1 = vld [vmem:[%s7681_s28 + $0x78] sm:$0xff]   ;;  %v6903_v5 = vld [vmem:[%s7681_s28 + $0x70] sm:$0xff]   ;;  %v6907_v9 = vld [vmem:[%s7681_s28 + $0x68] sm:$0xff]   ;;  %v1250_v29 = vlaneseq  ;;  %v7519_v37 = vmov 1966171168   ;;  %vm7521_vm0 = vmmov 0  }
  0x60   : > { %v6900_v2 = vld [vmem:[%s7681_s28 + $0xf8] sm:$0xff]   ;;  %6139 = vmatprep.subr.bf16.mxu0 %v6899_v1  ;;  %v6904_v6 = vld [vmem:[%s7681_s28 + $0xf0] sm:$0xff]   ;;  %v6908_v10 = vld [vmem:[%s7681_s28 + $0xe8] sm:$0xff]   ;;  %v1248_v38 = vunpack.c.l.s4 %v7519_v37 }
  0x61   : > { %v6901_v3 = vld [vmem:[%s7681_s28 + $0x38] sm:$0xff]   ;;  %6161 = vmatprep.subr.bf16.mxu1 %v6900_v2  ;;  %v6905_v7 = vld [vmem:[%s7681_s28 + $0x30] sm:$0xff]   ;;  %v6909_v11 = vld [vmem:[%s7681_s28 + $0x28] sm:$0xff]   ;;  %v1251_v34 = vshrl.u32 %v1250_v29, 7 }
  0x62   : > { %v6902_v4 = vld [vmem:[%s7681_s28 + $0xb8] sm:$0xff]   ;;  %6140 = vmatpush3.bf16.msra.mxu0 %v6901_v3  ;;  %v6906_v8 = vld [vmem:[%s7681_s28 + $0xb0] sm:$0xff]   ;;  %v6910_v12 = vld [vmem:[%s7681_s28 + $0xa8] sm:$0xff]   ;;  %v1249_v41 = vunpack.c.0.s8 %v1248_v38 }
  0x63   : > { %6162 = vmatpush3.bf16.msra.mxu1 %v6902_v4  ;;  %6141 = vmatprep.subr.bf16.mxu0 %v6903_v5  ;;  %v6911_v13 = vld [vmem:[%s7681_s28 + $0x60] sm:$0xff]   ;;  %v6915_v17 = vld [vmem:[%s7681_s28 + $0x58] sm:$0xff]   ;;  %v6919_v21 = vld [vmem:[%s7681_s28 + $0x50] sm:$0xff]  }
  0x64   : > { %6163 = vmatprep.subr.bf16.mxu1 %v6904_v6  ;;  %v6912_v14 = vld [vmem:[%s7681_s28 + $0xe0] sm:$0xff]   ;;  %v6916_v18 = vld [vmem:[%s7681_s28 + $0xd8] sm:$0xff]   ;;  %v6920_v22 = vld [vmem:[%s7681_s28 + $0xd0] sm:$0xff]   ;;  %v7743_v42 = vsub.s32 %v1249_v41, %v1251_v34 }
  0x65   : > { %v6913_v15 = vld [vmem:[%s7681_s28 + $0x20] sm:$0xff]   ;;  %v6917_v19 = vld [vmem:[%s7681_s28 + $0x18] sm:$0xff]   ;;  %v6921_v23 = vld [vmem:[%s7681_s28 + $0x10] sm:$0xff]  }
  0x66   : > { %6142 = vmatpush3.bf16.msra.mxu0 %v6905_v7  ;;  %v6914_v16 = vld [vmem:[%s7681_s28 + $0xa0] sm:$0xff]   ;;  %v6918_v20 = vld [vmem:[%s7681_s28 + $0x98] sm:$0xff]   ;;  %v6922_v24 = vld [vmem:[%s7681_s28 + $0x90] sm:$0xff]  }
  0x67   : > { %6164 = vmatpush3.bf16.msra.mxu1 %v6906_v8  ;;  %6143 = vmatprep.subr.bf16.mxu0 %v6907_v9  ;;  %v6923_v25 = vld [vmem:[%s7681_s28 + $0x48] sm:$0xff]   ;;  %v6927_v30 = vld [vmem:[%s7681_s28 + $0x40] sm:$0xff]   ;;  %v6932_v36 = vld [vmem:[%s7681_s28 + $0x178] sm:$0xff]  }
  0x68   : > { %6165 = vmatprep.subr.bf16.mxu1 %v6908_v10  ;;  %v6924_v26 = vld [vmem:[%s7681_s28 + $0xc8] sm:$0xff]   ;;  %v6928_v31 = vld [vmem:[%s7681_s28 + $0xc0] sm:$0xff]   ;;  %v6933_v39 = vld [vmem:[%s7681_s28 + $0x1f8] sm:$0xff]  }
  0x69   : > { %v6925_v27 = vld [vmem:[%s7681_s28 + $0x8] sm:$0xff]   ;;  %v6929_v32 = vld [vmem:[%s7681_s28] sm:$0xff]   ;;  %v6934_v48 = vld [vmem:[%s7681_s28 + $0x138] sm:$0xff]  }
  0x6a   : > { %6144 = vmatpush3.bf16.msra.mxu0 %v6909_v11  ;;  %v6926_v28 = vld [vmem:[%s7681_s28 + $0x88] sm:$0xff]   ;;  %v6930_v33 = vld [vmem:[%s7681_s28 + $0x80] sm:$0xff]   ;;  %v6935_v50 = vld [vmem:[%s7681_s28 + $0x1b8] sm:$0xff]  }
  0x6b   : > { %6166 = vmatpush3.bf16.msra.mxu1 %v6910_v12  ;;  %6145 = vmatprep.subr.bf16.mxu0 %v6911_v13  ;;  %v329_v35 = vld [vmem:[%s8316_s0] sm:$0xff]  ;;  %v6936_v53 = vld [vmem:[%s7681_s28 + $0x170] sm:$0xff]   ;;  %v6940_v59 = vld [vmem:[%s7681_s28 + $0x168] sm:$0xff]  }
  0x6c   : > { %6167 = vmatprep.subr.bf16.mxu1 %v6912_v14  ;;  %v1246_v40 = vcombine.high %v329_v35, %v329_v35  ;;  %v1253_v43 = vrot.slane %v329_v35, %v7743_v42  ;;  %v6937_v55 = vld [vmem:[%s7681_s28 + $0x1f0] sm:$0xff]   ;;  %v6941_v60 = vld [vmem:[%s7681_s28 + $0x1e8] sm:$0xff]   ;;  %v6944_v63 = vld [vmem:[%s7681_s28 + $0x160] sm:$0xff]  }
  0x6d   : > { %v6938_v56 = vld [vmem:[%s7681_s28 + $0x130] sm:$0xff]   ;;  %v6942_v61 = vld [vmem:[%s7681_s28 + $0x128] sm:$0xff]   ;;  %v6945_v0 = vld [vmem:[%s7681_s28 + $0x1e0] sm:$0xff]  }
  0x6e   : > { %6146 = vmatpush3.bf16.msra.mxu0 %v6913_v15  ;;  %v7747_v44 = vrot.slane %v1246_v40, %v7743_v42  ;;  %v1261_v45 = vcombine.high %v1253_v43, %v1253_v43  ;;  %v1269_v46 = vrot.slane %v1253_v43, %v7743_v42  ;;  %v6939_v58 = vld [vmem:[%s7681_s28 + $0x1b0] sm:$0xff]   ;;  %v6943_v62 = vld [vmem:[%s7681_s28 + $0x1a8] sm:$0xff]   ;;  %v6946_v1 = vld [vmem:[%s7681_s28 + $0x120] sm:$0xff]  }
  0x6f   : > { %6168 = vmatpush3.bf16.msra.mxu1 %v6914_v16  ;;  %6147 = vmatprep.subr.bf16.mxu0 %v6915_v17  ;;  %v6947_v2 = vld [vmem:[%s7681_s28 + $0x1a0] sm:$0xff]   ;;  %v6948_v3 = vld [vmem:[%s7681_s28 + $0x158] sm:$0xff]   ;;  %v6952_v7 = vld [vmem:[%s7681_s28 + $0x150] sm:$0xff]  }
  0x70   : > { %6169 = vmatprep.subr.bf16.mxu1 %v6916_v18  ;;  %v1262_v47 = vcombine.high %v7747_v44, %v7747_v44  ;;  %v1283_v49 = vrot.slane %v1261_v45, %v7743_v42  ;;  %v1291_v52 = vcombine.high %v1269_v46, %v1269_v46  ;;  %v6949_v4 = vld [vmem:[%s7681_s28 + $0x1d8] sm:$0xff]   ;;  %v6953_v8 = vld [vmem:[%s7681_s28 + $0x1d0] sm:$0xff]   ;;  %v6956_v11 = vld [vmem:[%s7681_s28 + $0x148] sm:$0xff]  }
  0x71   : > { %v6950_v5 = vld [vmem:[%s7681_s28 + $0x118] sm:$0xff]   ;;  %v6954_v9 = vld [vmem:[%s7681_s28 + $0x110] sm:$0xff]   ;;  %v6957_v12 = vld [vmem:[%s7681_s28 + $0x1c8] sm:$0xff]  }
  0x72   : > { %6148 = vmatpush3.bf16.msra.mxu0 %v6917_v19  ;;  %v1290_v51 = vrot.slane %v1262_v47, %v7743_v42  ;;  %4365 = vmatprep.mubr.bf16.mxu0 %v1283_v49  ;;  %v1293_v54 = vcombine.high %v1283_v49, %v1283_v49  ;;  %v6951_v6 = vld [vmem:[%s7681_s28 + $0x198] sm:$0xff]   ;;  %v6955_v10 = vld [vmem:[%s7681_s28 + $0x190] sm:$0xff]   ;;  %v6958_v13 = vld [vmem:[%s7681_s28 + $0x108] sm:$0xff]   ;;  %v1276_v19 = vrot.slane %v7747_v44, %v7743_v42 }
  0x73   : > { %6170 = vmatpush3.bf16.msra.mxu1 %v6918_v20  ;;  %6149 = vmatprep.subr.bf16.mxu0 %v6919_v21  ;;  %v6959_v14 = vld [vmem:[%s7681_s28 + $0x188] sm:$0xff]   ;;  %v6960_v15 = vld [vmem:[%s7681_s28 + $0x140] sm:$0xff]   ;;  %v6964_v20 = vld [vmem:[%s7681_s28 + $0x278] sm:$0xff]  }
  0x74   : > { %6171 = vmatprep.subr.bf16.mxu1 %v6920_v22  ;;  %v1294_v57 = vcombine.high %v1290_v51, %v1290_v51  ;;  %4405 = vmatprep.mubr.bf16.mxu1 %v1293_v54  ;;  %v6961_v16 = vld [vmem:[%s7681_s28 + $0x1c0] sm:$0xff]   ;;  %v6965_v21 = vld [vmem:[%s7681_s28 + $0x2f8] sm:$0xff]   ;;  %v6972_v29 = vld [vmem:[%s7681_s28 + $0x268] sm:$0xff]  }
  0x75   : > { %v6962_v17 = vld [vmem:[%s7681_s28 + $0x100] sm:$0xff]   ;;  %v6966_v22 = vld [vmem:[%s7681_s28 + $0x238] sm:$0xff]   ;;  %v6984_v41 = vld [vmem:[%s7681_s28 + $0x250] sm:$0xff]  }
  0x76   : > { %6150 = vmatpush3.bf16.msra.mxu0 %v6921_v23  ;;  %v6963_v18 = vld [vmem:[%s7681_s28 + $0x180] sm:$0xff]   ;;  %v6967_v23 = vld [vmem:[%s7681_s28 + $0x2b8] sm:$0xff]   ;;  %v6985_v43 = vld [vmem:[%s7681_s28 + $0x2d0] sm:$0xff]  }
  0x77   : > { %6172 = vmatpush3.bf16.msra.mxu1 %v6922_v24  ;;  %6151 = vmatprep.subr.bf16.mxu0 %v6923_v25  ;;  %v1292_v24 = vcombine.high %v1276_v19, %v1276_v19  ;;  %v6968_v25 = vld [vmem:[%s7681_s28 + $0x270] sm:$0xff]   ;;  %v6977_v34 = vld [vmem:[%s7681_s28 + $0x2e0] sm:$0xff]   ;;  %v6980_v37 = vld [vmem:[%s7681_s28 + $0x258] sm:$0xff]  }
  0x78   : > { %6173 = vmatprep.subr.bf16.mxu1 %v6924_v26  ;;  %v6969_v26 = vld [vmem:[%s7681_s28 + $0x2f0] sm:$0xff]   ;;  %v6978_v35 = vld [vmem:[%s7681_s28 + $0x220] sm:$0xff]   ;;  %v6981_v38 = vld [vmem:[%s7681_s28 + $0x2d8] sm:$0xff]  }
  0x79   : > { %v6983_v40 = vld [vmem:[%s7681_s28 + $0x298] sm:$0xff]   ;;  %v6986_v44 = vld [vmem:[%s7681_s28 + $0x210] sm:$0xff]   ;;  %v330_v47 = vld [vmem:[%s8316_s0 + $0x8] sm:$0xff] }
  0x7a   : > { %6152 = vmatpush3.bf16.msra.mxu0 %v6925_v27  ;;  %v6970_v27 = vld [vmem:[%s7681_s28 + $0x230] sm:$0xff]   ;;  %v1302_v49 = vrot.slane %v330_v47, %v7743_v42 }
  0x7b   : > { %6174 = vmatpush3.bf16.msra.mxu1 %v6926_v28  ;;  %6153 = vmatprep.subr.bf16.mxu0 %v6927_v30  ;;  %v6971_v28 = vld [vmem:[%s7681_s28 + $0x2b0] sm:$0xff]   ;;  %v6973_v30 = vld [vmem:[%s7681_s28 + $0x2e8] sm:$0xff]  }
  0x7c   : > { %6175 = vmatprep.subr.bf16.mxu1 %v6928_v31  ;;  %v6974_v31 = vld [vmem:[%s7681_s28 + $0x228] sm:$0xff]   ;;  %v6987_v45 = vld [vmem:[%s7681_s28 + $0x290] sm:$0xff]  }
  0x7e   : > { %6154 = vmatpush3.bf16.msra.mxu0 %v6929_v32  ;;  %v6975_v32 = vld [vmem:[%s7681_s28 + $0x2a8] sm:$0xff]  }
  0x7f   : > { %6176 = vmatpush3.bf16.msra.mxu1 %v6930_v33  ;;  %6183 = vmatprep.subr.bf16.mxu0 %v6932_v36  ;;  %v6976_v33 = vld [vmem:[%s7681_s28 + $0x260] sm:$0xff]  }
  0x80   : > { %6205 = vmatprep.subr.bf16.mxu1 %v6933_v39  ;;  %v6979_v36 = vld [vmem:[%s7681_s28 + $0x2a0] sm:$0xff]   ;;  %v6982_v39 = vld [vmem:[%s7681_s28 + $0x218] sm:$0xff]  }
  0x81   : > { %4366 = vmatmul.mubr.bf16.vlgmr.msra.gmra.mxu0 %v1269_v46  ;;  %v6988_v46 = vld [vmem:[%s7681_s28 + $0x248] sm:$0xff]  }
  0x82   : > { %6184 = vmatpush3.bf16.msra.mxu0 %v6934_v48  ;;  %4406 = vmatmul.mubr.bf16.vlgmr.msra.gmra.mxu1 %v1291_v52  ;;  %v6989_v48 = vld [vmem:[%s7681_s28 + $0x2c8] sm:$0xff]  }
  0x83   : > { %6185 = vmatprep.subr.bf16.mxu0 %v6936_v53  ;;  %6206 = vmatpush3.bf16.msra.mxu1 %v6935_v50  ;;  %v1295_v50 = vcombine.high %v330_v47, %v330_v47  ;;  %v6991_v52 = vld [vmem:[%s7681_s28 + $0x288] sm:$0xff]   ;;  %v1310_v53 = vcombine.high %v1302_v49, %v1302_v49 }
  0x84   : > { %4445 = vmatprep.mubr.bf16.mxu0 %v1290_v51  ;;  %6207 = vmatprep.subr.bf16.mxu1 %v6937_v55  ;;  %v6990_v51 = vld [vmem:[%s7681_s28 + $0x208] sm:$0xff]   ;;  %v6992_v55 = vld [vmem:[%s7681_s28 + $0x240] sm:$0xff]  }
  0x85   : > { %4485 = vmatprep.mubr.bf16.mxu1 %v1294_v57  ;;  %v7819_v54 = vrot.slane %v1295_v50, %v7743_v42  ;;  %v1332_v57 = vrot.slane %v1310_v53, %v7743_v42  ;;  %v7039_v47 = vld [vmem:[%s7681_s28 + $0x428] sm:$0xff]   ;;  %v7042_v50 = vld [vmem:[%s7681_s28 + $0x4e0] sm:$0xff]   ;;  %v7045_v53 = vld [vmem:[%s7681_s28 + $0x458] sm:$0xff]  }
  0x86   : > { %6186 = vmatpush3.bf16.msra.mxu0 %v6938_v56  ;;  %v6993_v56 = vld [vmem:[%s7681_s28 + $0x2c0] sm:$0xff]  }
  0x87   : > { %6187 = vmatprep.subr.bf16.mxu0 %v6940_v59  ;;  %6208 = vmatpush3.bf16.msra.mxu1 %v6939_v58  ;;  %v1311_v58 = vcombine.high %v7819_v54, %v7819_v54  ;;  %v6994_v59 = vld [vmem:[%s7681_s28 + $0x200] sm:$0xff]  }
  0x88   : > { %6209 = vmatprep.subr.bf16.mxu1 %v6941_v60  ;;  %v6995_v60 = vld [vmem:[%s7681_s28 + $0x280] sm:$0xff]  }
  0x8a   : > { %6188 = vmatpush3.bf16.msra.mxu0 %v6942_v61  ;;  %v1342_v61 = vcombine.high %v1332_v57, %v1332_v57 }
  0x8b   : > { %6189 = vmatprep.subr.bf16.mxu0 %v6944_v63  ;;  %6210 = vmatpush3.bf16.msra.mxu1 %v6943_v62  ;;  %v1318_v62 = vrot.slane %v1302_v49, %v7743_v42  ;;  %v6996_v63 = vld [vmem:[%s7681_s28 + $0x378] sm:$0xff]   ;;  %v7041_v49 = vld [vmem:[%s7681_s28 + $0x460] sm:$0xff]  }
  0x8c   : > { %6211 = vmatprep.subr.bf16.mxu1 %v6945_v0  ;;  %v6997_v0 = vld [vmem:[%s7681_s28 + $0x3f8] sm:$0xff]  }
  0x8e   : > { %6190 = vmatpush3.bf16.msra.mxu0 %v6946_v1  ;;  %v1339_v1 = vrot.slane %v1311_v58, %v7743_v42  ;;  %v7050_v58 = vld [vmem:[%s7681_s28 + $0x4d0] sm:$0xff]  }
  0x8f   : > { %6191 = vmatprep.subr.bf16.mxu0 %v6948_v3  ;;  %6212 = vmatpush3.bf16.msra.mxu1 %v6947_v2  ;;  %v6998_v2 = vld [vmem:[%s7681_s28 + $0x338] sm:$0xff]  }
  0x90   : > { %6213 = vmatprep.subr.bf16.mxu1 %v6949_v4  ;;  %v6999_v3 = vld [vmem:[%s7681_s28 + $0x3b8] sm:$0xff]   ;;  %v1340_v4 = vcombine.high %v1318_v62, %v1318_v62 }
  0x92   : > { %6192 = vmatpush3.bf16.msra.mxu0 %v6950_v5  ;;  %v7000_v5 = vld [vmem:[%s7681_s28 + $0x370] sm:$0xff]  }
  0x93   : > { %6193 = vmatprep.subr.bf16.mxu0 %v6952_v7  ;;  %6214 = vmatpush3.bf16.msra.mxu1 %v6951_v6  ;;  %v7001_v6 = vld [vmem:[%s7681_s28 + $0x3f0] sm:$0xff]   ;;  %v1343_v7 = vcombine.high %v1339_v1, %v1339_v1 }
  0x94   : > { %6215 = vmatprep.subr.bf16.mxu1 %v6953_v8  ;;  %v7002_v8 = vld [vmem:[%s7681_s28 + $0x330] sm:$0xff]  }
  0x96   : > { %6194 = vmatpush3.bf16.msra.mxu0 %v6954_v9  ;;  %v7003_v9 = vld [vmem:[%s7681_s28 + $0x3b0] sm:$0xff]  }
  0x97   : > { %6195 = vmatprep.subr.bf16.mxu0 %v6956_v11  ;;  %6216 = vmatpush3.bf16.msra.mxu1 %v6955_v10  ;;  %v7004_v10 = vld [vmem:[%s7681_s28 + $0x368] sm:$0xff]  }
  0x98   : > { %6217 = vmatprep.subr.bf16.mxu1 %v6957_v12  ;;  %v7005_v11 = vld [vmem:[%s7681_s28 + $0x3e8] sm:$0xff]  }
  0x99   : > { %v7006_v12 = vld [vmem:[%s7681_s28 + $0x328] sm:$0xff]  }
  0x9a   : > { %6196 = vmatpush3.bf16.msra.mxu0 %v6958_v13  ;;  %v7007_v13 = vld [vmem:[%s7681_s28 + $0x3a8] sm:$0xff]  }
  0x9b   : > { %6197 = vmatprep.subr.bf16.mxu0 %v6960_v15  ;;  %6218 = vmatpush3.bf16.msra.mxu1 %v6959_v14  ;;  %v7008_v14 = vld [vmem:[%s7681_s28 + $0x360] sm:$0xff]  }
  0x9c   : > { %6219 = vmatprep.subr.bf16.mxu1 %v6961_v16  ;;  %v7009_v15 = vld [vmem:[%s7681_s28 + $0x3e0] sm:$0xff]  }
  0x9d   : > { %v7010_v16 = vld [vmem:[%s7681_s28 + $0x320] sm:$0xff]  }
  0x9e   : > { %6198 = vmatpush3.bf16.msra.mxu0 %v6962_v17  ;;  %v7011_v17 = vld [vmem:[%s7681_s28 + $0x3a0] sm:$0xff]  }
  0x9f   : > { %6227 = vmatprep.subr.bf16.mxu0 %v6964_v20  ;;  %6220 = vmatpush3.bf16.msra.mxu1 %v6963_v18  ;;  %v7012_v18 = vld [vmem:[%s7681_s28 + $0x358] sm:$0xff]  }
  0xa0   : > { %6249 = vmatprep.subr.bf16.mxu1 %v6965_v21  ;;  %v7014_v20 = vld [vmem:[%s7681_s28 + $0x318] sm:$0xff]  }
  0xa1   : > { %4446 = vmatmul.mubr.bf16.vlgmr.msra.gmra.mxu0 %v1276_v19  ;;  %v7013_v19 = vld [vmem:[%s7681_s28 + $0x3d8] sm:$0xff]  }
  0xa2   : > { %6228 = vmatpush3.bf16.msra.mxu0 %v6966_v22  ;;  %4486 = vmatmul.mubr.bf16.vlgmr.msra.gmra.mxu1 %v1292_v24  ;;  %v7015_v21 = vld [vmem:[%s7681_s28 + $0x398] sm:$0xff]   ;;  %v7016_v22 = vld [vmem:[%s7681_s28 + $0x350] sm:$0xff]  }
  0xa3   : > { %6229 = vmatprep.subr.bf16.mxu0 %v6968_v25  ;;  %6250 = vmatpush3.bf16.msra.mxu1 %v6967_v23  ;;  %v7017_v23 = vld [vmem:[%s7681_s28 + $0x3d0] sm:$0xff]  }
  0xa4   : > { %6251 = vmatprep.subr.bf16.mxu1 %v6969_v26  ;;  %4525 = vmatprep.mubr.bf16.mxu0 %v1332_v57  ;;  %v7018_v24 = vld [vmem:[%s7681_s28 + $0x310] sm:$0xff]   ;;  %v7020_v26 = vld [vmem:[%s7681_s28 + $0x348] sm:$0xff]  }
  0xa5   : > { %4565 = vmatprep.mubr.bf16.mxu1 %v1342_v61  ;;  %v7019_v25 = vld [vmem:[%s7681_s28 + $0x390] sm:$0xff]   ;;  %v7053_v61 = vld [vmem:[%s7681_s28 + $0x448] sm:$0xff]  }
  0xa6   : > { %6230 = vmatpush3.bf16.msra.mxu0 %v6970_v27  ;;  %v7021_v27 = vld [vmem:[%s7681_s28 + $0x3c8] sm:$0xff]   ;;  %v7049_v57 = vld [vmem:[%s7681_s28 + $0x450] sm:$0xff]  }
  0xa7   : > { %6231 = vmatprep.subr.bf16.mxu0 %v6972_v29  ;;  %6252 = vmatpush3.bf16.msra.mxu1 %v6971_v28  ;;  %v7022_v28 = vld [vmem:[%s7681_s28 + $0x308] sm:$0xff]  }
  0xa8   : > { %6253 = vmatprep.subr.bf16.mxu1 %v6973_v30  ;;  %v7023_v29 = vld [vmem:[%s7681_s28 + $0x388] sm:$0xff]   ;;  %v7024_v30 = vld [vmem:[%s7681_s28 + $0x340] sm:$0xff]  }
  0xaa   : > { %6232 = vmatpush3.bf16.msra.mxu0 %v6974_v31  ;;  %v7025_v31 = vld [vmem:[%s7681_s28 + $0x3c0] sm:$0xff]  }
  0xab   : > { %6233 = vmatprep.subr.bf16.mxu0 %v6976_v33  ;;  %6254 = vmatpush3.bf16.msra.mxu1 %v6975_v32  ;;  %v7026_v32 = vld [vmem:[%s7681_s28 + $0x300] sm:$0xff]  }
  0xac   : > { %6255 = vmatprep.subr.bf16.mxu1 %v6977_v34  ;;  %v7027_v33 = vld [vmem:[%s7681_s28 + $0x380] sm:$0xff]   ;;  %v1325_v34 = vrot.slane %v7819_v54, %v7743_v42  ;;  %v7046_v54 = vld [vmem:[%s7681_s28 + $0x4d8] sm:$0xff]  }
  0xae   : > { %6234 = vmatpush3.bf16.msra.mxu0 %v6978_v35  ;;  %v7029_v35 = vld [vmem:[%s7681_s28 + $0x478] sm:$0xff]  }
  0xaf   : > { %6235 = vmatprep.subr.bf16.mxu0 %v6980_v37  ;;  %6256 = vmatpush3.bf16.msra.mxu1 %v6979_v36  ;;  %v7030_v36 = vld [vmem:[%s7681_s28 + $0x4f8] sm:$0xff]  }
  0xb0   : > { %6257 = vmatprep.subr.bf16.mxu1 %v6981_v38  ;;  %v7031_v37 = vld [vmem:[%s7681_s28 + $0x438] sm:$0xff]  }
  0xb1   : > { %v7032_v38 = vld [vmem:[%s7681_s28 + $0x4b8] sm:$0xff]  }
  0xb2   : > { %6236 = vmatpush3.bf16.msra.mxu0 %v6982_v39  ;;  %v1341_v39 = vcombine.high %v1325_v34, %v1325_v34 }
  0xb3   : > { %6237 = vmatprep.subr.bf16.mxu0 %v6984_v41  ;;  %6258 = vmatpush3.bf16.msra.mxu1 %v6983_v40  ;;  %v7033_v40 = vld [vmem:[%s7681_s28 + $0x470] sm:$0xff]  }
  0xb4   : > { %6259 = vmatprep.subr.bf16.mxu1 %v6985_v43  ;;  %v7034_v41 = vld [vmem:[%s7681_s28 + $0x4f0] sm:$0xff]  }
  0xb5   : > { %v7035_v43 = vld [vmem:[%s7681_s28 + $0x430] sm:$0xff]  }
  0xb6   : > { %6238 = vmatpush3.bf16.msra.mxu0 %v6986_v44  ;;  %v7036_v44 = vld [vmem:[%s7681_s28 + $0x4b0] sm:$0xff]  }
  0xb7   : > { %6239 = vmatprep.subr.bf16.mxu0 %v6988_v46  ;;  %6260 = vmatpush3.bf16.msra.mxu1 %v6987_v45  ;;  %v7037_v45 = vld [vmem:[%s7681_s28 + $0x468] sm:$0xff]  }
  0xb8   : > { %6261 = vmatprep.subr.bf16.mxu1 %v6989_v48  ;;  %v7038_v46 = vld [vmem:[%s7681_s28 + $0x4e8] sm:$0xff]  }
  0xb9   : > { %v7040_v48 = vld [vmem:[%s7681_s28 + $0x4a8] sm:$0xff]  }
  0xba   : > { %6240 = vmatpush3.bf16.msra.mxu0 %v6990_v51  ;;  %v7043_v51 = vld [vmem:[%s7681_s28 + $0x420] sm:$0xff]  }
  0xbb   : > { %6241 = vmatprep.subr.bf16.mxu0 %v6992_v55  ;;  %6262 = vmatpush3.bf16.msra.mxu1 %v6991_v52  ;;  %v7044_v52 = vld [vmem:[%s7681_s28 + $0x4a0] sm:$0xff]   ;;  %v7047_v55 = vld [vmem:[%s7681_s28 + $0x418] sm:$0xff]  }
  0xbc   : > { %6263 = vmatprep.subr.bf16.mxu1 %v6993_v56  ;;  %v7048_v56 = vld [vmem:[%s7681_s28 + $0x498] sm:$0xff]  }
  0xbe   : > { %6242 = vmatpush3.bf16.msra.mxu0 %v6994_v59  ;;  %v7051_v59 = vld [vmem:[%s7681_s28 + $0x410] sm:$0xff]  }
  0xbf   : > { %6271 = vmatprep.subr.bf16.mxu0 %v6996_v63  ;;  %6264 = vmatpush3.bf16.msra.mxu1 %v6995_v60  ;;  %v7052_v60 = vld [vmem:[%s7681_s28 + $0x490] sm:$0xff]   ;;  %v7054_v63 = vld [vmem:[%s7681_s28 + $0x4c8] sm:$0xff]  }
  0xc0   : > { %6293 = vmatprep.subr.bf16.mxu1 %v6997_v0 }
  0xc1   : > { %4526 = vmatmul.mubr.bf16.vlgmr.msra.gmra.mxu0 %v1318_v62  ;;  %v331_v62 = vld [vmem:[%s8316_s0 + $0x10] sm:$0xff] }
  0xc2   : > { %6272 = vmatpush3.bf16.msra.mxu0 %v6998_v2  ;;  %4605 = vmatprep.mubr.bf16.mxu0 %v1339_v1  ;;  %v1351_v0 = vrot.slane %v331_v62, %v7743_v42  ;;  %v1344_v1 = vcombine.high %v331_v62, %v331_v62  ;;  %v7055_v2 = vld [vmem:[%s7681_s28 + $0x408] sm:$0xff]  }
  0xc3   : > { %4566 = vmatmul.mubr.bf16.vlgmr.msra.gmra.mxu1 %v1340_v4  ;;  %6273 = vmatprep.subr.bf16.mxu0 %v7000_v5  ;;  %v7104_v62 = vld [vmem:[%s7681_s28 + $0x628] sm:$0xff]  }
  0xc4   : > { %6294 = vmatpush3.bf16.msra.mxu1 %v6999_v3  ;;  %4645 = vmatprep.mubr.bf16.mxu1 %v1343_v7  ;;  %v7056_v3 = vld [vmem:[%s7681_s28 + $0x488] sm:$0xff]   ;;  %v1359_v4 = vcombine.high %v1351_v0, %v1351_v0  ;;  %v7897_v5 = vrot.slane %v1344_v1, %v7743_v42  ;;  %v7058_v7 = vld [vmem:[%s7681_s28 + $0x4c0] sm:$0xff]  }
  0xc5   : > { %6295 = vmatprep.subr.bf16.mxu1 %v7001_v6  ;;  %v7057_v6 = vld [vmem:[%s7681_s28 + $0x440] sm:$0xff]  }
  0xc6   : > { %6274 = vmatpush3.bf16.msra.mxu0 %v7002_v8  ;;  %v1381_v8 = vrot.slane %v1359_v4, %v7743_v42  ;;  %v7107_v1 = vld [vmem:[%s7681_s28 + $0x6e0] sm:$0xff]   ;;  %v7110_v4 = vld [vmem:[%s7681_s28 + $0x658] sm:$0xff]  }
  0xc7   : > { %6275 = vmatprep.subr.bf16.mxu0 %v7004_v10  ;;  %v7059_v10 = vld [vmem:[%s7681_s28 + $0x400] sm:$0xff]  }
  0xc8   : > { %6296 = vmatpush3.bf16.msra.mxu1 %v7003_v9  ;;  %v1360_v9 = vcombine.high %v7897_v5, %v7897_v5 }
  0xc9   : > { %6297 = vmatprep.subr.bf16.mxu1 %v7005_v11  ;;  %v7060_v11 = vld [vmem:[%s7681_s28 + $0x480] sm:$0xff]  }
  0xca   : > { %6276 = vmatpush3.bf16.msra.mxu0 %v7006_v12  ;;  %v1391_v12 = vcombine.high %v1381_v8, %v1381_v8 }
  0xcb   : > { %6277 = vmatprep.subr.bf16.mxu0 %v7008_v14  ;;  %v7061_v14 = vld [vmem:[%s7681_s28 + $0x578] sm:$0xff]  }
  0xcc   : > { %6298 = vmatpush3.bf16.msra.mxu1 %v7007_v13  ;;  %v1367_v13 = vrot.slane %v1351_v0, %v7743_v42  ;;  %v7106_v0 = vld [vmem:[%s7681_s28 + $0x660] sm:$0xff]  }
  0xcd   : > { %6299 = vmatprep.subr.bf16.mxu1 %v7009_v15  ;;  %v7062_v15 = vld [vmem:[%s7681_s28 + $0x5f8] sm:$0xff]  }
  0xce   : > { %6278 = vmatpush3.bf16.msra.mxu0 %v7010_v16  ;;  %v1388_v16 = vrot.slane %v1360_v9, %v7743_v42  ;;  %v7115_v9 = vld [vmem:[%s7681_s28 + $0x6d0] sm:$0xff]  }
  0xcf   : > { %6279 = vmatprep.subr.bf16.mxu0 %v7012_v18  ;;  %v7064_v18 = vld [vmem:[%s7681_s28 + $0x5b8] sm:$0xff]  }
  0xd0   : > { %6300 = vmatpush3.bf16.msra.mxu1 %v7011_v17  ;;  %v7063_v17 = vld [vmem:[%s7681_s28 + $0x538] sm:$0xff]  }
  0xd1   : > { %6301 = vmatprep.subr.bf16.mxu1 %v7013_v19  ;;  %v1389_v19 = vcombine.high %v1367_v13, %v1367_v13 }
  0xd2   : > { %6280 = vmatpush3.bf16.msra.mxu0 %v7014_v20  ;;  %v7065_v20 = vld [vmem:[%s7681_s28 + $0x570] sm:$0xff]  }
  0xd3   : > { %6281 = vmatprep.subr.bf16.mxu0 %v7016_v22  ;;  %v1392_v22 = vcombine.high %v1388_v16, %v1388_v16 }
  0xd4   : > { %6302 = vmatpush3.bf16.msra.mxu1 %v7015_v21  ;;  %v7066_v21 = vld [vmem:[%s7681_s28 + $0x5f0] sm:$0xff]  }
  0xd5   : > { %6303 = vmatprep.subr.bf16.mxu1 %v7017_v23  ;;  %v7067_v23 = vld [vmem:[%s7681_s28 + $0x530] sm:$0xff]  }
  0xd6   : > { %6282 = vmatpush3.bf16.msra.mxu0 %v7018_v24  ;;  %v7068_v24 = vld [vmem:[%s7681_s28 + $0x5b0] sm:$0xff]  }
  0xd7   : > { %6283 = vmatprep.subr.bf16.mxu0 %v7020_v26  ;;  %v7070_v26 = vld [vmem:[%s7681_s28 + $0x5e8] sm:$0xff]  }
  0xd8   : > { %6304 = vmatpush3.bf16.msra.mxu1 %v7019_v25  ;;  %v7069_v25 = vld [vmem:[%s7681_s28 + $0x568] sm:$0xff]  }
  0xd9   : > { %6305 = vmatprep.subr.bf16.mxu1 %v7021_v27  ;;  %v7071_v27 = vld [vmem:[%s7681_s28 + $0x528] sm:$0xff]  }
  0xda   : > { %6284 = vmatpush3.bf16.msra.mxu0 %v7022_v28  ;;  %v7072_v28 = vld [vmem:[%s7681_s28 + $0x5a8] sm:$0xff]  }
  0xdb   : > { %6285 = vmatprep.subr.bf16.mxu0 %v7024_v30  ;;  %v7074_v30 = vld [vmem:[%s7681_s28 + $0x5e0] sm:$0xff]  }
  0xdc   : > { %6306 = vmatpush3.bf16.msra.mxu1 %v7023_v29  ;;  %v7073_v29 = vld [vmem:[%s7681_s28 + $0x560] sm:$0xff]  }
  0xdd   : > { %6307 = vmatprep.subr.bf16.mxu1 %v7025_v31  ;;  %v7075_v31 = vld [vmem:[%s7681_s28 + $0x520] sm:$0xff]  }
  0xde   : > { %6286 = vmatpush3.bf16.msra.mxu0 %v7026_v32  ;;  %v7076_v32 = vld [vmem:[%s7681_s28 + $0x5a0] sm:$0xff]  }
  0xdf   : > { %6315 = vmatprep.subr.bf16.mxu0 %v7029_v35  ;;  %v7079_v35 = vld [vmem:[%s7681_s28 + $0x518] sm:$0xff]  }
  0xe0   : > { %6308 = vmatpush3.bf16.msra.mxu1 %v7027_v33  ;;  %v7077_v33 = vld [vmem:[%s7681_s28 + $0x558] sm:$0xff]  }
  0xe1   : > { %4606 = vmatmul.mubr.bf16.vlgmr.msra.gmra.mxu0 %v1325_v34  ;;  %6337 = vmatprep.subr.bf16.mxu1 %v7030_v36  ;;  %v7078_v34 = vld [vmem:[%s7681_s28 + $0x5d8] sm:$0xff]  }
  0xe2   : > { %6316 = vmatpush3.bf16.msra.mxu0 %v7031_v37  ;;  %4685 = vmatprep.mubr.bf16.mxu0 %v1381_v8  ;;  %v7080_v36 = vld [vmem:[%s7681_s28 + $0x598] sm:$0xff]   ;;  %v7081_v37 = vld [vmem:[%s7681_s28 + $0x550] sm:$0xff]  }
  0xe3   : > { %4646 = vmatmul.mubr.bf16.vlgmr.msra.gmra.mxu1 %v1341_v39  ;;  %6317 = vmatprep.subr.bf16.mxu0 %v7033_v40  ;;  %v7083_v39 = vld [vmem:[%s7681_s28 + $0x510] sm:$0xff]  }
  0xe4   : > { %6338 = vmatpush3.bf16.msra.mxu1 %v7032_v38  ;;  %4725 = vmatprep.mubr.bf16.mxu1 %v1391_v12  ;;  %v7082_v38 = vld [vmem:[%s7681_s28 + $0x5d0] sm:$0xff]   ;;  %v7118_v12 = vld [vmem:[%s7681_s28 + $0x648] sm:$0xff]  }
  0xe5   : > { %6339 = vmatprep.subr.bf16.mxu1 %v7034_v41  ;;  %v7084_v40 = vld [vmem:[%s7681_s28 + $0x590] sm:$0xff]   ;;  %v7085_v41 = vld [vmem:[%s7681_s28 + $0x548] sm:$0xff]  }
  0xe6   : > { %6318 = vmatpush3.bf16.msra.mxu0 %v7035_v43  ;;  %v7086_v43 = vld [vmem:[%s7681_s28 + $0x5c8] sm:$0xff]   ;;  %v7114_v8 = vld [vmem:[%s7681_s28 + $0x650] sm:$0xff]  }
  0xe7   : > { %6319 = vmatprep.subr.bf16.mxu0 %v7037_v45  ;;  %v7088_v45 = vld [vmem:[%s7681_s28 + $0x588] sm:$0xff]  }
  0xe8   : > { %6340 = vmatpush3.bf16.msra.mxu1 %v7036_v44  ;;  %v7087_v44 = vld [vmem:[%s7681_s28 + $0x508] sm:$0xff]  }
  0xe9   : > { %6341 = vmatprep.subr.bf16.mxu1 %v7038_v46  ;;  %v7089_v46 = vld [vmem:[%s7681_s28 + $0x540] sm:$0xff]  }
  0xea   : > { %6320 = vmatpush3.bf16.msra.mxu0 %v7039_v47  ;;  %v7090_v47 = vld [vmem:[%s7681_s28 + $0x5c0] sm:$0xff]  }
  0xeb   : > { %6321 = vmatprep.subr.bf16.mxu0 %v7041_v49  ;;  %v7092_v49 = vld [vmem:[%s7681_s28 + $0x580] sm:$0xff]  }
  0xec   : > { %6342 = vmatpush3.bf16.msra.mxu1 %v7040_v48  ;;  %v7091_v48 = vld [vmem:[%s7681_s28 + $0x500] sm:$0xff]  }
  0xed   : > { %6343 = vmatprep.subr.bf16.mxu1 %v7042_v50  ;;  %v1374_v50 = vrot.slane %v7897_v5, %v7743_v42  ;;  %v7111_v5 = vld [vmem:[%s7681_s28 + $0x6d8] sm:$0xff]  }
  0xee   : > { %6322 = vmatpush3.bf16.msra.mxu0 %v7043_v51  ;;  %v7094_v51 = vld [vmem:[%s7681_s28 + $0x678] sm:$0xff]  }
  0xef   : > { %6323 = vmatprep.subr.bf16.mxu0 %v7045_v53  ;;  %v7096_v53 = vld [vmem:[%s7681_s28 + $0x638] sm:$0xff]  }
  0xf0   : > { %6344 = vmatpush3.bf16.msra.mxu1 %v7044_v52  ;;  %v7095_v52 = vld [vmem:[%s7681_s28 + $0x6f8] sm:$0xff]  }
  0xf1   : > { %6345 = vmatprep.subr.bf16.mxu1 %v7046_v54  ;;  %v7097_v54 = vld [vmem:[%s7681_s28 + $0x6b8] sm:$0xff]  }
  0xf2   : > { %6324 = vmatpush3.bf16.msra.mxu0 %v7047_v55  ;;  %v1390_v55 = vcombine.high %v1374_v50, %v1374_v50 }
  0xf3   : > { %6325 = vmatprep.subr.bf16.mxu0 %v7049_v57  ;;  %v7099_v57 = vld [vmem:[%s7681_s28 + $0x6f0] sm:$0xff]  }
  0xf4   : > { %6346 = vmatpush3.bf16.msra.mxu1 %v7048_v56  ;;  %v7098_v56 = vld [vmem:[%s7681_s28 + $0x670] sm:$0xff]  }
  0xf5   : > { %6347 = vmatprep.subr.bf16.mxu1 %v7050_v58  ;;  %v7100_v58 = vld [vmem:[%s7681_s28 + $0x630] sm:$0xff]  }
  0xf6   : > { %6326 = vmatpush3.bf16.msra.mxu0 %v7051_v59  ;;  %v7101_v59 = vld [vmem:[%s7681_s28 + $0x6b0] sm:$0xff]  }
  0xf7   : > { %6327 = vmatprep.subr.bf16.mxu0 %v7053_v61  ;;  %v7103_v61 = vld [vmem:[%s7681_s28 + $0x6e8] sm:$0xff]  }
  0xf8   : > { %6348 = vmatpush3.bf16.msra.mxu1 %v7052_v60  ;;  %v7102_v60 = vld [vmem:[%s7681_s28 + $0x668] sm:$0xff]  }
  0xf9   : > { %6349 = vmatprep.subr.bf16.mxu1 %v7054_v63  ;;  %v7105_v63 = vld [vmem:[%s7681_s28 + $0x6a8] sm:$0xff]  }
  0xfa   : > { %6328 = vmatpush3.bf16.msra.mxu0 %v7055_v2  ;;  %v7108_v2 = vld [vmem:[%s7681_s28 + $0x620] sm:$0xff]  }
  0xfb   : > { %6329 = vmatprep.subr.bf16.mxu0 %v7057_v6  ;;  %v7112_v6 = vld [vmem:[%s7681_s28 + $0x618] sm:$0xff]  }
  0xfc   : > { %6350 = vmatpush3.bf16.msra.mxu1 %v7056_v3  ;;  %v7109_v3 = vld [vmem:[%s7681_s28 + $0x6a0] sm:$0xff]  }
  0xfd   : > { %6351 = vmatprep.subr.bf16.mxu1 %v7058_v7  ;;  %v7113_v7 = vld [vmem:[%s7681_s28 + $0x698] sm:$0xff]  }
  0xfe   : > { %6330 = vmatpush3.bf16.msra.mxu0 %v7059_v10  ;;  %v7116_v10 = vld [vmem:[%s7681_s28 + $0x610] sm:$0xff]  }
  0xff   : > { %6359 = vmatprep.subr.bf16.mxu0 %v7061_v14  ;;  %v7119_v14 = vld [vmem:[%s7681_s28 + $0x6c8] sm:$0xff]  }
 0x100   : > { %6352 = vmatpush3.bf16.msra.mxu1 %v7060_v11  ;;  %v7117_v11 = vld [vmem:[%s7681_s28 + $0x690] sm:$0xff]  }
 0x101   : > { %4686 = vmatmul.mubr.bf16.vlgmr.msra.gmra.mxu0 %v1367_v13  ;;  %6381 = vmatprep.subr.bf16.mxu1 %v7062_v15  ;;  %v332_v13 = vld [vmem:[%s8316_s0 + $0x18] sm:$0xff] }
 0x102   : > { %6360 = vmatpush3.bf16.msra.mxu0 %v7063_v17  ;;  %4765 = vmatprep.mubr.bf16.mxu0 %v1388_v16  ;;  %v1400_v15 = vrot.slane %v332_v13, %v7743_v42  ;;  %v1393_v16 = vcombine.high %v332_v13, %v332_v13  ;;  %v7120_v17 = vld [vmem:[%s7681_s28 + $0x608] sm:$0xff]   ;;  %v7157_v13 = vld [vmem:[%s7681_s28 + $0x780] sm:$0xff]  }
 0x103   : > { %4726 = vmatmul.mubr.bf16.vlgmr.msra.gmra.mxu1 %v1389_v19  ;;  %6361 = vmatprep.subr.bf16.mxu0 %v7065_v20 }
 0x104   : > { %6382 = vmatpush3.bf16.msra.mxu1 %v7064_v18  ;;  %4805 = vmatprep.mubr.bf16.mxu1 %v1392_v22  ;;  %v7122_v18 = vld [vmem:[%s7681_s28 + $0x640] sm:$0xff]   ;;  %v1408_v19 = vcombine.high %v1400_v15, %v1400_v15  ;;  %v7975_v20 = vrot.slane %v1393_v16, %v7743_v42  ;;  %v7160_v16 = vld [vmem:[%s7681_s28 + $0x8f8] sm:$0xff]  }
 0x105   : > { %6383 = vmatprep.subr.bf16.mxu1 %v7066_v21  ;;  %v7121_v21 = vld [vmem:[%s7681_s28 + $0x688] sm:$0xff]   ;;  %v7123_v22 = vld [vmem:[%s7681_s28 + $0x6c0] sm:$0xff]  }
 0x106   : > { %6362 = vmatpush3.bf16.msra.mxu0 %v7067_v23  ;;  %v7124_v23 = vld [vmem:[%s7681_s28 + $0x600] sm:$0xff]  }
 0x107   : > { %6363 = vmatprep.subr.bf16.mxu0 %v7069_v25  ;;  %v1409_v25 = vcombine.high %v7975_v20, %v7975_v20 }
 0x108   : > { %6384 = vmatpush3.bf16.msra.mxu1 %v7068_v24  ;;  %v1430_v24 = vrot.slane %v1408_v19, %v7743_v42 }
 0x109   : > { %6385 = vmatprep.subr.bf16.mxu1 %v7070_v26  ;;  %v7125_v26 = vld [vmem:[%s7681_s28 + $0x680] sm:$0xff]  }
 0x10a   : > { %6364 = vmatpush3.bf16.msra.mxu0 %v7071_v27  ;;  %v1440_v27 = vcombine.high %v1430_v24, %v1430_v24 }
 0x10b   : > { %6365 = vmatprep.subr.bf16.mxu0 %v7073_v29  ;;  %v7126_v29 = vld [vmem:[%s7681_s28 + $0x778] sm:$0xff]  }
 0x10c   : > { %6386 = vmatpush3.bf16.msra.mxu1 %v7072_v28  ;;  %v1416_v28 = vrot.slane %v1400_v15, %v7743_v42  ;;  %v7159_v15 = vld [vmem:[%s7681_s28 + $0x878] sm:$0xff]  }
 0x10d   : > { %6387 = vmatprep.subr.bf16.mxu1 %v7074_v30  ;;  %v7127_v30 = vld [vmem:[%s7681_s28 + $0x7f8] sm:$0xff]  }
 0x10e   : > { %6366 = vmatpush3.bf16.msra.mxu0 %v7075_v31  ;;  %v1437_v31 = vrot.slane %v1409_v25, %v7743_v42 }
 0x10f   : > { %6367 = vmatprep.subr.bf16.mxu0 %v7077_v33  ;;  %v7129_v33 = vld [vmem:[%s7681_s28 + $0x7b8] sm:$0xff]  }
 0x110   : > { %6388 = vmatpush3.bf16.msra.mxu1 %v7076_v32  ;;  %v7128_v32 = vld [vmem:[%s7681_s28 + $0x738] sm:$0xff]  }
 0x111   : > { %6389 = vmatprep.subr.bf16.mxu1 %v7078_v34  ;;  %v1438_v34 = vcombine.high %v1416_v28, %v1416_v28 }
 0x112   : > { %6368 = vmatpush3.bf16.msra.mxu0 %v7079_v35  ;;  %v7130_v35 = vld [vmem:[%s7681_s28 + $0x770] sm:$0xff]  }
 0x113   : > { %6369 = vmatprep.subr.bf16.mxu0 %v7081_v37  ;;  %v1441_v37 = vcombine.high %v1437_v31, %v1437_v31 }
 0x114   : > { %6390 = vmatpush3.bf16.msra.mxu1 %v7080_v36  ;;  %v7131_v36 = vld [vmem:[%s7681_s28 + $0x7f0] sm:$0xff]  }
 0x115   : > { %6391 = vmatprep.subr.bf16.mxu1 %v7082_v38 }
 0x116   : > { %6370 = vmatpush3.bf16.msra.mxu0 %v7083_v39  ;;  %v5687_v39 = vld [vmem:[%s270_s6] ss:$0 sm:$0xff] }
 0x117   : > { %6371 = vmatprep.subr.bf16.mxu0 %v7085_v41  ;;  %v7133_v41 = vld [vmem:[%s7681_s28 + $0x7b0] sm:$0xff]  }
 0x118   : > { %6392 = vmatpush3.bf16.msra.mxu1 %v7084_v40  ;;  %v7132_v40 = vld [vmem:[%s7681_s28 + $0x730] sm:$0xff]  }
 0x119   : > { %6393 = vmatprep.subr.bf16.mxu1 %v7086_v43 }
 0x11a   : > { %6372 = vmatpush3.bf16.msra.mxu0 %v7087_v44 }
 0x11b   : > { %6373 = vmatprep.subr.bf16.mxu0 %v7089_v46 }
 0x11c   : > { %6394 = vmatpush3.bf16.msra.mxu1 %v7088_v45  ;;  %v7134_v45 = vld [vmem:[%s7681_s28 + $0x768] sm:$0xff]  }
 0x11d   : > { %6395 = vmatprep.subr.bf16.mxu1 %v7090_v47  ;;  %v7135_v47 = vld [vmem:[%s7681_s28 + $0x7e8] sm:$0xff]  }
 0x11e   : > { %6374 = vmatpush3.bf16.msra.mxu0 %v7091_v48 }
 0x11f   : > { %6403 = vmatprep.subr.bf16.mxu0 %v7094_v51 }
 0x120   : > { %6396 = vmatpush3.bf16.msra.mxu1 %v7092_v49 }
 0x121   : > { %4766 = vmatmul.mubr.bf16.vlgmr.msra.gmra.mxu0 %v1374_v50  ;;  %6425 = vmatprep.subr.bf16.mxu1 %v7095_v52  ;;  %v7136_v50 = vld [vmem:[%s7681_s28 + $0x728] sm:$0xff]  }
 0x122   : > { %6404 = vmatpush3.bf16.msra.mxu0 %v7096_v53  ;;  %4845 = vmatprep.mubr.bf16.mxu0 %v1430_v24  ;;  %v7137_v53 = vld [vmem:[%s7681_s28 + $0x7a8] sm:$0xff]   ;;  %v7166_v24 = vld [vmem:[%s7681_s28 + $0x8b0] sm:$0xff]  }
 0x123   : > { %4806 = vmatmul.mubr.bf16.vlgmr.msra.gmra.mxu1 %v1390_v55  ;;  %6405 = vmatprep.subr.bf16.mxu0 %v7098_v56  ;;  %v7138_v56 = vld [vmem:[%s7681_s28 + $0x760] sm:$0xff]  }
 0x124   : > { %6426 = vmatpush3.bf16.msra.mxu1 %v7097_v54  ;;  %4885 = vmatprep.mubr.bf16.mxu1 %v1440_v27  ;;  %v7167_v27 = vld [vmem:[%s7681_s28 + $0x868] sm:$0xff]  }
 0x125   : > { %6427 = vmatprep.subr.bf16.mxu1 %v7099_v57 }
 0x126   : > { %6406 = vmatpush3.bf16.msra.mxu0 %v7100_v58  ;;  %v7139_v58 = vld [vmem:[%s7681_s28 + $0x7e0] sm:$0xff]  }
 0x127   : > { %6407 = vmatprep.subr.bf16.mxu0 %v7102_v60  ;;  %v7140_v60 = vld [vmem:[%s7681_s28 + $0x720] sm:$0xff]  }
 0x128   : > { %6428 = vmatpush3.bf16.msra.mxu1 %v7101_v59 }
 0x129   : > { %6429 = vmatprep.subr.bf16.mxu1 %v7103_v61  ;;  %v7141_v61 = vld [vmem:[%s7681_s28 + $0x7a0] sm:$0xff]  }
 0x12a   : > { %6408 = vmatpush3.bf16.msra.mxu0 %v7104_v62  ;;  %v7142_v62 = vld [vmem:[%s7681_s28 + $0x758] sm:$0xff]  }
 0x12b   : > { %6409 = vmatprep.subr.bf16.mxu0 %v7106_v0  ;;  %v7144_v0 = vld [vmem:[%s7681_s28 + $0x718] sm:$0xff]  }
 0x12c   : > { %6430 = vmatpush3.bf16.msra.mxu1 %v7105_v63  ;;  %v7143_v63 = vld [vmem:[%s7681_s28 + $0x7d8] sm:$0xff]  }
 0x12d   : > { %6431 = vmatprep.subr.bf16.mxu1 %v7107_v1  ;;  %v7145_v1 = vld [vmem:[%s7681_s28 + $0x798] sm:$0xff]  }
 0x12e   : > { %6410 = vmatpush3.bf16.msra.mxu0 %v7108_v2  ;;  %v7146_v2 = vld [vmem:[%s7681_s28 + $0x750] sm:$0xff]  }
 0x12f   : > { %6411 = vmatprep.subr.bf16.mxu0 %v7110_v4  ;;  %v7148_v4 = vld [vmem:[%s7681_s28 + $0x710] sm:$0xff]  }
 0x130   : > { %6432 = vmatpush3.bf16.msra.mxu1 %v7109_v3  ;;  %v7147_v3 = vld [vmem:[%s7681_s28 + $0x7d0] sm:$0xff]  }
 0x131   : > { %6433 = vmatprep.subr.bf16.mxu1 %v7111_v5  ;;  %v7149_v5 = vld [vmem:[%s7681_s28 + $0x790] sm:$0xff]  }
 0x132   : > { %6412 = vmatpush3.bf16.msra.mxu0 %v7112_v6  ;;  %v7150_v6 = vld [vmem:[%s7681_s28 + $0x748] sm:$0xff]  }
 0x133   : > { %6413 = vmatprep.subr.bf16.mxu0 %v7114_v8  ;;  %v7152_v8 = vld [vmem:[%s7681_s28 + $0x708] sm:$0xff]  }
 0x134   : > { %6434 = vmatpush3.bf16.msra.mxu1 %v7113_v7  ;;  %v7151_v7 = vld [vmem:[%s7681_s28 + $0x7c8] sm:$0xff]  }
 0x135   : > { %6435 = vmatprep.subr.bf16.mxu1 %v7115_v9  ;;  %v7153_v9 = vld [vmem:[%s7681_s28 + $0x788] sm:$0xff]  }
 0x136   : > { %6414 = vmatpush3.bf16.msra.mxu0 %v7116_v10  ;;  %v7154_v10 = vld [vmem:[%s7681_s28 + $0x740] sm:$0xff]  }
 0x137   : > { %6415 = vmatprep.subr.bf16.mxu0 %v7118_v12  ;;  %v7156_v12 = vld [vmem:[%s7681_s28 + $0x700] sm:$0xff]  }
 0x138   : > { %6436 = vmatpush3.bf16.msra.mxu1 %v7117_v11  ;;  %v7155_v11 = vld [vmem:[%s7681_s28 + $0x7c0] sm:$0xff]  }
 0x139   : > { %6437 = vmatprep.subr.bf16.mxu1 %v7119_v14  ;;  %v1423_v14 = vrot.slane %v7975_v20, %v7743_v42  ;;  %v7165_v20 = vld [vmem:[%s7681_s28 + $0x830] sm:$0xff]  }
 0x13a   : > { %6416 = vmatpush3.bf16.msra.mxu0 %v7120_v17  ;;  %v7161_v17 = vld [vmem:[%s7681_s28 + $0x838] sm:$0xff]  }
 0x13b   : > { %6417 = vmatprep.subr.bf16.mxu0 %v7122_v18  ;;  %v7162_v18 = vld [vmem:[%s7681_s28 + $0x8b8] sm:$0xff]   ;;  %v1439_v19 = vcombine.high %v1423_v14, %v1423_v14 }
 0x13c   : > { %6438 = vmatpush3.bf16.msra.mxu1 %v7121_v21  ;;  %v7163_v21 = vld [vmem:[%s7681_s28 + $0x870] sm:$0xff]  }
 0x13d   : > { %6439 = vmatprep.subr.bf16.mxu1 %v7123_v22  ;;  %v7164_v22 = vld [vmem:[%s7681_s28 + $0x8f0] sm:$0xff]  }
 0x13e   : > { %6418 = vmatpush3.bf16.msra.mxu0 %v7124_v23 }
 0x13f   : > { %6447 = vmatprep.subr.bf16.mxu0 %v7126_v29  ;;  %v7168_v29 = vld [vmem:[%s7681_s28 + $0x8e8] sm:$0xff]  }
 0x140   : > { %6440 = vmatpush3.bf16.msra.mxu1 %v7125_v26 }
 0x141   : > { %v6155_v38 = vpop.f32.mrf.mxu0  ;;  %4846 = vmatmul.mubr.bf16.vlgmr.msra.gmra.mxu0 %v1416_v28  ;;  %6469 = vmatprep.subr.bf16.mxu1 %v7127_v30 }
 0x142   : > { %6448 = vmatpush3.bf16.msra.mxu0 %v7128_v32  ;;  %4925 = vmatprep.mubr.bf16.mxu0 %v1437_v31  ;;  %v6177_v43 = vpop.f32.mrf.mxu1  ;;  %v7169_v32 = vld [vmem:[%s7681_s28 + $0x828] sm:$0xff]  }
 0x143   : > { %4886 = vmatmul.mubr.bf16.vlgmr.msra.gmra.mxu1 %v1438_v34  ;;  %v6156_v44 = vpop.f32.mrf.mxu0  ;;  %6449 = vmatprep.subr.bf16.mxu0 %v7130_v35  ;;  %v7170_v35 = vld [vmem:[%s7681_s28 + $0x8a8] sm:$0xff]  }
 0x144   : > { %6470 = vmatpush3.bf16.msra.mxu1 %v7129_v33  ;;  %v6157_v46 = vadd.f32 %v6156_v44, %v6155_v38  ;;  %4965 = vmatprep.mubr.bf16.mxu1 %v1441_v37  ;;  %v6178_v48 = vpop.f32.mrf.mxu1  ;;  %v7171_v38 = vld [vmem:[%s7681_s28 + $0x860] sm:$0xff]  }
 0x145   : > { %v6158_v49 = vpop.f32.mrf.mxu0  ;;  %6471 = vmatprep.subr.bf16.mxu1 %v7131_v36  ;;  %v6179_v52 = vadd.f32 %v6178_v48, %v6177_v43  ;;  %v7173_v43 = vld [vmem:[%s7681_s28 + $0x820] sm:$0xff]   ;;  %v7178_v48 = vld [vmem:[%s7681_s28 + $0x898] sm:$0xff]  }
 0x146   : > { %v4368_v51 = vadd.f32 %v6157_v46, %v5687_v39  ;;  %6450 = vmatpush3.bf16.msra.mxu0 %v7132_v40  ;;  %v6180_v54 = vpop.f32.mrf.mxu1  ;;  %v7172_v40 = vld [vmem:[%s7681_s28 + $0x8e0] sm:$0xff]   ;;  %v7176_v46 = vld [vmem:[%s7681_s28 + $0x8d8] sm:$0xff]   ;;  %v7179_v49 = vld [vmem:[%s7681_s28 + $0x850] sm:$0xff]  }
 0x147   : > { %v6159_v55 = vpop.f32.mrf.mxu0  ;;  %6451 = vmatprep.subr.bf16.mxu0 %v7134_v45  ;;  %v7174_v44 = vld [vmem:[%s7681_s28 + $0x8a0] sm:$0xff]   ;;  %v7175_v45 = vld [vmem:[%s7681_s28 + $0x858] sm:$0xff]   ;;  %v7184_v54 = vld [vmem:[%s7681_s28 + $0x8c8] sm:$0xff]  }
 0x148   : > { %v8001_v57 = vadd.f32 %v6179_v52, %v4368_v51  ;;  %6472 = vmatpush3.bf16.msra.mxu1 %v7133_v41  ;;  %v6181_v59 = vpop.f32.mrf.mxu1  ;;  %v7181_v51 = vld [vmem:[%s7681_s28 + $0x810] sm:$0xff]   ;;  %v333_v55 = vld [vmem:[%s8316_s0 + $0x20] sm:$0xff] }
 0x149   : > { %6473 = vmatprep.subr.bf16.mxu1 %v7135_v47  ;;  %v7177_v47 = vld [vmem:[%s7681_s28 + $0x818] sm:$0xff]   ;;  %v7182_v52 = vld [vmem:[%s7681_s28 + $0x890] sm:$0xff]   ;;  %v7186_v59 = vld [vmem:[%s7681_s28 + $0x888] sm:$0xff]  }
 0x14a   : > { %6452 = vmatpush3.bf16.msra.mxu0 %v7136_v50  ;;  %v7180_v50 = vld [vmem:[%s7681_s28 + $0x8d0] sm:$0xff]  }
 0x14b   : > { %6453 = vmatprep.subr.bf16.mxu0 %v7138_v56  ;;  %v7185_v56 = vld [vmem:[%s7681_s28 + $0x808] sm:$0xff]  }
 0x14c   : > { %6474 = vmatpush3.bf16.msra.mxu1 %v7137_v53  ;;  %v7183_v53 = vld [vmem:[%s7681_s28 + $0x848] sm:$0xff]  }
 0x14d   : > { %6475 = vmatprep.subr.bf16.mxu1 %v7139_v58  ;;  %v1442_v58 = vcombine.high %v333_v55, %v333_v55 }
 0x14e   : > { %6454 = vmatpush3.bf16.msra.mxu0 %v7140_v60  ;;  %v7187_v60 = vld [vmem:[%s7681_s28 + $0x840] sm:$0xff]  }
 0x14f   : > { %6455 = vmatprep.subr.bf16.mxu0 %v7142_v62  ;;  %v8061_v62 = vrot.slane %v1442_v58, %v7743_v42  ;;  %v7227_v58 = vld [vmem:[%s7681_s28 + $0xab8] sm:$0xff]  }
 0x150   : > { %6476 = vmatpush3.bf16.msra.mxu1 %v7141_v61 }
 0x151   : > { %6477 = vmatprep.subr.bf16.mxu1 %v7143_v63  ;;  %v7188_v63 = vld [vmem:[%s7681_s28 + $0x8c0] sm:$0xff]  }
 0x152   : > { %6456 = vmatpush3.bf16.msra.mxu0 %v7144_v0  ;;  %v7189_v0 = vld [vmem:[%s7681_s28 + $0x800] sm:$0xff]  }
 0x153   : > { %6457 = vmatprep.subr.bf16.mxu0 %v7146_v2  ;;  %v1458_v2 = vcombine.high %v8061_v62, %v8061_v62 }
 0x154   : > { %6478 = vmatpush3.bf16.msra.mxu1 %v7145_v1 }
 0x155   : > { %6479 = vmatprep.subr.bf16.mxu1 %v7147_v3  ;;  %v7190_v3 = vld [vmem:[%s7681_s28 + $0x880] sm:$0xff]  }
 0x156   : > { %6458 = vmatpush3.bf16.msra.mxu0 %v7148_v4 }
 0x157   : > { %6459 = vmatprep.subr.bf16.mxu0 %v7150_v6  ;;  %v7191_v6 = vld [vmem:[%s7681_s28 + $0x978] sm:$0xff]  }
 0x158   : > { %6480 = vmatpush3.bf16.msra.mxu1 %v7149_v5 }
 0x159   : > { %6481 = vmatprep.subr.bf16.mxu1 %v7151_v7  ;;  %v7192_v7 = vld [vmem:[%s7681_s28 + $0x9f8] sm:$0xff]  }
 0x15a   : > { %6460 = vmatpush3.bf16.msra.mxu0 %v7152_v8  ;;  %v1486_v8 = vrot.slane %v1458_v2, %v7743_v42 }
 0x15b   : > { %6461 = vmatprep.subr.bf16.mxu0 %v7154_v10  ;;  %v7194_v10 = vld [vmem:[%s7681_s28 + $0x9b8] sm:$0xff]  }
 0x15c   : > { %6482 = vmatpush3.bf16.msra.mxu1 %v7153_v9  ;;  %v7193_v9 = vld [vmem:[%s7681_s28 + $0x938] sm:$0xff]  }
 0x15d   : > { %6483 = vmatprep.subr.bf16.mxu1 %v7155_v11 }
 0x15e   : > { %6462 = vmatpush3.bf16.msra.mxu0 %v7156_v12  ;;  %v7195_v12 = vld [vmem:[%s7681_s28 + $0x970] sm:$0xff]  }
 0x15f   : > { %6491 = vmatprep.subr.bf16.mxu0 %v7159_v15 }
 0x160   : > { %6484 = vmatpush3.bf16.msra.mxu1 %v7157_v13  ;;  %v7196_v13 = vld [vmem:[%s7681_s28 + $0x9f0] sm:$0xff]  }
 0x161   : > { %v6199_v23 = vpop.f32.mrf.mxu0  ;;  %4926 = vmatmul.mubr.bf16.vlgmr.msra.gmra.mxu0 %v1423_v14  ;;  %6513 = vmatprep.subr.bf16.mxu1 %v7160_v16  ;;  %v1490_v14 = vcombine.high %v1486_v8, %v1486_v8  ;;  %v7197_v16 = vld [vmem:[%s7681_s28 + $0x930] sm:$0xff]  }
 0x162   : > { %6492 = vmatpush3.bf16.msra.mxu0 %v7161_v17  ;;  %v6221_v25 = vpop.f32.mrf.mxu1  ;;  %v7198_v17 = vld [vmem:[%s7681_s28 + $0x9b0] sm:$0xff]  }
 0x163   : > { %4966 = vmatmul.mubr.bf16.vlgmr.msra.gmra.mxu1 %v1439_v19  ;;  %v6200_v26 = vpop.f32.mrf.mxu0  ;;  %6493 = vmatprep.subr.bf16.mxu0 %v7163_v21  ;;  %v7199_v21 = vld [vmem:[%s7681_s28 + $0x968] sm:$0xff]  }
 0x164   : > { %6514 = vmatpush3.bf16.msra.mxu1 %v7162_v18  ;;  %v6201_v28 = vadd.f32 %v6200_v26, %v6199_v23  ;;  %v6222_v30 = vpop.f32.mrf.mxu1  ;;  %v7200_v23 = vld [vmem:[%s7681_s28 + $0x9e8] sm:$0xff]  }
 0x165   : > { %v6202_v31 = vpop.f32.mrf.mxu0  ;;  %6515 = vmatprep.subr.bf16.mxu1 %v7164_v22  ;;  %v6223_v34 = vadd.f32 %v6222_v30, %v6221_v25  ;;  %v7201_v25 = vld [vmem:[%s7681_s28 + $0x928] sm:$0xff]  }
 0x166   : > { %v4448_v33 = vadd.f32 %v6201_v28, %v8001_v57  ;;  %6494 = vmatpush3.bf16.msra.mxu0 %v7165_v20  ;;  %v6224_v36 = vpop.f32.mrf.mxu1  ;;  %v1449_v57 = vrot.slane %v333_v55, %v7743_v42  ;;  %v7202_v28 = vld [vmem:[%s7681_s28 + $0x9a8] sm:$0xff]   ;;  %v7203_v31 = vld [vmem:[%s7681_s28 + $0x960] sm:$0xff]   ;;  %v7224_v55 = vld [vmem:[%s7681_s28 + $0xa78] sm:$0xff]  }
 0x167   : > { %v6203_v37 = vpop.f32.mrf.mxu0  ;;  %6495 = vmatprep.subr.bf16.mxu0 %v7167_v27  ;;  %v7206_v36 = vld [vmem:[%s7681_s28 + $0x9a0] sm:$0xff]  }
 0x168   : > { %v8038_v39 = vadd.f32 %v6223_v34, %v4448_v33  ;;  %6516 = vmatpush3.bf16.msra.mxu1 %v7166_v24  ;;  %v6225_v41 = vpop.f32.mrf.mxu1  ;;  %v1457_v61 = vcombine.high %v1449_v57, %v1449_v57  ;;  %v1465_v5 = vrot.slane %v1449_v57, %v7743_v42  ;;  %v7204_v33 = vld [vmem:[%s7681_s28 + $0x9e0] sm:$0xff]   ;;  %v7207_v37 = vld [vmem:[%s7681_s28 + $0x958] sm:$0xff]  }
 0x169   : > { %6517 = vmatprep.subr.bf16.mxu1 %v7168_v29  ;;  %v7211_v41 = vld [vmem:[%s7681_s28 + $0x950] sm:$0xff]   ;;  %v7226_v57 = vld [vmem:[%s7681_s28 + $0xa38] sm:$0xff]  }
 0x16a   : > { %6496 = vmatpush3.bf16.msra.mxu0 %v7169_v32  ;;  %v1479_v1 = vrot.slane %v1457_v61, %v7743_v42  ;;  %v1487_v11 = vcombine.high %v1465_v5, %v1465_v5  ;;  %v7229_v61 = vld [vmem:[%s7681_s28 + $0xaf0] sm:$0xff]  }
 0x16b   : > { %6497 = vmatprep.subr.bf16.mxu0 %v7171_v38  ;;  %v7208_v38 = vld [vmem:[%s7681_s28 + $0x9d8] sm:$0xff]  }
 0x16c   : > { %6518 = vmatpush3.bf16.msra.mxu1 %v7170_v35  ;;  %5005 = vmatprep.mubr.bf16.mxu0 %v1479_v1  ;;  %v1489_v4 = vcombine.high %v1479_v1, %v1479_v1  ;;  %v7205_v35 = vld [vmem:[%s7681_s28 + $0x920] sm:$0xff]  }
 0x16d   : > { %6519 = vmatprep.subr.bf16.mxu1 %v7172_v40  ;;  %v7210_v40 = vld [vmem:[%s7681_s28 + $0x998] sm:$0xff]  }
 0x16e   : > { %6498 = vmatpush3.bf16.msra.mxu0 %v7173_v43  ;;  %5045 = vmatprep.mubr.bf16.mxu1 %v1489_v4  ;;  %v7212_v43 = vld [vmem:[%s7681_s28 + $0x9d0] sm:$0xff]  }
 0x16f   : > { %6499 = vmatprep.subr.bf16.mxu0 %v7175_v45  ;;  %v7214_v45 = vld [vmem:[%s7681_s28 + $0x990] sm:$0xff]  }
 0x170   : > { %6520 = vmatpush3.bf16.msra.mxu1 %v7174_v44  ;;  %v7213_v44 = vld [vmem:[%s7681_s28 + $0x910] sm:$0xff]  }
 0x171   : > { %6521 = vmatprep.subr.bf16.mxu1 %v7176_v46  ;;  %v7215_v46 = vld [vmem:[%s7681_s28 + $0x948] sm:$0xff]  }
 0x172   : > { %6500 = vmatpush3.bf16.msra.mxu0 %v7177_v47  ;;  %v7216_v47 = vld [vmem:[%s7681_s28 + $0x9c8] sm:$0xff]  }
 0x173   : > { %6501 = vmatprep.subr.bf16.mxu0 %v7179_v49  ;;  %v7218_v49 = vld [vmem:[%s7681_s28 + $0x988] sm:$0xff]  }
 0x174   : > { %6522 = vmatpush3.bf16.msra.mxu1 %v7178_v48  ;;  %v7217_v48 = vld [vmem:[%s7681_s28 + $0x908] sm:$0xff]  }
 0x175   : > { %6523 = vmatprep.subr.bf16.mxu1 %v7180_v50  ;;  %v7219_v50 = vld [vmem:[%s7681_s28 + $0x940] sm:$0xff]  }
 0x176   : > { %6502 = vmatpush3.bf16.msra.mxu0 %v7181_v51  ;;  %v7220_v51 = vld [vmem:[%s7681_s28 + $0x9c0] sm:$0xff]  }
 0x177   : > { %6503 = vmatprep.subr.bf16.mxu0 %v7183_v53  ;;  %v7222_v53 = vld [vmem:[%s7681_s28 + $0x980] sm:$0xff]  }
 0x178   : > { %6524 = vmatpush3.bf16.msra.mxu1 %v7182_v52  ;;  %v7221_v52 = vld [vmem:[%s7681_s28 + $0x900] sm:$0xff]  }
 0x179   : > { %6525 = vmatprep.subr.bf16.mxu1 %v7184_v54  ;;  %v1472_v54 = vrot.slane %v8061_v62, %v7743_v42  ;;  %v7230_v62 = vld [vmem:[%s7681_s28 + $0xa30] sm:$0xff]  }
 0x17a   : > { %6504 = vmatpush3.bf16.msra.mxu0 %v7185_v56  ;;  %v7225_v56 = vld [vmem:[%s7681_s28 + $0xaf8] sm:$0xff]  }
 0x17b   : > { %6505 = vmatprep.subr.bf16.mxu0 %v7187_v60  ;;  %v7228_v60 = vld [vmem:[%s7681_s28 + $0xa70] sm:$0xff]  }
 0x17c   : > { %6526 = vmatpush3.bf16.msra.mxu1 %v7186_v59  ;;  %v1488_v59 = vcombine.high %v1472_v54, %v1472_v54 }
 0x17d   : > { %6527 = vmatprep.subr.bf16.mxu1 %v7188_v63 }
 0x17e   : > { %6506 = vmatpush3.bf16.msra.mxu0 %v7189_v0  ;;  %v7231_v0 = vld [vmem:[%s7681_s28 + $0xab0] sm:$0xff]  }
 0x17f   : > { %6535 = vmatprep.subr.bf16.mxu0 %v7191_v6 }
 0x180   : > { %6528 = vmatpush3.bf16.msra.mxu1 %v7190_v3  ;;  %v7232_v3 = vld [vmem:[%s7681_s28 + $0xa68] sm:$0xff]  }
 0x181   : > { %v6243_v15 = vpop.f32.mrf.mxu0  ;;  %5006 = vmatmul.mubr.bf16.vlgmr.msra.gmra.mxu0 %v1465_v5  ;;  %6557 = vmatprep.subr.bf16.mxu1 %v7192_v7  ;;  %v7233_v5 = vld [vmem:[%s7681_s28 + $0xae8] sm:$0xff]  }
 0x182   : > { %6536 = vmatpush3.bf16.msra.mxu0 %v7193_v9  ;;  %5085 = vmatprep.mubr.bf16.mxu0 %v1486_v8  ;;  %v7234_v8 = vld [vmem:[%s7681_s28 + $0xa28] sm:$0xff]  }
 0x183   : > { %v6265_v18 = vpop.f32.mrf.mxu1  ;;  %5046 = vmatmul.mubr.bf16.vlgmr.msra.gmra.mxu1 %v1487_v11  ;;  %v6244_v19 = vpop.f32.mrf.mxu0  ;;  %6537 = vmatprep.subr.bf16.mxu0 %v7195_v12  ;;  %v7235_v11 = vld [vmem:[%s7681_s28 + $0xaa8] sm:$0xff]  }
 0x184   : > { %6558 = vmatpush3.bf16.msra.mxu1 %v7194_v10  ;;  %v6245_v22 = vadd.f32 %v6244_v19, %v6243_v15  ;;  %5125 = vmatprep.mubr.bf16.mxu1 %v1490_v14  ;;  %v7236_v14 = vld [vmem:[%s7681_s28 + $0xa60] sm:$0xff]  }
 0x185   : > { %v6266_v20 = vpop.f32.mrf.mxu1  ;;  %v6246_v24 = vpop.f32.mrf.mxu0  ;;  %6559 = vmatprep.subr.bf16.mxu1 %v7196_v13  ;;  %v7239_v19 = vld [vmem:[%s7681_s28 + $0xaa0] sm:$0xff]  }
 0x186   : > { %v4528_v26 = vadd.f32 %v6245_v22, %v8038_v39  ;;  %v6267_v27 = vadd.f32 %v6266_v20, %v6265_v18  ;;  %6538 = vmatpush3.bf16.msra.mxu0 %v7197_v16  ;;  %v7209_v39 = vld [vmem:[%s7681_s28 + $0x918] sm:$0xff]   ;;  %v7237_v16 = vld [vmem:[%s7681_s28 + $0xae0] sm:$0xff]   ;;  %v7244_v24 = vld [vmem:[%s7681_s28 + $0xa50] sm:$0xff]  }
 0x187   : > { %v6268_v29 = vpop.f32.mrf.mxu1  ;;  %v6247_v30 = vpop.f32.mrf.mxu0  ;;  %6539 = vmatprep.subr.bf16.mxu0 %v7199_v21  ;;  %v7238_v18 = vld [vmem:[%s7681_s28 + $0xa20] sm:$0xff]   ;;  %v7240_v21 = vld [vmem:[%s7681_s28 + $0xa58] sm:$0xff]  }
 0x188   : > { %v8085_v32 = vadd.f32 %v6267_v27, %v4528_v26  ;;  %6560 = vmatpush3.bf16.msra.mxu1 %v7198_v17  ;;  %v7241_v22 = vld [vmem:[%s7681_s28 + $0xad8] sm:$0xff]   ;;  %v7246_v26 = vld [vmem:[%s7681_s28 + $0xa10] sm:$0xff]   ;;  %v7249_v29 = vld [vmem:[%s7681_s28 + $0xac8] sm:$0xff]  }
 0x189   : > { %v6269_v34 = vpop.f32.mrf.mxu1  ;;  %6561 = vmatprep.subr.bf16.mxu1 %v7200_v23  ;;  %v7242_v23 = vld [vmem:[%s7681_s28 + $0xa18] sm:$0xff]   ;;  %v7247_v27 = vld [vmem:[%s7681_s28 + $0xa90] sm:$0xff]   ;;  %v334_v30 = vld [vmem:[%s8316_s0 + $0x28] sm:$0xff] }
 0x18a   : > { %6540 = vmatpush3.bf16.msra.mxu0 %v7201_v25  ;;  %v7243_v20 = vld [vmem:[%s7681_s28 + $0xa98] sm:$0xff]   ;;  %v7245_v25 = vld [vmem:[%s7681_s28 + $0xad0] sm:$0xff]   ;;  %v7252_v34 = vld [vmem:[%s7681_s28 + $0xa40] sm:$0xff]  }
 0x18b   : > { %6541 = vmatprep.subr.bf16.mxu0 %v7203_v31  ;;  %v7250_v31 = vld [vmem:[%s7681_s28 + $0xa08] sm:$0xff]  }
 0x18c   : > { %6562 = vmatpush3.bf16.msra.mxu1 %v7202_v28  ;;  %v7248_v28 = vld [vmem:[%s7681_s28 + $0xa48] sm:$0xff]  }
 0x18d   : > { %6563 = vmatprep.subr.bf16.mxu1 %v7204_v33  ;;  %v1491_v33 = vcombine.high %v334_v30, %v334_v30 }
 0x18e   : > { %6542 = vmatpush3.bf16.msra.mxu0 %v7205_v35  ;;  %v7251_v35 = vld [vmem:[%s7681_s28 + $0xa88] sm:$0xff]  }
 0x18f   : > { %6543 = vmatprep.subr.bf16.mxu0 %v7207_v37  ;;  %v8145_v37 = vrot.slane %v1491_v33, %v7743_v42 }
 0x190   : > { %6564 = vmatpush3.bf16.msra.mxu1 %v7206_v36 }
 0x191   : > { %6565 = vmatprep.subr.bf16.mxu1 %v7208_v38  ;;  %v7253_v38 = vld [vmem:[%s7681_s28 + $0xac0] sm:$0xff]  }
 0x192   : > { %6544 = vmatpush3.bf16.msra.mxu0 %v7209_v39  ;;  %v7254_v39 = vld [vmem:[%s7681_s28 + $0xa00] sm:$0xff]  }
 0x193   : > { %6545 = vmatprep.subr.bf16.mxu0 %v7211_v41  ;;  %v1507_v41 = vcombine.high %v8145_v37, %v8145_v37 }
 0x194   : > { %6566 = vmatpush3.bf16.msra.mxu1 %v7210_v40 }
 0x195   : > { %6567 = vmatprep.subr.bf16.mxu1 %v7212_v43 }
 0x196   : > { %6546 = vmatpush3.bf16.msra.mxu0 %v7213_v44  ;;  %v7256_v44 = vld [vmem:[%s7681_s28 + $0xb78] sm:$0xff]  }
 0x197   : > { %6547 = vmatprep.subr.bf16.mxu0 %v7215_v46 }
 0x198   : > { %6568 = vmatpush3.bf16.msra.mxu1 %v7214_v45  ;;  %v7255_v45 = vld [vmem:[%s7681_s28 + $0xa80] sm:$0xff]  }
 0x199   : > { %6569 = vmatprep.subr.bf16.mxu1 %v7216_v47  ;;  %v1535_v47 = vrot.slane %v1507_v41, %v7743_v42  ;;  %v7297_v41 = vld [vmem:[%s7681_s28 + $0xc68] sm:$0xff]  }
 0x19a   : > { %6548 = vmatpush3.bf16.msra.mxu0 %v7217_v48  ;;  %v7257_v48 = vld [vmem:[%s7681_s28 + $0xbf8] sm:$0xff]  }
 0x19b   : > { %6549 = vmatprep.subr.bf16.mxu0 %v7219_v50 }
 0x19c   : > { %6570 = vmatpush3.bf16.msra.mxu1 %v7218_v49  ;;  %v7258_v49 = vld [vmem:[%s7681_s28 + $0xb38] sm:$0xff]  }
 0x19d   : > { %6571 = vmatprep.subr.bf16.mxu1 %v7220_v51  ;;  %v7260_v51 = vld [vmem:[%s7681_s28 + $0xb70] sm:$0xff]  }
 0x19e   : > { %6550 = vmatpush3.bf16.msra.mxu0 %v7221_v52  ;;  %v7259_v52 = vld [vmem:[%s7681_s28 + $0xbb8] sm:$0xff]  }
 0x19f   : > { %6579 = vmatprep.subr.bf16.mxu0 %v7224_v55  ;;  %v7261_v55 = vld [vmem:[%s7681_s28 + $0xbf0] sm:$0xff]  }
 0x1a0   : > { %6572 = vmatpush3.bf16.msra.mxu1 %v7222_v53  ;;  %v1539_v53 = vcombine.high %v1535_v47, %v1535_v47 }
 0x1a1   : > { %v6287_v63 = vpop.f32.mrf.mxu0  ;;  %5086 = vmatmul.mubr.bf16.vlgmr.msra.gmra.mxu0 %v1472_v54  ;;  %6601 = vmatprep.subr.bf16.mxu1 %v7225_v56  ;;  %v7262_v56 = vld [vmem:[%s7681_s28 + $0xb30] sm:$0xff]  }
 0x1a2   : > { %6580 = vmatpush3.bf16.msra.mxu0 %v7226_v57 }
 0x1a3   : > { %v6309_v1 = vpop.f32.mrf.mxu1  ;;  %5126 = vmatmul.mubr.bf16.vlgmr.msra.gmra.mxu1 %v1488_v59  ;;  %v6288_v2 = vpop.f32.mrf.mxu0  ;;  %6581 = vmatprep.subr.bf16.mxu0 %v7228_v60  ;;  %v7264_v59 = vld [vmem:[%s7681_s28 + $0xb68] sm:$0xff]  }
 0x1a4   : > { %6602 = vmatpush3.bf16.msra.mxu1 %v7227_v58  ;;  %v6289_v4 = vadd.f32 %v6288_v2, %v6287_v63 }
 0x1a5   : > { %v6310_v6 = vpop.f32.mrf.mxu1  ;;  %v6290_v7 = vpop.f32.mrf.mxu0  ;;  %6603 = vmatprep.subr.bf16.mxu1 %v7229_v61  ;;  %v7263_v61 = vld [vmem:[%s7681_s28 + $0xbb0] sm:$0xff]  }
 0x1a6   : > { %v4608_v9 = vadd.f32 %v6289_v4, %v8085_v32  ;;  %v6311_v10 = vadd.f32 %v6310_v6, %v6309_v1  ;;  %6582 = vmatpush3.bf16.msra.mxu0 %v7230_v62  ;;  %v1498_v32 = vrot.slane %v334_v30, %v7743_v42  ;;  %v7268_v6 = vld [vmem:[%s7681_s28 + $0xb60] sm:$0xff]  }
 0x1a7   : > { %v6312_v12 = vpop.f32.mrf.mxu1  ;;  %v6291_v13 = vpop.f32.mrf.mxu0  ;;  %6583 = vmatprep.subr.bf16.mxu0 %v7232_v3  ;;  %v7266_v3 = vld [vmem:[%s7681_s28 + $0xb28] sm:$0xff]   ;;  %v7287_v30 = vld [vmem:[%s7681_s28 + $0xb80] sm:$0xff]  }
 0x1a8   : > { %v8122_v15 = vadd.f32 %v6311_v10, %v4608_v9  ;;  %6604 = vmatpush3.bf16.msra.mxu1 %v7231_v0  ;;  %v1506_v36 = vcombine.high %v1498_v32, %v1498_v32  ;;  %v1514_v43 = vrot.slane %v1498_v32, %v7743_v42  ;;  %v7265_v0 = vld [vmem:[%s7681_s28 + $0xbe8] sm:$0xff]   ;;  %v7269_v10 = vld [vmem:[%s7681_s28 + $0xbe0] sm:$0xff]   ;;  %v7272_v12 = vld [vmem:[%s7681_s28 + $0xb58] sm:$0xff]  }
 0x1a9   : > { %v6313_v17 = vpop.f32.mrf.mxu1  ;;  %6605 = vmatprep.subr.bf16.mxu1 %v7233_v5  ;;  %v7271_v13 = vld [vmem:[%s7681_s28 + $0xba0] sm:$0xff]   ;;  %v7291_v32 = vld [vmem:[%s7681_s28 + $0xc38] sm:$0xff]  }
 0x1aa   : > { %6584 = vmatpush3.bf16.msra.mxu0 %v7234_v8  ;;  %v1528_v40 = vrot.slane %v1506_v36, %v7743_v42  ;;  %v1536_v50 = vcombine.high %v1514_v43, %v1514_v43  ;;  %v7267_v8 = vld [vmem:[%s7681_s28 + $0xba8] sm:$0xff]   ;;  %v7275_v17 = vld [vmem:[%s7681_s28 + $0xb98] sm:$0xff]  }
 0x1ab   : > { %6585 = vmatprep.subr.bf16.mxu0 %v7236_v14  ;;  %v7273_v14 = vld [vmem:[%s7681_s28 + $0xbd8] sm:$0xff]  }
 0x1ac   : > { %6606 = vmatpush3.bf16.msra.mxu1 %v7235_v11  ;;  %5165 = vmatprep.mubr.bf16.mxu0 %v1528_v40  ;;  %v1538_v46 = vcombine.high %v1528_v40, %v1528_v40  ;;  %v7270_v11 = vld [vmem:[%s7681_s28 + $0xb20] sm:$0xff]  }
 0x1ad   : > { %6607 = vmatprep.subr.bf16.mxu1 %v7237_v16  ;;  %v7276_v16 = vld [vmem:[%s7681_s28 + $0xb50] sm:$0xff]  }
 0x1ae   : > { %6586 = vmatpush3.bf16.msra.mxu0 %v7238_v18  ;;  %5205 = vmatprep.mubr.bf16.mxu1 %v1538_v46  ;;  %v7277_v18 = vld [vmem:[%s7681_s28 + $0xbd0] sm:$0xff]  }
 0x1af   : > { %6587 = vmatprep.subr.bf16.mxu0 %v7240_v21  ;;  %v7280_v21 = vld [vmem:[%s7681_s28 + $0xb48] sm:$0xff]  }
 0x1b0   : > { %6608 = vmatpush3.bf16.msra.mxu1 %v7239_v19  ;;  %v7278_v19 = vld [vmem:[%s7681_s28 + $0xb10] sm:$0xff]  }
 0x1b1   : > { %6609 = vmatprep.subr.bf16.mxu1 %v7241_v22  ;;  %v7279_v22 = vld [vmem:[%s7681_s28 + $0xb90] sm:$0xff]  }
 0x1b2   : > { %6588 = vmatpush3.bf16.msra.mxu0 %v7242_v23  ;;  %v7281_v23 = vld [vmem:[%s7681_s28 + $0xbc8] sm:$0xff]  }
 0x1b3   : > { %6589 = vmatprep.subr.bf16.mxu0 %v7244_v24  ;;  %v7284_v24 = vld [vmem:[%s7681_s28 + $0xb40] sm:$0xff]  }
 0x1b4   : > { %6610 = vmatpush3.bf16.msra.mxu1 %v7243_v20  ;;  %v7282_v20 = vld [vmem:[%s7681_s28 + $0xb08] sm:$0xff]  }
 0x1b5   : > { %6611 = vmatprep.subr.bf16.mxu1 %v7245_v25  ;;  %v7283_v25 = vld [vmem:[%s7681_s28 + $0xb88] sm:$0xff]  }
 0x1b6   : > { %6590 = vmatpush3.bf16.msra.mxu0 %v7246_v26  ;;  %v7285_v26 = vld [vmem:[%s7681_s28 + $0xbc0] sm:$0xff]  }
 0x1b7   : > { %6591 = vmatprep.subr.bf16.mxu0 %v7248_v28  ;;  %v1521_v28 = vrot.slane %v8145_v37, %v7743_v42  ;;  %v7294_v37 = vld [vmem:[%s7681_s28 + $0xcf0] sm:$0xff]  }
 0x1b8   : > { %6612 = vmatpush3.bf16.msra.mxu1 %v7247_v27  ;;  %v7286_v27 = vld [vmem:[%s7681_s28 + $0xb00] sm:$0xff]  }
 0x1b9   : > { %6613 = vmatprep.subr.bf16.mxu1 %v7249_v29  ;;  %v7289_v29 = vld [vmem:[%s7681_s28 + $0xc78] sm:$0xff]   ;;  %v1537_v33 = vcombine.high %v1521_v28, %v1521_v28 }
 0x1ba   : > { %6592 = vmatpush3.bf16.msra.mxu0 %v7250_v31  ;;  %v7290_v31 = vld [vmem:[%s7681_s28 + $0xcf8] sm:$0xff]  }
 0x1bb   : > { %6593 = vmatprep.subr.bf16.mxu0 %v7252_v34  ;;  %v7293_v34 = vld [vmem:[%s7681_s28 + $0xc70] sm:$0xff]  }
 0x1bc   : > { %6614 = vmatpush3.bf16.msra.mxu1 %v7251_v35  ;;  %v7292_v35 = vld [vmem:[%s7681_s28 + $0xcb8] sm:$0xff]  }
 0x1bd   : > { %6615 = vmatprep.subr.bf16.mxu1 %v7253_v38  ;;  %v7295_v38 = vld [vmem:[%s7681_s28 + $0xc30] sm:$0xff]  }
 0x1be   : > { %6594 = vmatpush3.bf16.msra.mxu0 %v7254_v39 }
 0x1bf   : > { %6623 = vmatprep.subr.bf16.mxu0 %v7256_v44  ;;  %v7296_v44 = vld [vmem:[%s7681_s28 + $0xcb0] sm:$0xff]  }
 0x1c0   : > { %6616 = vmatpush3.bf16.msra.mxu1 %v7255_v45 }
 0x1c1   : > { %v6331_v54 = vpop.f32.mrf.mxu0  ;;  %5166 = vmatmul.mubr.bf16.vlgmr.msra.gmra.mxu0 %v1514_v43  ;;  %6645 = vmatprep.subr.bf16.mxu1 %v7257_v48 }
 0x1c2   : > { %6624 = vmatpush3.bf16.msra.mxu0 %v7258_v49  ;;  %5245 = vmatprep.mubr.bf16.mxu0 %v1535_v47  ;;  %v7298_v47 = vld [vmem:[%s7681_s28 + $0xce8] sm:$0xff]  }
 0x1c3   : > { %v6353_v57 = vpop.f32.mrf.mxu1  ;;  %5206 = vmatmul.mubr.bf16.vlgmr.msra.gmra.mxu1 %v1536_v50  ;;  %v6332_v58 = vpop.f32.mrf.mxu0  ;;  %6625 = vmatprep.subr.bf16.mxu0 %v7260_v51  ;;  %v7299_v50 = vld [vmem:[%s7681_s28 + $0xc28] sm:$0xff]  }
 0x1c4   : > { %6646 = vmatpush3.bf16.msra.mxu1 %v7259_v52  ;;  %v6333_v60 = vadd.f32 %v6332_v58, %v6331_v54  ;;  %5285 = vmatprep.mubr.bf16.mxu1 %v1539_v53  ;;  %v7301_v53 = vld [vmem:[%s7681_s28 + $0xc60] sm:$0xff]  }
 0x1c5   : > { %v6354_v63 = vpop.f32.mrf.mxu1  ;;  %v6334_v62 = vpop.f32.mrf.mxu0  ;;  %6647 = vmatprep.subr.bf16.mxu1 %v7261_v55  ;;  %v7300_v55 = vld [vmem:[%s7681_s28 + $0xca8] sm:$0xff]   ;;  %v7303_v58 = vld [vmem:[%s7681_s28 + $0xc20] sm:$0xff]  }
 0x1c6   : > { %v4688_v1 = vadd.f32 %v6333_v60, %v8122_v15  ;;  %v6355_v2 = vadd.f32 %v6354_v63, %v6353_v57  ;;  %6626 = vmatpush3.bf16.msra.mxu0 %v7262_v56  ;;  %v7274_v15 = vld [vmem:[%s7681_s28 + $0xb18] sm:$0xff]   ;;  %v7302_v57 = vld [vmem:[%s7681_s28 + $0xce0] sm:$0xff]   ;;  %v7309_v62 = vld [vmem:[%s7681_s28 + $0xc50] sm:$0xff]  }
 0x1c7   : > { %v6356_v4 = vpop.f32.mrf.mxu1  ;;  %v6335_v5 = vpop.f32.mrf.mxu0  ;;  %6627 = vmatprep.subr.bf16.mxu0 %v7264_v59  ;;  %v7305_v59 = vld [vmem:[%s7681_s28 + $0xc58] sm:$0xff]   ;;  %v7304_v60 = vld [vmem:[%s7681_s28 + $0xca0] sm:$0xff]  }
 0x1c8   : > { %v8168_v7 = vadd.f32 %v6355_v2, %v4688_v1  ;;  %6648 = vmatpush3.bf16.msra.mxu1 %v7263_v61  ;;  %v7306_v61 = vld [vmem:[%s7681_s28 + $0xcd8] sm:$0xff]   ;;  %v7310_v1 = vld [vmem:[%s7681_s28 + $0xcd0] sm:$0xff]   ;;  %v7314_v5 = vld [vmem:[%s7681_s28 + $0xcc8] sm:$0xff]  }
 0x1c9   : > { %v6357_v9 = vpop.f32.mrf.mxu1  ;;  %6649 = vmatprep.subr.bf16.mxu1 %v7265_v0  ;;  %v7307_v63 = vld [vmem:[%s7681_s28 + $0xc18] sm:$0xff]   ;;  %v7311_v2 = vld [vmem:[%s7681_s28 + $0xc10] sm:$0xff]  }
 0x1ca   : > { %6628 = vmatpush3.bf16.msra.mxu0 %v7266_v3  ;;  %v7308_v0 = vld [vmem:[%s7681_s28 + $0xc98] sm:$0xff]   ;;  %v7313_v3 = vld [vmem:[%s7681_s28 + $0xc48] sm:$0xff]   ;;  %v7312_v4 = vld [vmem:[%s7681_s28 + $0xc90] sm:$0xff]  }
 0x1cb   : > { %6629 = vmatprep.subr.bf16.mxu0 %v7268_v6  ;;  %v335_v6 = vld [vmem:[%s8316_s0 + $0x30] sm:$0xff] }
 0x1cc   : > { %6650 = vmatpush3.bf16.msra.mxu1 %v7267_v8  ;;  %v1547_v8 = vrot.slane %v335_v6, %v7743_v42  ;;  %v1540_v9 = vcombine.high %v335_v6, %v335_v6 }
 0x1cd   : > { %6651 = vmatprep.subr.bf16.mxu1 %v7269_v10  ;;  %v7317_v10 = vld [vmem:[%s7681_s28 + $0xc40] sm:$0xff]  }
 0x1ce   : > { %6630 = vmatpush3.bf16.msra.mxu0 %v7270_v11  ;;  %v7316_v11 = vld [vmem:[%s7681_s28 + $0xc88] sm:$0xff]  }
 0x1cf   : > { %6631 = vmatprep.subr.bf16.mxu0 %v7272_v12  ;;  %v1555_v12 = vcombine.high %v1547_v8, %v1547_v8 }
 0x1d0   : > { %6652 = vmatpush3.bf16.msra.mxu1 %v7271_v13  ;;  %v8229_v13 = vrot.slane %v1540_v9, %v7743_v42 }
 0x1d1   : > { %6653 = vmatprep.subr.bf16.mxu1 %v7273_v14  ;;  %v7318_v14 = vld [vmem:[%s7681_s28 + $0xcc0] sm:$0xff]  }
 0x1d2   : > { %6632 = vmatpush3.bf16.msra.mxu0 %v7274_v15  ;;  %v7319_v15 = vld [vmem:[%s7681_s28 + $0xc00] sm:$0xff]  }
 0x1d3   : > { %6633 = vmatprep.subr.bf16.mxu0 %v7276_v16  ;;  %v1577_v16 = vrot.slane %v1555_v12, %v7743_v42 }
 0x1d4   : > { %6654 = vmatpush3.bf16.msra.mxu1 %v7275_v17  ;;  %v1556_v17 = vcombine.high %v8229_v13, %v8229_v13 }
 0x1d5   : > { %6655 = vmatprep.subr.bf16.mxu1 %v7277_v18  ;;  %v1563_v18 = vrot.slane %v1547_v8, %v7743_v42 }
 0x1d6   : > { %6634 = vmatpush3.bf16.msra.mxu0 %v7278_v19  ;;  %v7321_v19 = vld [vmem:[%s7681_s28 + $0xd78] sm:$0xff]  }
 0x1d7   : > { %6635 = vmatprep.subr.bf16.mxu0 %v7280_v21  ;;  %v7320_v21 = vld [vmem:[%s7681_s28 + $0xc80] sm:$0xff]  }
 0x1d8   : > { %6656 = vmatpush3.bf16.msra.mxu1 %v7279_v22  ;;  %v1587_v22 = vcombine.high %v1577_v16, %v1577_v16 }
 0x1d9   : > { %6657 = vmatprep.subr.bf16.mxu1 %v7281_v23  ;;  %v1584_v23 = vrot.slane %v1556_v17, %v7743_v42 }
 0x1da   : > { %6636 = vmatpush3.bf16.msra.mxu0 %v7282_v20  ;;  %v7322_v20 = vld [vmem:[%s7681_s28 + $0xdf8] sm:$0xff]  }
 0x1db   : > { %6637 = vmatprep.subr.bf16.mxu0 %v7284_v24  ;;  %v7323_v24 = vld [vmem:[%s7681_s28 + $0xd38] sm:$0xff]  }
 0x1dc   : > { %6658 = vmatpush3.bf16.msra.mxu1 %v7283_v25  ;;  %v1585_v25 = vcombine.high %v1563_v18, %v1563_v18 }
 0x1dd   : > { %6659 = vmatprep.subr.bf16.mxu1 %v7285_v26  ;;  %v7325_v26 = vld [vmem:[%s7681_s28 + $0xd70] sm:$0xff]  }
 0x1de   : > { %6638 = vmatpush3.bf16.msra.mxu0 %v7286_v27  ;;  %v7324_v27 = vld [vmem:[%s7681_s28 + $0xdb8] sm:$0xff]  }
 0x1df   : > { %6667 = vmatprep.subr.bf16.mxu0 %v7289_v29 }
 0x1e0   : > { %6660 = vmatpush3.bf16.msra.mxu1 %v7287_v30  ;;  %v7326_v30 = vld [vmem:[%s7681_s28 + $0xdf0] sm:$0xff]  }
 0x1e1   : > { %v6375_v36 = vpop.f32.mrf.mxu0  ;;  %5246 = vmatmul.mubr.bf16.vlgmr.msra.gmra.mxu0 %v1521_v28  ;;  %6689 = vmatprep.subr.bf16.mxu1 %v7290_v31  ;;  %v1588_v28 = vcombine.high %v1584_v23, %v1584_v23  ;;  %v7327_v31 = vld [vmem:[%s7681_s28 + $0xd30] sm:$0xff]  }
 0x1e2   : > { %6668 = vmatpush3.bf16.msra.mxu0 %v7291_v32  ;;  %5325 = vmatprep.mubr.bf16.mxu0 %v1577_v16 }
 0x1e3   : > { %v6397_v39 = vpop.f32.mrf.mxu1  ;;  %5286 = vmatmul.mubr.bf16.vlgmr.msra.gmra.mxu1 %v1537_v33  ;;  %v6376_v40 = vpop.f32.mrf.mxu0  ;;  %6669 = vmatprep.subr.bf16.mxu0 %v7293_v34  ;;  %v7329_v34 = vld [vmem:[%s7681_s28 + $0xd68] sm:$0xff]  }
 0x1e4   : > { %6690 = vmatpush3.bf16.msra.mxu1 %v7292_v35  ;;  %v6377_v43 = vadd.f32 %v6376_v40, %v6375_v36  ;;  %5365 = vmatprep.mubr.bf16.mxu1 %v1587_v22  ;;  %v7328_v36 = vld [vmem:[%s7681_s28 + $0xdb0] sm:$0xff]  }
 0x1e5   : > { %v6398_v45 = vpop.f32.mrf.mxu1  ;;  %v6378_v46 = vpop.f32.mrf.mxu0  ;;  %6691 = vmatprep.subr.bf16.mxu1 %v7294_v37 }
 0x1e6   : > { %v4768_v48 = vadd.f32 %v6377_v43, %v8168_v7  ;;  %v6399_v49 = vadd.f32 %v6398_v45, %v6397_v39  ;;  %6670 = vmatpush3.bf16.msra.mxu0 %v7295_v38  ;;  %v7315_v7 = vld [vmem:[%s7681_s28 + $0xc08] sm:$0xff]   ;;  %v7333_v46 = vld [vmem:[%s7681_s28 + $0xd60] sm:$0xff]  }
 0x1e7   : > { %v6400_v51 = vpop.f32.mrf.mxu1  ;;  %v6379_v52 = vpop.f32.mrf.mxu0  ;;  %6671 = vmatprep.subr.bf16.mxu0 %v7297_v41  ;;  %v7330_v39 = vld [vmem:[%s7681_s28 + $0xde8] sm:$0xff]  }
 0x1e8   : > { %v8205_v54 = vadd.f32 %v6399_v49, %v4768_v48  ;;  %6692 = vmatpush3.bf16.msra.mxu1 %v7296_v44  ;;  %v7331_v43 = vld [vmem:[%s7681_s28 + $0xd28] sm:$0xff]   ;;  %v7335_v51 = vld [vmem:[%s7681_s28 + $0xd20] sm:$0xff]   ;;  %v7337_v52 = vld [vmem:[%s7681_s28 + $0xd58] sm:$0xff]  }
 0x1e9   : > { %v6401_v56 = vpop.f32.mrf.mxu1  ;;  %6693 = vmatprep.subr.bf16.mxu1 %v7298_v47  ;;  %v7332_v48 = vld [vmem:[%s7681_s28 + $0xda8] sm:$0xff]  }
 0x1ea   : > { %6672 = vmatpush3.bf16.msra.mxu0 %v7299_v50  ;;  %v7334_v50 = vld [vmem:[%s7681_s28 + $0xde0] sm:$0xff]   ;;  %v7341_v56 = vld [vmem:[%s7681_s28 + $0xd50] sm:$0xff]  }
 0x1eb   : > { %6673 = vmatprep.subr.bf16.mxu0 %v7301_v53  ;;  %v7336_v53 = vld [vmem:[%s7681_s28 + $0xda0] sm:$0xff]  }
 0x1ec   : > { %6694 = vmatpush3.bf16.msra.mxu1 %v7300_v55  ;;  %v7339_v55 = vld [vmem:[%s7681_s28 + $0xd18] sm:$0xff]  }
 0x1ed   : > { %6695 = vmatprep.subr.bf16.mxu1 %v7302_v57  ;;  %v7340_v57 = vld [vmem:[%s7681_s28 + $0xd98] sm:$0xff]  }
 0x1ee   : > { %6674 = vmatpush3.bf16.msra.mxu0 %v7303_v58  ;;  %v7342_v58 = vld [vmem:[%s7681_s28 + $0xdd0] sm:$0xff]  }
 0x1ef   : > { %6675 = vmatprep.subr.bf16.mxu0 %v7305_v59  ;;  %v7343_v59 = vld [vmem:[%s7681_s28 + $0xd10] sm:$0xff]  }
 0x1f0   : > { %6696 = vmatpush3.bf16.msra.mxu1 %v7304_v60  ;;  %v7345_v60 = vld [vmem:[%s7681_s28 + $0xd48] sm:$0xff]  }
 0x1f1   : > { %6697 = vmatprep.subr.bf16.mxu1 %v7306_v61  ;;  %v7344_v61 = vld [vmem:[%s7681_s28 + $0xd90] sm:$0xff]  }
 0x1f2   : > { %6676 = vmatpush3.bf16.msra.mxu0 %v7307_v63  ;;  %v7346_v63 = vld [vmem:[%s7681_s28 + $0xdc8] sm:$0xff]  }
 0x1f3   : > { %6677 = vmatprep.subr.bf16.mxu0 %v7309_v62  ;;  %v7347_v62 = vld [vmem:[%s7681_s28 + $0xd08] sm:$0xff]  }
 0x1f4   : > { %6698 = vmatpush3.bf16.msra.mxu1 %v7308_v0  ;;  %v7349_v0 = vld [vmem:[%s7681_s28 + $0xd40] sm:$0xff]  }
 0x1f5   : > { %6699 = vmatprep.subr.bf16.mxu1 %v7310_v1  ;;  %v7348_v1 = vld [vmem:[%s7681_s28 + $0xd88] sm:$0xff]  }
 0x1f6   : > { %6678 = vmatpush3.bf16.msra.mxu0 %v7311_v2  ;;  %v7350_v2 = vld [vmem:[%s7681_s28 + $0xdc0] sm:$0xff]  }
 0x1f7   : > { %6679 = vmatprep.subr.bf16.mxu0 %v7313_v3  ;;  %v7351_v3 = vld [vmem:[%s7681_s28 + $0xd00] sm:$0xff]  }
 0x1f8   : > { %6700 = vmatpush3.bf16.msra.mxu1 %v7312_v4  ;;  %v1570_v4 = vrot.slane %v8229_v13, %v7743_v42 }
 0x1f9   : > { %6701 = vmatprep.subr.bf16.mxu1 %v7314_v5  ;;  %v7352_v5 = vld [vmem:[%s7681_s28 + $0xd80] sm:$0xff]  }
 0x1fa   : > { %6680 = vmatpush3.bf16.msra.mxu0 %v7315_v7  ;;  %v1586_v6 = vcombine.high %v1570_v4, %v1570_v4 }
 0x1fb   : > { %6681 = vmatprep.subr.bf16.mxu0 %v7317_v10 }
 0x1fc   : > { %6702 = vmatpush3.bf16.msra.mxu1 %v7316_v11 }
 0x1fd   : > { %6703 = vmatprep.subr.bf16.mxu1 %v7318_v14 }
 0x1fe   : > { %6682 = vmatpush3.bf16.msra.mxu0 %v7319_v15 }
 0x1ff   : > { %6711 = vmatprep.subr.bf16.mxu0 %v7321_v19 }
 0x200   : > { %6704 = vmatpush3.bf16.msra.mxu1 %v7320_v21 }
 0x201   : > { %v6419_v29 = vpop.f32.mrf.mxu0  ;;  %5326 = vmatmul.mubr.bf16.vlgmr.msra.gmra.mxu0 %v1563_v18  ;;  %6733 = vmatprep.subr.bf16.mxu1 %v7322_v20 }
 0x202   : > { %6712 = vmatpush3.bf16.msra.mxu0 %v7323_v24  ;;  %5405 = vmatprep.mubr.bf16.mxu0 %v1584_v23 }
 0x203   : > { %v6441_v32 = vpop.f32.mrf.mxu1  ;;  %5366 = vmatmul.mubr.bf16.vlgmr.msra.gmra.mxu1 %v1585_v25  ;;  %v6420_v33 = vpop.f32.mrf.mxu0  ;;  %6713 = vmatprep.subr.bf16.mxu0 %v7325_v26 }
 0x204   : > { %6734 = vmatpush3.bf16.msra.mxu1 %v7324_v27  ;;  %v6421_v35 = vadd.f32 %v6420_v33, %v6419_v29  ;;  %5445 = vmatprep.mubr.bf16.mxu1 %v1588_v28  ;;  %v5468_v33 = vld [vmem:[%s7702_s14 + $0x68] sm:$0xff] }
 0x205   : > { %v6442_v37 = vpop.f32.mrf.mxu1  ;;  %v6422_v38 = vpop.f32.mrf.mxu0  ;;  %6735 = vmatprep.subr.bf16.mxu1 %v7326_v30  ;;  %v5470_v30 = vld [vmem:[%s7702_s14 + $0x78] sm:$0xff] }
 0x206   : > { %v4848_v40 = vadd.f32 %v6421_v35, %v8205_v54  ;;  %v6443_v41 = vadd.f32 %v6442_v37, %v6441_v32  ;;  %6714 = vmatpush3.bf16.msra.mxu0 %v7327_v31  ;;  %v7338_v54 = vld [vmem:[%s7681_s28 + $0xdd8] sm:$0xff]   ;;  %v7520_v31 = vmov 0.0   ;;  %v5464_v37 = vld [vmem:[%s7702_s14 + $0x48] sm:$0xff]  ;;  %v5463_v38 = vld [vmem:[%s7702_s14 + $0x40] sm:$0xff] }
 0x207   : > { %v6444_v44 = vpop.f32.mrf.mxu1  ;;  %v6423_v45 = vpop.f32.mrf.mxu0  ;;  %6715 = vmatprep.subr.bf16.mxu0 %v7329_v34  ;;  %v5469_v32 = vld [vmem:[%s7702_s14 + $0x70] sm:$0xff]  ;;  %v5467_v34 = vld [vmem:[%s7702_s14 + $0x60] sm:$0xff]  ;;  %v5466_v35 = vld [vmem:[%s7702_s14 + $0x58] sm:$0xff] }
 0x208   : > { %v4888_v47 = vadd.f32 %v6443_v41, %v4848_v40  ;;  %6736 = vmatpush3.bf16.msra.mxu1 %v7328_v36  ;;  %v5465_v36 = vld [vmem:[%s7702_s14 + $0x50] sm:$0xff] }
 0x209   : > { %v6445_v49 = vpop.f32.mrf.mxu1  ;;  %6737 = vmatprep.subr.bf16.mxu1 %v7330_v39  ;;  %v5462_v39 = vld [vmem:[%s7702_s14 + $0x38] sm:$0xff]  ;;  %v5461_v40 = vld [vmem:[%s7702_s14 + $0x30] sm:$0xff] }
 0x20a   : > { %6716 = vmatpush3.bf16.msra.mxu0 %v7331_v43  ;;  %v5460_v43 = vld [vmem:[%s7702_s14 + $0x28] sm:$0xff] }
 0x20b   : > { %6717 = vmatprep.subr.bf16.mxu0 %v7333_v46 }
 0x20c   : > { %6738 = vmatpush3.bf16.msra.mxu1 %v7332_v48 }
 0x20d   : > { %6739 = vmatprep.subr.bf16.mxu1 %v7334_v50 }
 0x20e   : > { %6718 = vmatpush3.bf16.msra.mxu0 %v7335_v51 }
 0x20f   : > { %6719 = vmatprep.subr.bf16.mxu0 %v7337_v52  ;;  %v5458_v52 = vld [vmem:[%s7702_s14 + $0x18] sm:$0xff] }
 0x210   : > { %6740 = vmatpush3.bf16.msra.mxu1 %v7336_v53 }
 0x211   : > { %6741 = vmatprep.subr.bf16.mxu1 %v7338_v54 }
 0x212   : > { %6720 = vmatpush3.bf16.msra.mxu0 %v7339_v55 }
 0x213   : > { %6721 = vmatprep.subr.bf16.mxu0 %v7341_v56  ;;  %v5457_v56 = vld [vmem:[%s7702_s14 + $0x10] sm:$0xff] }
 0x214   : > { %6742 = vmatpush3.bf16.msra.mxu1 %v7340_v57 }
 0x215   : > { %6743 = vmatprep.subr.bf16.mxu1 %v7342_v58  ;;  %v5456_v58 = vld [vmem:[%s7702_s14 + $0x8] sm:$0xff] }
 0x216   : > { %6722 = vmatpush3.bf16.msra.mxu0 %v7343_v59  ;;  %v5455_v59 = vld [vmem:[%s7702_s14] sm:$0xff] }
 0x217   : > { %6723 = vmatprep.subr.bf16.mxu0 %v7345_v60 }
 0x218   : > { %6744 = vmatpush3.bf16.msra.mxu1 %v7344_v61 }
 0x219   : > { %6745 = vmatprep.subr.bf16.mxu1 %v7346_v63 }
 0x21a   : > { %6724 = vmatpush3.bf16.msra.mxu0 %v7347_v62 }
 0x21b   : > { %6725 = vmatprep.subr.bf16.mxu0 %v7349_v0 }
 0x21c   : > { %6746 = vmatpush3.bf16.msra.mxu1 %v7348_v1 }
 0x21d   : > { %6747 = vmatprep.subr.bf16.mxu1 %v7350_v2 }
 0x21e   : > { %6726 = vmatpush3.bf16.msra.mxu0 %v7351_v3 }
 0x21f   : > { %6772 = vmatprep.subr.mxu0 %v7520_v31 }
 0x220   : > { %6748 = vmatpush3.bf16.msra.mxu1 %v7352_v5 }
 0x221   : > { %v6463_v7 = vpop.f32.mrf.mxu0  ;;  %5406 = vmatmul.mubr.bf16.vlgmr.msra.gmra.mxu0 %v1570_v4 }
 0x222   : > { %6773 = vmatpush3.msra.mxu0 %v5470_v30  ;;  %6804 = vmatprep.mubr.msk.f32.mxu0 %vm7521_vm0, %v7520_v31 }
 0x223   : > { %v6485_v8 = vpop.f32.mrf.mxu1  ;;  %5446 = vmatmul.mubr.bf16.vlgmr.msra.gmra.mxu1 %v1586_v6  ;;  %v6464_v9 = vpop.f32.mrf.mxu0  ;;  %6774 = vmatprep.subr.mxu0 %v7520_v31 }
 0x224   : > { %v6465_v10 = vadd.f32 %v6464_v9, %v6463_v7  ;;  %6775 = vmatpush3.msra.mxu0 %v5469_v32 }
 0x225   : > { %v6486_v11 = vpop.f32.mrf.mxu1  ;;  %v6466_v12 = vpop.f32.mrf.mxu0  ;;  %6776 = vmatprep.subr.mxu0 %v7520_v31 }
 0x226   : > { %v4928_v14 = vadd.f32 %v6465_v10, %v4888_v47  ;;  %v6487_v15 = vadd.f32 %v6486_v11, %v6485_v8  ;;  %6777 = vmatpush3.msra.mxu0 %v5468_v33  ;;  %v5459_v47 = vld [vmem:[%s7702_s14 + $0x20] sm:$0xff] }
 0x227   : > { %v6488_v16 = vpop.f32.mrf.mxu1  ;;  %v6467_v17 = vpop.f32.mrf.mxu0  ;;  %6778 = vmatprep.subr.mxu0 %v7520_v31 }
 0x228   : > { %v4968_v42 = vadd.f32 %v6487_v15, %v4928_v14  ;;  %6779 = vmatpush3.msra.mxu0 %v5467_v34 }
 0x229   : > { %v6489_v13 = vpop.f32.mrf.mxu1  ;;  %6780 = vmatprep.subr.mxu0 %v7520_v31 }
 0x22a   : > { %6781 = vmatpush3.msra.mxu0 %v5466_v35 }
 0x22b   : > { %6782 = vmatprep.subr.mxu0 %v7520_v31 }
 0x22c   : > { %6783 = vmatpush3.msra.mxu0 %v5465_v36 }
 0x22d   : > { %6784 = vmatprep.subr.mxu0 %v7520_v31 }
 0x22e   : > { %6785 = vmatpush3.msra.mxu0 %v5464_v37 }
 0x22f   : > { %6786 = vmatprep.subr.mxu0 %v7520_v31 }
 0x230   : > { %6787 = vmatpush3.msra.mxu0 %v5463_v38 }
 0x231   : > { %6788 = vmatprep.subr.mxu0 %v7520_v31 }
 0x232   : > { %6789 = vmatpush3.msra.mxu0 %v5462_v39 }
 0x233   : > { %6790 = vmatprep.subr.mxu0 %v7520_v31 }
 0x234   : > { %6791 = vmatpush3.msra.mxu0 %v5461_v40 }
 0x235   : > { %6792 = vmatprep.subr.mxu0 %v7520_v31 }
 0x236   : > { %6793 = vmatpush3.msra.mxu0 %v5460_v43 }
 0x237   : > { %6794 = vmatprep.subr.mxu0 %v7520_v31 }
 0x238   : > { %6795 = vmatpush3.msra.mxu0 %v5459_v47 }
 0x239   : > { %6796 = vmatprep.subr.mxu0 %v7520_v31 }
 0x23a   : > { %6797 = vmatpush3.msra.mxu0 %v5458_v52 }
 0x23b   : > { %6798 = vmatprep.subr.mxu0 %v7520_v31 }
 0x23c   : > { %6799 = vmatpush3.msra.mxu0 %v5457_v56 }
 0x23d   : > { %6800 = vmatprep.subr.mxu0 %v7520_v31 }
 0x23e   : > { %6801 = vmatpush3.msra.mxu0 %v5456_v58 }
 0x23f   : > { %6802 = vmatprep.subr.mxu0 %v7520_v31 }
 0x240   : > { %6803 = vmatpush3.msra.mxu0 %v5455_v59 }
 0x241   : > { %v6507_v18 = vpop.f32.mrf.mxu0 }
 0x243   : > { %v6529_v19 = vpop.f32.mrf.mxu1  ;;  %v6508_v21 = vpop.f32.mrf.mxu0 }
 0x244   : > { %v6509_v22 = vadd.f32 %v6508_v21, %v6507_v18 }
 0x245   : > { %v6530_v23 = vpop.f32.mrf.mxu1  ;;  %v6510_v20 = vpop.f32.mrf.mxu0 }
 0x246   : > { %v5008_v24 = vadd.f32 %v6509_v22, %v4968_v42  ;;  %v6531_v25 = vadd.f32 %v6530_v23, %v6529_v19 }
 0x247   : > { %v6532_v26 = vpop.f32.mrf.mxu1  ;;  %v6511_v27 = vpop.f32.mrf.mxu0 }
 0x248   : > { %v5048_v28 = vadd.f32 %v6531_v25, %v5008_v24 }
 0x249   : > { %v6533_v29 = vpop.f32.mrf.mxu1 }
 0x261   : > { %v6551_v41 = vpop.f32.mrf.mxu0 }
 0x263   : > { %v6573_v44 = vpop.f32.mrf.mxu1  ;;  %v6552_v45 = vpop.f32.mrf.mxu0 }
 0x264   : > { %v6553_v46 = vadd.f32 %v6552_v45, %v6551_v41  ;;  %v5454_v45 = vld [vmem:[%s7700_s9] sm:$0x3] }
 0x265   : > { %v6574_v48 = vpop.f32.mrf.mxu1  ;;  %v6554_v49 = vpop.f32.mrf.mxu0 }
 0x266   : > { %v5088_v50 = vadd.f32 %v6553_v46, %v5048_v28  ;;  %v6575_v51 = vadd.f32 %v6574_v48, %v6573_v44 }
 0x267   : > { %v6576_v53 = vpop.f32.mrf.mxu1  ;;  %v6555_v54 = vpop.f32.mrf.mxu0 }
 0x268   : > { %v5128_v55 = vadd.f32 %v6575_v51, %v5088_v50 }
 0x269   : > { %v6577_v57 = vpop.f32.mrf.mxu1 }
 0x281   : > { %v6595_v60 = vpop.f32.mrf.mxu0 }
 0x283   : > { %v6617_v61 = vpop.f32.mrf.mxu1  ;;  %v6596_v63 = vpop.f32.mrf.mxu0 }
 0x284   : > { %v6597_v62 = vadd.f32 %v6596_v63, %v6595_v60 }
 0x285   : > { %v6618_v0 = vpop.f32.mrf.mxu1  ;;  %v6598_v1 = vpop.f32.mrf.mxu0 }
 0x286   : > { %v5168_v2 = vadd.f32 %v6597_v62, %v5128_v55  ;;  %v6619_v3 = vadd.f32 %v6618_v0, %v6617_v61 }
 0x287   : > { %v6620_v4 = vpop.f32.mrf.mxu1  ;;  %v6599_v5 = vpop.f32.mrf.mxu0 }
 0x288   : > { %v5208_v6 = vadd.f32 %v6619_v3, %v5168_v2 }
 0x289   : > { %v6621_v7 = vpop.f32.mrf.mxu1 }
 0x2a1   : > { %v6639_v8 = vpop.f32.mrf.mxu0 }
 0x2a3   : > { %v6661_v9 = vpop.f32.mrf.mxu1  ;;  %v6640_v10 = vpop.f32.mrf.mxu0 }
 0x2a4   : > { %v6641_v20 = vadd.f32 %v6640_v10, %v6639_v8 }
 0x2a5   : > { %v6662_v11 = vpop.f32.mrf.mxu1  ;;  %v6642_v12 = vpop.f32.mrf.mxu0 }
 0x2a6   : > { %v5248_v24 = vadd.f32 %v6641_v20, %v5208_v6  ;;  %v6663_v25 = vadd.f32 %v6662_v11, %v6661_v9 }
 0x2a7   : > { %v6664_v14 = vpop.f32.mrf.mxu1  ;;  %v6643_v15 = vpop.f32.mrf.mxu0 }
 0x2a8   : > { %v5288_v27 = vadd.f32 %v6663_v25, %v5248_v24 }
 0x2a9   : > { %v6665_v16 = vpop.f32.mrf.mxu1 }
 0x2c1   : > { %v6683_v17 = vpop.f32.mrf.mxu0 }
 0x2c3   : > { %v6705_v42 = vpop.f32.mrf.mxu1  ;;  %v6684_v13 = vpop.f32.mrf.mxu0 }
 0x2c4   : > { %v6685_v26 = vadd.f32 %v6684_v13, %v6683_v17 }
 0x2c5   : > { %v6706_v18 = vpop.f32.mrf.mxu1  ;;  %v6686_v19 = vpop.f32.mrf.mxu0 }
 0x2c6   : > { %v5328_v28 = vadd.f32 %v6685_v26, %v5288_v27  ;;  %v6707_v29 = vadd.f32 %v6706_v18, %v6705_v42 }
 0x2c7   : > { %v6708_v21 = vpop.f32.mrf.mxu1  ;;  %v6687_v22 = vpop.f32.mrf.mxu0 }
 0x2c8   : > { %v5368_v33 = vadd.f32 %v6707_v29, %v5328_v28 }
 0x2c9   : > { %v6709_v23 = vpop.f32.mrf.mxu1 }
 0x2e1   : > { %v6727_v30 = vpop.f32.mrf.mxu0 }
 0x2e3   : > { %v6749_v31 = vpop.f32.mrf.mxu1  ;;  %v6728_v32 = vpop.f32.mrf.mxu0 }
 0x2e4   : > { %v6729_v34 = vadd.f32 %v6728_v32, %v6727_v30 }
 0x2e5   : > { %v6750_v35 = vpop.f32.mrf.mxu1  ;;  %v6730_v36 = vpop.f32.mrf.mxu0 }
 0x2e6   : > { %v5408_v37 = vadd.f32 %v6729_v34, %v5368_v33  ;;  %v6751_v38 = vadd.f32 %v6750_v35, %v6749_v31 }
 0x2e7   : > { %v6752_v39 = vpop.f32.mrf.mxu1  ;;  %v6731_v40 = vpop.f32.mrf.mxu0 }
 0x2e8   : > { %v5448_v41 = vadd.f32 %v6751_v38, %v5408_v37 }
 0x2e9   : > { %v6753_v43 = vpop.f32.mrf.mxu1 }
 0x2ea   : > { %v5453_v44 = vmax.f32 %v5448_v41, 0.0 }
 0x2ec   : > { %6805 = vmatmul.mubr.f32.vlgmr.msra.gmra.mxu0 %v5453_v44 }
 0x3ac   : > { %v5537_v46 = vpop.f32.mrf.mxu0 }
 0x3ad   : > { %v5541_v47 = vadd.f32 %v5537_v46, %v5454_v45 }
 0x3ae   : > { %v6806_v48 = vpop.f32.mrf.mxu0 }
 0x3af   : > { %5542 = vst [vmem:[%s7700_s9] sm:$0x3] %v5541_v47 }
 0x3b0 PF: > { %s20_s22 = sadd.s32 1, %s7508_s22   ;;  %s8342_s28 = sld [smem:[#allocation13_spill]] }
 0x3b1   : > { %p17_p7 = scmp.ge.s32.totalorder %s20_s22, 10   ;;  %s8343_s18 = sld [smem:[#allocation9_spill]] }
 0x3b2   : > { %s8344_s19 = sld [smem:[#allocation10_spill]]  ;;  %s8347_s15 = smov %s7484_s16 }
 0x3b3   : > { %s8345_s20 = sld [smem:[#allocation11_spill]]  ;;  %s8348_s16 = smov %s7488_s17 }
 0x3b4   : > { %s8346_s21 = sld [smem:[#allocation12_spill]]  ;;  %19 = sbr.rel (!%p17_p7) target bundleno = 10 (0xa), region = 104 }
 0x3b6   : > { %s8349_s17 = smov %s8342_s28 }
 0x3b9   :  { %5562 = vsyncpa [#allocation3], 1 }
 0x3ba   :  { %5564 = vsyncpa [#allocation3 + $0x1], 1 }
 0x3bb   :  { %5565 = vsyncpa [#allocation5], 1 }
 0x3bc   :  { %5567 = vsyncpa [#allocation5 + $0x1], 1 }

// kernel: cnn_forward.2
= control target key start
LH: loop header
LB: loop body
LE: loop exit
PB: predicated region body
PF: predicated region fallthrough
CT: control target
= control target key end

     0   :  { %12 = vsyncpa [#allocation9], 0  ;;  %s15084_s0 = inlined_call_operand.vmem [shape: f32[2,1,2688], index: 0, kind: input, shape index: {}]   ;;  %s15085_s1 = inlined_call_operand.hbm [shape: f32[32,32], index: 1, kind: input, shape index: {}]   ;;  %s15086_s2 = inlined_call_operand.vmem [shape: f32[32,1], index: 2, kind: input, shape index: {}]   ;;  %s15087_s3 = inlined_call_operand.hbm [shape: bf16[16,288], index: 3, kind: input, shape index: {}]   ;;  %s15088_s4 = inlined_call_operand.vmem [shape: f32[16,1], index: 4, kind: input, shape index: {}]   ;;  %s15089_s5 = inlined_call_operand.hbm [shape: bf16[4,144], index: 5, kind: input, shape index: {}]   ;;  %s15090_s6 = inlined_call_operand.vmem [shape: f32[4,1], index: 6, kind: input, shape index: {}]   ;;  %s15091_s7 = inlined_call_operand.vmem [shape: bf16[2,4,1792], index: 7, kind: output, shape index: {}]  }
   0x1   :  { %13 = vsyncpa [#allocation11], 0  ;;  %s10195_s24 = smov [#allocation10]  }
   0x2   :  { %s35_s25 = sshll.u32 %s10195_s24, 4  ;;  %s36_s25 = int_to_ptr.vmem [resolvable:$true] %s35_s25 }
   0x3   :  { %s10131_s26 = scalar_lea.vmem %s36_s25, 384  ;;  %p10136_p1 = scmp.lt.s32.totalorder %s36_s25, %s36_s25 }
   0x4   :  { %p10132_p0 = scmp.ne.s32.totalorder %s36_s25, %s10131_s26  ;;  %p10137_p2 = scmp.lt.s32.totalorder %s10131_s26, %s10131_s26 }
   0x6   :  { %p10138_p3 = por %p10137_p2, %p10136_p1 }
   0x8   :  { %p10139_p4 = pnand %p10138_p3, %p10132_p0 }
   0xa   :  { %10142 = shalt.err (!%p10139_p4)
}
   0xb   :  { %s10196_s27 = smov 192   ;;  %s10197_s28 = smov 12  }
   0xc   :  { %41 = dma.hbm_to_vmem [thread:$0]  %s15087_s3, 384, %s36_s25, [#allocation11], %s10196_s27, %s10196_s27, %s10197_s28  }
   0xd   :  { %s10198_s8 = smov [#allocation8]  }
   0xe   :  { %s21_s9 = sshll.u32 %s10198_s8, 4  ;;  %s22_s9 = int_to_ptr.vmem [resolvable:$true] %s21_s9 }
   0xf   :  { %s10151_s10 = scalar_lea.vmem %s22_s9, 512  ;;  %p10156_p6 = scmp.lt.s32.totalorder %s22_s9, %s22_s9 }
  0x10   :  { %p10152_p5 = scmp.ne.s32.totalorder %s22_s9, %s10151_s10  ;;  %p10157_p7 = scmp.lt.s32.totalorder %s10151_s10, %s10151_s10 }
  0x12   :  { %p10158_p8 = por %p10157_p7, %p10156_p6 }
  0x14   :  { %p10159_p9 = pnand %p10158_p8, %p10152_p5 }
  0x16   :  { %10162 = shalt.err (!%p10159_p9)
}
  0x17   :  { %s10199_s11 = smov 128   ;;  %s10200_s12 = smov 8  }
  0x18   :  { %27 = dma.hbm_to_vmem [thread:$0]  %s15085_s1, 512, %s22_s9, [#allocation9], %s10199_s11, %s10199_s11, %s10200_s12  }
  0x19   :  { %s10201_s15 = smov [#allocation12]  }
  0x1a   :  { %s50_s16 = sshll.u32 %s10201_s15, 4  ;;  %s51_s16 = int_to_ptr.vmem [resolvable:$true] %s50_s16 }
  0x1b   :  { %s10171_s3 = scalar_lea.vmem %s51_s16, 64  ;;  %p10176_p11 = scmp.lt.s32.totalorder %s51_s16, %s51_s16 }
  0x1c   :  { %p10172_p10 = scmp.ne.s32.totalorder %s51_s16, %s10171_s3  ;;  %p10177_p12 = scmp.lt.s32.totalorder %s10171_s3, %s10171_s3 }
  0x1e   :  { %p10178_p13 = por %p10177_p12, %p10176_p11 }
  0x20   :  { %p10179_p0 = pnand %p10178_p13, %p10172_p10 }
  0x22   :  { %10182 = shalt.err (!%p10179_p0)
}
  0x23   :  { %53 = dma.hbm_to_vmem [thread:$0]  %s15089_s5, 64, %s51_s16, [#allocation11]  }
  0x24   :  { %10187 = dma.done.wait [#allocation9], 512  }
  0x25   :  { %10188 = vsyncadd [#allocation9], 4294966784 }
  0x26   :  { %10189 = dma.done.wait [#allocation11], 448  }
  0x27   :  { %10190 = vsyncadd [#allocation11], 4294966848  ;;  %v15104_v0 = vlaneseq  ;;  %vm15092_vm0 = vcmask 1043456   ;;  %vm83_vm1 = vcmask 7172   ;;  %v10202_v1 = vmov 0.0   ;;  %v10304_v17 = vld [vmem:[%s15086_s2] sm:$0xff] }
  0x28   :  { %66 = vst [vmem:[#allocation2 + $0x180] sm:$0xfe] %v10202_v1  ;;  %67 = vst [vmem:[#allocation2 + $0x188] sm:$0xfe] %v10202_v1  ;;  %vm89_vm3 = vcmask 1043464   ;;  %vm90_vm4 = vcmask 1047556  }
  0x29   :  { %68 = vst [vmem:[#allocation2 + $0x190] sm:$0xfe] %v10202_v1  ;;  %69 = vst [vmem:[#allocation2 + $0x198] sm:$0xfe] %v10202_v1  ;;  %v10271_v2 = vand.u32 127, %v15104_v0  ;;  %v10203_v3 = vmov 0  }
  0x2a   :  { %70 = vst [vmem:[#allocation2 + $0x1a0] sm:$0xfe] %v10202_v1  ;;  %71 = vst [vmem:[#allocation2 + $0x1a8] sm:$0xfe] %v10202_v1  ;;  %v15409_v4 = vmov 0  ;;  %v10309_v18 = vld [vmem:[%s15086_s2 + $0x8] sm:$0xff] }
  0x2b   :  { %72 = vst [vmem:[#allocation2 + $0x1b0] sm:$0xfe] %v10202_v1  ;;  %73 = vst [vmem:[#allocation2 + $0x1b8] sm:$0xfe] %v10202_v1  ;;  %v102_v5 = vadd.s32 128, %v10271_v2  ;;  %v103_v6 = vadd.s32 256, %v10271_v2 }
  0x2c   :  { %74 = vst [vmem:[#allocation2 + $0x1c0] sm:$0xfe] %v10202_v1  ;;  %75 = vst [vmem:[#allocation2 + $0x1c8] sm:$0xfe] %v10202_v1  ;;  %v104_v7 = vadd.s32 384, %v10271_v2  ;;  %v105_v8 = vadd.s32 512, %v10271_v2 }
  0x2d   :  { %76 = vst [vmem:[#allocation2 + $0x1d0] sm:$0xfe] %v10202_v1  ;;  %77 = vst [vmem:[#allocation2 + $0x1d8] sm:$0xfe] %v10202_v1  ;;  %v106_v9 = vadd.s32 640, %v10271_v2  ;;  %v107_v10 = vadd.s32 768, %v10271_v2 }
  0x2e   :  { %78 = vst [vmem:[#allocation2 + $0x1e0] sm:$0xfe] %v10202_v1  ;;  %79 = vst [vmem:[#allocation2 + $0x1e8] sm:$0xfe] %v10202_v1  ;;  %v108_v11 = vadd.s32 896, %v10271_v2  ;;  %v109_v12 = vadd.s32 1024, %v10271_v2 }
  0x2f   :  { %80 = vst [vmem:[#allocation2 + $0x1f0] sm:$0xfe] %v10202_v1  ;;  %81 = vst [vmem:[#allocation2 + $0x1f8] sm:$0xfe] %v10202_v1  ;;  %v110_v13 = vadd.s32 1152, %v10271_v2  ;;  %v111_v14 = vadd.s32 1280, %v10271_v2 }
  0x30   :  { %vm84_vm2 = vmor %vm83_vm1, %vm15092_vm0  ;;  %15408 = vst [vmem:[#allocation15_spill] sm:$0xff] %v10271_v2  ;;  %v112_v15 = vadd.s32 1408, %v10271_v2  ;;  %v113_v16 = vadd.s32 1536, %v10271_v2  ;;  %v10314_v19 = vld [vmem:[%s15086_s2 + $0x10] sm:$0xff]  ;;  %v114_v20 = vadd.s32 1664, %v10271_v2  ;;  %v115_v21 = vadd.s32 1792, %v10271_v2 }
  0x31   :  { %85 = vst.msk [vmem:[#allocation3] sm:$0xff] %vm84_vm2, %v10203_v3  ;;  %86 = vst.msk [vmem:[#allocation3 + $0x4c] sm:$0xff] %vm84_vm2, %v10203_v3  ;;  %v116_v22 = vadd.s32 1920, %v10271_v2  ;;  %v10322_v23 = vld [vmem:[%s15086_s2 + $0x18] sm:$0xff]  ;;  %v10327_v24 = vld [vmem:[%s15088_s4] sm:$0xff]  ;;  %v128_v26 = vand.u32 127, %v102_v5 }
  0x32   :  { %87 = vst.msk [vmem:[#allocation3 + $0x98] sm:$0xff] %vm84_vm2, %v10203_v3  ;;  %88 = vst.msk [vmem:[#allocation3 + $0xe4] sm:$0xff] %vm84_vm2, %v10203_v3  ;;  %v10332_v25 = vld [vmem:[%s15088_s4 + $0x8] sm:$0xff]  ;;  %v135_v27 = vand.u32 127, %v103_v6  ;;  %v142_v28 = vand.u32 127, %v104_v7  ;;  %v149_v30 = vand.u32 127, %v105_v8 }
  0x33   :  { %96 = vst.msk [vmem:[#allocation4] sm:$0xff] %vm84_vm2, %v10203_v3  ;;  %97 = vst.msk [vmem:[#allocation4 + $0x4c] sm:$0xff] %vm84_vm2, %v10203_v3  ;;  %v10337_v29 = vld [vmem:[%s15090_s6] sm:$0xf]  ;;  %v156_v31 = vand.u32 127, %v106_v9  ;;  %v163_v32 = vand.u32 127, %v107_v10 }
  0x34   :  { %vm10273_vm5 = vmor %vm90_vm4, %vm89_vm3  ;;  %15412 = vst [vmem:[#allocation17_spill] sm:$0xff] %v10304_v17  ;;  %v170_v33 = vand.u32 127, %v108_v11  ;;  %v177_v34 = vand.u32 127, %v109_v12  ;;  %v184_v35 = vand.u32 127, %v110_v13  ;;  %v191_v36 = vand.u32 127, %v111_v14  ;;  %s10400_s2 = smov 0  }
  0x35   :  { %v15410_v4 = vsel %vm10273_vm5, 4294967295, %v15409_v4  ;;  %92 = vst.msk [vmem:[#allocation3 + $0x44] sm:$0xff] %vm10273_vm5, %v10203_v3  ;;  %93 = vst.msk [vmem:[#allocation3 + $0x90] sm:$0xff] %vm10273_vm5, %v10203_v3  ;;  %v198_v37 = vand.u32 127, %v112_v15  ;;  %v205_v38 = vand.u32 127, %v113_v16  ;;  %v212_v39 = vand.u32 127, %v114_v20 }
  0x36   :  { %15411 = vst [vmem:[#allocation16_spill] sm:$0xff] %v15410_v4  ;;  %94 = vst.msk [vmem:[#allocation3 + $0xdc] sm:$0xff] %vm10273_vm5, %v10203_v3  ;;  %v219_v40 = vand.u32 127, %v115_v21  ;;  %v226_v41 = vand.u32 127, %v116_v22  ;;  %vm10340_vm7 = vcmp.lt.s32.totalorder %v128_v26, 109  ;;  %v15419_v42 = vmov 0 }
  0x37   :  { %95 = vst.msk [vmem:[#allocation3 + $0x128] sm:$0xff] %vm10273_vm5, %v10203_v3  ;;  %98 = vst.msk [vmem:[#allocation4 + $0x44] sm:$0xff] %vm10273_vm5, %v10203_v3  ;;  %v15420_v42 = vsel %vm10340_vm7, 4294967295, %v15419_v42  ;;  %vm10344_vm8 = vcmp.lt.s32.totalorder %v135_v27, 109  ;;  %v15422_v43 = vmov 0  ;;  %vm10348_vm9 = vcmp.lt.s32.totalorder %v142_v28, 109 }
  0x38   :  { %99 = vst.msk [vmem:[#allocation4 + $0x90] sm:$0xff] %vm10273_vm5, %v10203_v3  ;;  %15413 = vst [vmem:[#allocation18_spill] sm:$0xff] %v10309_v18  ;;  %v15423_v43 = vsel %vm10344_vm8, 4294967295, %v15422_v43  ;;  %v15425_v44 = vmov 0  ;;  %vm10352_vm10 = vcmp.lt.s32.totalorder %v149_v30, 109  ;;  %v15428_v45 = vmov 0 }
  0x39   :  { %15414 = vst [vmem:[#allocation19_spill] sm:$0xff] %v10314_v19  ;;  %15415 = vst [vmem:[#allocation20_spill] sm:$0xff] %v10322_v23  ;;  %v15426_v44 = vsel %vm10348_vm9, 4294967295, %v15425_v44  ;;  %v15429_v45 = vsel %vm10352_vm10, 4294967295, %v15428_v45  ;;  %vm10356_vm11 = vcmp.lt.s32.totalorder %v156_v31, 109  ;;  %v15431_v46 = vmov 0 }
  0x3a   :  { %15416 = vst [vmem:[#allocation21_spill] sm:$0xff] %v10327_v24  ;;  %15417 = vst [vmem:[#allocation22_spill] sm:$0xff] %v10332_v25  ;;  %v15432_v46 = vsel %vm10356_vm11, 4294967295, %v15431_v46  ;;  %vm10360_vm12 = vcmp.lt.s32.totalorder %v163_v32, 109  ;;  %v15434_v47 = vmov 0  ;;  %vm10364_vm13 = vcmp.lt.s32.totalorder %v170_v33, 109 }
  0x3b   :  { %15418 = vst [vmem:[#allocation23_spill] sm:$0xff] %v10337_v29  ;;  %15421 = vst [vmem:[#allocation24_spill] sm:$0xff] %v15420_v42  ;;  %v15435_v47 = vsel %vm10360_vm12, 4294967295, %v15434_v47  ;;  %v15437_v48 = vmov 0  ;;  %vm10368_vm14 = vcmp.lt.s32.totalorder %v177_v34, 109  ;;  %v15440_v49 = vmov 0 }
  0x3c   :  { %15424 = vst [vmem:[#allocation25_spill] sm:$0xff] %v15423_v43  ;;  %15427 = vst [vmem:[#allocation26_spill] sm:$0xff] %v15426_v44  ;;  %v15438_v48 = vsel %vm10364_vm13, 4294967295, %v15437_v48  ;;  %v15441_v49 = vsel %vm10368_vm14, 4294967295, %v15440_v49  ;;  %vm10372_vm15 = vcmp.lt.s32.totalorder %v184_v35, 109  ;;  %v15443_v50 = vmov 0 }
  0x3d   :  { %15430 = vst [vmem:[#allocation27_spill] sm:$0xff] %v15429_v45  ;;  %15433 = vst [vmem:[#allocation28_spill] sm:$0xff] %v15432_v46  ;;  %v15444_v50 = vsel %vm10372_vm15, 4294967295, %v15443_v50  ;;  %vm10376_vm1 = vcmp.lt.s32.totalorder %v191_v36, 109  ;;  %v15446_v51 = vmov 0  ;;  %vm10380_vm2 = vcmp.lt.s32.totalorder %v198_v37, 109 }
  0x3e   :  { %15436 = vst [vmem:[#allocation29_spill] sm:$0xff] %v15435_v47  ;;  %15439 = vst [vmem:[#allocation30_spill] sm:$0xff] %v15438_v48  ;;  %v15447_v51 = vsel %vm10376_vm1, 4294967295, %v15446_v51  ;;  %v15449_v52 = vmov 0  ;;  %vm10384_vm3 = vcmp.lt.s32.totalorder %v205_v38, 109  ;;  %v15452_v53 = vmov 0 }
  0x3f   :  { %15442 = vst [vmem:[#allocation31_spill] sm:$0xff] %v15441_v49  ;;  %15445 = vst [vmem:[#allocation32_spill] sm:$0xff] %v15444_v50  ;;  %v15450_v52 = vsel %vm10380_vm2, 4294967295, %v15449_v52  ;;  %v15453_v53 = vsel %vm10384_vm3, 4294967295, %v15452_v53  ;;  %vm10388_vm4 = vcmp.lt.s32.totalorder %v212_v39, 109  ;;  %v15455_v54 = vmov 0 }
  0x40   :  { %15448 = vst [vmem:[#allocation33_spill] sm:$0xff] %v15447_v51  ;;  %15451 = vst [vmem:[#allocation34_spill] sm:$0xff] %v15450_v52  ;;  %v15456_v54 = vsel %vm10388_vm4, 4294967295, %v15455_v54  ;;  %vm10392_vm6 = vcmp.lt.s32.totalorder %v219_v40, 109  ;;  %v15458_v55 = vmov 0  ;;  %vm10396_vm0 = vcmp.lt.s32.totalorder %v226_v41, 109 }
  0x41   :  { %15454 = vst [vmem:[#allocation35_spill] sm:$0xff] %v15453_v53  ;;  %15457 = vst [vmem:[#allocation36_spill] sm:$0xff] %v15456_v54  ;;  %v15459_v55 = vsel %vm10392_vm6, 4294967295, %v15458_v55  ;;  %v15461_v56 = vmov 0 }
  0x42   :  { %15460 = vst [vmem:[#allocation37_spill] sm:$0xff] %v15459_v55  ;;  %v15462_v56 = vsel %vm10396_vm0, 4294967295, %v15461_v56 }
  0x43   :  { %15463 = vst [vmem:[#allocation38_spill] sm:$0xff] %v15462_v56 }
  0x44 LB: > { %v15464_v2 = vld [vmem:[#allocation15_spill] sm:$0xff]  ;;  %v15465_v42 = vld [vmem:[#allocation24_spill] sm:$0xff]  ;;  %v15466_v43 = vld [vmem:[#allocation25_spill] sm:$0xff]  ;;  %s338_s4 = smul.u32 21, %s10193_s2  ;;  %s10204_s10 = smov 127   ;;  %vm15481_vm5 = vcmask 1043456   ;;  %s10193_s2 = sphi %s10400_s2, %s337_s2  }
  0x45   : > { %v15467_v44 = vld [vmem:[#allocation26_spill] sm:$0xff]  ;;  %v15468_v45 = vld [vmem:[#allocation27_spill] sm:$0xff]  ;;  %v15474_v4 = vld [vmem:[#allocation16_spill] sm:$0xff]  ;;  %s10205_s11 = smov 124   ;;  %s10206_s12 = smov 126   ;;  %vm360_vm6 = vcmask 1046528   ;;  %vm15551_vm7 = vnez %v15465_v42  ;;  %vm15552_vm8 = vnez %v15466_v43 }
  0x46   : > { %v15473_v50 = vld [vmem:[#allocation32_spill] sm:$0xff]  ;;  %s339_s9 = scalar_lea.vmem %s15084_s0, %s338_s4  ;;  %s10207_s13 = smov 125   ;;  %vm15098_vm0 = vcmask 1044480   ;;  %vm15482_vm4 = vcmask 1043456   ;;  %v15107_v21 = vmov 0.0   ;;  %v15105_v26 = vmov 0  }
  0x47   : > { %v15475_v52 = vld [vmem:[#allocation34_spill] sm:$0xff]  ;;  %v15476_v51 = vld [vmem:[#allocation33_spill] sm:$0xff]  ;;  %v340_v57 = vld [vmem:[%s339_s9] sm:$0xff]  ;;  %900 = vmatprep.mubr.f32.mxu0 %v15107_v21  ;;  %989 = vmatprep.mubr.f32.mxu1 %v15107_v21  ;;  %vm15490_vm3 = vcmask 1039360   ;;  %vm15553_vm9 = vnez %v15467_v44  ;;  %s10210_s14 = smov 1   ;;  %vm15557_vm10 = vnez %v15468_v45  ;;  %s10212_s15 = smov 112  }
  0x48   : > { %v15477_v54 = vld [vmem:[#allocation36_spill] sm:$0xff]  ;;  %v15478_v53 = vld [vmem:[#allocation35_spill] sm:$0xff]  ;;  %351 = vrot.lane.b32.xlu1 %v340_v57, %s10204_s10  ;;  %343 = vst [vmem:[#allocation2] ss:$8 sm:$0xf] %v340_v57  ;;  %418 = vrot.lane.b32.xlu0 %v340_v57, %s10205_s11  ;;  %v661_v63 = vrot.slane %v340_v57, 4  ;;  %vm15491_vm1 = vmmov %vm15490_vm3 }
  0x49   : > { %v15480_v55 = vld [vmem:[#allocation37_spill] sm:$0xff]  ;;  %v10409_v58 = vld [vmem:[%s339_s9 + $0x8] sm:$0xff]  ;;  %344 = vst [vmem:[#allocation2] ss:$8 sm:$0xf0] %v340_v57  ;;  %v514_v1 = vrot.slane %v340_v57, 2  ;;  %9972 = vset.pattern.permute.xlu1 %v15105_v26  ;;  %9971 = vset.pattern.permute.xlu0 %v15105_v26  ;;  %vm15492_vm2 = vmmov %vm15491_vm1 }
  0x4a   : > { %v15479_v56 = vld [vmem:[#allocation38_spill] sm:$0xff]  ;;  %346 = vst [vmem:[#allocation2 + $0x40] ss:$8 sm:$0xf] %v10409_v58  ;;  %v342_v59 = vld [vmem:[%s339_s9 + $0x10] sm:$0x1f]  ;;  %vm15493_vm15 = vmmov %vm15491_vm1 }
  0x4b   : > { %347 = vst [vmem:[#allocation2 + $0x40] ss:$8 sm:$0xf0] %v10409_v58  ;;  %v662_v60 = vrot.slane %v10409_v58, 4  ;;  %v663_v61 = vrot.slane %v342_v59, 4  ;;  %v515_v3 = vrot.slane %v10409_v58, 2 }
  0x4c   : > { %353 = vrot.lane.b32.xlu1 %v10409_v58, %s10204_s10  ;;  %420 = vrot.lane.b32.xlu0 %v10409_v58, %s10205_s11  ;;  %v588_v5 = vrot.slane %v340_v57, 3  ;;  %v589_v6 = vrot.slane %v10409_v58, 3  ;;  %v440_v7 = vrot.slane %v340_v57, 1  ;;  %v441_v8 = vrot.slane %v10409_v58, 1  ;;  %v15483_v23 = vld [vmem:[#allocation20_spill] sm:$0xff]  ;;  %v15484_v19 = vld [vmem:[#allocation19_spill] sm:$0xff] }
  0x4d   : > { %v665_v62 = vsel %vm15481_vm5, %v662_v60, %v663_v61  ;;  %vm15099_vm5 = vcmask 1045504   ;;  %v664_v9 = vsel %vm15482_vm4, %v661_v63, %v662_v60  ;;  %v516_v13 = vrot.slane %v342_v59, 2  ;;  %v15485_v17 = vld [vmem:[#allocation17_spill] sm:$0xff]  ;;  %v15486_v18 = vld [vmem:[#allocation18_spill] sm:$0xff]  ;;  %s10213_s16 = smov 96   ;;  %s10214_s3 = smov 80  }
  0x4e   : > { %672 = vst [vmem:[#allocation2 + $0x144] ss:$8 sm:$0xf] %v665_v62  ;;  %673 = vst [vmem:[#allocation2 + $0x144] ss:$8 sm:$0xf0] %v665_v62  ;;  %v517_v10 = vsel %vm15099_vm5, %v514_v1, %v515_v3  ;;  %v591_v11 = vsel %vm15098_vm0, %v588_v5, %v589_v6  ;;  %v443_v12 = vsel %vm360_vm6, %v440_v7, %v441_v8 }
  0x4f   : > { %669 = vst [vmem:[#allocation2 + $0x104] ss:$8 sm:$0xf] %v664_v9  ;;  %670 = vst [vmem:[#allocation2 + $0x104] ss:$8 sm:$0xf0] %v664_v9  ;;  %v518_v16 = vsel %vm15099_vm5, %v515_v3, %v516_v13 }
  0x50   : > { %376 = vrot.lane.b32.xlu1 %v10409_v58, %s10206_s12  ;;  %374 = vrot.lane.b32.xlu0 %v340_v57, %s10206_s12  ;;  %522 = vst [vmem:[#allocation2 + $0x82] ss:$8 sm:$0xf] %v517_v10  ;;  %523 = vst [vmem:[#allocation2 + $0x82] ss:$8 sm:$0xf0] %v517_v10 }
  0x51   : > { %596 = vst [vmem:[#allocation2 + $0x87] ss:$8 sm:$0xf] %v591_v11  ;;  %597 = vst [vmem:[#allocation2 + $0x87] ss:$8 sm:$0xf0] %v591_v11 }
  0x52   : > { %448 = vst [vmem:[#allocation2 + $0x5] ss:$8 sm:$0xf] %v443_v12  ;;  %449 = vst [vmem:[#allocation2 + $0x5] ss:$8 sm:$0xf0] %v443_v12 }
  0x53   : > { %v590_v14 = vrot.slane %v342_v59, 3  ;;  %v442_v15 = vrot.slane %v342_v59, 1  ;;  %525 = vst [vmem:[#allocation2 + $0xc2] ss:$8 sm:$0xf] %v518_v16  ;;  %vm15487_vm4 = vcmask 1045504  }
  0x54   : > { %398 = vrot.lane.b32.xlu1 %v10409_v58, %s10207_s13  ;;  %396 = vrot.lane.b32.xlu0 %v340_v57, %s10207_s13  ;;  %526 = vst [vmem:[#allocation2 + $0xc2] ss:$8 sm:$0xf0] %v518_v16  ;;  %vm15488_vm5 = vcmask 1044480   ;;  %s10215_s17 = smov 64   ;;  %s10216_s18 = smov 48  }
  0x55   : > { %v592_v20 = vsel %vm15098_vm0, %v589_v6, %v590_v14  ;;  %v444_v22 = vsel %vm360_vm6, %v441_v8, %v442_v15  ;;  %vm15489_vm0 = vcmask 1043456   ;;  %s10217_s1 = smov 32   ;;  %s10218_s5 = smov 16  }
  0x56   : > { %599 = vst [vmem:[#allocation2 + $0xc7] ss:$8 sm:$0xf] %v592_v20  ;;  %600 = vst [vmem:[#allocation2 + $0xc7] ss:$8 sm:$0xf0] %v592_v20 }
  0x57   : > { %451 = vst [vmem:[#allocation2 + $0x45] ss:$8 sm:$0xf] %v444_v22  ;;  %452 = vst [vmem:[#allocation2 + $0x45] ss:$8 sm:$0xf0] %v444_v22 }
  0x58   : > { %355 = vrot.lane.b32.xlu1 %v342_v59, %s10204_s10  ;;  %422 = vrot.lane.b32.xlu0 %v342_v59, %s10205_s11  ;;  %s9938_s19 = smul.u32 28, %s10193_s2  ;;  %s337_s2 = sadd.s32 1, %s10193_s2  }
  0x59   : > { %p334_p1 = scmp.ge.s32.totalorder %s337_s2, 2  }
  0x5a   : > { %s15048_s22 = scalar_lea.vmem %s15091_s7, %s9938_s19 }
  0x5c   : > { %400 = vrot.lane.b32.xlu1 %v342_v59, %s10207_s13  ;;  %378 = vrot.lane.b32.xlu0 %v342_v59, %s10206_s12 }
  0x60   : > { %820 = vperm.xlu1 %9972, %v15483_v23   ;;  %815 = vperm.xlu0 %9971, %v15484_v19  }
  0x64   : > { %805 = vperm.xlu1 %9972, %v15485_v17   ;;  %810 = vperm.xlu0 %9971, %v15486_v18   ;;  %v11345_v17 = vld [vmem:[#allocation10 + $0x4] ss:$12 sps:$4 sm:$0xff]  }
  0x65   : > { %15586 = vst [vmem:[#allocation42_spill] sm:$0xff] %v11345_v17 }
  0xba   : > { %v352_v27 = vpop.permute.xlu1 %351  ;;  %v10443_v28 = vpop.permute.xlu0 %418 }
  0xbb   : > { %v357_v30 = vrot.slane %v352_v27, 1  ;;  %v453_v31 = vrot.slane %v352_v27, 2  ;;  %v527_v32 = vrot.slane %v352_v27, 3  ;;  %v601_v33 = vrot.slane %v352_v27, 4 }
  0xbc   : > { %v674_v34 = vrot.slane %v352_v27, 5  ;;  %v424_v35 = vrot.slane %v10443_v28, 1  ;;  %v499_v36 = vrot.slane %v10443_v28, 2  ;;  %v573_v37 = vrot.slane %v10443_v28, 3 }
  0xbd   : > { %v646_v38 = vrot.slane %v10443_v28, 4  ;;  %v720_v39 = vrot.slane %v10443_v28, 5 }
  0xbe   : > { %v10450_v40 = vpop.permute.xlu1 %353  ;;  %v10452_v41 = vpop.permute.xlu0 %420 }
  0xbf   : > { %v358_v57 = vrot.slane %v10450_v40, 1  ;;  %v454_v58 = vrot.slane %v10450_v40, 2  ;;  %v528_v59 = vrot.slane %v10450_v40, 3  ;;  %v602_v60 = vrot.slane %v10450_v40, 4 }
  0xc0   : > { %v675_v61 = vrot.slane %v10450_v40, 5  ;;  %v425_v62 = vrot.slane %v10452_v41, 1  ;;  %v500_v63 = vrot.slane %v10452_v41, 2  ;;  %v574_v1 = vrot.slane %v10452_v41, 3 }
  0xc1   : > { %v361_v3 = vsel %vm360_vm6, %v357_v30, %v358_v57  ;;  %v457_v5 = vsel %vm15487_vm4, %v453_v31, %v454_v58  ;;  %v531_v6 = vsel %vm15488_vm5, %v527_v32, %v528_v59  ;;  %v604_v7 = vsel %vm15489_vm0, %v601_v33, %v602_v60 }
  0xc2   : > { %v363_v8 = vsel %vm15490_vm3, %v352_v27, %v361_v3  ;;  %v458_v9 = vsel %vm15491_vm1, %v361_v3, %v457_v5  ;;  %v532_v10 = vsel %vm15492_vm2, %v457_v5, %v531_v6  ;;  %v605_v11 = vsel %vm15493_vm15, %v531_v6, %v604_v7  ;;  %v10478_v12 = vpop.permute.xlu1 %376  ;;  %vm15495_vm15 = vmmov %vm15487_vm4  ;;  %v375_v20 = vpop.permute.xlu0 %374 }
  0xc3   : > { %369 = vst [vmem:[#allocation2 + $0x1] ss:$8 sm:$0xf] %v363_v8  ;;  %370 = vst [vmem:[#allocation2 + $0x1] ss:$8 sm:$0xf0] %v363_v8  ;;  %v427_v14 = vsel %vm360_vm6, %v424_v35, %v425_v62  ;;  %v502_v15 = vsel %vm15495_vm15, %v499_v36, %v500_v63 }
  0xc4   : > { %464 = vst [vmem:[#allocation2 + $0x6] ss:$8 sm:$0xf] %v458_v9  ;;  %465 = vst [vmem:[#allocation2 + $0x6] ss:$8 sm:$0xf0] %v458_v9 }
  0xc5   : > { %538 = vst [vmem:[#allocation2 + $0x83] ss:$8 sm:$0xf] %v532_v10  ;;  %539 = vst [vmem:[#allocation2 + $0x83] ss:$8 sm:$0xf0] %v532_v10 }
  0xc6   : > { %611 = vst [vmem:[#allocation2 + $0x100] ss:$8 sm:$0xf] %v605_v11  ;;  %612 = vst [vmem:[#allocation2 + $0x100] ss:$8 sm:$0xf0] %v605_v11  ;;  %v10504_v5 = vpop.permute.xlu1 %398 }
  0xc7   : > { %vm15494_vm0 = vcmask 1042432   ;;  %vm15496_vm1 = vmmov %vm15488_vm5  ;;  %vm15497_vm3 = vcmask 1014784   ;;  %v647_v32 = vrot.slane %v10452_v41, 4  ;;  %v721_v33 = vrot.slane %v10452_v41, 5 }
  0xc8   : > { %v678_v13 = vsel %vm15494_vm0, %v674_v34, %v675_v61  ;;  %v576_v16 = vsel %vm15496_vm1, %v573_v37, %v574_v1  ;;  %v429_v27 = vsel %vm15497_vm3, %v10443_v28, %v427_v14  ;;  %vm15498_vm5 = vmmov %vm15497_vm3  ;;  %vm406_vm0 = vcmask 1022976  }
  0xc9   : > { %v679_v22 = vsel %vm15492_vm2, %v604_v7, %v678_v13  ;;  %v503_v30 = vsel %vm15498_vm5, %v427_v14, %v502_v15  ;;  %vm15499_vm4 = vmmov %vm15497_vm3  ;;  %435 = vst [vmem:[#allocation2 + $0x4] ss:$8 sm:$0xf] %v429_v27  ;;  %v381_v34 = vrot.slane %v10478_v12, 1  ;;  %v470_v28 = vrot.slane %v10478_v12, 2 }
  0xca   : > { %v577_v31 = vsel %vm15499_vm4, %v502_v15, %v576_v16  ;;  %685 = vst [vmem:[#allocation2 + $0x105] ss:$8 sm:$0xf] %v679_v22  ;;  %686 = vst [vmem:[#allocation2 + $0x105] ss:$8 sm:$0xf0] %v679_v22  ;;  %v397_v22 = vpop.permute.xlu0 %396 }
  0xcb   : > { %436 = vst [vmem:[#allocation2 + $0x4] ss:$8 sm:$0xf0] %v429_v27  ;;  %509 = vst [vmem:[#allocation2 + $0x81] ss:$8 sm:$0xf] %v503_v30 }
  0xcc   : > { %510 = vst [vmem:[#allocation2 + $0x81] ss:$8 sm:$0xf0] %v503_v30  ;;  %583 = vst [vmem:[#allocation2 + $0x86] ss:$8 sm:$0xf] %v577_v31 }
  0xcd   : > { %584 = vst [vmem:[#allocation2 + $0x86] ss:$8 sm:$0xf0] %v577_v31  ;;  %v15111_v35 = vrot.slane %v10478_v12, 3  ;;  %v15110_v36 = vrot.slane %v10478_v12, 4  ;;  %v15109_v37 = vrot.slane %v10478_v12, 5  ;;  %vm15502_vm2 = vmmov %vm15497_vm3 }
  0xce   : > { %v380_v3 = vrot.slane %v375_v20, 1  ;;  %vm15500_vm15 = vcmask 1043456   ;;  %vm15501_vm1 = vcmask 1042432   ;;  %v469_v8 = vrot.slane %v375_v20, 2  ;;  %vm15503_vm3 = vmmov %vm15502_vm2 }
  0xcf   : > { %v649_v6 = vsel %vm15500_vm15, %v646_v38, %v647_v32  ;;  %v723_v7 = vsel %vm15501_vm1, %v720_v39, %v721_v33  ;;  %v543_v9 = vrot.slane %v375_v20, 3  ;;  %v616_v14 = vrot.slane %v375_v20, 4 }
  0xd0   : > { %v650_v10 = vsel %vm15502_vm2, %v576_v16, %v649_v6  ;;  %v724_v11 = vsel %vm15503_vm3, %v649_v6, %v723_v7  ;;  %v383_v13 = vsel %vm360_vm6, %v380_v3, %v381_v34  ;;  %vm15504_vm5 = vcmask 1031168  }
  0xd1   : > { %656 = vst [vmem:[#allocation2 + $0x103] ss:$8 sm:$0xf] %v650_v10  ;;  %657 = vst [vmem:[#allocation2 + $0x103] ss:$8 sm:$0xf0] %v650_v10  ;;  %v385_v38 = vsel %vm15504_vm5, %v375_v20, %v383_v13 }
  0xd2   : > { %730 = vst [vmem:[#allocation2 + $0x180] ss:$8 sm:$0xf] %v724_v11  ;;  %731 = vst [vmem:[#allocation2 + $0x180] ss:$8 sm:$0xf0] %v724_v11 }
  0xd3   : > { %vm15505_vm4 = vcmask 1045504   ;;  %vm15506_vm15 = vcmask 1044480   ;;  %v690_v16 = vrot.slane %v375_v20, 5  ;;  %391 = vst [vmem:[#allocation2 + $0x2] ss:$8 sm:$0xf] %v385_v38  ;;  %vm15507_vm1 = vmmov %vm15504_vm5 }
  0xd4   : > { %v472_v39 = vsel %vm15505_vm4, %v469_v8, %v470_v28  ;;  %v546_v15 = vsel %vm15506_vm15, %v543_v9, %v15111_v35  ;;  %392 = vst [vmem:[#allocation2 + $0x2] ss:$8 sm:$0xf0] %v385_v38  ;;  %vm15508_vm2 = vmmov %vm15507_vm1  ;;  %vm15509_vm3 = vcmask 1043456   ;;  %v403_v3 = vrot.slane %v10504_v5, 1  ;;  %v10536_v9 = vpop.permute.xlu1 %355 }
  0xd5   : > { %v473_v27 = vsel %vm15507_vm1, %v383_v13, %v472_v39  ;;  %v547_v30 = vsel %vm15508_vm2, %v472_v39, %v546_v15  ;;  %v619_v31 = vsel %vm15509_vm3, %v616_v14, %v15110_v36  ;;  %vm15510_vm5 = vmmov %vm15507_vm1  ;;  %vm15511_vm4 = vcmask 1042432  }
  0xd6   : > { %479 = vst [vmem:[#allocation2 + $0x7] ss:$8 sm:$0xf] %v473_v27  ;;  %480 = vst [vmem:[#allocation2 + $0x7] ss:$8 sm:$0xf0] %v473_v27  ;;  %v620_v6 = vsel %vm15510_vm5, %v546_v15, %v619_v31  ;;  %v693_v20 = vsel %vm15511_vm4, %v690_v16, %v15109_v37  ;;  %v423_v37 = vpop.permute.xlu0 %422 }
  0xd7   : > { %553 = vst [vmem:[#allocation2 + $0x84] ss:$8 sm:$0xf] %v547_v30  ;;  %554 = vst [vmem:[#allocation2 + $0x84] ss:$8 sm:$0xf0] %v547_v30 }
  0xd8   : > { %v485_v7 = vrot.slane %v10504_v5, 2  ;;  %v559_v8 = vrot.slane %v10504_v5, 3  ;;  %626 = vst [vmem:[#allocation2 + $0x101] ss:$8 sm:$0xf] %v620_v6  ;;  %vm15512_vm15 = vmmov %vm15507_vm1  ;;  %v632_v11 = vrot.slane %v10504_v5, 4 }
  0xd9   : > { %627 = vst [vmem:[#allocation2 + $0x101] ss:$8 sm:$0xf0] %v620_v6  ;;  %v694_v10 = vsel %vm15512_vm15, %v619_v31, %v693_v20  ;;  %v706_v13 = vrot.slane %v10504_v5, 5  ;;  %v402_v14 = vrot.slane %v397_v22, 1  ;;  %v484_v38 = vrot.slane %v397_v22, 2  ;;  %vm15515_vm5 = vmmov %vm15511_vm4 }
  0xda   : > { %700 = vst [vmem:[#allocation2 + $0x106] ss:$8 sm:$0xf] %v694_v10  ;;  %701 = vst [vmem:[#allocation2 + $0x106] ss:$8 sm:$0xf0] %v694_v10 }
  0xdb   : > { %v558_v39 = vrot.slane %v397_v22, 3  ;;  %v631_v15 = vrot.slane %v397_v22, 4  ;;  %v705_v16 = vrot.slane %v397_v22, 5  ;;  %v405_v27 = vsel %vm360_vm6, %v402_v14, %v403_v3  ;;  %v788_v36 = vld [vmem:[#allocation2 + $0x188] sm:$0xff]  ;;  %v790_v35 = vld [vmem:[#allocation2 + $0x198] sm:$0xff] }
  0xdc   : > { %v359_v30 = vrot.slane %v10536_v9, 1  ;;  %v455_v6 = vrot.slane %v10536_v9, 2  ;;  %v529_v31 = vrot.slane %v10536_v9, 3  ;;  %v407_v20 = vsel %vm406_vm0, %v397_v22, %v405_v27  ;;  %860 = vmatprep.subr.mxu0 %v788_v36  ;;  %949 = vmatprep.subr.mxu1 %v790_v35 }
  0xdd   : > { %vm15513_vm1 = vcmask 1045504   ;;  %vm15514_vm2 = vcmask 1044480   ;;  %v634_v14 = vsel %vm15509_vm3, %v631_v15, %v632_v11  ;;  %413 = vst [vmem:[#allocation2 + $0x3] ss:$8 sm:$0xf] %v407_v20  ;;  %v501_v36 = vrot.slane %v423_v37, 2 }
  0xde   : > { %v487_v10 = vsel %vm15513_vm1, %v484_v38, %v485_v7  ;;  %v561_v0 = vsel %vm15514_vm2, %v558_v39, %v559_v8  ;;  %414 = vst [vmem:[#allocation2 + $0x3] ss:$8 sm:$0xf0] %v407_v20  ;;  %v708_v38 = vsel %vm15515_vm5, %v705_v16, %v706_v13  ;;  %v787_v39 = vld [vmem:[#allocation2 + $0x180] sm:$0xff]  ;;  %vm15516_vm4 = vmmov %vm15513_vm1  ;;  %v10573_v20 = vpop.permute.xlu1 %400  ;;  %vm15518_vm1 = vcmask 1039360  }
  0xdf   : > { %v488_v26 = vsel %vm406_vm0, %v405_v27, %v487_v10  ;;  %v562_v21 = vsel %vm406_vm0, %v487_v10, %v561_v0  ;;  %v635_v22 = vsel %vm406_vm0, %v561_v0, %v634_v14  ;;  %v709_v15 = vsel %vm406_vm0, %v634_v14, %v708_v38  ;;  %vm15517_vm15 = vmmov %vm15514_vm2  ;;  %861 = vmatpush1.msra.mxu0 %v787_v39 }
  0xe0   : > { %494 = vst [vmem:[#allocation2 + $0x80] ss:$8 sm:$0xf] %v488_v26  ;;  %495 = vst [vmem:[#allocation2 + $0x80] ss:$8 sm:$0xf0] %v488_v26  ;;  %v364_v0 = vsel %vm360_vm6, %v358_v57, %v359_v30  ;;  %v459_v16 = vsel %vm15516_vm4, %v454_v58, %v455_v6  ;;  %v533_v27 = vsel %vm15517_vm15, %v528_v59, %v529_v31 }
  0xe1   : > { %568 = vst [vmem:[#allocation2 + $0x85] ss:$8 sm:$0xf] %v562_v21  ;;  %569 = vst [vmem:[#allocation2 + $0x85] ss:$8 sm:$0xf0] %v562_v21  ;;  %v365_v21 = vsel %vm15518_vm1, %v10450_v40, %v364_v0 }
  0xe2   : > { %641 = vst [vmem:[#allocation2 + $0x102] ss:$8 sm:$0xf] %v635_v22  ;;  %642 = vst [vmem:[#allocation2 + $0x102] ss:$8 sm:$0xf0] %v635_v22 }
  0xe3   : > { %v789_v26 = vld [vmem:[#allocation2 + $0x190] sm:$0xff]  ;;  %715 = vst [vmem:[#allocation2 + $0x107] ss:$8 sm:$0xf] %v709_v15  ;;  %vm15519_vm2 = vmmov %vm15518_vm1  ;;  %v603_v30 = vrot.slane %v10536_v9, 4  ;;  %v676_v58 = vrot.slane %v10536_v9, 5 }
  0xe4   : > { %716 = vst [vmem:[#allocation2 + $0x107] ss:$8 sm:$0xf0] %v709_v15  ;;  %v460_v10 = vsel %vm15519_vm2, %v364_v0, %v459_v16  ;;  %vm15520_vm3 = vmmov %vm15518_vm1  ;;  %v426_v59 = vrot.slane %v423_v37, 1  ;;  %v575_v6 = vrot.slane %v423_v37, 3  ;;  %950 = vmatpush1.msra.mxu1 %v789_v26  ;;  %vm15521_vm5 = vcmask 1043456  }
  0xe5   : > { %v534_v57 = vsel %vm15520_vm3, %v459_v16, %v533_v27  ;;  %372 = vst [vmem:[#allocation2 + $0x41] ss:$8 sm:$0xf] %v365_v21  ;;  %373 = vst [vmem:[#allocation2 + $0x41] ss:$8 sm:$0xf0] %v365_v21  ;;  %v606_v31 = vsel %vm15521_vm5, %v602_v60, %v603_v30 }
  0xe6   : > { %467 = vst [vmem:[#allocation2 + $0x46] ss:$8 sm:$0xf] %v460_v10  ;;  %468 = vst [vmem:[#allocation2 + $0x46] ss:$8 sm:$0xf0] %v460_v10  ;;  %v430_v9 = vsel %vm360_vm6, %v425_v62, %v426_v59 }
  0xe7   : > { %541 = vst [vmem:[#allocation2 + $0xc3] ss:$8 sm:$0xf] %v534_v57  ;;  %542 = vst [vmem:[#allocation2 + $0xc3] ss:$8 sm:$0xf0] %v534_v57 }
  0xe8   : > { %v648_v14 = vrot.slane %v423_v37, 4  ;;  %v722_v22 = vrot.slane %v423_v37, 5  ;;  %v404_v35 = vrot.slane %v10573_v20, 1  ;;  %vm15522_vm4 = vmmov %vm15518_vm1  ;;  %vm15523_vm15 = vcmask 1042432  }
  0xe9   : > { %v607_v38 = vsel %vm15522_vm4, %v533_v27, %v606_v31  ;;  %v680_v39 = vsel %vm15523_vm15, %v675_v61, %v676_v58  ;;  %vm15524_vm1 = vcmask 1045504   ;;  %vm15525_vm3 = vcmask 1014784   ;;  %v10602_v61 = vpop.permute.xlu0 %378 }
  0xea   : > { %v504_v15 = vsel %vm15524_vm1, %v500_v63, %v501_v36  ;;  %614 = vst [vmem:[#allocation2 + $0x140] ss:$8 sm:$0xf] %v607_v38  ;;  %615 = vst [vmem:[#allocation2 + $0x140] ss:$8 sm:$0xf0] %v607_v38  ;;  %v681_v60 = vsel %vm15519_vm2, %v606_v31, %v680_v39  ;;  %v431_v37 = vsel %vm15525_vm3, %v10452_v41, %v430_v9 }
  0xeb   : > { %vm15526_vm5 = vmmov %vm15525_vm3  ;;  %vm15527_vm4 = vcmask 1044480   ;;  %vm15112_vm15 = vcmask 261120   ;;  %688 = vst [vmem:[#allocation2 + $0x145] ss:$8 sm:$0xf] %v681_v60  ;;  %vm15529_vm2 = vcmask 1043456  }
  0xec   : > { %v505_v0 = vsel %vm15526_vm5, %v430_v9, %v504_v15  ;;  %v578_v40 = vsel %vm15527_vm4, %v574_v1, %v575_v6  ;;  %689 = vst [vmem:[#allocation2 + $0x145] ss:$8 sm:$0xf0] %v681_v60  ;;  %438 = vst [vmem:[#allocation2 + $0x44] ss:$8 sm:$0xf] %v431_v37  ;;  %v651_v63 = vsel %vm15529_vm2, %v647_v32, %v648_v14 }
  0xed   : > { %439 = vst [vmem:[#allocation2 + $0x44] ss:$8 sm:$0xf0] %v431_v37  ;;  %512 = vst [vmem:[#allocation2 + $0xc1] ss:$8 sm:$0xf] %v505_v0  ;;  %v408_v1 = vsel %vm360_vm6, %v403_v3, %v404_v35 }
  0xee   : > { %513 = vst [vmem:[#allocation2 + $0xc1] ss:$8 sm:$0xf0] %v505_v0  ;;  %vm15528_vm1 = vmmov %vm15525_vm3  ;;  %vm15530_vm3 = vcmask 1042432   ;;  %v409_v21 = vsel %vm406_vm0, %v10504_v5, %v408_v1  ;;  %v486_v10 = vrot.slane %v10573_v20, 2  ;;  %v560_v41 = vrot.slane %v10573_v20, 3 }
  0xef   : > { %v579_v62 = vsel %vm15528_vm1, %v504_v15, %v578_v40  ;;  %v725_v16 = vsel %vm15530_vm3, %v721_v33, %v722_v22  ;;  %vm15531_vm5 = vmmov %vm15528_vm1  ;;  %416 = vst [vmem:[#allocation2 + $0x43] ss:$8 sm:$0xf] %v409_v21  ;;  %v633_v32 = vrot.slane %v10573_v20, 4  ;;  %v707_v33 = vrot.slane %v10573_v20, 5  ;;  %v772_v57 = vld [vmem:[#allocation2 + $0x108] sm:$0xff] }
  0xf0   : > { %586 = vst [vmem:[#allocation2 + $0xc6] ss:$8 sm:$0xf] %v579_v62  ;;  %587 = vst [vmem:[#allocation2 + $0xc6] ss:$8 sm:$0xf0] %v579_v62  ;;  %v652_v27 = vsel %vm15531_vm5, %v578_v40, %v651_v63  ;;  %862 = vmatprep.subr.mxu0 %v772_v57 }
  0xf1   : > { %vm15532_vm4 = vmmov %vm15528_vm1  ;;  %659 = vst [vmem:[#allocation2 + $0x143] ss:$8 sm:$0xf] %v652_v27  ;;  %v382_v3 = vrot.slane %v10602_v61, 1  ;;  %v774_v30 = vld [vmem:[#allocation2 + $0x118] sm:$0xff]  ;;  %vm15533_vm1 = vcmask 1045504  }
  0xf2   : > { %v726_v26 = vsel %vm15532_vm4, %v651_v63, %v725_v16  ;;  %660 = vst [vmem:[#allocation2 + $0x143] ss:$8 sm:$0xf0] %v652_v27  ;;  %417 = vst [vmem:[#allocation2 + $0x43] ss:$8 sm:$0xf0] %v409_v21  ;;  %v489_v58 = vsel %vm15533_vm1, %v485_v7, %v486_v10  ;;  %951 = vmatprep.subr.mxu1 %v774_v30 }
  0xf3   : > { %733 = vst [vmem:[#allocation2 + $0x1c0] ss:$8 sm:$0xf] %v726_v26  ;;  %734 = vst [vmem:[#allocation2 + $0x1c0] ss:$8 sm:$0xf0] %v726_v26  ;;  %v490_v20 = vsel %vm406_vm0, %v408_v1, %v489_v58 }
  0xf4   : > { %v471_v59 = vrot.slane %v10602_v61, 2  ;;  %v545_v36 = vrot.slane %v10602_v61, 3  ;;  %v618_v6 = vrot.slane %v10602_v61, 4  ;;  %v771_v31 = vld [vmem:[#allocation2 + $0x100] sm:$0xff]  ;;  %v773_v14 = vld [vmem:[#allocation2 + $0x110] sm:$0xff]  ;;  %vm15534_vm2 = vcmask 1044480  }
  0xf5   : > { %v563_v22 = vsel %vm15534_vm2, %v559_v8, %v560_v41  ;;  %vm15535_vm3 = vcmask 1043456   ;;  %vm15536_vm5 = vcmask 1042432   ;;  %863 = vmatpush1.msra.mxu0 %v771_v31  ;;  %497 = vst [vmem:[#allocation2 + $0xc0] ss:$8 sm:$0xf] %v490_v20  ;;  %v386_v8 = vsel %vm360_vm6, %v381_v34, %v382_v3  ;;  %952 = vmatpush1.msra.mxu1 %v773_v14  ;;  %v756_v15 = vld [vmem:[#allocation2 + $0x88] sm:$0xff] }
  0xf6   : > { %v636_v7 = vsel %vm15535_vm3, %v632_v11, %v633_v32  ;;  %v710_v35 = vsel %vm15536_vm5, %v706_v13, %v707_v33  ;;  %498 = vst [vmem:[#allocation2 + $0xc0] ss:$8 sm:$0xf0] %v490_v20  ;;  %v564_v38 = vsel %vm406_vm0, %v489_v58, %v563_v22  ;;  %vm15537_vm4 = vcmask 1031168   ;;  %vm15541_vm6 = vmmov %vm15535_vm3  ;;  %864 = vmatprep.subr.mxu0 %v756_v15  ;;  %v758_v0 = vld [vmem:[#allocation2 + $0x98] sm:$0xff]  ;;  %v755_v40 = vld [vmem:[#allocation2 + $0x80] sm:$0xff] }
  0xf7   : > { %v637_v39 = vsel %vm406_vm0, %v563_v22, %v636_v7  ;;  %v711_v9 = vsel %vm406_vm0, %v636_v7, %v710_v35  ;;  %571 = vst [vmem:[#allocation2 + $0xc5] ss:$8 sm:$0xf] %v564_v38  ;;  %572 = vst [vmem:[#allocation2 + $0xc5] ss:$8 sm:$0xf0] %v564_v38  ;;  %v387_v5 = vsel %vm15537_vm4, %v10478_v12, %v386_v8  ;;  %953 = vmatprep.subr.mxu1 %v758_v0 }
  0xf8   : > { %644 = vst [vmem:[#allocation2 + $0x142] ss:$8 sm:$0xf] %v637_v39  ;;  %645 = vst [vmem:[#allocation2 + $0x142] ss:$8 sm:$0xf0] %v637_v39  ;;  %v474_v11 = vsel %vm15533_vm1, %v470_v28, %v471_v59  ;;  %865 = vmatpush1.msra.mxu0 %v755_v40 }
  0xf9   : > { %718 = vst [vmem:[#allocation2 + $0x147] ss:$8 sm:$0xf] %v711_v9  ;;  %719 = vst [vmem:[#allocation2 + $0x147] ss:$8 sm:$0xf0] %v711_v9 }
  0xfa   : > { %v15538_v13 = vrot.slane %v10478_v12, 3  ;;  %vm15539_vm0 = vmmov %vm15534_vm2  ;;  %v15540_v34 = vrot.slane %v10478_v12, 4  ;;  %394 = vst [vmem:[#allocation2 + $0x42] ss:$8 sm:$0xf] %v387_v5  ;;  %v692_v28 = vrot.slane %v10602_v61, 5 }
  0xfb   : > { %395 = vst [vmem:[#allocation2 + $0x42] ss:$8 sm:$0xf0] %v387_v5  ;;  %vm15542_vm2 = vmmov %vm15537_vm4  ;;  %v757_v1 = vld [vmem:[#allocation2 + $0x90] sm:$0xff]  ;;  %v740_v27 = vld [vmem:[#allocation2 + $0x8] sm:$0xff]  ;;  %v15545_v41 = vrot.slane %v10478_v12, 5 }
  0xfc   : > { %v548_v60 = vsel %vm15539_vm0, %v15538_v13, %v545_v36  ;;  %v621_v37 = vsel %vm15541_vm6, %v15540_v34, %v618_v6  ;;  %v475_v62 = vsel %vm15542_vm2, %v386_v8, %v474_v11  ;;  %vm15543_vm3 = vmmov %vm15542_vm2  ;;  %v10660_v26 = vld [vmem:[#allocation8] sm:$0xff]  ;;  %954 = vmatpush1.msra.mxu1 %v757_v1  ;;  %866 = vmatprep.subr.mxu0 %v740_v27  ;;  %v742_v21 = vld [vmem:[#allocation2 + $0x18] sm:$0xff]  ;;  %vm15546_vm4 = vcmask 1042432  }
  0xfd   : > { %v549_v63 = vsel %vm15543_vm3, %v474_v11, %v548_v60  ;;  %vm15544_vm5 = vmmov %vm15542_vm2  ;;  %482 = vst [vmem:[#allocation2 + $0x47] ss:$8 sm:$0xf] %v475_v62  ;;  %v739_v10 = vld [vmem:[#allocation2] sm:$0xff]  ;;  %v695_v61 = vsel %vm15546_vm4, %v15545_v41, %v692_v28  ;;  %955 = vmatprep.subr.mxu1 %v742_v21  ;;  %v741_v32 = vld [vmem:[#allocation2 + $0x10] sm:$0xff]  ;;  %v15548_v6 = vmov 0.0   ;;  %vm15559_vm4 = vnez %v15475_v52 }
  0xfe   : > { %v622_v16 = vsel %vm15544_vm5, %v548_v60, %v621_v37  ;;  %483 = vst [vmem:[#allocation2 + $0x47] ss:$8 sm:$0xf0] %v475_v62  ;;  %556 = vst [vmem:[#allocation2 + $0xc4] ss:$8 sm:$0xf] %v549_v63  ;;  %867 = vmatpush1.msra.mxu0 %v739_v10  ;;  %956 = vmatpush1.msra.mxu1 %v741_v32  ;;  %vm15558_vm5 = vnez %v15473_v50 }
  0xff   : > { %557 = vst [vmem:[#allocation2 + $0xc4] ss:$8 sm:$0xf0] %v549_v63  ;;  %629 = vst [vmem:[#allocation2 + $0x141] ss:$8 sm:$0xf] %v622_v16  ;;  %9357 = vmatmul.mubr.msk.f32.vlgmr.msra.gmra.mxu0 %vm15112_vm15, %v10660_v26  ;;  %9361 = vmatmul.mubr.msk.f32.vlgmr.msra.gmra.mxu1 %vm15112_vm15, %v10660_v26 }
 0x100   : > { %630 = vst [vmem:[#allocation2 + $0x141] ss:$8 sm:$0xf0] %v622_v16  ;;  %vm15547_vm1 = vmmov %vm15542_vm2  ;;  %v792_v3 = vld [vmem:[#allocation2 + $0x1a8] sm:$0xff]  ;;  %v794_v57 = vld [vmem:[#allocation2 + $0x1b8] sm:$0xff]  ;;  %906 = vmatprep.mubr.f32.mxu0 %v15548_v6  ;;  %995 = vmatprep.mubr.f32.mxu1 %v15548_v6  ;;  %vm15550_vm0 = vcmp.lt.s32.totalorder %v15464_v2, 109 }
 0x101   : > { %v696_v33 = vsel %vm15547_vm1, %v621_v37, %v695_v61  ;;  %1038 = vmatprep.subr.mxu0 %v792_v3  ;;  %v791_v12 = vld [vmem:[#allocation2 + $0x1a0] sm:$0xff]  ;;  %1127 = vmatprep.subr.mxu1 %v794_v57  ;;  %v793_v30 = vld [vmem:[#allocation2 + $0x1b0] sm:$0xff]  ;;  %v776_v58 = vld [vmem:[#allocation2 + $0x128] sm:$0xff]  ;;  %vm15560_vm1 = vnez %v15476_v51 }
 0x102   : > { %703 = vst [vmem:[#allocation2 + $0x146] ss:$8 sm:$0xf] %v696_v33  ;;  %704 = vst [vmem:[#allocation2 + $0x146] ss:$8 sm:$0xf0] %v696_v33  ;;  %1039 = vmatpush1.msra.mxu0 %v791_v12  ;;  %1128 = vmatpush1.msra.mxu1 %v793_v30 }
 0x103   : > { %1040 = vmatprep.subr.mxu0 %v776_v58  ;;  %v778_v59 = vld [vmem:[#allocation2 + $0x138] sm:$0xff]  ;;  %v10670_v36 = vld [vmem:[#allocation8 + $0x8] sm:$0xff]  ;;  %v775_v31 = vld [vmem:[#allocation2 + $0x120] sm:$0xff] }
 0x104   : > { %1129 = vmatprep.subr.mxu1 %v778_v59  ;;  %1041 = vmatpush1.msra.mxu0 %v775_v31  ;;  %v777_v14 = vld [vmem:[#allocation2 + $0x130] sm:$0xff]  ;;  %v760_v20 = vld [vmem:[#allocation2 + $0xa8] sm:$0xff]  ;;  %v762_v22 = vld [vmem:[#allocation2 + $0xb8] sm:$0xff] }
 0x105   : > { %1130 = vmatpush1.msra.mxu1 %v777_v14  ;;  %9358 = vmatmul.mubr.msk.f32.gmra.mxu0 %vm15112_vm15, %v10670_v36  ;;  %v759_v7 = vld [vmem:[#allocation2 + $0xa0] sm:$0xff]  ;;  %v761_v35 = vld [vmem:[#allocation2 + $0xb0] sm:$0xff]  ;;  %v744_v38 = vld [vmem:[#allocation2 + $0x28] sm:$0xff] }
 0x106   : > { %9362 = vmatmul.mubr.msk.f32.gmra.mxu1 %vm15112_vm15, %v10670_v36  ;;  %1042 = vmatprep.subr.mxu0 %v760_v20  ;;  %v746_v39 = vld [vmem:[#allocation2 + $0x38] sm:$0xff]  ;;  %v743_v8 = vld [vmem:[#allocation2 + $0x20] sm:$0xff]  ;;  %v745_v15 = vld [vmem:[#allocation2 + $0x30] sm:$0xff] }
 0x107   : > { %1131 = vmatprep.subr.mxu1 %v762_v22  ;;  %1043 = vmatpush1.msra.mxu0 %v759_v7  ;;  %v10678_v9 = vld [vmem:[#allocation8 + $0x10] sm:$0xff]  ;;  %v796_v5 = vld [vmem:[#allocation2 + $0x1c8] sm:$0xff]  ;;  %v10686_v13 = vld [vmem:[#allocation8 + $0x18] sm:$0xff] }
 0x108   : > { %1132 = vmatpush1.msra.mxu1 %v761_v35  ;;  %1044 = vmatprep.subr.mxu0 %v744_v38  ;;  %v798_v11 = vld [vmem:[#allocation2 + $0x1d8] sm:$0xff]  ;;  %v795_v60 = vld [vmem:[#allocation2 + $0x1c0] sm:$0xff]  ;;  %v797_v34 = vld [vmem:[#allocation2 + $0x1d0] sm:$0xff] }
 0x109   : > { %1133 = vmatprep.subr.mxu1 %v746_v39  ;;  %912 = vmatprep.mubr.f32.mxu0 %v15548_v6  ;;  %v780_v37 = vld [vmem:[#allocation2 + $0x148] sm:$0xff]  ;;  %v782_v0 = vld [vmem:[#allocation2 + $0x158] sm:$0xff]  ;;  %v779_v40 = vld [vmem:[#allocation2 + $0x140] sm:$0xff]  ;;  %v10769_v39 = vpop.permute.xlu0 %815 }
 0x10a   : > { %1001 = vmatprep.mubr.f32.mxu1 %v15548_v6  ;;  %1045 = vmatpush1.msra.mxu0 %v743_v8  ;;  %v781_v62 = vld [vmem:[#allocation2 + $0x150] sm:$0xff]  ;;  %v764_v63 = vld [vmem:[#allocation2 + $0xc8] sm:$0xff]  ;;  %v766_v16 = vld [vmem:[#allocation2 + $0xd8] sm:$0xff] }
 0x10b   : > { %1134 = vmatpush1.msra.mxu1 %v745_v15  ;;  %9359 = vmatmul.mubr.msk.f32.gmra.mxu0 %vm15112_vm15, %v10678_v9  ;;  %v763_v28 = vld [vmem:[#allocation2 + $0xc0] sm:$0xff]  ;;  %v765_v1 = vld [vmem:[#allocation2 + $0xd0] sm:$0xff]  ;;  %v748_v27 = vld [vmem:[#allocation2 + $0x48] sm:$0xff] }
 0x10c   : > { %9363 = vmatmul.mubr.msk.f32.gmra.mxu1 %vm15112_vm15, %v10678_v9  ;;  %1216 = vmatprep.subr.mxu0 %v796_v5  ;;  %v750_v21 = vld [vmem:[#allocation2 + $0x58] sm:$0xff]  ;;  %v747_v10 = vld [vmem:[#allocation2 + $0x40] sm:$0xff]  ;;  %v749_v41 = vld [vmem:[#allocation2 + $0x50] sm:$0xff] }
 0x10d   : > { %1305 = vmatprep.subr.mxu1 %v798_v11  ;;  %918 = vmatprep.mubr.f32.mxu0 %v15548_v6  ;;  %v800_v61 = vld [vmem:[#allocation2 + $0x1e8] sm:$0xff]  ;;  %v802_v32 = vld [vmem:[#allocation2 + $0x1f8] sm:$0xff]  ;;  %v799_v33 = vld [vmem:[#allocation2 + $0x1e0] sm:$0xff] }
 0x10e   : > { %1007 = vmatprep.mubr.f32.mxu1 %v15548_v6  ;;  %v801_v3 = vld [vmem:[#allocation2 + $0x1f0] sm:$0xff]  ;;  %v784_v57 = vld [vmem:[#allocation2 + $0x168] sm:$0xff]  ;;  %v786_v12 = vld [vmem:[#allocation2 + $0x178] sm:$0xff] }
 0x10f   : > { %9360 = vmatmul.mubr.msk.f32.gmra.mxu0 %vm15112_vm15, %v10686_v13  ;;  %v783_v30 = vld [vmem:[#allocation2 + $0x160] sm:$0xff]  ;;  %v785_v58 = vld [vmem:[#allocation2 + $0x170] sm:$0xff]  ;;  %v768_v59 = vld [vmem:[#allocation2 + $0xe8] sm:$0xff] }
 0x110   : > { %9364 = vmatmul.mubr.msk.f32.gmra.mxu1 %vm15112_vm15, %v10686_v13  ;;  %1078 = vmatprep.mubr.f32.mxu0 %v15548_v6  ;;  %v770_v31 = vld [vmem:[#allocation2 + $0xf8] sm:$0xff]  ;;  %v767_v14 = vld [vmem:[#allocation2 + $0xe0] sm:$0xff]  ;;  %v769_v20 = vld [vmem:[#allocation2 + $0xf0] sm:$0xff] }
 0x111   : > { %1167 = vmatprep.mubr.f32.mxu1 %v15548_v6  ;;  %v752_v22 = vld [vmem:[#allocation2 + $0x68] sm:$0xff]  ;;  %v754_v7 = vld [vmem:[#allocation2 + $0x78] sm:$0xff]  ;;  %v751_v35 = vld [vmem:[#allocation2 + $0x60] sm:$0xff] }
 0x112   : > { %v753_v38 = vld [vmem:[#allocation2 + $0x70] sm:$0xff]  ;;  %vm15554_vm6 = vmmov %vm15550_vm0 }
 0x113   : > { %9365 = vmatmul.mubr.msk.f32.vlgmr.msra.gmra.mxu0 %vm15112_vm15, %v10660_v26  ;;  %vm15555_vm2 = vmmov %vm15550_vm0 }
 0x114   : > { %9369 = vmatmul.mubr.msk.f32.vlgmr.msra.gmra.mxu1 %vm15112_vm15, %v10660_v26  ;;  %1217 = vmatpush1.msra.mxu0 %v795_v60  ;;  %vm15556_vm3 = vmmov %vm15550_vm0 }
 0x115   : > { %1306 = vmatpush1.msra.mxu1 %v797_v34  ;;  %1218 = vmatprep.subr.mxu0 %v780_v37 }
 0x116   : > { %1307 = vmatprep.subr.mxu1 %v782_v0  ;;  %1219 = vmatpush1.msra.mxu0 %v779_v40  ;;  %v10777_v40 = vpop.permute.xlu0 %810 }
 0x117   : > { %1308 = vmatpush1.msra.mxu1 %v781_v62  ;;  %1084 = vmatprep.mubr.f32.mxu0 %v15548_v6 }
 0x118   : > { %1173 = vmatprep.mubr.f32.mxu1 %v15548_v6  ;;  %1220 = vmatprep.subr.mxu0 %v764_v63 }
 0x119   : > { %1309 = vmatprep.subr.mxu1 %v766_v16  ;;  %9366 = vmatmul.mubr.msk.f32.gmra.mxu0 %vm15112_vm15, %v10670_v36 }
 0x11a   : > { %9370 = vmatmul.mubr.msk.f32.gmra.mxu1 %vm15112_vm15, %v10670_v36  ;;  %1221 = vmatpush1.msra.mxu0 %v763_v28 }
 0x11b   : > { %1310 = vmatpush1.msra.mxu1 %v765_v1  ;;  %1222 = vmatprep.subr.mxu0 %v748_v27 }
 0x11c   : > { %1311 = vmatprep.subr.mxu1 %v750_v21  ;;  %1223 = vmatpush1.msra.mxu0 %v747_v10 }
 0x11d   : > { %1312 = vmatpush1.msra.mxu1 %v749_v41  ;;  %1090 = vmatprep.mubr.f32.mxu0 %v15548_v6 }
 0x11e   : > { %1179 = vmatprep.mubr.f32.mxu1 %v15548_v6  ;;  %1394 = vmatprep.subr.mxu0 %v800_v61 }
 0x11f   : > { %1483 = vmatprep.subr.mxu1 %v802_v32  ;;  %9367 = vmatmul.mubr.msk.f32.gmra.mxu0 %vm15112_vm15, %v10678_v9 }
 0x120   : > { %9371 = vmatmul.mubr.msk.f32.gmra.mxu1 %vm15112_vm15, %v10678_v9  ;;  %1096 = vmatprep.mubr.f32.mxu0 %v15548_v6 }
 0x121   : > { %1185 = vmatprep.mubr.f32.mxu1 %v15548_v6 }
 0x123   : > { %9368 = vmatmul.mubr.msk.f32.gmra.mxu0 %vm15112_vm15, %v10686_v13 }
 0x124   : > { %9372 = vmatmul.mubr.msk.f32.gmra.mxu1 %vm15112_vm15, %v10686_v13  ;;  %1256 = vmatprep.mubr.f32.mxu0 %v15548_v6 }
 0x125   : > { %1345 = vmatprep.mubr.f32.mxu1 %v15548_v6 }
 0x127   : > { %9373 = vmatmul.mubr.msk.f32.vlgmr.msra.gmra.mxu0 %vm15112_vm15, %v10660_v26 }
 0x128   : > { %9377 = vmatmul.mubr.msk.f32.vlgmr.msra.gmra.mxu1 %vm15112_vm15, %v10660_v26  ;;  %1395 = vmatpush1.msra.mxu0 %v799_v33 }
 0x129   : > { %1484 = vmatpush1.msra.mxu1 %v801_v3  ;;  %1396 = vmatprep.subr.mxu0 %v784_v57 }
 0x12a   : > { %1485 = vmatprep.subr.mxu1 %v786_v12  ;;  %1397 = vmatpush1.msra.mxu0 %v783_v30 }
 0x12b   : > { %1486 = vmatpush1.msra.mxu1 %v785_v58  ;;  %1262 = vmatprep.mubr.f32.mxu0 %v15548_v6 }
 0x12c   : > { %1351 = vmatprep.mubr.f32.mxu1 %v15548_v6  ;;  %1398 = vmatprep.subr.mxu0 %v768_v59 }
 0x12d   : > { %1487 = vmatprep.subr.mxu1 %v770_v31  ;;  %9374 = vmatmul.mubr.msk.f32.gmra.mxu0 %vm15112_vm15, %v10670_v36 }
 0x12e   : > { %9378 = vmatmul.mubr.msk.f32.gmra.mxu1 %vm15112_vm15, %v10670_v36  ;;  %1399 = vmatpush1.msra.mxu0 %v767_v14 }
 0x12f   : > { %1488 = vmatpush1.msra.mxu1 %v769_v20  ;;  %1400 = vmatprep.subr.mxu0 %v752_v22 }
 0x130   : > { %1489 = vmatprep.subr.mxu1 %v754_v7  ;;  %1401 = vmatpush1.msra.mxu0 %v751_v35 }
 0x131   : > { %1490 = vmatpush1.msra.mxu1 %v753_v38  ;;  %1268 = vmatprep.mubr.f32.mxu0 %v15548_v6 }
 0x132   : > { %1357 = vmatprep.mubr.f32.mxu1 %v15548_v6  ;;  %9375 = vmatmul.mubr.msk.f32.gmra.mxu0 %vm15112_vm15, %v10678_v9 }
 0x133   : > { %9379 = vmatmul.mubr.msk.f32.gmra.mxu1 %vm15112_vm15, %v10678_v9  ;;  %1274 = vmatprep.mubr.f32.mxu0 %v15548_v6 }
 0x134   : > { %1363 = vmatprep.mubr.f32.mxu1 %v15548_v6 }
 0x136   : > { %9376 = vmatmul.mubr.msk.f32.gmra.mxu0 %vm15112_vm15, %v10686_v13 }
 0x137   : > { %9380 = vmatmul.mubr.msk.f32.gmra.mxu1 %vm15112_vm15, %v10686_v13  ;;  %1434 = vmatprep.mubr.f32.mxu0 %v15548_v6 }
 0x138   : > { %1523 = vmatprep.mubr.f32.mxu1 %v15548_v6 }
 0x13a   : > { %9381 = vmatmul.mubr.msk.f32.vlgmr.msra.gmra.mxu0 %vm15112_vm15, %v10660_v26 }
 0x13b   : > { %9385 = vmatmul.mubr.msk.f32.vlgmr.msra.gmra.mxu1 %vm15112_vm15, %v10660_v26  ;;  %1440 = vmatprep.mubr.f32.mxu0 %v15548_v6  ;;  %v15549_v26 = vmov 0  }
 0x13c   : > { %1529 = vmatprep.mubr.f32.mxu1 %v15548_v6 }
 0x13e   : > { %9382 = vmatmul.mubr.msk.f32.gmra.mxu0 %vm15112_vm15, %v10670_v36 }
 0x13f   : > { %9386 = vmatmul.mubr.msk.f32.gmra.mxu1 %vm15112_vm15, %v10670_v36  ;;  %1446 = vmatprep.mubr.f32.mxu0 %v15548_v6  ;;  %v10767_v36 = vpop.permute.xlu1 %820 }
 0x140   : > { %1535 = vmatprep.mubr.f32.mxu1 %v15548_v6 }
 0x142   : > { %9383 = vmatmul.mubr.msk.f32.gmra.mxu0 %vm15112_vm15, %v10678_v9 }
 0x143   : > { %9387 = vmatmul.mubr.msk.f32.gmra.mxu1 %vm15112_vm15, %v10678_v9  ;;  %1452 = vmatprep.mubr.f32.mxu0 %v15548_v6  ;;  %v10771_v8 = vpop.permute.xlu1 %805 }
 0x144   : > { %1541 = vmatprep.mubr.f32.mxu1 %v15548_v6 }
 0x146   : > { %9384 = vmatmul.mubr.msk.f32.gmra.mxu0 %vm15112_vm15, %v10686_v13 }
 0x147   : > { %9388 = vmatmul.mubr.msk.f32.gmra.mxu1 %vm15112_vm15, %v10686_v13  ;;  %vm15167_vm15 = vcmask 7168   ;;  %5933 = vmatprep.mubr.bf16.mxu0 %v11345_v17 }
 0x148   : > { %5976 = vmatprep.mubr.bf16.mxu1 %v15549_v26 }
 0x1bf   : > { %v902_v15 = vpop.f32.mrf.mxu0  ;;  %v991_v5 = vpop.f32.mrf.mxu1 }
 0x1c0   : > { %v903_v9 = vadd.f32 %v902_v15, %v10771_v8  ;;  %v992_v6 = vadd.f32 %v991_v5, %v10771_v8 }
 0x1c1   : > { %v904_v11 = vpop.f32.mrf.mxu0  ;;  %v993_v37 = vpop.f32.mrf.mxu1 }
 0x1c2   : > { %v1548_v60 = vmax.f32 %v903_v9, 0.0  ;;  %v905_v34 = vadd.f32 %v904_v11, %v10771_v8  ;;  %v1550_v13 = vmax.f32 %v992_v6, 0.0  ;;  %v994_v0 = vadd.f32 %v993_v37, %v10771_v8 }
 0x1c4   : > { %v1549_v62 = vmax.f32 %v905_v34, 0.0  ;;  %v1551_v63 = vmax.f32 %v994_v0, 0.0  ;;  %v1644_v28 = vsel %vm15550_vm0, %v1548_v60, 0.0  ;;  %v1646_v10 = vsel %vm15552_vm8, %v1550_v13, 0.0 }
 0x1c5   : > { %v908_v16 = vpop.f32.mrf.mxu0  ;;  %vm15561_vm0 = vnez %v15478_v53 }
 0x1c6   : > { %v1645_v1 = vsel %vm15551_vm7, %v1549_v62, 0.0  ;;  %v997_v27 = vpop.f32.mrf.mxu1  ;;  %v909_v21 = vadd.f32 %v908_v16, %v10777_v40  ;;  %v1647_v61 = vsel %vm15553_vm9, %v1551_v63, 0.0 }
 0x1c7   : > { %v9890_v41 = vpack.c.bf16 %v1645_v1, %v1644_v28  ;;  %v910_v32 = vpop.f32.mrf.mxu0  ;;  %v998_v33 = vadd.f32 %v997_v27, %v10777_v40  ;;  %v9891_v3 = vpack.c.bf16 %v1647_v61, %v1646_v10 }
 0x1c8   : > { %v911_v57 = vadd.f32 %v910_v32, %v10777_v40  ;;  %v1564_v12 = vmax.f32 %v909_v21, 0.0  ;;  %v999_v30 = vpop.f32.mrf.mxu1 }
 0x1c9   : > { %v1000_v58 = vadd.f32 %v999_v30, %v10777_v40  ;;  %v1566_v59 = vmax.f32 %v998_v33, 0.0  ;;  %1868 = vrot.lane.b32.xlu1 %v9890_v41, %s10210_s14  ;;  %1870 = vrot.lane.b32.xlu0 %v9891_v3, %s10210_s14 }
 0x1ca   : > { %v1565_v31 = vmax.f32 %v911_v57, 0.0  ;;  %v1660_v14 = vsel %vm15554_vm6, %v1564_v12, 0.0  ;;  %vm15562_vm6 = vnez %v15477_v54 }
 0x1cb   : > { %v1567_v20 = vmax.f32 %v1000_v58, 0.0  ;;  %v1662_v22 = vsel %vm15552_vm8, %v1566_v59, 0.0  ;;  %v914_v7 = vpop.f32.mrf.mxu0 }
 0x1cc   : > { %v1661_v35 = vsel %vm15551_vm7, %v1565_v31, 0.0  ;;  %v915_v38 = vadd.f32 %v914_v7, %v10769_v39  ;;  %v1003_v15 = vpop.f32.mrf.mxu1 }
 0x1cd   : > { %v9898_v9 = vpack.c.bf16 %v1661_v35, %v1660_v14  ;;  %v1663_v5 = vsel %vm15553_vm9, %v1567_v20, 0.0  ;;  %v1004_v6 = vadd.f32 %v1003_v15, %v10769_v39  ;;  %v916_v11 = vpop.f32.mrf.mxu0 }
 0x1ce   : > { %v9899_v60 = vpack.c.bf16 %v1663_v5, %v1662_v22  ;;  %v1580_v34 = vmax.f32 %v915_v38, 0.0  ;;  %v1005_v37 = vpop.f32.mrf.mxu1  ;;  %v917_v13 = vadd.f32 %v916_v11, %v10769_v39 }
 0x1cf   : > { %v1582_v0 = vmax.f32 %v1004_v6, 0.0  ;;  %v1006_v62 = vadd.f32 %v1005_v37, %v10769_v39  ;;  %v920_v63 = vpop.f32.mrf.mxu0  ;;  %1884 = vrot.lane.b32.xlu0 %v9898_v9, %s10210_s14 }
 0x1d0   : > { %v1676_v16 = vsel %vm15555_vm2, %v1580_v34, 0.0  ;;  %v1581_v28 = vmax.f32 %v917_v13, 0.0  ;;  %v921_v1 = vadd.f32 %v920_v63, %v10767_v36  ;;  %v1009_v27 = vpop.f32.mrf.mxu1  ;;  %1886 = vrot.lane.b32.xlu1 %v9899_v60, %s10210_s14  ;;  %vm15563_vm2 = vnez %v15479_v56 }
 0x1d1   : > { %v1678_v21 = vsel %vm15552_vm8, %v1582_v0, 0.0  ;;  %v1583_v10 = vmax.f32 %v1006_v62, 0.0  ;;  %v1010_v41 = vadd.f32 %v1009_v27, %v10767_v36  ;;  %v922_v61 = vpop.f32.mrf.mxu0 }
 0x1d2   : > { %v1677_v32 = vsel %vm15551_vm7, %v1581_v28, 0.0  ;;  %v1596_v33 = vmax.f32 %v921_v1, 0.0  ;;  %v923_v3 = vadd.f32 %v922_v61, %v10767_v36  ;;  %v1011_v57 = vpop.f32.mrf.mxu1 }
 0x1d3   : > { %v1679_v12 = vsel %vm15553_vm9, %v1583_v10, 0.0  ;;  %v9906_v30 = vpack.c.bf16 %v1677_v32, %v1676_v16  ;;  %v1598_v58 = vmax.f32 %v1010_v41, 0.0  ;;  %v1012_v59 = vadd.f32 %v1011_v57, %v10767_v36  ;;  %v1080_v31 = vpop.f32.mrf.mxu0 }
 0x1d4   : > { %v9907_v14 = vpack.c.bf16 %v1679_v12, %v1678_v21  ;;  %v1597_v20 = vmax.f32 %v923_v3, 0.0  ;;  %v1081_v22 = vadd.f32 %v1080_v31, %v10771_v8  ;;  %v1169_v7 = vpop.f32.mrf.mxu1  ;;  %v1692_v35 = vsel %vm15556_vm3, %v1596_v33, 0.0 }
 0x1d5   : > { %v1599_v38 = vmax.f32 %v1012_v59, 0.0  ;;  %v1082_v15 = vpop.f32.mrf.mxu0  ;;  %1900 = vrot.lane.b32.xlu1 %v9906_v30, %s10210_s14  ;;  %v1170_v6 = vadd.f32 %v1169_v7, %v10771_v8  ;;  %v1694_v34 = vsel %vm15552_vm8, %v1598_v58, 0.0  ;;  %vm15564_vm3 = vnez %v15480_v55 }
 0x1d6   : > { %v1693_v9 = vsel %vm15551_vm7, %v1597_v20, 0.0  ;;  %v1552_v5 = vmax.f32 %v1081_v22, 0.0  ;;  %v1083_v11 = vadd.f32 %v1082_v15, %v10771_v8  ;;  %v1171_v60 = vpop.f32.mrf.mxu1  ;;  %1902 = vrot.lane.b32.xlu0 %v9907_v14, %s10210_s14 }
 0x1d7   : > { %v9914_v37 = vpack.c.bf16 %v1693_v9, %v1692_v35  ;;  %v1695_v13 = vsel %vm15553_vm9, %v1599_v38, 0.0  ;;  %v1172_v0 = vadd.f32 %v1171_v60, %v10771_v8  ;;  %v1554_v27 = vmax.f32 %v1170_v6, 0.0 }
 0x1d8   : > { %v9915_v62 = vpack.c.bf16 %v1695_v13, %v1694_v34  ;;  %v1553_v63 = vmax.f32 %v1083_v11, 0.0  ;;  %v1648_v1 = vsel %vm15557_vm10, %v1552_v5, 0.0 }
 0x1d9   : > { %v1555_v16 = vmax.f32 %v1172_v0, 0.0  ;;  %v1086_v28 = vpop.f32.mrf.mxu0  ;;  %v1650_v59 = vsel %vm10360_vm12, %v1554_v27, 0.0 }
 0x1da   : > { %v1649_v21 = vsel %vm10356_vm11, %v1553_v63, 0.0  ;;  %v1087_v10 = vadd.f32 %v1086_v28, %v10777_v40  ;;  %v1175_v41 = vpop.f32.mrf.mxu1  ;;  %1916 = vrot.lane.b32.xlu0 %v9914_v37, %s10210_s14  ;;  %1918 = vrot.lane.b32.xlu1 %v9915_v62, %s10210_s14 }
 0x1db   : > { %v9892_v61 = vpack.c.bf16 %v1649_v21, %v1648_v1  ;;  %v1088_v32 = vpop.f32.mrf.mxu0  ;;  %v1651_v33 = vsel %vm10364_vm13, %v1555_v16, 0.0  ;;  %v1176_v57 = vadd.f32 %v1175_v41, %v10777_v40 }
 0x1dc   : > { %v1568_v3 = vmax.f32 %v1087_v10, 0.0  ;;  %v1089_v12 = vadd.f32 %v1088_v32, %v10777_v40  ;;  %v1177_v30 = vpop.f32.mrf.mxu1  ;;  %v9893_v14 = vpack.c.bf16 %v1651_v33, %v1650_v59 }
 0x1dd   : > { %v1178_v58 = vadd.f32 %v1177_v30, %v10777_v40  ;;  %v1570_v35 = vmax.f32 %v1176_v57, 0.0 }
 0x1de   : > { %v1569_v31 = vmax.f32 %v1089_v12, 0.0  ;;  %1872 = vrot.lane.b32.xlu1 %v9892_v61, %s10210_s14  ;;  %v1664_v7 = vsel %vm15557_vm10, %v1568_v3, 0.0 }
 0x1df   : > { %v1571_v20 = vmax.f32 %v1178_v58, 0.0  ;;  %v1092_v22 = vpop.f32.mrf.mxu0  ;;  %v1666_v63 = vsel %vm10360_vm12, %v1570_v35, 0.0 }
 0x1e0   : > { %v1665_v38 = vsel %vm10356_vm11, %v1569_v31, 0.0  ;;  %v1093_v15 = vadd.f32 %v1092_v22, %v10769_v39  ;;  %v1181_v9 = vpop.f32.mrf.mxu1 }
 0x1e1   : > { %v9900_v5 = vpack.c.bf16 %v1665_v38, %v1664_v7  ;;  %v1182_v6 = vadd.f32 %v1181_v9, %v10769_v39  ;;  %v1094_v11 = vpop.f32.mrf.mxu0  ;;  %v1667_v60 = vsel %vm10364_vm13, %v1571_v20, 0.0 }
 0x1e2   : > { %v1584_v34 = vmax.f32 %v1093_v15, 0.0  ;;  %v1095_v37 = vadd.f32 %v1094_v11, %v10769_v39  ;;  %v1183_v13 = vpop.f32.mrf.mxu1  ;;  %1874 = vrot.lane.b32.xlu1 %v9893_v14, %s10210_s14  ;;  %v9901_v27 = vpack.c.bf16 %v1667_v60, %v1666_v63 }
 0x1e3   : > { %v1184_v0 = vadd.f32 %v1183_v13, %v10769_v39  ;;  %v1098_v62 = vpop.f32.mrf.mxu0  ;;  %1888 = vrot.lane.b32.xlu0 %v9900_v5, %s10210_s14  ;;  %v1586_v21 = vmax.f32 %v1182_v6, 0.0 }
 0x1e4   : > { %v1585_v16 = vmax.f32 %v1095_v37, 0.0  ;;  %v1099_v28 = vadd.f32 %v1098_v62, %v10767_v36  ;;  %v1187_v1 = vpop.f32.mrf.mxu1  ;;  %v1680_v32 = vsel %vm15557_vm10, %v1584_v34, 0.0 }
 0x1e5   : > { %v1587_v10 = vmax.f32 %v1184_v0, 0.0  ;;  %v1188_v41 = vadd.f32 %v1187_v1, %v10767_v36  ;;  %v1100_v61 = vpop.f32.mrf.mxu0  ;;  %v1682_v7 = vsel %vm10360_vm12, %v1586_v21, 0.0 }
 0x1e6   : > { %v1681_v33 = vsel %vm10356_vm11, %v1585_v16, 0.0  ;;  %v1600_v3 = vmax.f32 %v1099_v28, 0.0  ;;  %v1101_v57 = vadd.f32 %v1100_v61, %v10767_v36  ;;  %v1189_v12 = vpop.f32.mrf.mxu1 }
 0x1e7   : > { %v9908_v30 = vpack.c.bf16 %v1681_v33, %v1680_v32  ;;  %v1190_v58 = vadd.f32 %v1189_v12, %v10767_v36  ;;  %v1258_v59 = vpop.f32.mrf.mxu0  ;;  %1890 = vrot.lane.b32.xlu0 %v9901_v27, %s10210_s14  ;;  %v1683_v31 = vsel %vm10364_vm13, %v1587_v10, 0.0  ;;  %v1602_v38 = vmax.f32 %v1188_v41, 0.0 }
 0x1e8   : > { %v1601_v14 = vmax.f32 %v1101_v57, 0.0  ;;  %v1259_v20 = vadd.f32 %v1258_v59, %v10771_v8  ;;  %v1347_v22 = vpop.f32.mrf.mxu1  ;;  %v1696_v35 = vsel %vm15557_vm10, %v1600_v3, 0.0  ;;  %v9909_v37 = vpack.c.bf16 %v1683_v31, %v1682_v7 }
 0x1e9   : > { %v1603_v15 = vmax.f32 %v1190_v58, 0.0  ;;  %v1260_v9 = vpop.f32.mrf.mxu0  ;;  %1904 = vrot.lane.b32.xlu1 %v9908_v30, %s10210_s14  ;;  %v1348_v11 = vadd.f32 %v1347_v22, %v10771_v8  ;;  %v1698_v16 = vsel %vm10360_vm12, %v1602_v38, 0.0 }
 0x1ea   : > { %v1697_v5 = vsel %vm10356_vm11, %v1601_v14, 0.0  ;;  %v1556_v6 = vmax.f32 %v1259_v20, 0.0  ;;  %v1261_v60 = vadd.f32 %v1260_v9, %v10771_v8  ;;  %v1349_v34 = vpop.f32.mrf.mxu1 }
 0x1eb   : > { %v9916_v13 = vpack.c.bf16 %v1697_v5, %v1696_v35  ;;  %v1350_v0 = vadd.f32 %v1349_v34, %v10771_v8  ;;  %v1699_v62 = vsel %vm10364_vm13, %v1603_v15, 0.0  ;;  %v1558_v21 = vmax.f32 %v1348_v11, 0.0 }
 0x1ec   : > { %v1557_v63 = vmax.f32 %v1261_v60, 0.0  ;;  %v1652_v27 = vsel %vm10368_vm14, %v1556_v6, 0.0  ;;  %v9917_v32 = vpack.c.bf16 %v1699_v62, %v1698_v16 }
 0x1ed   : > { %v1559_v28 = vmax.f32 %v1350_v0, 0.0  ;;  %v1264_v1 = vpop.f32.mrf.mxu0  ;;  %1920 = vrot.lane.b32.xlu0 %v9916_v13, %s10210_s14  ;;  %1906 = vrot.lane.b32.xlu1 %v9909_v37, %s10210_s14  ;;  %v1654_v14 = vsel %vm15560_vm1, %v1558_v21, 0.0 }
 0x1ee   : > { %v1653_v10 = vsel %vm15558_vm5, %v1557_v63, 0.0  ;;  %v1265_v41 = vadd.f32 %v1264_v1, %v10777_v40  ;;  %v1353_v61 = vpop.f32.mrf.mxu1 }
 0x1ef   : > { %v9894_v33 = vpack.c.bf16 %v1653_v10, %v1652_v27  ;;  %v1354_v3 = vadd.f32 %v1353_v61, %v10777_v40  ;;  %v1266_v57 = vpop.f32.mrf.mxu0  ;;  %v1655_v12 = vsel %vm15559_vm4, %v1559_v28, 0.0 }
 0x1f0   : > { %v1572_v30 = vmax.f32 %v1265_v41, 0.0  ;;  %v1267_v58 = vadd.f32 %v1266_v57, %v10777_v40  ;;  %v1355_v59 = vpop.f32.mrf.mxu1  ;;  %v9895_v7 = vpack.c.bf16 %v1655_v12, %v1654_v14 }
 0x1f1   : > { %v1356_v31 = vadd.f32 %v1355_v59, %v10777_v40  ;;  %1922 = vrot.lane.b32.xlu0 %v9917_v32, %s10210_s14  ;;  %1876 = vrot.lane.b32.xlu1 %v9894_v33, %s10210_s14  ;;  %v1574_v35 = vmax.f32 %v1354_v3, 0.0 }
 0x1f2   : > { %v1573_v20 = vmax.f32 %v1267_v58, 0.0  ;;  %v1270_v22 = vpop.f32.mrf.mxu0  ;;  %v1668_v5 = vsel %vm10368_vm14, %v1572_v30, 0.0 }
 0x1f3   : > { %v1575_v38 = vmax.f32 %v1356_v31, 0.0  ;;  %v1271_v15 = vadd.f32 %v1270_v22, %v10769_v39  ;;  %v1359_v9 = vpop.f32.mrf.mxu1  ;;  %v1670_v28 = vsel %vm15560_vm1, %v1574_v35, 0.0 }
 0x1f4   : > { %v1669_v6 = vsel %vm15558_vm5, %v1573_v20, 0.0  ;;  %v1360_v11 = vadd.f32 %v1359_v9, %v10769_v39  ;;  %v1272_v60 = vpop.f32.mrf.mxu0 }
 0x1f5   : > { %v9902_v34 = vpack.c.bf16 %v1669_v6, %v1668_v5  ;;  %v1671_v37 = vsel %vm15559_vm4, %v1575_v38, 0.0  ;;  %v1588_v13 = vmax.f32 %v1271_v15, 0.0  ;;  %v1273_v0 = vadd.f32 %v1272_v60, %v10769_v39  ;;  %v1361_v62 = vpop.f32.mrf.mxu1  ;;  %1878 = vrot.lane.b32.xlu1 %v9895_v7, %s10210_s14 }
 0x1f6   : > { %v1362_v63 = vadd.f32 %v1361_v62, %v10769_v39  ;;  %v1276_v16 = vpop.f32.mrf.mxu0  ;;  %v9903_v10 = vpack.c.bf16 %v1671_v37, %v1670_v28  ;;  %v1590_v41 = vmax.f32 %v1360_v11, 0.0 }
 0x1f7   : > { %v1589_v1 = vmax.f32 %v1273_v0, 0.0  ;;  %v1277_v27 = vadd.f32 %v1276_v16, %v10767_v36  ;;  %v1365_v21 = vpop.f32.mrf.mxu1  ;;  %1892 = vrot.lane.b32.xlu0 %v9902_v34, %s10210_s14  ;;  %v1684_v3 = vsel %vm10368_vm14, %v1588_v13, 0.0 }
 0x1f8   : > { %v1591_v61 = vmax.f32 %v1362_v63, 0.0  ;;  %v1366_v32 = vadd.f32 %v1365_v21, %v10767_v36  ;;  %v1278_v33 = vpop.f32.mrf.mxu0  ;;  %v1686_v38 = vsel %vm15560_vm1, %v1590_v41, 0.0 }
 0x1f9   : > { %v1685_v57 = vsel %vm15558_vm5, %v1589_v1, 0.0  ;;  %v1604_v12 = vmax.f32 %v1277_v27, 0.0  ;;  %v1279_v30 = vadd.f32 %v1278_v33, %v10767_v36  ;;  %v1367_v58 = vpop.f32.mrf.mxu1 }
 0x1fa   : > { %v9910_v59 = vpack.c.bf16 %v1685_v57, %v1684_v3  ;;  %v1368_v31 = vadd.f32 %v1367_v58, %v10767_v36  ;;  %v1436_v14 = vpop.f32.mrf.mxu0  ;;  %v1687_v20 = vsel %vm15559_vm4, %v1591_v61, 0.0  ;;  %v1606_v15 = vmax.f32 %v1366_v32, 0.0 }
 0x1fb   : > { %v1605_v22 = vmax.f32 %v1279_v30, 0.0  ;;  %v1437_v7 = vadd.f32 %v1436_v14, %v10771_v8  ;;  %v1525_v35 = vpop.f32.mrf.mxu1  ;;  %1894 = vrot.lane.b32.xlu0 %v9903_v10, %s10210_s14  ;;  %v1700_v11 = vsel %vm10368_vm14, %v1604_v12, 0.0  ;;  %v9911_v0 = vpack.c.bf16 %v1687_v20, %v1686_v38 }
 0x1fc   : > { %v1607_v9 = vmax.f32 %v1368_v31, 0.0  ;;  %v1526_v5 = vadd.f32 %v1525_v35, %v10771_v8  ;;  %v1438_v6 = vpop.f32.mrf.mxu0  ;;  %1908 = vrot.lane.b32.xlu1 %v9910_v59, %s10210_s14  ;;  %v1702_v10 = vsel %vm15560_vm1, %v1606_v15, 0.0 }
 0x1fd   : > { %v1701_v60 = vsel %vm15558_vm5, %v1605_v22, 0.0  ;;  %v1560_v34 = vmax.f32 %v1437_v7, 0.0  ;;  %v1439_v37 = vadd.f32 %v1438_v6, %v10771_v8  ;;  %v1527_v13 = vpop.f32.mrf.mxu1 }
 0x1fe   : > { %v9918_v62 = vpack.c.bf16 %v1701_v60, %v1700_v11  ;;  %v1528_v63 = vadd.f32 %v1527_v13, %v10771_v8  ;;  %v1442_v16 = vpop.f32.mrf.mxu0  ;;  %v1703_v28 = vsel %vm15559_vm4, %v1607_v9, 0.0  ;;  %v1562_v41 = vmax.f32 %v1526_v5, 0.0 }
 0x1ff   : > { %v1561_v1 = vmax.f32 %v1439_v37, 0.0  ;;  %v1443_v27 = vadd.f32 %v1442_v16, %v10777_v40  ;;  %v1531_v21 = vpop.f32.mrf.mxu1  ;;  %v1656_v8 = vsel %vm15561_vm0, %v1560_v34, 0.0  ;;  %v9919_v58 = vpack.c.bf16 %v1703_v28, %v1702_v10 }
 0x200   : > { %v1563_v61 = vmax.f32 %v1528_v63, 0.0  ;;  %v1532_v32 = vadd.f32 %v1531_v21, %v10777_v40  ;;  %v1444_v33 = vpop.f32.mrf.mxu0  ;;  %1924 = vrot.lane.b32.xlu0 %v9918_v62, %s10210_s14  ;;  %1910 = vrot.lane.b32.xlu1 %v9911_v0, %s10210_s14  ;;  %v1658_v38 = vsel %vm15564_vm3, %v1562_v41, 0.0 }
 0x201   : > { %v1657_v3 = vsel %vm15562_vm6, %v1561_v1, 0.0  ;;  %v1576_v57 = vmax.f32 %v1443_v27, 0.0  ;;  %v1445_v12 = vadd.f32 %v1444_v33, %v10777_v40  ;;  %v1533_v30 = vpop.f32.mrf.mxu1 }
 0x202   : > { %v9896_v59 = vpack.c.bf16 %v1657_v3, %v1656_v8  ;;  %v1534_v31 = vadd.f32 %v1533_v30, %v10777_v40  ;;  %v1448_v14 = vpop.f32.mrf.mxu0  ;;  %v1659_v20 = vsel %vm15563_vm2, %v1563_v61, 0.0  ;;  %v1578_v15 = vmax.f32 %v1532_v32, 0.0 }
 0x203   : > { %v1577_v22 = vmax.f32 %v1445_v12, 0.0  ;;  %v1449_v7 = vadd.f32 %v1448_v14, %v10769_v39  ;;  %v1537_v35 = vpop.f32.mrf.mxu1  ;;  %v1672_v40 = vsel %vm15561_vm0, %v1576_v57, 0.0  ;;  %v9897_v13 = vpack.c.bf16 %v1659_v20, %v1658_v38 }
 0x204   : > { %v1579_v9 = vmax.f32 %v1534_v31, 0.0  ;;  %v1538_v5 = vadd.f32 %v1537_v35, %v10769_v39  ;;  %v1450_v6 = vpop.f32.mrf.mxu0  ;;  %1926 = vrot.lane.b32.xlu0 %v9919_v58, %s10210_s14  ;;  %1880 = vrot.lane.b32.xlu1 %v9896_v59, %s10210_s14  ;;  %v1674_v21 = vsel %vm15564_vm3, %v1578_v15, 0.0 }
 0x205   : > { %v1673_v11 = vsel %vm15562_vm6, %v1577_v22, 0.0  ;;  %v1592_v60 = vmax.f32 %v1449_v7, 0.0  ;;  %v1451_v34 = vadd.f32 %v1450_v6, %v10769_v39  ;;  %v1539_v37 = vpop.f32.mrf.mxu1 }
 0x206   : > { %v9904_v0 = vpack.c.bf16 %v1673_v11, %v1672_v40  ;;  %v1540_v62 = vadd.f32 %v1539_v37, %v10769_v39  ;;  %v1454_v63 = vpop.f32.mrf.mxu0  ;;  %v1675_v16 = vsel %vm15563_vm2, %v1579_v9, 0.0  ;;  %v1594_v41 = vmax.f32 %v1538_v5, 0.0 }
 0x207   : > { %v1593_v28 = vmax.f32 %v1451_v34, 0.0  ;;  %v1455_v1 = vadd.f32 %v1454_v63, %v10767_v36  ;;  %v1543_v27 = vpop.f32.mrf.mxu1  ;;  %v1688_v10 = vsel %vm15561_vm0, %v1592_v60, 0.0  ;;  %v9905_v12 = vpack.c.bf16 %v1675_v16, %v1674_v21 }
 0x208   : > { %v1595_v61 = vmax.f32 %v1540_v62, 0.0  ;;  %v1456_v32 = vpop.f32.mrf.mxu0  ;;  %1896 = vrot.lane.b32.xlu0 %v9904_v0, %s10210_s14  ;;  %1882 = vrot.lane.b32.xlu1 %v9897_v13, %s10210_s14  ;;  %v1544_v8 = vadd.f32 %v1543_v27, %v10767_v36  ;;  %v1690_v20 = vsel %vm15564_vm3, %v1594_v41, 0.0 }
 0x209   : > { %v1689_v39 = vsel %vm15562_vm6, %v1593_v28, 0.0  ;;  %v1608_v33 = vmax.f32 %v1455_v1, 0.0  ;;  %v1457_v3 = vadd.f32 %v1456_v32, %v10767_v36  ;;  %v1545_v57 = vpop.f32.mrf.mxu1 }
 0x20a   : > { %v9912_v30 = vpack.c.bf16 %v1689_v39, %v1688_v10  ;;  %v1546_v58 = vadd.f32 %v1545_v57, %v10767_v36  ;;  %v1691_v59 = vsel %vm15563_vm2, %v1595_v61, 0.0  ;;  %v1610_v7 = vmax.f32 %v1544_v8, 0.0 }
 0x20b   : > { %v1609_v31 = vmax.f32 %v1457_v3, 0.0  ;;  %v1704_v22 = vsel %vm15561_vm0, %v1608_v33, 0.0  ;;  %v9913_v36 = vpack.c.bf16 %v1691_v59, %v1690_v20  ;;  %vm15565_vm0 = vcmask 1043456  }
 0x20c   : > { %v1611_v14 = vmax.f32 %v1546_v58, 0.0  ;;  %1898 = vrot.lane.b32.xlu0 %v9905_v12, %s10210_s14  ;;  %1912 = vrot.lane.b32.xlu1 %v9912_v30, %s10210_s14  ;;  %v1706_v9 = vsel %vm15564_vm3, %v1610_v7, 0.0  ;;  %vm15567_vm3 = vmmov %vm15565_vm0 }
 0x20d   : > { %v1705_v35 = vsel %vm15562_vm6, %v1609_v31, 0.0  ;;  %vm15117_vm6 = vcmask 3072  }
 0x20e   : > { %v9920_v38 = vpack.c.bf16 %v1705_v35, %v1704_v22  ;;  %v1707_v15 = vsel %vm15563_vm2, %v1611_v14, 0.0  ;;  %vm15566_vm2 = vnez %v15474_v4 }
 0x20f   : > { %v9921_v5 = vpack.c.bf16 %v1707_v15, %v1706_v9 }
 0x210   : > { %1928 = vrot.lane.b32.xlu0 %v9920_v38, %s10210_s14  ;;  %1914 = vrot.lane.b32.xlu1 %v9913_v36, %s10210_s14 }
 0x214   : > { %1930 = vrot.lane.b32.xlu0 %v9921_v5, %s10210_s14 }
 0x23b   : > { %v1869_v6 = vpop.permute.xlu1 %1868  ;;  %v1871_v40 = vpop.permute.xlu0 %1870 }
 0x23c   : > { %v1932_v11 = vrot.slane %v1869_v6, 4  ;;  %v1933_v60 = vrot.slane %v1871_v40, 4 }
 0x23e   : > { %v1965_v34 = vsel %vm15167_vm15, %v1932_v11, %v1869_v6  ;;  %v1967_v37 = vsel %vm15565_vm0, %v1932_v11, %v1933_v60 }
 0x23f   : > { %2062 = vst.msk [vmem:[#allocation3 + $0x4] sm:$0xff] %vm15566_vm2, %v1965_v34  ;;  %v1968_v13 = vsel %vm15167_vm15, %v1967_v37, %v1871_v40 }
 0x240   : > { %2063 = vst [vmem:[#allocation3 + $0xc] sm:$0xff] %v1968_v13 }
 0x241   : > { %v1885_v0 = vpop.permute.xlu0 %1884 }
 0x242   : > { %v1940_v62 = vrot.slane %v1885_v0, 4  ;;  %v1887_v63 = vpop.permute.xlu1 %1886 }
 0x243   : > { %v1941_v16 = vrot.slane %v1887_v63, 4 }
 0x244   : > { %v1981_v28 = vsel %vm15167_vm15, %v1940_v62, %v1885_v0 }
 0x245   : > { %2072 = vst.msk [vmem:[#allocation3 + $0x50] sm:$0xff] %vm15566_vm2, %v1981_v28  ;;  %v1982_v1 = vsel %vm15567_vm3, %v1940_v62, %v1941_v16  ;;  %vm15568_vm3 = vmmov %vm15565_vm0 }
 0x246   : > { %v11009_v27 = vsel %vm15167_vm15, %v1982_v1, %v1887_v63  ;;  %v2472_v21 = vld [vmem:[#allocation3] sm:$0xff] }
 0x247   : > { %2073 = vst [vmem:[#allocation3 + $0x58] sm:$0xff] %v11009_v27  ;;  %v1901_v10 = vpop.permute.xlu1 %1900  ;;  %2544 = vrot.lane.b32.xlu1 %v2472_v21, %s10206_s12  ;;  %v2473_v32 = vld [vmem:[#allocation3 + $0x8] sm:$0xff] }
 0x248   : > { %v11013_v41 = vpop.permute.xlu0 %1902  ;;  %v1948_v61 = vrot.slane %v1901_v10, 4  ;;  %2546 = vrot.lane.b32.xlu0 %v2473_v32, %s10206_s12  ;;  %v3153_v59 = vld [vmem:[#allocation3 + $0x4] sm:$0xff] }
 0x249   : > { %v1949_v39 = vrot.slane %v11013_v41, 4 }
 0x24a   : > { %v1996_v33 = vsel %vm15167_vm15, %v1948_v61, %v1901_v10 }
 0x24b   : > { %v1997_v8 = vsel %vm15565_vm0, %v1948_v61, %v1949_v39  ;;  %2081 = vst.msk [vmem:[#allocation3 + $0x9c] sm:$0xff] %vm15566_vm2, %v1996_v33  ;;  %2235 = vrot.lane.b32.xlu1 %v2472_v21, %s10204_s10 }
 0x24c   : > { %v11026_v3 = vsel %vm15167_vm15, %v1997_v8, %v11013_v41  ;;  %v1917_v57 = vpop.permute.xlu0 %1916  ;;  %v11028_v12 = vpop.permute.xlu1 %1918  ;;  %2237 = vrot.lane.b32.xlu0 %v2473_v32, %s10204_s10  ;;  %v11066_v37 = vld [vmem:[#allocation3 + $0x50] sm:$0xff] }
 0x24d   : > { %2082 = vst [vmem:[#allocation3 + $0xa4] sm:$0xff] %v11026_v3  ;;  %v1956_v30 = vrot.slane %v1917_v57, 4  ;;  %v1957_v58 = vrot.slane %v11028_v12, 4  ;;  %v9521_v33 = vcombine.high %v3153_v59, %v11066_v37 }
 0x24e   : > { %v11058_v40 = vld [vmem:[#allocation3 + $0x54] sm:$0xff] }
 0x24f   : > { %v2011_v31 = vsel %vm15167_vm15, %v1956_v30, %v1917_v57  ;;  %v2012_v14 = vsel %vm15568_vm3, %v1956_v30, %v1957_v58  ;;  %3225 = vrot.lane.b32.xlu1 %v3153_v59, %s10206_s12  ;;  %vm15569_vm3 = vmmov %vm15565_vm0 }
 0x250   : > { %2090 = vst.msk [vmem:[#allocation3 + $0xe8] sm:$0xff] %vm15566_vm2, %v2011_v31  ;;  %v11042_v20 = vsel %vm15167_vm15, %v2012_v14, %v11028_v12  ;;  %v1873_v22 = vpop.permute.xlu1 %1872  ;;  %3227 = vrot.lane.b32.xlu0 %v1968_v13, %s10206_s12  ;;  %v9520_v14 = vcombine.low %v3153_v59, %v11066_v37 }
 0x251   : > { %2091 = vst [vmem:[#allocation3 + $0xf0] sm:$0xff] %v11042_v20  ;;  %v1934_v7 = vrot.slane %v1873_v22, 4 }
 0x252   : > { %v11056_v5 = vld [vmem:[#allocation3 + $0x9c] sm:$0xff] }
 0x253   : > { %v1969_v35 = vsel %vm15565_vm0, %v1933_v60, %v1934_v7  ;;  %2917 = vrot.lane.b32.xlu1 %v3153_v59, %s10204_s10  ;;  %v11060_v11 = vld [vmem:[#allocation3 + $0x98] sm:$0xff] }
 0x254   : > { %v11049_v36 = vsel %vm15167_vm15, %v1969_v35, %v1873_v22  ;;  %v11051_v38 = vpop.permute.xlu1 %1874  ;;  %2919 = vrot.lane.b32.xlu0 %v1968_v13, %s10204_s10 }
 0x255   : > { %2064 = vst [vmem:[#allocation3 + $0x14] sm:$0xff] %v11049_v36  ;;  %v1889_v15 = vpop.permute.xlu0 %1888  ;;  %v1935_v9 = vrot.slane %v11051_v38, 4 }
 0x256   : > { %v1942_v6 = vrot.slane %v1889_v15, 4 }
 0x257   : > { %v1971_v60 = vsel %vm15569_vm3, %v1934_v7, %v1935_v9  ;;  %v11063_v34 = vld [vmem:[#allocation3 + $0xe8] sm:$0xff]  ;;  %3905 = vrot.lane.b32.xlu1 %v2473_v32, %s10206_s12  ;;  %vm15570_vm3 = vmmov %vm15565_vm0 }
 0x258   : > { %v11068_v0 = vld [vmem:[#allocation3 + $0xe4] sm:$0xff]  ;;  %v1984_v62 = vsel %vm15565_vm0, %v1941_v16, %v1942_v6  ;;  %v11073_v13 = vsel %vm15167_vm15, %v1971_v60, %v11051_v38  ;;  %v9536_v63 = vcombine.low %v11056_v5, %v11063_v34  ;;  %v9537_v28 = vcombine.high %v11056_v5, %v11063_v34  ;;  %2564 = vrot.lane.b32.xlu0 %v11058_v40, %s10206_s12  ;;  %v11103_v7 = vld [vmem:[#allocation3 + $0x4c] sm:$0xff] }
 0x259   : > { %v11080_v1 = vsel %vm15167_vm15, %v1984_v62, %v1889_v15  ;;  %2065 = vst [vmem:[#allocation3 + $0x1c] sm:$0xff] %v11073_v13  ;;  %v1891_v21 = vpop.permute.xlu0 %1890 }
 0x25a   : > { %2074 = vst [vmem:[#allocation3 + $0x60] sm:$0xff] %v11080_v1  ;;  %v1943_v61 = vrot.slane %v1891_v21, 4  ;;  %5901 = vmatprep.subr.bf16.mxu0 %v9537_v28 }
 0x25b   : > { %v1905_v8 = vpop.permute.xlu1 %1904  ;;  %5902 = vmatpush1.bf16.msra.mxu0 %v9536_v63  ;;  %3597 = vrot.lane.b32.xlu1 %v2473_v32, %s10204_s10 }
 0x25c   : > { %v1986_v57 = vsel %vm15570_vm3, %v1942_v6, %v1943_v61  ;;  %v1950_v30 = vrot.slane %v1905_v8, 4  ;;  %5903 = vmatprep.subr.bf16.mxu0 %v9521_v33  ;;  %2255 = vrot.lane.b32.xlu0 %v11058_v40, %s10204_s10  ;;  %vm15571_vm3 = vmmov %vm15565_vm0 }
 0x25d   : > { %v11094_v31 = vsel %vm15167_vm15, %v1986_v57, %v1891_v21 }
 0x25e   : > { %2075 = vst [vmem:[#allocation3 + $0x68] sm:$0xff] %v11094_v31  ;;  %v1999_v22 = vsel %vm15565_vm0, %v1949_v39, %v1950_v30 }
 0x25f   : > { %v11106_v32 = vsel %vm15167_vm15, %v1999_v22, %v1905_v8  ;;  %v1921_v35 = vpop.permute.xlu0 %1920  ;;  %v1907_v38 = vpop.permute.xlu1 %1906  ;;  %5904 = vmatpush1.bf16.msra.mxu0 %v9520_v14  ;;  %2562 = vrot.lane.b32.xlu1 %v11103_v7, %s10206_s12 }
 0x260   : > { %2083 = vst [vmem:[#allocation3 + $0xac] sm:$0xff] %v11106_v32  ;;  %v1958_v59 = vrot.slane %v1921_v35, 4  ;;  %v1951_v15 = vrot.slane %v1907_v38, 4  ;;  %3245 = vrot.lane.b32.xlu0 %v11009_v27, %s10206_s12 }
 0x262   : > { %v2014_v41 = vsel %vm15571_vm3, %v1957_v58, %v1958_v59  ;;  %v2001_v39 = vsel %vm15565_vm0, %v1950_v30, %v1951_v15  ;;  %vm15572_vm3 = vmmov %vm15565_vm0 }
 0x263   : > { %v11118_v6 = vsel %vm15167_vm15, %v2014_v41, %v1921_v35  ;;  %v11121_v60 = vsel %vm15167_vm15, %v2001_v39, %v1907_v38  ;;  %v1923_v62 = vpop.permute.xlu0 %1922  ;;  %v1877_v63 = vpop.permute.xlu1 %1876  ;;  %2253 = vrot.lane.b32.xlu1 %v11103_v7, %s10204_s10 }
 0x264   : > { %2092 = vst [vmem:[#allocation3 + $0xf8] sm:$0xff] %v11118_v6  ;;  %2084 = vst [vmem:[#allocation3 + $0xb4] sm:$0xff] %v11121_v60  ;;  %v1959_v12 = vrot.slane %v1923_v62, 4  ;;  %v1936_v28 = vrot.slane %v1877_v63, 4  ;;  %2937 = vrot.lane.b32.xlu0 %v11009_v27, %s10204_s10  ;;  %v11141_v27 = vld [vmem:[#allocation3 + $0xa0] sm:$0xff] }
 0x266   : > { %v2016_v58 = vsel %vm15572_vm3, %v1958_v59, %v1959_v12  ;;  %v1973_v21 = vsel %vm15565_vm0, %v1935_v9, %v1936_v28  ;;  %vm15573_vm3 = vmmov %vm15565_vm0 }
 0x267   : > { %v11132_v33 = vsel %vm15167_vm15, %v2016_v58, %v1923_v62  ;;  %v11135_v8 = vsel %vm15167_vm15, %v1973_v21, %v1877_v63  ;;  %v1879_v57 = vpop.permute.xlu1 %1878  ;;  %3243 = vrot.lane.b32.xlu1 %v11066_v37, %s10206_s12 }
 0x268   : > { %2093 = vst [vmem:[#allocation3 + $0x100] sm:$0xff] %v11132_v33  ;;  %2066 = vst [vmem:[#allocation3 + $0x24] sm:$0xff] %v11135_v8  ;;  %v1937_v30 = vrot.slane %v1879_v57, 4  ;;  %2582 = vrot.lane.b32.xlu0 %v11141_v27, %s10206_s12 }
 0x269   : > { %v1893_v14 = vpop.permute.xlu0 %1892 }
 0x26a   : > { %v1944_v9 = vrot.slane %v1893_v14, 4  ;;  %v1975_v22 = vsel %vm15573_vm3, %v1936_v28, %v1937_v30  ;;  %vm15574_vm3 = vmmov %vm15565_vm0 }
 0x26b   : > { %v1976_v35 = vsel %vm15167_vm15, %v1975_v22, %v1879_v57  ;;  %2935 = vrot.lane.b32.xlu1 %v11066_v37, %s10204_s10 }
 0x26c   : > { %v1988_v38 = vsel %vm15565_vm0, %v1943_v61, %v1944_v9  ;;  %2067 = vst [vmem:[#allocation3 + $0x2c] sm:$0xff] %v1976_v35  ;;  %2273 = vrot.lane.b32.xlu0 %v11141_v27, %s10204_s10 }
 0x26d   : > { %v11151_v59 = vsel %vm15167_vm15, %v1988_v38, %v1893_v14  ;;  %v1895_v41 = vpop.permute.xlu0 %1894 }
 0x26e   : > { %2076 = vst [vmem:[#allocation3 + $0x70] sm:$0xff] %v11151_v59  ;;  %v1945_v39 = vrot.slane %v1895_v41, 4  ;;  %v1909_v62 = vpop.permute.xlu1 %1908 }
 0x26f   : > { %v1952_v63 = vrot.slane %v1909_v62, 4  ;;  %3923 = vrot.lane.b32.xlu1 %v11058_v40, %s10206_s12 }
 0x270   : > { %v1990_v37 = vsel %vm15574_vm3, %v1944_v9, %v1945_v39  ;;  %3263 = vrot.lane.b32.xlu0 %v11026_v3, %s10206_s12  ;;  %vm15575_vm3 = vmmov %vm15565_vm0 }
 0x271   : > { %v11160_v61 = vsel %vm15167_vm15, %v1990_v37, %v1895_v41  ;;  %v2003_v28 = vsel %vm15565_vm0, %v1951_v15, %v1952_v63 }
 0x272   : > { %2077 = vst [vmem:[#allocation3 + $0x78] sm:$0xff] %v11160_v61  ;;  %v11167_v58 = vsel %vm15167_vm15, %v2003_v28, %v1909_v62  ;;  %v1925_v21 = vpop.permute.xlu0 %1924  ;;  %v1911_v57 = vpop.permute.xlu1 %1910 }
 0x273   : > { %2085 = vst [vmem:[#allocation3 + $0xbc] sm:$0xff] %v11167_v58  ;;  %v1960_v14 = vrot.slane %v1925_v21, 4  ;;  %v1953_v22 = vrot.slane %v1911_v57, 4  ;;  %3615 = vrot.lane.b32.xlu1 %v11058_v40, %s10204_s10  ;;  %v11183_v40 = vld [vmem:[#allocation3 + $0xec] sm:$0xff] }
 0x274   : > { %2955 = vrot.lane.b32.xlu0 %v11026_v3, %s10204_s10  ;;  %v3529_v24 = vld [vmem:[#allocation3 + $0x28] sm:$0xff] }
 0x275   : > { %v2018_v9 = vsel %vm15575_vm3, %v1959_v12, %v1960_v14  ;;  %v2005_v15 = vsel %vm15565_vm0, %v1952_v63, %v1953_v22  ;;  %vm15576_vm3 = vmmov %vm15565_vm0  ;;  %v3845_v55 = vld [vmem:[#allocation3 + $0x6c] sm:$0xff] }
 0x276   : > { %v11177_v35 = vsel %vm15167_vm15, %v2018_v9, %v1925_v21  ;;  %v2006_v38 = vsel %vm15167_vm15, %v2005_v15, %v1911_v57  ;;  %v1927_v41 = vpop.permute.xlu0 %1926  ;;  %v1881_v62 = vpop.permute.xlu1 %1880 }
 0x277   : > { %2094 = vst [vmem:[#allocation3 + $0x108] sm:$0xff] %v11177_v35  ;;  %2086 = vst [vmem:[#allocation3 + $0xc4] sm:$0xff] %v2006_v38  ;;  %v1961_v37 = vrot.slane %v1927_v41, 4  ;;  %v1938_v28 = vrot.slane %v1881_v62, 4  ;;  %2580 = vrot.lane.b32.xlu1 %v11060_v11, %s10206_s12 }
 0x278   : > { %2600 = vrot.lane.b32.xlu0 %v11183_v40, %s10206_s12 }
 0x279   : > { %v2020_v12 = vsel %vm15576_vm3, %v1960_v14, %v1961_v37  ;;  %v1977_v3 = vsel %vm15565_vm0, %v1937_v30, %v1938_v28  ;;  %vm15577_vm3 = vmmov %vm15565_vm0 }
 0x27a   : > { %v2021_v63 = vsel %vm15167_vm15, %v2020_v12, %v1927_v41  ;;  %v1978_v21 = vsel %vm15167_vm15, %v1977_v3, %v1881_v62  ;;  %v1897_v57 = vpop.permute.xlu0 %1896  ;;  %v1883_v9 = vpop.permute.xlu1 %1882 }
 0x27b   : > { %2095 = vst [vmem:[#allocation3 + $0x110] sm:$0xff] %v2021_v63  ;;  %2068 = vst [vmem:[#allocation3 + $0x34] sm:$0xff] %v1978_v21  ;;  %v1946_v15 = vrot.slane %v1897_v57, 4  ;;  %v1939_v38 = vrot.slane %v1883_v9, 4  ;;  %2271 = vrot.lane.b32.xlu1 %v11060_v11, %s10204_s10 }
 0x27c   : > { %2291 = vrot.lane.b32.xlu0 %v11183_v40, %s10204_s10 }
 0x27d   : > { %v1992_v14 = vsel %vm15577_vm3, %v1945_v39, %v1946_v15  ;;  %v1979_v30 = vsel %vm15565_vm0, %v1938_v28, %v1939_v38  ;;  %2071 = vst.msk [vmem:[#allocation3 + $0x44] sm:$0xf] %vm15117_vm6, %v1939_v38  ;;  %vm15578_vm3 = vmmov %vm15565_vm0 }
 0x27e   : > { %v1993_v41 = vsel %vm15167_vm15, %v1992_v14, %v1897_v57  ;;  %v1980_v62 = vsel %vm15167_vm15, %v1979_v30, %v1883_v9  ;;  %v1899_v12 = vpop.permute.xlu0 %1898  ;;  %v1913_v3 = vpop.permute.xlu1 %1912 }
 0x27f   : > { %2078 = vst [vmem:[#allocation3 + $0x80] sm:$0xff] %v1993_v41  ;;  %2069 = vst [vmem:[#allocation3 + $0x3c] sm:$0xff] %v1980_v62  ;;  %v1947_v63 = vrot.slane %v1899_v12, 4  ;;  %v1954_v21 = vrot.slane %v1913_v3, 4  ;;  %3261 = vrot.lane.b32.xlu1 %v11056_v5, %s10206_s12 }
 0x280   : > { %3281 = vrot.lane.b32.xlu0 %v11042_v20, %s10206_s12 }
 0x281   : > { %v1994_v39 = vsel %vm15578_vm3, %v1946_v15, %v1947_v63  ;;  %2080 = vst.msk [vmem:[#allocation3 + $0x90] sm:$0xf] %vm15117_vm6, %v1947_v63  ;;  %v2007_v28 = vsel %vm15565_vm0, %v1953_v22, %v1954_v21  ;;  %vm15579_vm3 = vmmov %vm15565_vm0 }
 0x282   : > { %v1995_v57 = vsel %vm15167_vm15, %v1994_v39, %v1899_v12  ;;  %v2008_v9 = vsel %vm15167_vm15, %v2007_v28, %v1913_v3  ;;  %v1929_v38 = vpop.permute.xlu0 %1928  ;;  %v1915_v14 = vpop.permute.xlu1 %1914  ;;  %vm15580_vm6 = vmmov %vm15565_vm0  ;;  %vm15581_vm0 = vcmask 3072  }
 0x283   : > { %2079 = vst [vmem:[#allocation3 + $0x88] sm:$0xff] %v1995_v57  ;;  %2087 = vst [vmem:[#allocation3 + $0xcc] sm:$0xff] %v2008_v9  ;;  %v1962_v30 = vrot.slane %v1929_v38, 4  ;;  %v1955_v41 = vrot.slane %v1915_v14, 4  ;;  %2953 = vrot.lane.b32.xlu1 %v11056_v5, %s10204_s10  ;;  %v3834_v5 = vld [vmem:[#allocation3 + $0x10] sm:$0xff]  ;;  %v3852_v57 = vld [vmem:[#allocation3 + $0xa8] sm:$0xff] }
 0x284   : > { %2973 = vrot.lane.b32.xlu0 %v11042_v20, %s10204_s10 }
 0x285   : > { %v2022_v15 = vsel %vm15579_vm3, %v1961_v37, %v1962_v30  ;;  %v2009_v22 = vsel %vm15580_vm6, %v1954_v21, %v1955_v41  ;;  %2089 = vst.msk [vmem:[#allocation3 + $0xdc] sm:$0xf] %vm15581_vm0, %v1955_v41  ;;  %vm15582_vm6 = vmmov %vm15581_vm0  ;;  %v3843_v21 = vld [vmem:[#allocation3 + $0x5c] sm:$0xff] }
 0x286   : > { %v2023_v62 = vsel %vm15167_vm15, %v2022_v15, %v1929_v38  ;;  %v2010_v12 = vsel %vm15167_vm15, %v2009_v22, %v1915_v14  ;;  %v1931_v3 = vpop.permute.xlu0 %1930  ;;  %v3861_v14 = vld [vmem:[#allocation3 + $0xf4] sm:$0xff]  ;;  %vm15588_vm0 = vmmov %vm15579_vm3 }
 0x287   : > { %2096 = vst [vmem:[#allocation3 + $0x118] sm:$0xff] %v2023_v62  ;;  %2088 = vst [vmem:[#allocation3 + $0xd4] sm:$0xff] %v2010_v12  ;;  %v1963_v63 = vrot.slane %v1931_v3, 4  ;;  %3941 = vrot.lane.b32.xlu1 %v11141_v27, %s10206_s12 }
 0x288   : > { %3907 = vrot.lane.b32.xlu0 %v3834_v5, %s10206_s12 }
 0x289   : > { %v2024_v37 = vsel %vm15579_vm3, %v1962_v30, %v1963_v63  ;;  %2098 = vst.msk [vmem:[#allocation3 + $0x128] sm:$0xf] %vm15582_vm6, %v1963_v63  ;;  %vm15589_vm3 = vmmov %vm15588_vm0 }
 0x28a   : > { %v2025_v20 = vsel %vm15167_vm15, %v2024_v37, %v1931_v3  ;;  %vm15591_vm6 = vmmov %vm15588_vm0 }
 0x28b   : > { %2097 = vst [vmem:[#allocation3 + $0x120] sm:$0xff] %v2025_v20  ;;  %3633 = vrot.lane.b32.xlu1 %v11141_v27, %s10204_s10  ;;  %v3536_v27 = vld [vmem:[#allocation3 + $0x64] sm:$0xff]  ;;  %vm15593_vm15 = vmmov %vm15589_vm3 }
 0x28c   : > { %3599 = vrot.lane.b32.xlu0 %v3834_v5, %s10204_s10 }
 0x28f   : > { %2598 = vrot.lane.b32.xlu1 %v11068_v0, %s10206_s12 }
 0x290   : > { %3925 = vrot.lane.b32.xlu0 %v3843_v21, %s10206_s12 }
 0x293   : > { %2289 = vrot.lane.b32.xlu1 %v11068_v0, %s10204_s10 }
 0x294   : > { %2566 = vrot.lane.b32.xlu0 %v3843_v21, %s10206_s12 }
 0x297   : > { %3279 = vrot.lane.b32.xlu1 %v11063_v34, %s10206_s12 }
 0x298   : > { %2257 = vrot.lane.b32.xlu0 %v3843_v21, %s10204_s10 }
 0x29b   : > { %2971 = vrot.lane.b32.xlu1 %v11063_v34, %s10204_s10  ;;  %v3527_v34 = vld [vmem:[#allocation3 + $0x18] sm:$0xff] }
 0x29c   : > { %3617 = vrot.lane.b32.xlu0 %v3843_v21, %s10204_s10 }
 0x29f   : > { %3959 = vrot.lane.b32.xlu1 %v11183_v40, %s10206_s12 }
 0x2a0   : > { %3619 = vrot.lane.b32.xlu0 %v3536_v27, %s10204_s10 }
 0x2a3   : > { %3651 = vrot.lane.b32.xlu1 %v11183_v40, %s10204_s10 }
 0x2a4   : > { %3247 = vrot.lane.b32.xlu0 %v11080_v1, %s10206_s12 }
 0x2a7   : > { %2548 = vrot.lane.b32.xlu1 %v3834_v5, %s10206_s12 }
 0x2a8   : > { %2939 = vrot.lane.b32.xlu0 %v11080_v1, %s10204_s10 }
 0x2ab   : > { %2239 = vrot.lane.b32.xlu1 %v3834_v5, %s10204_s10  ;;  %v3554_v5 = vld [vmem:[#allocation3 + $0xfc] sm:$0xff] }
 0x2ac   : > { %3927 = vrot.lane.b32.xlu0 %v3536_v27, %s10206_s12 }
 0x2af   : > { %3601 = vrot.lane.b32.xlu1 %v3527_v34, %s10204_s10 }
 0x2b0   : > { %2568 = vrot.lane.b32.xlu0 %v3536_v27, %s10206_s12 }
 0x2b3   : > { %3229 = vrot.lane.b32.xlu1 %v11049_v36, %s10206_s12 }
 0x2b4   : > { %2259 = vrot.lane.b32.xlu0 %v3536_v27, %s10204_s10 }
 0x2b7   : > { %2921 = vrot.lane.b32.xlu1 %v11049_v36, %s10204_s10 }
 0x2b8   : > { %3249 = vrot.lane.b32.xlu0 %v11094_v31, %s10206_s12 }
 0x2b9   : > { %v11260_v1 = vpop.permute.xlu1 %2544 }
 0x2ba   : > { %v11262_v40 = vpop.permute.xlu0 %2546  ;;  %v2616_v4 = vrot.slane %v11260_v1, 4 }
 0x2bb   : > { %3909 = vrot.lane.b32.xlu1 %v3527_v34, %s10206_s12  ;;  %v15173_v50 = vrot.slane %v11262_v40, 4 }
 0x2bc   : > { %2941 = vrot.lane.b32.xlu0 %v11094_v31, %s10204_s10 }
 0x2bd   : > { %v11267_v39 = vpop.permute.xlu1 %2235  ;;  %v2652_v42 = vsel %vm15591_vm6, %v2616_v4, %v15173_v50 }
 0x2be   : > { %v11269_v28 = vpop.permute.xlu0 %2237 }
 0x2bf   : > { %2550 = vrot.lane.b32.xlu1 %v3527_v34, %s10206_s12 }
 0x2c0   : > { %3943 = vrot.lane.b32.xlu0 %v3852_v57, %s10206_s12 }
 0x2c1   : > { %v11273_v36 = vpop.permute.xlu1 %3225 }
 0x2c2   : > { %v11275_v9 = vpop.permute.xlu0 %3227 }
 0x2c3   : > { %2241 = vrot.lane.b32.xlu1 %v3527_v34, %s10204_s10 }
 0x2c4   : > { %3635 = vrot.lane.b32.xlu0 %v3852_v57, %s10204_s10 }
 0x2c5   : > { %v11279_v38 = vpop.permute.xlu1 %2917 }
 0x2c6   : > { %v11281_v31 = vpop.permute.xlu0 %2919 }
 0x2c7   : > { %15583 = vst [vmem:[#allocation39_spill] sm:$0xff] %v11281_v31  ;;  %3231 = vrot.lane.b32.xlu1 %v11073_v13, %s10206_s12 }
 0x2c8   : > { %3961 = vrot.lane.b32.xlu0 %v3861_v14, %s10206_s12 }
 0x2c9   : > { %v11286_v30 = vpop.permute.xlu1 %3905 }
 0x2ca   : > { %v11288_v41 = vpop.permute.xlu0 %2564 }
 0x2cb   : > { %2923 = vrot.lane.b32.xlu1 %v11073_v13, %s10204_s10  ;;  %v3545_v13 = vld [vmem:[#allocation3 + $0xb0] sm:$0xff]  ;;  %v15166_v51 = vrot.slane %v11288_v41, 4 }
 0x2cc   : > { %2602 = vrot.lane.b32.xlu0 %v3861_v14, %s10206_s12 }
 0x2cd   : > { %v11293_v15 = vpop.permute.xlu1 %3597 }
 0x2ce   : > { %v11295_v22 = vpop.permute.xlu0 %2255 }
 0x2cf   : > { %2584 = vrot.lane.b32.xlu1 %v3852_v57, %s10206_s12 }
 0x2d0   : > { %2293 = vrot.lane.b32.xlu0 %v3861_v14, %s10204_s10 }
 0x2d1   : > { %v11299_v62 = vpop.permute.xlu1 %2562 }
 0x2d2   : > { %v11301_v12 = vpop.permute.xlu0 %3245 }
 0x2d3   : > { %2275 = vrot.lane.b32.xlu1 %v3852_v57, %s10204_s10 }
 0x2d4   : > { %3653 = vrot.lane.b32.xlu0 %v3861_v14, %s10204_s10 }
 0x2d5   : > { %v11305_v3 = vpop.permute.xlu1 %2253 }
 0x2d6   : > { %v11307_v63 = vpop.permute.xlu0 %2937 }
 0x2d7   : > { %15584 = vst [vmem:[#allocation40_spill] sm:$0xff] %v11307_v63  ;;  %3637 = vrot.lane.b32.xlu1 %v3545_v13, %s10204_s10 }
 0x2d8   : > { %3655 = vrot.lane.b32.xlu0 %v3554_v5, %s10204_s10 }
 0x2d9   : > { %v11311_v37 = vpop.permute.xlu1 %3243 }
 0x2da   : > { %v11313_v20 = vpop.permute.xlu0 %2582 }
 0x2db   : > { %3265 = vrot.lane.b32.xlu1 %v11106_v32, %s10206_s12  ;;  %v15168_v49 = vrot.slane %v11313_v20, 4 }
 0x2dc   : > { %3283 = vrot.lane.b32.xlu0 %v11118_v6, %s10206_s12 }
 0x2dd   : > { %v11319_v21 = vpop.permute.xlu1 %2935 }
 0x2de   : > { %v11321_v27 = vpop.permute.xlu0 %2273 }
 0x2df   : > { %2957 = vrot.lane.b32.xlu1 %v11106_v32, %s10204_s10 }
 0x2e0   : > { %2975 = vrot.lane.b32.xlu0 %v11118_v6, %s10204_s10 }
 0x2e1   : > { %v11327_v34 = vpop.permute.xlu1 %3923 }
 0x2e2   : > { %v11329_v57 = vpop.permute.xlu0 %3263 }
 0x2e3   : > { %3945 = vrot.lane.b32.xlu1 %v3545_v13, %s10206_s12 }
 0x2e4   : > { %3963 = vrot.lane.b32.xlu0 %v3554_v5, %s10206_s12 }
 0x2e5   : > { %v11333_v14 = vpop.permute.xlu1 %3615 }
 0x2e6   : > { %v11335_v16 = vpop.permute.xlu0 %2955 }
 0x2e7   : > { %15585 = vst [vmem:[#allocation41_spill] sm:$0xff] %v11335_v16  ;;  %2586 = vrot.lane.b32.xlu1 %v3545_v13, %s10206_s12  ;;  %v2307_v16 = vrot.slane %v11267_v39, 4 }
 0x2e8   : > { %2604 = vrot.lane.b32.xlu0 %v3554_v5, %s10206_s12 }
 0x2e9   : > { %v2581_v32 = vpop.permute.xlu1 %2580 }
 0x2ea   : > { %v11339_v10 = vpop.permute.xlu0 %2600  ;;  %v2634_v54 = vrot.slane %v2581_v32, 4 }
 0x2eb   : > { %2277 = vrot.lane.b32.xlu1 %v3545_v13, %s10204_s10  ;;  %v15175_v45 = vrot.slane %v11339_v10, 4 }
 0x2ec   : > { %2295 = vrot.lane.b32.xlu0 %v3554_v5, %s10204_s10  ;;  %v3836_v5 = vld [vmem:[#allocation3 + $0x20] sm:$0xff]  ;;  %v2685_v46 = vsel %vm15589_vm3, %v2634_v54, %v15168_v49  ;;  %v2316_v49 = vrot.slane %v11305_v3, 4 }
 0x2ed   : > { %v11343_v6 = vpop.permute.xlu1 %2271 }
 0x2ee   : > { %v11347_v18 = vpop.permute.xlu0 %2291 }
 0x2ef   : > { %3267 = vrot.lane.b32.xlu1 %v11121_v60, %s10206_s12  ;;  %v15178_v50 = vrot.slane %v11347_v18, 4 }
 0x2f0   : > { %3285 = vrot.lane.b32.xlu0 %v11132_v33, %s10206_s12 }
 0x2f1   : > { %v11354_v19 = vpop.permute.xlu1 %3261 }
 0x2f2   : > { %v11356_v23 = vpop.permute.xlu0 %3281 }
 0x2f3   : > { %2959 = vrot.lane.b32.xlu1 %v11121_v60, %s10204_s10  ;;  %v2625_v60 = vrot.slane %v11299_v62, 4 }
 0x2f4   : > { %2977 = vrot.lane.b32.xlu0 %v11132_v33, %s10204_s10 }
 0x2f5   : > { %v11362_v13 = vpop.permute.xlu1 %2953  ;;  %v2669_v48 = vsel %vm15588_vm0, %v2625_v60, %v15166_v51  ;;  %vm15592_vm0 = vcmask 1031168   ;;  %v2325_v51 = vrot.slane %v11343_v6, 4 }
 0x2f6   : > { %v11364_v29 = vpop.permute.xlu0 %2973  ;;  %v2670_v60 = vsel %vm15592_vm0, %v11299_v62, %v2669_v48  ;;  %vm15594_vm3 = vmmov %vm15592_vm0 }
 0x2f7   : > { %15587 = vst [vmem:[#allocation43_spill] sm:$0xff] %v11364_v29  ;;  %3911 = vrot.lane.b32.xlu1 %v3836_v5, %s10206_s12  ;;  %v2686_v25 = vsel %vm15594_vm3, %v2581_v32, %v2685_v46  ;;  %vm15595_vm1 = vmmov %vm15592_vm0  ;;  %v15176_v46 = vrot.slane %v11295_v22, 4  ;;  %v3538_v32 = vld [vmem:[#allocation3 + $0x74] sm:$0xff] }
 0x2f8   : > { %3929 = vrot.lane.b32.xlu0 %v3845_v55, %s10206_s12 }
 0x2f9   : > { %v11368_v56 = vpop.permute.xlu1 %3941 }
 0x2fa   : > { %v11370_v53 = vpop.permute.xlu0 %3907 }
 0x2fb   : > { %2552 = vrot.lane.b32.xlu1 %v3836_v5, %s10206_s12 }
 0x2fc   : > { %2570 = vrot.lane.b32.xlu0 %v3845_v55, %s10206_s12 }
 0x2fd   : > { %v11375_v33 = vpop.permute.xlu1 %3633 }
 0x2fe   : > { %v11378_v52 = vpop.permute.xlu0 %3599 }
 0x2ff   : > { %2243 = vrot.lane.b32.xlu1 %v3836_v5, %s10204_s10 }
 0x300   : > { %2261 = vrot.lane.b32.xlu0 %v3845_v55, %s10204_s10 }
 0x301   : > { %v2599_v47 = vpop.permute.xlu1 %2598 }
 0x302   : > { %v2643_v44 = vrot.slane %v2599_v47, 4  ;;  %v11392_v43 = vpop.permute.xlu0 %3925 }
 0x303   : > { %15590 = vst [vmem:[#allocation44_spill] sm:$0xff] %v11392_v43  ;;  %3603 = vrot.lane.b32.xlu1 %v3836_v5, %s10204_s10 }
 0x304   : > { %v2701_v54 = vsel %vm15593_vm15, %v2643_v44, %v15175_v45  ;;  %3621 = vrot.lane.b32.xlu0 %v3845_v55, %s10204_s10  ;;  %v15177_v44 = vrot.slane %v11269_v28, 4  ;;  %vm15596_vm15 = vmmov %vm15592_vm0  ;;  %vm15601_vm0 = vcmask 1039360  }
 0x305   : > { %v2702_v5 = vsel %vm15595_vm1, %v2599_v47, %v2701_v54  ;;  %v2290_v4 = vpop.permute.xlu1 %2289  ;;  %v2654_v45 = vsel %vm15596_vm15, %v11260_v1, %v2652_v42  ;;  %v15598_v47 = vrot.slane %v11321_v27, 4  ;;  %vm15599_vm1 = vmmov %vm15591_vm6 }
 0x306   : > { %v9504_v48 = vcombine.low %v2686_v25, %v2702_v5  ;;  %v2334_v62 = vrot.slane %v2290_v4, 4  ;;  %v9505_v26 = vcombine.high %v2686_v25, %v2702_v5  ;;  %v11414_v2 = vpop.permute.xlu0 %2566  ;;  %vm15600_vm6 = vmmov %vm15599_vm1  ;;  %v9489_v54 = vcombine.high %v2654_v45, %v2670_v60 }
 0x307   : > { %15597 = vst [vmem:[#allocation45_spill] sm:$0xff] %v11414_v2  ;;  %3605 = vrot.lane.b32.xlu1 %v3529_v24, %s10204_s10  ;;  %v2376_v55 = vsel %vm15599_vm1, %v2325_v51, %v15598_v47  ;;  %vm15602_vm3 = vmmov %vm15599_vm1  ;;  %v9488_v51 = vcombine.low %v2654_v45, %v2670_v60 }
 0x308   : > { %v2392_v25 = vsel %vm15600_vm6, %v2334_v62, %v15178_v50  ;;  %5905 = vmatprep.subr.bf16.mxu0 %v9505_v26  ;;  %3623 = vrot.lane.b32.xlu0 %v3538_v32, %s10204_s10  ;;  %v2360_v1 = vsel %vm15602_vm3, %v2316_v49, %v15176_v46  ;;  %vm15603_vm15 = vmmov %vm15601_vm0  ;;  %v2343_v26 = vsel %vm15599_vm1, %v2307_v16, %v15177_v44 }
 0x309   : > { %v2393_v5 = vsel %vm15601_vm0, %v2290_v4, %v2392_v25  ;;  %5906 = vmatpush1.bf16.msra.mxu0 %v9504_v48  ;;  %v11426_v42 = vpop.permute.xlu1 %3279  ;;  %v2377_v47 = vsel %vm15603_vm15, %v11343_v6, %v2376_v55  ;;  %vm15605_vm6 = vmmov %vm15601_vm0  ;;  %v2345_v49 = vsel %vm15601_vm0, %v11267_v39, %v2343_v26 }
 0x30a   : > { %5907 = vmatprep.subr.bf16.mxu0 %v9489_v54  ;;  %v11433_v62 = vpop.permute.xlu0 %2257  ;;  %v9473_v4 = vcombine.high %v2377_v47, %v2393_v5  ;;  %v2361_v48 = vsel %vm15605_vm6, %v11305_v3, %v2360_v1  ;;  %v9472_v6 = vcombine.low %v2377_v47, %v2393_v5  ;;  %v15608_v1 = vcombine.low %v11060_v11, %v11068_v0  ;;  %v3854_v47 = vld [vmem:[#allocation3 + $0xb8] sm:$0xff]  ;;  %vm15624_vm3 = vmmov %vm15599_vm1 }
 0x30b   : > { %15604 = vst [vmem:[#allocation46_spill] sm:$0xff] %v11433_v62  ;;  %3233 = vrot.lane.b32.xlu1 %v11135_v8, %s10206_s12  ;;  %v9457_v16 = vcombine.high %v2345_v49, %v2361_v48  ;;  %v9456_v55 = vcombine.low %v2345_v49, %v2361_v48  ;;  %v3863_v48 = vld [vmem:[#allocation3 + $0x104] sm:$0xff]  ;;  %vm15626_vm15 = vmmov %vm15599_vm1 }
 0x30c   : > { %3251 = vrot.lane.b32.xlu0 %v11151_v59, %s10206_s12  ;;  %vm15629_vm6 = vmmov %vm15599_vm1 }
 0x30d   : > { %5908 = vmatpush1.bf16.msra.mxu0 %v9488_v51  ;;  %v11444_v45 = vpop.permute.xlu1 %2971  ;;  %vm15631_vm0 = vmmov %vm15599_vm1 }
 0x30e   : > { %5909 = vmatprep.subr.bf16.mxu0 %v9473_v4  ;;  %v11448_v60 = vpop.permute.xlu0 %3617 }
 0x30f   : > { %2925 = vrot.lane.b32.xlu1 %v11135_v8, %s10204_s10  ;;  %v15607_v8 = vcombine.high %v11060_v11, %v11068_v0 }
 0x310   : > { %2943 = vrot.lane.b32.xlu0 %v11151_v59, %s10204_s10  ;;  %v2099_v59 = vld [vmem:[#allocation3] sm:$0xff] }
 0x311   : > { %5910 = vmatpush1.bf16.msra.mxu0 %v9472_v6  ;;  %v11454_v3 = vpop.permute.xlu1 %3959  ;;  %v9425_v5 = vcombine.high %v2099_v59, %v11103_v7  ;;  %v9424_v4 = vcombine.low %v2099_v59, %v11103_v7 }
 0x312   : > { %5911 = vmatprep.subr.bf16.mxu0 %v9457_v16  ;;  %v11456_v25 = vpop.permute.xlu0 %3619 }
 0x313   : > { %15606 = vst [vmem:[#allocation47_spill] sm:$0xff] %v11456_v25  ;;  %3913 = vrot.lane.b32.xlu1 %v3529_v24, %s10206_s12 }
 0x314   : > { %3931 = vrot.lane.b32.xlu0 %v3538_v32, %s10206_s12 }
 0x315   : > { %5912 = vmatpush1.bf16.msra.mxu0 %v9456_v55  ;;  %v11460_v39 = vpop.permute.xlu1 %3651 }
 0x316   : > { %5913 = vmatprep.subr.bf16.mxu0 %v15607_v8  ;;  %v11465_v54 = vpop.permute.xlu0 %3247  ;;  %v11507_v8 = vld [vmem:[#allocation3 + $0xc0] sm:$0xff] }
 0x317   : > { %2554 = vrot.lane.b32.xlu1 %v3529_v24, %s10206_s12  ;;  %v15189_v50 = vrot.slane %v11465_v54, 4 }
 0x318   : > { %2572 = vrot.lane.b32.xlu0 %v3538_v32, %s10206_s12 }
 0x319   : > { %5914 = vmatpush1.bf16.msra.mxu0 %v15608_v1  ;;  %v11473_v51 = vpop.permute.xlu1 %2548  ;;  %v11520_v1 = vld [vmem:[#allocation3 + $0x10c] sm:$0xff] }
 0x31a   : > { %15609 = vst [vmem:[#allocation48_spill] sm:$0xff] %v11473_v51  ;;  %5915 = vmatprep.subr.bf16.mxu0 %v9425_v5  ;;  %v11475_v26 = vpop.permute.xlu0 %2939 }
 0x31b   : > { %15610 = vst [vmem:[#allocation49_spill] sm:$0xff] %v11475_v26  ;;  %3947 = vrot.lane.b32.xlu1 %v3854_v47, %s10206_s12 }
 0x31c   : > { %3965 = vrot.lane.b32.xlu0 %v3863_v48, %s10206_s12 }
 0x31d   : > { %5916 = vmatpush1.bf16.msra.mxu0 %v9424_v4  ;;  %v11480_v49 = vpop.permute.xlu1 %2239  ;;  %v4004_v4 = vrot.slane %v11454_v3, 4 }
 0x31e   : > { %15611 = vst [vmem:[#allocation50_spill] sm:$0xff] %v11480_v49  ;;  %v11482_v6 = vpop.permute.xlu0 %3927 }
 0x31f   : > { %15612 = vst [vmem:[#allocation51_spill] sm:$0xff] %v11482_v6  ;;  %2245 = vrot.lane.b32.xlu1 %v3529_v24, %s10204_s10  ;;  %v15625_v6 = vrot.slane %v11370_v53, 4 }
 0x320   : > { %2263 = vrot.lane.b32.xlu0 %v3538_v32, %s10204_s10 }
 0x321   : > { %v11486_v11 = vpop.permute.xlu1 %3601 }
 0x322   : > { %15613 = vst [vmem:[#allocation52_spill] sm:$0xff] %v11486_v11  ;;  %v11488_v0 = vpop.permute.xlu0 %2568  ;;  %v15627_v11 = vrot.slane %v11392_v43, 4 }
 0x323   : > { %15614 = vst [vmem:[#allocation53_spill] sm:$0xff] %v11488_v0  ;;  %2588 = vrot.lane.b32.xlu1 %v3854_v47, %s10206_s12  ;;  %v3986_v0 = vrot.slane %v11327_v34, 4 }
 0x324   : > { %3253 = vrot.lane.b32.xlu0 %v11160_v61, %s10206_s12 }
 0x325   : > { %v11493_v7 = vpop.permute.xlu1 %3229  ;;  %v4029_v25 = vsel %vm15599_vm1, %v3986_v0, %v15627_v11 }
 0x326   : > { %v11495_v16 = vpop.permute.xlu0 %2259 }
 0x327   : > { %15615 = vst [vmem:[#allocation54_spill] sm:$0xff] %v11495_v16  ;;  %2279 = vrot.lane.b32.xlu1 %v3854_v47, %s10204_s10 }
 0x328   : > { %2606 = vrot.lane.b32.xlu0 %v3863_v48, %s10206_s12 }
 0x329   : > { %v11499_v24 = vpop.permute.xlu1 %2921 }
 0x32a   : > { %15616 = vst [vmem:[#allocation55_spill] sm:$0xff] %v11499_v24  ;;  %v11501_v32 = vpop.permute.xlu0 %3249 }
 0x32b   : > { %15617 = vst [vmem:[#allocation56_spill] sm:$0xff] %v11501_v32  ;;  %3639 = vrot.lane.b32.xlu1 %v3854_v47, %s10204_s10 }
 0x32c   : > { %2297 = vrot.lane.b32.xlu0 %v3863_v48, %s10204_s10 }
 0x32d   : > { %v11505_v55 = vpop.permute.xlu1 %3909 }
 0x32e   : > { %15618 = vst [vmem:[#allocation57_spill] sm:$0xff] %v11505_v55  ;;  %v11509_v61 = vpop.permute.xlu0 %2941 }
 0x32f   : > { %15619 = vst [vmem:[#allocation58_spill] sm:$0xff] %v11509_v61  ;;  %3641 = vrot.lane.b32.xlu1 %v11507_v8, %s10204_s10  ;;  %v15632_v29 = vrot.slane %v11509_v61, 4 }
 0x330   : > { %3657 = vrot.lane.b32.xlu0 %v3863_v48, %s10204_s10  ;;  %v3995_v48 = vrot.slane %v11368_v56, 4 }
 0x331   : > { %v11514_v59 = vpop.permute.xlu1 %2550 }
 0x332   : > { %15620 = vst [vmem:[#allocation59_spill] sm:$0xff] %v11514_v59  ;;  %v11516_v5 = vpop.permute.xlu0 %3943  ;;  %v3977_v59 = vrot.slane %v11286_v30, 4 }
 0x333   : > { %3269 = vrot.lane.b32.xlu1 %v11167_v58, %s10206_s12 }
 0x334   : > { %3659 = vrot.lane.b32.xlu0 %v11520_v1, %s10204_s10 }
 0x335   : > { %v11524_v47 = vpop.permute.xlu1 %2241 }
 0x336   : > { %15621 = vst [vmem:[#allocation60_spill] sm:$0xff] %v11524_v47  ;;  %v11529_v44 = vpop.permute.xlu0 %3635  ;;  %v4013_v47 = vsel %vm15626_vm15, %v3977_v59, %v15625_v6  ;;  %v15630_v6 = vrot.slane %v11493_v7, 4  ;;  %vm15636_vm15 = vcmask 1031168  }
 0x337   : > { %2961 = vrot.lane.b32.xlu1 %v11167_v58, %s10204_s10  ;;  %v15623_v58 = vrot.slane %v11501_v32, 4  ;;  %v15633_v32 = vrot.slane %v11475_v26, 4  ;;  %vm15638_vm1 = vmmov %vm15636_vm15 }
 0x338   : > { %3287 = vrot.lane.b32.xlu0 %v11177_v35, %s10206_s12 }
 0x339   : > { %v11540_v46 = vpop.permute.xlu1 %3231  ;;  %v3353_v16 = vsel %vm15624_vm3, %v15189_v50, %v15623_v58  ;;  %v15628_v58 = vrot.slane %v11516_v5, 4  ;;  %vm15634_vm3 = vmmov %vm15631_vm0 }
 0x33a   : > { %15622 = vst [vmem:[#allocation61_spill] sm:$0xff] %v11540_v46  ;;  %v15194_v55 = vrot.slane %v11540_v46, 4  ;;  %v11557_v63 = vpop.permute.xlu0 %3961  ;;  %v3045_v43 = vsel %vm15634_vm3, %v15633_v32, %v15632_v29  ;;  %v15644_v29 = vrot.slane %v11499_v24, 4 }
 0x33b   : > { %3949 = vrot.lane.b32.xlu1 %v11507_v8, %s10206_s12  ;;  %v4045_v50 = vsel %vm15629_vm6, %v3995_v48, %v15628_v58  ;;  %v15195_v11 = vrot.slane %v11557_v63, 4  ;;  %vm15640_vm6 = vmmov %vm15631_vm0 }
 0x33c   : > { %v3337_v59 = vsel %vm15631_vm0, %v15630_v6, %v15194_v55  ;;  %2979 = vrot.lane.b32.xlu0 %v11177_v35, %s10204_s10  ;;  %v11587_v6 = vsel %vm15638_vm1, %v11465_v54, %v3353_v16  ;;  %vm15641_vm0 = vmmov %vm15638_vm1 }
 0x33d   : > { %v11579_v48 = vpop.permute.xlu1 %2923  ;;  %v11583_v58 = vsel %vm15636_vm15, %v11493_v7, %v3337_v59  ;;  %15639 = vst [vmem:[#allocation64_spill] sm:$0xff] %v11587_v6  ;;  %v4061_v55 = vsel %vm15640_vm6, %v4004_v4, %v15195_v11  ;;  %v4046_v16 = vsel %vm15641_vm0, %v11368_v56, %v4045_v50  ;;  %vm15642_vm3 = vmmov %vm15641_vm0  ;;  %v15658_v6 = vrot.slane %v11378_v52, 4 }
 0x33e   : > { %15635 = vst [vmem:[#allocation62_spill] sm:$0xff] %v11579_v48  ;;  %15637 = vst [vmem:[#allocation63_spill] sm:$0xff] %v11583_v58  ;;  %v15200_v0 = vrot.slane %v11579_v48, 4  ;;  %v11597_v32 = vpop.permute.xlu0 %2602  ;;  %v4062_v59 = vsel %vm15642_vm3, %v11454_v3, %v4061_v55  ;;  %v3669_v55 = vrot.slane %v11293_v15, 4  ;;  %v15665_v58 = vrot.slane %v11339_v10, 4 }
 0x33f   : > { %2590 = vrot.lane.b32.xlu1 %v11507_v8, %s10206_s12  ;;  %vm15643_vm15 = vmmov %vm15641_vm0  ;;  %v9696_v11 = vcombine.low %v4046_v16, %v4062_v59  ;;  %v9697_v61 = vcombine.high %v4046_v16, %v4062_v59  ;;  %v9979_v59 = vld [vmem:[#allocation3 + $0xa8] ss:$76 sps:$4 sm:$0xff]  }
 0x340   : > { %v4030_v4 = vsel %vm15643_vm15, %v11327_v34, %v4029_v25  ;;  %vm15645_vm1 = vmmov %vm15640_vm6  ;;  %3967 = vrot.lane.b32.xlu0 %v11520_v1, %s10206_s12  ;;  %v11644_v25 = vld [vmem:[#allocation3 + $0xc4] sm:$0xff] }
 0x341   : > { %v3029_v35 = vsel %vm15645_vm1, %v15644_v29, %v15200_v0  ;;  %v11614_v46 = vpop.permute.xlu1 %2584  ;;  %vm15646_vm6 = vmmov %vm15641_vm0  ;;  %vm15647_vm0 = vcmask 1039360   ;;  %5956 = vmatprep.subr.bf16.mxu1 %v9697_v61  ;;  %v15203_v29 = vrot.slane %v11448_v60, 4  ;;  %v3687_v0 = vrot.slane %v11375_v33, 4 }
 0x342   : > { %v4014_v50 = vsel %vm15646_vm6, %v11286_v30, %v4013_v47  ;;  %v11620_v56 = vsel %vm15647_vm0, %v11499_v24, %v3029_v35  ;;  %vm15649_vm3 = vmmov %vm15647_vm0  ;;  %v11631_v16 = vpop.permute.xlu0 %2293  ;;  %5957 = vmatpush1.bf16.msra.mxu1 %v9696_v11  ;;  %v15210_v30 = vrot.slane %v11529_v44, 4  ;;  %v3696_v11 = vrot.slane %v11460_v39, 4 }
 0x343   : > { %15648 = vst [vmem:[#allocation65_spill] sm:$0xff] %v11620_v56  ;;  %v11624_v34 = vsel %vm15649_vm3, %v11475_v26, %v3045_v43  ;;  %v9681_v3 = vcombine.high %v4014_v50, %v4030_v4  ;;  %15651 = vst [vmem:[#allocation67_spill] sm:$0xff] %v11631_v16  ;;  %2281 = vrot.lane.b32.xlu1 %v11507_v8, %s10204_s10  ;;  %v3678_v43 = vrot.slane %v11333_v14, 4  ;;  %v11646_v8 = vld [vmem:[#allocation10 + $0x8] ss:$12 sps:$4 sm:$0xff]   ;;  %v3306_v24 = vrot.slane %v11311_v37, 4 }
 0x344   : > { %15650 = vst [vmem:[#allocation66_spill] sm:$0xff] %v11624_v34  ;;  %v9680_v47 = vcombine.low %v4014_v50, %v4030_v4  ;;  %2608 = vrot.lane.b32.xlu0 %v11520_v1, %s10206_s12  ;;  %15653 = vst [vmem:[#allocation69_spill] sm:$0xff] %v11646_v8  ;;  %v3737_v61 = vsel %vm15645_vm1, %v3687_v0, %v15210_v30  ;;  %v9977_v34 = vld [vmem:[#allocation3 + $0xa4] ss:$76 sps:$4 sm:$0xff]  }
 0x345   : > { %5958 = vmatprep.subr.bf16.mxu1 %v9681_v3  ;;  %v11640_v35 = vpop.permute.xlu1 %2275  ;;  %vm15654_vm15 = vmmov %vm15645_vm1  ;;  %v11680_v30 = vld [vmem:[#allocation3 + $0x2c] sm:$0xff] }
 0x346   : > { %15652 = vst [vmem:[#allocation68_spill] sm:$0xff] %v11640_v35  ;;  %v3721_v3 = vsel %vm15654_vm15, %v3678_v43, %v15203_v29  ;;  %v11652_v50 = vpop.permute.xlu0 %3653  ;;  %5959 = vmatpush1.bf16.msra.mxu1 %v9680_v47  ;;  %v15655_v29 = vrot.slane %v11614_v46, 4  ;;  %v15656_v47 = vrot.slane %v11313_v20, 4  ;;  %vm15657_vm6 = vmmov %vm15645_vm1  ;;  %vm15661_vm15 = vcmask 261120  }
 0x347   : > { %3271 = vrot.lane.b32.xlu1 %v11644_v25, %s10206_s12  ;;  %v15213_v48 = vrot.slane %v11652_v50, 4  ;;  %5987 = vmatprep.subr.bf16.mxu1 %v9979_v59  ;;  %vm15659_vm0 = vmmov %vm15645_vm1  ;;  %15662 = vst [vmem:[#allocation70_spill] sm:$0xff] %v11680_v30  ;;  %vm15663_vm1 = vcmask 1039360   ;;  %v15664_v43 = vrot.slane %v11597_v32, 4 }
 0x348   : > { %v2687_v4 = vsel %vm15657_vm6, %v15656_v47, %v15655_v29  ;;  %2299 = vrot.lane.b32.xlu0 %v11520_v1, %s10204_s10  ;;  %v3705_v0 = vsel %vm15659_vm0, %v3669_v55, %v15658_v6  ;;  %vm15660_vm3 = vmmov %vm15659_vm0  ;;  %v9983_v29 = vld [vmem:[#allocation3 + $0x10] ss:$76 sps:$4 sm:$0xff]   ;;  %v3722_v47 = vsel %vm15663_vm1, %v11333_v14, %v3721_v3 }
 0x349   : > { %v11670_v56 = vpop.permute.xlu1 %3637  ;;  %v3753_v59 = vsel %vm15660_vm3, %v3696_v11, %v15213_v48  ;;  %9712 = vmatmul.mubr.msk.bf16.vlgmr.msra.gmra.mxu1 %vm15661_vm15, %v11646_v8  ;;  %vm15666_vm6 = vmmov %vm15659_vm0  ;;  %v11698_v3 = vld [vmem:[#allocation3 + $0x110] sm:$0xff]  ;;  %vm15669_vm15 = vcmask 1031168  }
 0x34a   : > { %v2703_v6 = vsel %vm15666_vm6, %v15665_v58, %v15664_v43  ;;  %v11690_v55 = vpop.permute.xlu0 %3655  ;;  %5988 = vmatpush1.bf16.msra.mxu1 %v9977_v34  ;;  %vm15667_vm0 = vmmov %vm15663_vm1  ;;  %v2688_v58 = vsel %vm15669_vm15, %v11313_v20, %v2687_v4  ;;  %6019 = vmatprep.mubr.bf16.mxu1 %v11345_v17  ;;  %v15670_v34 = vrot.slane %v11473_v51, 4  ;;  %v15671_v43 = vrot.slane %v11262_v40, 4 }
 0x34b   : > { %3235 = vrot.lane.b32.xlu1 %v11680_v30, %s10206_s12  ;;  %v3738_v11 = vsel %vm15667_vm0, %v11375_v33, %v3737_v61  ;;  %vm15668_vm3 = vmmov %vm15667_vm0  ;;  %5989 = vmatprep.subr.bf16.mxu1 %v9983_v29  ;;  %v9981_v61 = vld [vmem:[#allocation3 + $0xc] ss:$76 sps:$4 sm:$0xff]   ;;  %v3297_v29 = vrot.slane %v11273_v36, 4  ;;  %v15225_v51 = vrot.slane %v11329_v57, 4 }
 0x34c   : > { %v3754_v14 = vsel %vm15668_vm3, %v11460_v39, %v3753_v59  ;;  %vm15672_vm1 = vmmov %vm15666_vm6  ;;  %3289 = vrot.lane.b32.xlu0 %v11698_v3, %s10206_s12 }
 0x34d   : > { %v9664_v48 = vcombine.low %v3738_v11, %v3754_v14  ;;  %v9665_v1 = vcombine.high %v3738_v11, %v3754_v14  ;;  %v2655_v30 = vsel %vm15672_vm1, %v15671_v43, %v15670_v34  ;;  %v11711_v39 = vpop.permute.xlu1 %3265  ;;  %vm15673_vm6 = vmmov %vm15667_vm0  ;;  %v15675_v11 = vrot.slane %v11414_v2, 4 }
 0x34e   : > { %v3706_v59 = vsel %vm15673_vm6, %v11293_v15, %v3705_v0  ;;  %vm15674_vm0 = vmmov %vm15669_vm15  ;;  %v15676_v14 = vrot.slane %v11288_v41, 4  ;;  %v11724_v33 = vpop.permute.xlu0 %3283  ;;  %5990 = vmatpush1.bf16.msra.mxu1 %v9981_v61  ;;  %v11726_v15 = vld [vmem:[#allocation3 + $0x30] sm:$0xff]  ;;  %v15679_v61 = vrot.slane %v11640_v35, 4  ;;  %v15680_v43 = vrot.slane %v11321_v27, 4 }
 0x34f   : > { %5917 = vmatprep.subr.bf16.mxu0 %v9665_v1  ;;  %v9649_v20 = vcombine.high %v3706_v59, %v3722_v47  ;;  %v2704_v4 = vsel %vm15674_vm0, %v11339_v10, %v2703_v6  ;;  %vm15677_vm3 = vmmov %vm15672_vm1  ;;  %v2989_v10 = vrot.slane %v11279_v38, 4  ;;  %v3324_v6 = vrot.slane %v11426_v42, 4  ;;  %3915 = vrot.lane.b32.xlu1 %v11726_v15, %s10206_s12 }
 0x350   : > { %v2671_v34 = vsel %vm15677_vm3, %v15676_v14, %v15675_v11  ;;  %5918 = vmatpush2.bf16.msra.mxu0 %v9664_v48  ;;  %v9507_v0 = vcombine.high %v2688_v58, %v2704_v4  ;;  %v11733_v11 = vld [vmem:[#allocation3 + $0x7c] sm:$0xff]  ;;  %vm15678_vm15 = vmmov %vm15674_vm0  ;;  %v2378_v1 = vsel %vm15672_vm1, %v15680_v43, %v15679_v61  ;;  %v9648_v26 = vcombine.low %v3706_v59, %v3722_v47  ;;  %v11750_v48 = vld [vmem:[#allocation3 + $0xa4] ss:$76 sps:$4 sm:$0xff]  }
 0x351   : > { %5919 = vmatprep.subr.bf16.mxu0 %v9649_v20  ;;  %v2656_v14 = vsel %vm15678_vm15, %v11262_v40, %v2655_v30  ;;  %v9506_v17 = vcombine.low %v2688_v58, %v2704_v4  ;;  %3933 = vrot.lane.b32.xlu0 %v11733_v11, %s10206_s12  ;;  %v11745_v20 = vpop.permute.xlu1 %2957  ;;  %v3315_v40 = vrot.slane %v11354_v19, 4  ;;  %vm15681_vm6 = vmmov %vm15674_vm0  ;;  %v15682_v59 = vrot.slane %v11631_v16, 4  ;;  %v11778_v47 = vld [vmem:[#allocation3 + $0xa0] ss:$76 sps:$4 sm:$0xff]   ;;  %v11822_v16 = vld [vmem:[#allocation3 + $0x8] ss:$76 sps:$4 sm:$0xff]  }
 0x352   : > { %5991 = vmatprep.subr.bf16.mxu1 %v9507_v0  ;;  %v2672_v35 = vsel %vm15681_vm6, %v11288_v41, %v2671_v34  ;;  %v15683_v4 = vrot.slane %v11347_v18, 4  ;;  %vm15684_vm0 = vmmov %vm15672_vm1  ;;  %v11761_v0 = vpop.permute.xlu0 %2975  ;;  %v15222_v30 = vrot.slane %v11301_v12, 4  ;;  %v15685_v41 = vrot.slane %v11356_v23, 4 }
 0x353   : > { %5992 = vmatpush1.bf16.msra.mxu1 %v9506_v17  ;;  %v9491_v61 = vcombine.high %v2656_v14, %v2672_v35  ;;  %vm15686_vm3 = vmmov %vm15684_vm0  ;;  %2556 = vrot.lane.b32.xlu1 %v11726_v15, %s10206_s12  ;;  %vm15687_vm15 = vcmask 1039360   ;;  %v15689_v17 = vrot.slane %v11269_v28, 4  ;;  %v9490_v58 = vcombine.low %v2656_v14, %v2672_v35 }
 0x354   : > { %v2394_v43 = vsel %vm15684_vm0, %v15683_v4, %v15682_v59  ;;  %5920 = vmatpush2.bf16.msra.mxu0 %v9648_v26  ;;  %v3381_v34 = vsel %vm15686_vm3, %v3324_v6, %v15685_v41  ;;  %v2379_v59 = vsel %vm15687_vm15, %v11321_v27, %v2378_v1  ;;  %v15688_v26 = vrot.slane %v11480_v49, 4  ;;  %vm15690_vm1 = vmmov %vm15684_vm0 }
 0x355   : > { %5921 = vmatprep.subr.bf16.mxu0 %v11750_v48  ;;  %5993 = vmatprep.subr.bf16.mxu1 %v9491_v61  ;;  %v11782_v6 = vpop.permute.xlu1 %3945  ;;  %vm15691_vm6 = vmmov %vm15684_vm0  ;;  %v2998_v27 = vrot.slane %v11319_v21, 4  ;;  %v3365_v1 = vsel %vm15684_vm0, %v3315_v40, %v15225_v51  ;;  %v15694_v61 = vrot.slane %v11433_v62, 4  ;;  %v15697_v51 = vrot.slane %v11275_v9, 4 }
 0x356   : > { %v2346_v4 = vsel %vm15690_vm1, %v15689_v17, %v15688_v26  ;;  %2574 = vrot.lane.b32.xlu0 %v11733_v11, %s10206_s12  ;;  %v3349_v41 = vsel %vm15691_vm6, %v3306_v24, %v15222_v30  ;;  %v11791_v26 = vld [vmem:[#allocation3 + $0xc] ss:$76 sps:$4 sm:$0xff]   ;;  %vm15692_vm3 = vmmov %vm15687_vm15  ;;  %vm15693_vm15 = vcmask 1031168   ;;  %v15695_v17 = vrot.slane %v11295_v22, 4  ;;  %v11803_v49 = vpop.permute.xlu0 %3963 }
 0x357   : > { %v2395_v35 = vsel %vm15692_vm3, %v11347_v18, %v2394_v43  ;;  %v3382_v14 = vsel %vm15693_vm15, %v11426_v42, %v3381_v34  ;;  %vm15696_vm1 = vmmov %vm15684_vm0  ;;  %v3016_v30 = vrot.slane %v11444_v45, 4  ;;  %5994 = vmatpush1.bf16.msra.mxu1 %v9490_v58  ;;  %v15699_v42 = vrot.slane %v11281_v31, 4  ;;  %2247 = vrot.lane.b32.xlu1 %v11726_v15, %s10204_s10  ;;  %v15700_v58 = vld [vmem:[#allocation40_spill] sm:$0xff] }
 0x358   : > { %v2362_v24 = vsel %vm15696_vm1, %v15695_v17, %v15694_v61  ;;  %5922 = vmatpush2.bf16.msra.mxu0 %v11778_v47  ;;  %v9475_v40 = vcombine.high %v2379_v59, %v2395_v35  ;;  %vm15698_vm6 = vmmov %vm15684_vm0  ;;  %v3007_v34 = vrot.slane %v11362_v13, 4  ;;  %v2347_v61 = vsel %vm15692_vm3, %v11269_v28, %v2346_v4  ;;  %v15703_v28 = vld [vmem:[#allocation41_spill] sm:$0xff] }
 0x359   : > { %v3333_v18 = vsel %vm15698_vm6, %v3297_v29, %v15697_v51  ;;  %v3025_v43 = vsel %vm15684_vm0, %v2989_v10, %v15699_v42  ;;  %5923 = vmatprep.subr.bf16.mxu0 %v11791_v26  ;;  %v3366_v62 = vsel %vm15693_vm15, %v11354_v19, %v3365_v1  ;;  %v15701_v51 = vld [vmem:[#allocation43_spill] sm:$0xff]  ;;  %v9474_v10 = vcombine.low %v2379_v59, %v2395_v35  ;;  %v11826_v42 = vpop.permute.xlu1 %2586  ;;  %vm15702_vm1 = vmmov %vm15693_vm15 }
 0x35a   : > { %5995 = vmatprep.subr.bf16.mxu1 %v9475_v40  ;;  %2265 = vrot.lane.b32.xlu0 %v11733_v11, %s10204_s10  ;;  %v3350_v31 = vsel %vm15702_vm1, %v11311_v37, %v3349_v41  ;;  %v15243_v4 = vrot.slane %v15703_v28, 4  ;;  %v9601_v17 = vcombine.high %v3366_v62, %v3382_v14  ;;  %vm15704_vm6 = vmmov %vm15692_vm3  ;;  %v15705_v1 = vrot.slane %v15700_v58, 4  ;;  %v15708_v40 = vld [vmem:[#allocation47_spill] sm:$0xff]  ;;  %v11840_v2 = vpop.permute.xlu0 %2604 }
 0x35b   : > { %v2363_v19 = vsel %vm15704_vm6, %v11295_v22, %v2362_v24  ;;  %v15706_v59 = vrot.slane %v15701_v51, 4  ;;  %vm15707_vm3 = vmmov %vm15684_vm0  ;;  %v15241_v8 = vrot.slane %v15708_v40, 4  ;;  %5996 = vmatpush1.bf16.msra.mxu1 %v9474_v10  ;;  %v15236_v24 = vrot.slane %v11690_v55, 4  ;;  %3607 = vrot.lane.b32.xlu1 %v11726_v15, %s10204_s10 }
 0x35c   : > { %v3041_v29 = vsel %vm15684_vm0, %v2998_v27, %v15705_v1  ;;  %5924 = vmatpush2.bf16.msra.mxu0 %v11822_v16  ;;  %v9459_v37 = vcombine.high %v2347_v61, %v2363_v19  ;;  %vm15709_vm15 = vmmov %vm15702_vm1  ;;  %v15237_v27 = vrot.slane %v11670_v56, 4  ;;  %v9600_v10 = vcombine.low %v3366_v62, %v3382_v14 }
 0x35d   : > { %v3073_v35 = vsel %vm15707_vm3, %v3016_v30, %v15706_v59  ;;  %v3334_v41 = vsel %vm15709_vm15, %v11273_v36, %v3333_v18  ;;  %vm15710_vm1 = vmmov %vm15684_vm0  ;;  %5925 = vmatprep.subr.bf16.mxu0 %v9601_v17  ;;  %v11854_v30 = vsel %vm15704_vm6, %v11279_v38, %v3025_v43  ;;  %v9458_v1 = vcombine.low %v2347_v61, %v2363_v19  ;;  %v11858_v36 = vpop.permute.xlu1 %2277 }
 0x35e   : > { %v3057_v22 = vsel %vm15710_vm1, %v3007_v34, %v15243_v4  ;;  %5997 = vmatprep.subr.bf16.mxu1 %v9459_v37  ;;  %3625 = vrot.lane.b32.xlu0 %v11733_v11, %s10204_s10  ;;  %vm15711_vm0 = vmmov %vm15704_vm6  ;;  %v15713_v34 = vld [vmem:[#allocation52_spill] sm:$0xff]  ;;  %v9585_v59 = vcombine.high %v3334_v41, %v3350_v31  ;;  %v9584_v38 = vcombine.low %v3334_v41, %v3350_v31  ;;  %v15715_v11 = vrot.slane %v11448_v60, 4  ;;  %v11874_v43 = vpop.permute.xlu0 %2295 }
 0x35f   : > { %v11862_v18 = vsel %vm15711_vm0, %v11319_v21, %v3041_v29  ;;  %vm15712_vm3 = vmmov %vm15711_vm0  ;;  %v15242_v17 = vrot.slane %v15713_v34, 4  ;;  %5998 = vmatpush1.bf16.msra.mxu1 %v9458_v1  ;;  %v11876_v21 = vld [vmem:[#allocation3 + $0x38] sm:$0xff]  ;;  %v15240_v29 = vrot.slane %v11782_v6, 4  ;;  %v15239_v19 = vrot.slane %v11803_v49, 4 }
 0x360   : > { %v3074_v15 = vsel %vm15712_vm3, %v11444_v45, %v3073_v35  ;;  %vm15714_vm15 = vmmov %vm15711_vm0  ;;  %v3723_v14 = vsel %vm15710_vm1, %v15715_v11, %v15241_v8  ;;  %5926 = vmatpush2.bf16.msra.mxu0 %v9600_v10  ;;  %v15716_v45 = vrot.slane %v11529_v44, 4  ;;  %3609 = vrot.lane.b32.xlu1 %v11876_v21, %s10204_s10  ;;  %v11892_v35 = vld [vmem:[#allocation3 + $0x84] sm:$0xff]  ;;  %v9552_v37 = vcombine.low %v11854_v30, %v11862_v18 }
 0x361   : > { %v3058_v62 = vsel %vm15714_vm15, %v11362_v13, %v3057_v22  ;;  %vm15717_vm6 = vmmov %vm15710_vm1  ;;  %v15718_v13 = vrot.slane %v11652_v50, 4  ;;  %5927 = vmatprep.subr.bf16.mxu0 %v9585_v59  ;;  %5999 = vmatprep.subr.bf16.mxu1 %v11750_v48  ;;  %v11899_v22 = vpop.permute.xlu1 %3267  ;;  %v9553_v10 = vcombine.high %v11854_v30, %v11862_v18  ;;  %v15721_v1 = vrot.slane %v11378_v52, 4 }
 0x362   : > { %v3739_v31 = vsel %vm15717_vm6, %v15716_v45, %v15237_v27  ;;  %vm15719_vm0 = vmmov %vm15710_vm1  ;;  %v9568_v41 = vcombine.low %v3058_v62, %v3074_v15  ;;  %3627 = vrot.lane.b32.xlu0 %v11892_v35, %s10204_s10  ;;  %15720 = vst [vmem:[#allocation40_spill] sm:$0xff] %v11899_v22  ;;  %v3317_v11 = vrot.slane %v11711_v39, 4  ;;  %v15238_v45 = vrot.slane %v11899_v22, 4  ;;  %v11914_v27 = vld [vmem:[#allocation3 + $0xc8] sm:$0xff] }
 0x363   : > { %v3755_v61 = vsel %vm15719_vm0, %v15718_v13, %v15236_v24  ;;  %vm15722_vm3 = vmmov %vm15719_vm0  ;;  %v9569_v13 = vcombine.high %v3058_v62, %v3074_v15  ;;  %v3326_v48 = vrot.slane %v11724_v33, 4  ;;  %v11911_v24 = vpop.permute.xlu0 %3285  ;;  %6000 = vmatpush1.bf16.msra.mxu1 %v11778_v47  ;;  %v3740_v30 = vsel %vm15714_vm15, %v11529_v44, %v3739_v31 }
 0x364   : > { %v3707_v59 = vsel %vm15722_vm3, %v15721_v1, %v15242_v17  ;;  %15723 = vst [vmem:[#allocation43_spill] sm:$0xff] %v11911_v24  ;;  %5928 = vmatpush2.bf16.msra.mxu0 %v9584_v38  ;;  %vm15724_vm1 = vmmov %vm15714_vm15  ;;  %v15726_v15 = vrot.slane %v11516_v5, 4  ;;  %v15727_v47 = vrot.slane %v11557_v63, 4  ;;  %3951 = vrot.lane.b32.xlu1 %v11914_v27, %s10206_s12  ;;  %v15249_v17 = vrot.slane %v11761_v0, 4 }
 0x365   : > { %v3756_v18 = vsel %vm15724_vm1, %v11652_v50, %v3755_v61  ;;  %vm15725_vm6 = vmmov %vm15724_vm1  ;;  %5929 = vmatprep.subr.bf16.mxu0 %v9569_v13  ;;  %v11940_v50 = vld [vmem:[#allocation3 + $0x114] sm:$0xff]  ;;  %6001 = vmatprep.subr.bf16.mxu1 %v11791_v26  ;;  %v15250_v13 = vrot.slane %v11745_v20, 4  ;;  %v15779_v22 = vrot.slane %v15703_v28, 4 }
 0x366   : > { %v3724_v1 = vsel %vm15725_vm6, %v11448_v60, %v3723_v14  ;;  %v4047_v62 = vsel %vm15719_vm0, %v15726_v15, %v15240_v29  ;;  %vm15728_vm3 = vmmov %vm15719_vm0  ;;  %v15244_v60 = vrot.slane %v11911_v24, 4  ;;  %v15730_v14 = vld [vmem:[#allocation51_spill] sm:$0xff]  ;;  %v15731_v61 = vld [vmem:[#allocation57_spill] sm:$0xff]  ;;  %3969 = vrot.lane.b32.xlu0 %v11940_v50, %s10206_s12  ;;  %vm15733_vm6 = vcmask 1031168  }
 0x367   : > { %v4063_v38 = vsel %vm15728_vm3, %v15727_v47, %v15239_v19  ;;  %vm15729_vm15 = vmmov %vm15719_vm0  ;;  %v15247_v31 = vrot.slane %v15730_v14, 4  ;;  %v15248_v15 = vrot.slane %v15731_v61, 4  ;;  %v11947_v47 = vpop.permute.xlu1 %2959  ;;  %v9667_v8 = vcombine.high %v3740_v30, %v3756_v18  ;;  %v11963_v4 = vpop.permute.xlu0 %2977  ;;  %6002 = vmatpush1.bf16.msra.mxu1 %v11822_v16 }
 0x368   : > { %v3369_v44 = vsel %vm15729_vm15, %v3317_v11, %v15238_v45  ;;  %15732 = vst [vmem:[#allocation41_spill] sm:$0xff] %v11947_v47  ;;  %v3708_v45 = vsel %vm15724_vm1, %v11378_v52, %v3707_v59  ;;  %v3385_v26 = vsel %vm15719_vm0, %v3326_v48, %v15244_v60  ;;  %v15245_v29 = vrot.slane %v11947_v47, 4  ;;  %15734 = vst [vmem:[#allocation47_spill] sm:$0xff] %v11963_v4  ;;  %v15775_v47 = vld [vmem:[#allocation48_spill] sm:$0xff] }
 0x369   : > { %v11953_v19 = vsel %vm15733_vm6, %v11711_v39, %v3369_v44  ;;  %5930 = vmatpush2.bf16.msra.mxu0 %v9568_v41  ;;  %vm15735_vm3 = vmmov %vm15733_vm6  ;;  %v15246_v41 = vrot.slane %v11963_v4, 4  ;;  %2963 = vrot.lane.b32.xlu1 %v11644_v25, %s10204_s10  ;;  %v15740_v16 = vrot.slane %v11370_v53, 4  ;;  %v15251_v39 = vrot.slane %v11840_v2, 4 }
 0x36a   : > { %v4048_v52 = vsel %vm15735_vm3, %v11516_v5, %v4047_v62  ;;  %vm15736_vm15 = vmmov %vm15735_vm3  ;;  %5931 = vmatprep.subr.bf16.mxu0 %v9553_v10  ;;  %6003 = vmatprep.subr.bf16.mxu1 %v9667_v8  ;;  %v12004_v5 = vld [vmem:[#allocation10] ss:$12 sps:$4 sm:$0xff]   ;;  %v15744_v8 = vld [vmem:[#allocation44_spill] sm:$0xff]  ;;  %v15776_v4 = vrot.slane %v15775_v47, 4 }
 0x36b   : > { %v4064_v59 = vsel %vm15736_vm15, %v11557_v63, %v4063_v38  ;;  %vm15737_vm1 = vmmov %vm15735_vm3  ;;  %v4015_v62 = vsel %vm15719_vm0, %v15740_v16, %v15248_v15  ;;  %v9666_v38 = vcombine.low %v3740_v30, %v3756_v18  ;;  %2981 = vrot.lane.b32.xlu0 %v11698_v3, %s10204_s10  ;;  %v11993_v10 = vpop.permute.xlu1 %3911  ;;  %vm15741_vm3 = vcmask 1039360   ;;  %v12011_v18 = vpop.permute.xlu0 %3929 }
 0x36c   : > { %v11972_v44 = vsel %vm15737_vm1, %v11724_v33, %v3385_v26  ;;  %vm15739_vm6 = vmmov %vm15719_vm0  ;;  %v15745_v30 = vrot.slane %v15744_v8, 4  ;;  %v15761_v15 = vmov 0  }
 0x36d   : > { %15738 = vst [vmem:[#allocation52_spill] sm:$0xff] %v11972_v44  ;;  %v3061_v60 = vsel %vm15739_vm6, %v15250_v13, %v15245_v29  ;;  %vm15743_vm15 = vmmov %vm15719_vm0  ;;  %v9651_v29 = vcombine.high %v3708_v45, %v3724_v1  ;;  %5932 = vmatpush2.bf16.msra.mxu0 %v9552_v37  ;;  %6004 = vmatpush2.bf16.msra.mxu1 %v9666_v38  ;;  %v12069_v37 = vld [vmem:[#allocation3 + $0x14] ss:$76 sps:$4 sm:$0xff]  }
 0x36e   : > { %v11997_v25 = vsel %vm15741_vm3, %v11745_v20, %v3061_v60  ;;  %v3077_v26 = vsel %vm15743_vm15, %v15249_v17, %v15246_v41  ;;  %vm15746_vm1 = vmmov %vm15719_vm0  ;;  %v9699_v60 = vcombine.high %v4048_v52, %v4064_v59  ;;  %2592 = vrot.lane.b32.xlu1 %v11914_v27, %s10206_s12  ;;  %v12019_v41 = vld [vmem:[#allocation3 + $0x80] sm:$0xff]  ;;  %vm15749_vm0 = vcmask 1031168  }
 0x36f   : > { %15742 = vst [vmem:[#allocation51_spill] sm:$0xff] %v11997_v25  ;;  %v4031_v3 = vsel %vm15746_vm1, %v15745_v30, %v15247_v31  ;;  %vm15747_vm6 = vmmov %vm15741_vm3  ;;  %6005 = vmatprep.subr.bf16.mxu1 %v9651_v29  ;;  %v4016_v63 = vsel %vm15749_vm0, %v11370_v53, %v4015_v62  ;;  %v9650_v38 = vcombine.low %v3708_v45, %v3724_v1  ;;  %v12032_v29 = vld [vmem:[#allocation3 + $0xac] ss:$76 sps:$4 sm:$0xff]   ;;  %v12036_v62 = vpop.permute.xlu0 %2570  ;;  %v15751_v45 = vrot.slane %v11493_v7, 4  ;;  %v15762_v17 = vld [vmem:[#allocation59_spill] sm:$0xff] }
 0x370   : > { %v12015_v16 = vsel %vm15747_vm6, %v11761_v0, %v3077_v26  ;;  %v9698_v31 = vcombine.low %v4048_v52, %v4064_v59  ;;  %6042 = vmatprep.subr.bf16.mxu0 %v9699_v60  ;;  %3255 = vrot.lane.b32.xlu0 %v12019_v41, %s10206_s12  ;;  %v12029_v26 = vpop.permute.xlu1 %2552  ;;  %vm15750_vm3 = vmmov %vm15749_vm0  ;;  %v15752_v1 = vrot.slane %v11275_v9, 4  ;;  %v15754_v59 = vrot.slane %v11329_v57, 4  ;;  %v2859_v7 = vld [vmem:[#allocation3 + $0x78] sm:$0xff]  ;;  %v12132_v25 = vld [vmem:[#allocation3 + $0xd0] sm:$0xff] }
 0x371   : > { %15748 = vst [vmem:[#allocation57_spill] sm:$0xff] %v12015_v16  ;;  %5934 = vmatmul.mubr.bf16.vlgmr.msra.gmra.mxu0 %v12004_v5  ;;  %v4032_v53 = vsel %vm15750_vm3, %v15744_v8, %v4031_v3  ;;  %6006 = vmatpush2.bf16.msra.mxu1 %v9650_v38  ;;  %vm15753_vm15 = vmmov %vm15746_vm1  ;;  %v15755_v8 = vrot.slane %v11356_v23, 4  ;;  %v12058_v38 = vld [vmem:[#allocation3 + $0xa8] ss:$76 sps:$4 sm:$0xff]   ;;  %v15266_v13 = vrot.slane %v15762_v17, 4 }
 0x372   : > { %6043 = vmatpush1.bf16.msra.mxu0 %v9698_v31  ;;  %v9683_v30 = vcombine.high %v4016_v63, %v4032_v53  ;;  %v3335_v52 = vsel %vm15753_vm15, %v15752_v1, %v15751_v45  ;;  %v3367_v60 = vsel %vm15746_vm1, %v15754_v59, %v3317_v11  ;;  %vm15756_vm6 = vmmov %vm15746_vm1  ;;  %2283 = vrot.lane.b32.xlu1 %v11914_v27, %s10204_s10  ;;  %v15252_v31 = vrot.slane %v11826_v42, 4  ;;  %v15760_v59 = vld [vmem:[#allocation53_spill] sm:$0xff] }
 0x373   : > { %v3383_v3 = vsel %vm15756_vm6, %v15755_v8, %v3326_v48  ;;  %6007 = vmatprep.subr.bf16.mxu1 %v12032_v29  ;;  %v9682_v45 = vcombine.low %v4016_v63, %v4032_v53  ;;  %v15757_v11 = vrot.slane %v11465_v54, 4  ;;  %v15758_v48 = vrot.slane %v11301_v12, 4  ;;  %vm15759_vm0 = vmmov %vm15746_vm1  ;;  %6062 = vmatprep.mubr.bf16.mxu0 %v15761_v15  ;;  %v12073_v63 = vpop.permute.xlu0 %2261  ;;  %v10002_v44 = vld [vmem:[#allocation3 + $0x14] ss:$76 sps:$4 sm:$0xff]  }
 0x374   : > { %6044 = vmatprep.subr.bf16.mxu0 %v9683_v30  ;;  %2945 = vrot.lane.b32.xlu0 %v2859_v7, %s10204_s10  ;;  %v12061_v33 = vpop.permute.xlu1 %2243  ;;  %v15259_v8 = vrot.slane %v15760_v59, 4  ;;  %v10001_v30 = vld [vmem:[#allocation3 + $0xb0] ss:$76 sps:$4 sm:$0xff]   ;;  %v3368_v54 = vsel %vm15750_vm3, %v11329_v57, %v3367_v60  ;;  %vm15763_vm15 = vmmov %vm15750_vm3  ;;  %v15767_v57 = vrot.slane %v11597_v32, 4 }
 0x375   : > { %v3351_v1 = vsel %vm15759_vm0, %v15758_v48, %v15757_v11  ;;  %6008 = vmatpush2.bf16.msra.mxu1 %v12058_v38  ;;  %v3384_v53 = vsel %vm15763_vm15, %v11356_v23, %v3383_v3  ;;  %vm15764_vm1 = vmmov %vm15750_vm3  ;;  %v12097_v60 = vld [vmem:[#allocation3 + $0x10] ss:$76 sps:$4 sm:$0xff]  }
 0x376   : > { %6045 = vmatpush1.bf16.msra.mxu0 %v9682_v45  ;;  %v12082_v7 = vsel %vm15764_vm1, %v11275_v9, %v3335_v52  ;;  %3643 = vrot.lane.b32.xlu1 %v11914_v27, %s10204_s10  ;;  %v15765_v45 = vrot.slane %v11614_v46, 4  ;;  %vm15766_vm6 = vmmov %vm15759_vm0  ;;  %v2705_v23 = vsel %vm15759_vm0, %v15767_v57, %v15251_v39  ;;  %v9999_v9 = vld [vmem:[#allocation3 + $0xac] ss:$76 sps:$4 sm:$0xff]   ;;  %v15770_v3 = vld [vmem:[#allocation45_spill] sm:$0xff]  ;;  %v15781_v57 = vrot.slane %v15701_v51, 4 }
 0x377   : > { %6009 = vmatprep.subr.bf16.mxu1 %v12069_v37  ;;  %6073 = vmatprep.subr.bf16.mxu0 %v10001_v30  ;;  %vm15769_vm3 = vmmov %vm15764_vm1  ;;  %v15771_v48 = vrot.slane %v15770_v3, 4  ;;  %v15773_v39 = vld [vmem:[#allocation69_spill] sm:$0xff]  ;;  %vm15774_vm1 = vcmask 261120   ;;  %v9603_v30 = vcombine.high %v3368_v54, %v3384_v53  ;;  %v12129_v16 = vpop.permute.xlu0 %3621 }
 0x378   : > { %v2689_v11 = vsel %vm15766_vm6, %v15765_v45, %v15252_v31  ;;  %2610 = vrot.lane.b32.xlu0 %v11940_v50, %s10206_s12  ;;  %v12101_v27 = vpop.permute.xlu1 %3603  ;;  %v3352_v52 = vsel %vm15769_vm3, %v11301_v12, %v3351_v1  ;;  %vm15772_vm15 = vmmov %vm15759_vm0  ;;  %v15778_v1 = vrot.slane %v11745_v20, 4  ;;  %15783 = vst [vmem:[#allocation53_spill] sm:$0xff] %v12129_v16 }
 0x379   : > { %15768 = vst [vmem:[#allocation44_spill] sm:$0xff] %v12101_v27  ;;  %v2673_v45 = vsel %vm15772_vm15, %v15771_v48, %v15259_v8  ;;  %9713 = vmatmul.mubr.msk.bf16.vlgmr.msra.gmra.mxu0 %vm15774_vm1, %v15773_v39  ;;  %v9586_v31 = vcombine.low %v12082_v7, %v3352_v52  ;;  %vm15777_vm6 = vmmov %vm15759_vm0  ;;  %v15780_v8 = vrot.slane %v11761_v0, 4  ;;  %6010 = vmatpush2.bf16.msra.mxu1 %v12097_v60  ;;  %v15784_v20 = vrot.slane %v12101_v27, 4 }
 0x37a   : > { %v2657_v12 = vsel %vm15777_vm6, %v15776_v4, %v15266_v13  ;;  %v3059_v48 = vsel %vm15759_vm0, %v15779_v22, %v15778_v1  ;;  %vm15782_vm3 = vmmov %vm15759_vm0  ;;  %6074 = vmatpush1.bf16.msra.mxu0 %v9999_v9  ;;  %v10004_v4 = vld [vmem:[#allocation3 + $0x18] ss:$76 sps:$4 sm:$0xff]   ;;  %v15785_v13 = vrot.slane %v15713_v34, 4  ;;  %v15271_v0 = vrot.slane %v12129_v16, 4  ;;  %3645 = vrot.lane.b32.xlu1 %v12132_v25, %s10204_s10 }
 0x37b   : > { %v3075_v24 = vsel %vm15782_vm3, %v15781_v57, %v15780_v8  ;;  %vm15786_vm15 = vmmov %vm15759_vm0  ;;  %6011 = vmatprep.subr.bf16.mxu1 %v9603_v30  ;;  %vm15787_vm1 = vcmask 1031168   ;;  %v15272_v57 = vrot.slane %v11858_v36, 4  ;;  %v9602_v27 = vcombine.low %v3368_v54, %v3384_v53  ;;  %6075 = vmatprep.subr.bf16.mxu0 %v10004_v4  ;;  %v15797_v1 = vld [vmem:[#allocation42_spill] sm:$0xff] }
 0x37c   : > { %v3709_v22 = vsel %vm15786_vm15, %v15785_v13, %v15784_v20  ;;  %v2690_v8 = vsel %vm15787_vm1, %v11614_v46, %v2689_v11  ;;  %vm15788_vm6 = vmmov %vm15787_vm1  ;;  %2947 = vrot.lane.b32.xlu0 %v12019_v41, %s10204_s10  ;;  %v12150_v13 = vpop.permute.xlu1 %3605  ;;  %vm15789_vm0 = vcmask 1039360   ;;  %v15790_v46 = vld [vmem:[#allocation55_spill] sm:$0xff]  ;;  %v15794_v54 = vrot.slane %v15708_v40, 4  ;;  %6105 = vmatprep.mubr.bf16.mxu0 %v15797_v1 }
 0x37d   : > { %v2706_v9 = vsel %vm15788_vm6, %v11597_v32, %v2705_v23  ;;  %v12154_v30 = vsel %vm15789_vm0, %v15713_v34, %v3709_v22  ;;  %v15791_v11 = vrot.slane %v15790_v46, 4  ;;  %v15792_v20 = vld [vmem:[#allocation39_spill] sm:$0xff]  ;;  %vm15795_vm15 = vmmov %vm15782_vm3  ;;  %v9587_v41 = vcombine.high %v12082_v7, %v3352_v52  ;;  %v12170_v34 = vpop.permute.xlu0 %3623  ;;  %6012 = vmatpush2.bf16.msra.mxu1 %v9602_v27  ;;  %v3177_v22 = vld [vmem:[#allocation3 + $0xcc] sm:$0xff] }
 0x37e   : > { %v15793_v32 = vrot.slane %v15792_v20, 4  ;;  %v3725_v53 = vsel %vm15795_vm15, %v15794_v54, %v15271_v0  ;;  %vm15796_vm1 = vmmov %vm15789_vm0  ;;  %6076 = vmatpush1.bf16.msra.mxu0 %v10002_v44  ;;  %v9509_v46 = vcombine.high %v2690_v8, %v2706_v9  ;;  %v15799_v54 = vld [vmem:[#allocation60_spill] sm:$0xff]  ;;  %3273 = vrot.lane.b32.xlu1 %v3177_v22, %s10206_s12  ;;  %v15803_v52 = vrot.slane %v11874_v43, 4 }
 0x37f   : > { %v3060_v4 = vsel %vm15796_vm1, %v15703_v28, %v3059_v48  ;;  %vm15798_vm6 = vmmov %vm15789_vm0  ;;  %6013 = vmatprep.subr.bf16.mxu1 %v9587_v41  ;;  %v15804_v48 = vld [vmem:[#allocation67_spill] sm:$0xff]  ;;  %v9508_v41 = vcombine.low %v2690_v8, %v2706_v9  ;;  %v15810_v44 = vrot.slane %v15700_v58, 4  ;;  %v3159_v8 = vld [vmem:[#allocation3 + $0x34] sm:$0xff] }
 0x380   : > { %v3027_v23 = vsel %vm15782_vm3, %v15793_v32, %v15791_v11  ;;  %v3076_v11 = vsel %vm15798_vm6, %v15701_v51, %v3075_v24  ;;  %v12176_v32 = vsel %vm15789_vm0, %v15708_v40, %v3725_v53  ;;  %vm15800_vm3 = vcmask 1031168   ;;  %v15801_v51 = vld [vmem:[#allocation68_spill] sm:$0xff]  ;;  %vm15806_vm1 = vmmov %vm15795_vm15  ;;  %6077 = vmatprep.subr.bf16.mxu0 %v9509_v46  ;;  %2301 = vrot.lane.b32.xlu0 %v11940_v50, %s10204_s10 }
 0x381   : > { %v2658_v28 = vsel %vm15800_vm3, %v15775_v47, %v2657_v12  ;;  %v15802_v24 = vrot.slane %v15801_v51, 4  ;;  %v15805_v1 = vrot.slane %v15804_v48, 4  ;;  %v12198_v47 = vpop.permute.xlu1 %3233  ;;  %v15808_v12 = vld [vmem:[#allocation49_spill] sm:$0xff]  ;;  %vm15811_vm6 = vmmov %vm15806_vm1  ;;  %v9571_v7 = vcombine.high %v3060_v4, %v3076_v11  ;;  %6014 = vmatpush2.bf16.msra.mxu1 %v9586_v31 }
 0x382   : > { %15807 = vst [vmem:[#allocation59_spill] sm:$0xff] %v12198_v47  ;;  %v15809_v0 = vrot.slane %v15808_v12, 4  ;;  %vm15813_vm0 = vmmov %vm15800_vm3  ;;  %6078 = vmatpush1.bf16.msra.mxu0 %v9508_v41  ;;  %vm15814_vm3 = vcmask 1039360   ;;  %v15816_v12 = vld [vmem:[#allocation50_spill] sm:$0xff]  ;;  %3237 = vrot.lane.b32.xlu1 %v3159_v8, %s10206_s12 }
 0x383   : > { %v2380_v40 = vsel %vm15795_vm15, %v15802_v24, %v15272_v57  ;;  %v2396_v53 = vsel %vm15806_vm1, %v15805_v1, %v15803_v52  ;;  %v15812_v24 = vld [vmem:[#allocation54_spill] sm:$0xff]  ;;  %v2674_v16 = vsel %vm15813_vm0, %v15770_v3, %v2673_v45  ;;  %v12208_v52 = vpop.permute.xlu0 %3251  ;;  %v3028_v46 = vsel %vm15814_vm3, %v15792_v20, %v3027_v23  ;;  %vm15818_vm15 = vmmov %vm15806_vm1  ;;  %6015 = vmatprep.subr.bf16.mxu1 %v9571_v7 }
 0x384   : > { %v3043_v27 = vsel %vm15811_vm6, %v15810_v44, %v15809_v0  ;;  %v15285_v57 = vrot.slane %v15812_v24, 4  ;;  %v9493_v9 = vcombine.high %v2658_v28, %v2674_v16  ;;  %v15815_v1 = vrot.slane %v15799_v54, 4  ;;  %vm15819_vm1 = vmmov %vm15814_vm3  ;;  %3935 = vrot.lane.b32.xlu0 %v11892_v35, %s10206_s12  ;;  %v15823_v7 = vld [vmem:[#allocation46_spill] sm:$0xff] }
 0x385   : > { %v15817_v47 = vrot.slane %v15816_v12, 4  ;;  %v2381_v3 = vsel %vm15819_vm1, %v15801_v51, %v2380_v40  ;;  %vm15820_vm6 = vmmov %vm15819_vm1  ;;  %v9570_v45 = vcombine.low %v3060_v4, %v3076_v11  ;;  %v9492_v44 = vcombine.low %v2658_v28, %v2674_v16  ;;  %v12224_v20 = vpop.permute.xlu1 %2925  ;;  %v15828_v11 = vld [vmem:[#allocation70_spill] sm:$0xff] }
 0x386   : > { %v2397_v31 = vsel %vm15820_vm6, %v15804_v48, %v2396_v53  ;;  %6079 = vmatprep.subr.bf16.mxu0 %v9493_v9  ;;  %15821 = vst [vmem:[#allocation45_spill] sm:$0xff] %v12224_v20  ;;  %vm15822_vm0 = vmmov %vm15819_vm1  ;;  %v15824_v41 = vrot.slane %v15823_v7, 4  ;;  %2927 = vrot.lane.b32.xlu1 %v15828_v11, %s10204_s10  ;;  %v15837_v11 = vrot.slane %v11803_v49, 4 }
 0x387   : > { %v2348_v0 = vsel %vm15818_vm15, %v15817_v47, %v15815_v1  ;;  %v3044_v23 = vsel %vm15822_vm0, %v15700_v58, %v3043_v27  ;;  %vm15825_vm3 = vmmov %vm15818_vm15  ;;  %v12233_v47 = vpop.permute.xlu0 %2943  ;;  %6016 = vmatpush2.bf16.msra.mxu1 %v9570_v45  ;;  %6080 = vmatpush1.bf16.msra.mxu0 %v9492_v44  ;;  %v9477_v16 = vcombine.high %v2381_v3, %v2397_v31  ;;  %v12239_v58 = vld [vmem:[#allocation3 + $0x8c] sm:$0xff] }
 0x388   : > { %v2364_v51 = vsel %vm15825_vm3, %v15824_v41, %v15285_v57  ;;  %v9555_v40 = vcombine.high %v3028_v46, %v3044_v23  ;;  %15826 = vst [vmem:[#allocation69_spill] sm:$0xff] %v12233_v47  ;;  %vm15827_vm15 = vmmov %vm15822_vm0  ;;  %v9554_v28 = vcombine.low %v3028_v46, %v3044_v23  ;;  %v9476_v27 = vcombine.low %v2381_v3, %v2397_v31 }
 0x389   : > { %v2349_v4 = vsel %vm15827_vm15, %v15816_v12, %v2348_v0  ;;  %6081 = vmatprep.subr.bf16.mxu0 %v9477_v16  ;;  %3937 = vrot.lane.b32.xlu0 %v12239_v58, %s10206_s12  ;;  %v12243_v48 = vpop.permute.xlu1 %3913  ;;  %vm15829_vm1 = vmmov %vm15822_vm0  ;;  %v15279_v3 = vrot.slane %v11993_v10, 4  ;;  %v15276_v31 = vrot.slane %v12011_v18, 4  ;;  %v15830_v23 = vrot.slane %v15731_v61, 4 }
 0x38a   : > { %6017 = vmatprep.subr.bf16.mxu1 %v9555_v40  ;;  %v2365_v53 = vsel %vm15829_vm1, %v15823_v7, %v2364_v51  ;;  %2965 = vrot.lane.b32.xlu1 %v3177_v22, %s10204_s10  ;;  %v12263_v22 = vld [vmem:[#allocation3 + $0x11c] sm:$0xff]  ;;  %vm15831_vm6 = vmmov %vm15825_vm3  ;;  %v15834_v51 = vrot.slane %v11782_v6, 4  ;;  %vm15836_vm15 = vcmask 1031168   ;;  %v15859_v57 = vrot.slane %v11858_v36, 4 }
 0x38b   : > { %v9461_v9 = vcombine.high %v2349_v4, %v2365_v53  ;;  %v12247_v1 = vpop.permute.xlu0 %3931  ;;  %6018 = vmatpush2.bf16.msra.mxu1 %v9554_v28  ;;  %6082 = vmatpush1.bf16.msra.mxu0 %v9476_v27  ;;  %v9460_v12 = vcombine.low %v2349_v4, %v2365_v53  ;;  %v4017_v7 = vsel %vm15831_vm6, %v15830_v23, %v15279_v3  ;;  %vm15833_vm0 = vmmov %vm15825_vm3 }
 0x38c   : > { %vm15835_vm3 = vmmov %vm15833_vm0 }
 0x38d   : > { %6083 = vmatprep.subr.bf16.mxu0 %v9461_v9  ;;  %3661 = vrot.lane.b32.xlu0 %v11940_v50, %s10204_s10  ;;  %v12252_v46 = vpop.permute.xlu1 %2554  ;;  %vm15838_vm1 = vmmov %vm15833_vm0 }
 0x38e   : > { %6020 = vmatmul.mubr.bf16.vlgmr.msra.gmra.mxu1 %v12004_v5  ;;  %3953 = vrot.lane.b32.xlu1 %v12132_v25, %s10206_s12  ;;  %vm15839_vm6 = vmmov %vm15836_vm15 }
 0x38f   : > { %v12255_v0 = vpop.permute.xlu0 %2572  ;;  %6084 = vmatpush1.bf16.msra.mxu0 %v9460_v12  ;;  %6148 = vmatprep.mubr.bf16.mxu1 %v15761_v15 }
 0x390   : > { %6085 = vmatprep.subr.bf16.mxu0 %v12032_v29  ;;  %v15832_v29 = vrot.slane %v15730_v14, 4 }
 0x391   : > { %3663 = vrot.lane.b32.xlu0 %v12263_v22, %s10204_s10  ;;  %v12267_v50 = vpop.permute.xlu1 %3947 }
 0x392   : > { %v15282_v45 = vrot.slane %v12267_v50, 4  ;;  %v4033_v41 = vsel %vm15833_vm0, %v15832_v29, %v15276_v31  ;;  %2929 = vrot.lane.b32.xlu1 %v3159_v8, %s10204_s10  ;;  %vm15840_vm0 = vmmov %vm15839_vm6  ;;  %v12355_v31 = vld [vmem:[#allocation10 + $0x4] ss:$12 sps:$4 sm:$0xff]  }
 0x393   : > { %v12270_v44 = vpop.permute.xlu0 %3965  ;;  %6086 = vmatpush1.bf16.msra.mxu0 %v12058_v38  ;;  %v4018_v8 = vsel %vm15840_vm0, %v15731_v61, %v4017_v7 }
 0x394   : > { %v4049_v40 = vsel %vm15835_vm3, %v15834_v51, %v15282_v45  ;;  %v15283_v38 = vrot.slane %v12270_v44, 4  ;;  %6087 = vmatprep.subr.bf16.mxu0 %v12069_v37  ;;  %vm15841_vm3 = vmmov %vm15840_vm0 }
 0x395   : > { %2576 = vrot.lane.b32.xlu0 %v11892_v35, %s10206_s12  ;;  %v12293_v16 = vpop.permute.xlu1 %2245  ;;  %v4050_v4 = vsel %vm15836_vm15, %v11782_v6, %v4049_v40  ;;  %v4034_v53 = vsel %vm15841_vm3, %v15730_v14, %v4033_v41  ;;  %v2489_v6 = vld [vmem:[#allocation3 + $0x8c] sm:$0xf]  ;;  %v10007_v41 = vld [vmem:[#allocation3 + $0xb8] ss:$76 sps:$4 sm:$0xff]   ;;  %vm15844_vm15 = vmmov %vm15838_vm1 }
 0x396   : > { %v4065_v28 = vsel %vm15838_vm1, %v15837_v11, %v15283_v38  ;;  %3917 = vrot.lane.b32.xlu1 %v11876_v21, %s10206_s12  ;;  %v9684_v14 = vcombine.low %v4018_v8, %v4034_v53  ;;  %v12329_v40 = vld [vmem:[#allocation3 + $0x40] sm:$0xff]  ;;  %v15281_v11 = vrot.slane %v12036_v62, 4  ;;  %vm15848_vm3 = vmmov %vm15838_vm1 }
 0x397   : > { %v12302_v27 = vpop.permute.xlu0 %2263  ;;  %6088 = vmatpush1.bf16.msra.mxu0 %v12097_v60  ;;  %v4066_v37 = vsel %vm15839_vm6, %v11803_v49, %v4065_v28  ;;  %v9685_v60 = vcombine.high %v4018_v8, %v4034_v53  ;;  %v12318_v49 = vld [vmem:[#allocation3 + $0xd8] sm:$0xff]  ;;  %v15843_v53 = vrot.slane %v11826_v42, 4  ;;  %vm15846_vm6 = vcmask 261120  }
 0x398   : > { %v9700_v9 = vcombine.low %v4050_v4, %v4066_v37  ;;  %v9701_v12 = vcombine.high %v4050_v4, %v4066_v37  ;;  %v15280_v4 = vrot.slane %v12029_v26, 4  ;;  %v10005_v37 = vld [vmem:[#allocation3 + $0xb4] ss:$76 sps:$4 sm:$0xff]  }
 0x399   : > { %2578 = vrot.lane.b32.xlu0 %v2489_v6, %s10206_s12  ;;  %v12314_v23 = vpop.permute.xlu1 %2588 }
 0x39a   : > { %6128 = vmatprep.subr.bf16.mxu1 %v9701_v12  ;;  %3955 = vrot.lane.b32.xlu1 %v12318_v49, %s10206_s12  ;;  %v15277_v7 = vrot.slane %v12314_v23, 4 }
 0x39b   : > { %v12316_v29 = vpop.permute.xlu0 %3253  ;;  %6129 = vmatpush1.bf16.msra.mxu1 %v9700_v9  ;;  %v15845_v9 = vrot.slane %v11840_v2, 4 }
 0x39c   : > { %15842 = vst [vmem:[#allocation48_spill] sm:$0xff] %v12316_v29  ;;  %6130 = vmatprep.subr.bf16.mxu1 %v9685_v60  ;;  %v2691_v6 = vsel %vm15844_vm15, %v15843_v53, %v15277_v7  ;;  %v10010_v60 = vld [vmem:[#allocation3 + $0x20] ss:$76 sps:$4 sm:$0xff]   ;;  %v15847_v53 = vrot.slane %v15762_v17, 4  ;;  %vm15850_vm15 = vmmov %vm15838_vm1 }
 0x39d   : > { %2267 = vrot.lane.b32.xlu0 %v11892_v35, %s10204_s10  ;;  %v12324_v61 = vpop.permute.xlu1 %2279  ;;  %v3186_v35 = vld [vmem:[#allocation3 + $0x118] sm:$0xff] }
 0x39e   : > { %3919 = vrot.lane.b32.xlu1 %v12329_v40, %s10206_s12 }
 0x39f   : > { %v12327_v51 = vpop.permute.xlu0 %2606  ;;  %6131 = vmatpush1.bf16.msra.mxu1 %v9684_v14 }
 0x3a0   : > { %v15278_v28 = vrot.slane %v12327_v51, 4  ;;  %6159 = vmatprep.subr.bf16.mxu1 %v10007_v41 }
 0x3a1   : > { %3291 = vrot.lane.b32.xlu0 %v3186_v35, %s10206_s12  ;;  %v12337_v8 = vpop.permute.xlu1 %3639 }
 0x3a2   : > { %v2707_v12 = vsel %vm15838_vm1, %v15845_v9, %v15278_v28  ;;  %9714 = vmatmul.mubr.msk.bf16.vlgmr.msra.gmra.mxu1 %vm15846_vm6, %v15773_v39  ;;  %v2659_v9 = vsel %vm15848_vm3, %v15847_v53, %v15280_v4  ;;  %v15849_v39 = vrot.slane %v15760_v59, 4  ;;  %2594 = vrot.lane.b32.xlu1 %v12132_v25, %s10206_s12  ;;  %v10008_v28 = vld [vmem:[#allocation3 + $0x1c] ss:$76 sps:$4 sm:$0xff]   ;;  %vm15852_vm1 = vmmov %vm15840_vm0 }
 0x3a3   : > { %v12351_v14 = vpop.permute.xlu0 %2297  ;;  %6160 = vmatpush1.bf16.msra.mxu1 %v10005_v37  ;;  %v2708_v41 = vsel %vm15840_vm0, %v11840_v2, %v2707_v12  ;;  %6191 = vmatprep.mubr.bf16.mxu1 %v12355_v31  ;;  %v15284_v37 = vrot.slane %v12337_v8, 4  ;;  %v2180_v2 = vld [vmem:[#allocation3 + $0x8c] sm:$0xf]  ;;  %v2692_v53 = vsel %vm15852_vm1, %v11826_v42, %v2691_v6  ;;  %vm15853_vm6 = vmmov %vm15840_vm0 }
 0x3a4   : > { %v2675_v7 = vsel %vm15850_vm15, %v15849_v39, %v15281_v11  ;;  %6161 = vmatprep.subr.bf16.mxu1 %v10010_v60  ;;  %v15286_v12 = vrot.slane %v12351_v14, 4  ;;  %v9511_v4 = vcombine.high %v2692_v53, %v2708_v41  ;;  %v15287_v39 = vrot.slane %v12324_v61, 4  ;;  %vm15856_vm15 = vmmov %vm15848_vm3 }
 0x3a5   : > { %2269 = vrot.lane.b32.xlu0 %v2180_v2, %s10204_s10  ;;  %v12373_v3 = vpop.permute.xlu1 %3641  ;;  %v2660_v60 = vsel %vm15853_vm6, %v15762_v17, %v2659_v9  ;;  %v2676_v45 = vsel %vm15840_vm0, %v15760_v59, %v2675_v7  ;;  %v15854_v2 = vrot.slane %v11670_v56, 4  ;;  %v15855_v17 = vrot.slane %v11874_v43, 4  ;;  %vm15858_vm1 = vmmov %vm15848_vm3 }
 0x3a6   : > { %15851 = vst [vmem:[#allocation55_spill] sm:$0xff] %v12373_v3  ;;  %2558 = vrot.lane.b32.xlu1 %v11876_v21, %s10206_s12  ;;  %v9510_v7 = vcombine.low %v2692_v53, %v2708_v41  ;;  %vm15860_vm6 = vmmov %vm15858_vm1  ;;  %v2498_v41 = vld [vmem:[#allocation3 + $0xd8] sm:$0xf]  ;;  %vm15862_vm0 = vcmask 1039360  }
 0x3a7   : > { %v12378_v11 = vpop.permute.xlu0 %3657  ;;  %6162 = vmatpush1.bf16.msra.mxu1 %v10008_v28  ;;  %v3741_v38 = vsel %vm15848_vm3, %v15854_v2, %v15284_v37  ;;  %v2398_v59 = vsel %vm15856_vm15, %v15855_v17, %v15286_v12  ;;  %v15857_v2 = vrot.slane %v11690_v55, 4  ;;  %v9495_v37 = vcombine.high %v2660_v60, %v2676_v45  ;;  %vm15863_vm3 = vmmov %vm15862_vm0 }
 0x3a8   : > { %v15288_v42 = vrot.slane %v12378_v11, 4  ;;  %6163 = vmatprep.subr.bf16.mxu1 %v9511_v4  ;;  %v2382_v6 = vsel %vm15860_vm6, %v15859_v57, %v15287_v39  ;;  %vm15864_vm15 = vmmov %vm15862_vm0  ;;  %v15865_v57 = vrot.slane %v12061_v33, 4  ;;  %v15866_v39 = vrot.slane %v15799_v54, 4 }
 0x3a9   : > { %2983 = vrot.lane.b32.xlu0 %v3186_v35, %s10204_s10  ;;  %v12400_v9 = vpop.permute.xlu1 %3269  ;;  %v3742_v35 = vsel %vm15862_vm0, %v11670_v56, %v3741_v38  ;;  %v2399_v12 = vsel %vm15864_vm15, %v11874_v43, %v2398_v59  ;;  %v15868_v56 = vrot.slane %v15812_v24, 4  ;;  %vm15869_vm6 = vmmov %vm15858_vm1  ;;  %v9494_v38 = vcombine.low %v2660_v60, %v2676_v45  ;;  %v12444_v60 = vld [vmem:[#allocation3 + $0x124] sm:$0xff] }
 0x3aa   : > { %v3757_v4 = vsel %vm15858_vm1, %v15857_v2, %v15288_v42  ;;  %2596 = vrot.lane.b32.xlu1 %v2498_v41, %s10206_s12  ;;  %v15867_v42 = vrot.slane %v12073_v63, 4  ;;  %v2383_v43 = vsel %vm15862_vm0, %v11858_v36, %v2382_v6  ;;  %v15870_v45 = vcombine.high %v12154_v30, %v12176_v32  ;;  %vm15872_vm15 = vmmov %vm15862_vm0 }
 0x3ab   : > { %v12412_v28 = vpop.permute.xlu0 %3659  ;;  %6164 = vmatpush1.bf16.msra.mxu1 %v9510_v7  ;;  %v3758_v53 = vsel %vm15863_vm3, %v11690_v55, %v3757_v4  ;;  %v2350_v7 = vsel %vm15858_vm1, %v15866_v39, %v15865_v57  ;;  %v9479_v39 = vcombine.high %v2383_v43, %v2399_v12  ;;  %vm15871_vm3 = vmmov %vm15862_vm0  ;;  %v9478_v6 = vcombine.low %v2383_v43, %v2399_v12  ;;  %v10011_v12 = vld [vmem:[#allocation3 + $0xb0] ss:$76 sps:$4 sm:$0xff]   ;;  %v10014_v43 = vld [vmem:[#allocation3 + $0x18] ss:$76 sps:$4 sm:$0xff]  }
 0x3ac   : > { %15861 = vst [vmem:[#allocation39_spill] sm:$0xff] %v12412_v28  ;;  %6165 = vmatprep.subr.bf16.mxu1 %v9495_v37  ;;  %v9668_v17 = vcombine.low %v3742_v35, %v3758_v53  ;;  %v9669_v2 = vcombine.high %v3742_v35, %v3758_v53  ;;  %v2366_v55 = vsel %vm15869_vm6, %v15868_v56, %v15867_v42  ;;  %v2480_v53 = vld [vmem:[#allocation3 + $0x40] sm:$0xf]  ;;  %v10016_v57 = vld [vmem:[#allocation3 + $0x1c] ss:$76 sps:$4 sm:$0xff]   ;;  %v15292_v56 = vrot.slane %v12150_v13, 4  ;;  %vm15876_vm6 = vmmov %vm15858_vm1 }
 0x3ad   : > { %3971 = vrot.lane.b32.xlu0 %v12263_v22, %s10206_s12  ;;  %v12433_v37 = vpop.permute.xlu1 %2961  ;;  %v2351_v42 = vsel %vm15871_vm3, %v15799_v54, %v2350_v7  ;;  %v2367_v36 = vsel %vm15872_vm15, %v15812_v24, %v2366_v55  ;;  %v15873_v35 = vcombine.low %v12154_v30, %v12176_v32  ;;  %v15289_v24 = vrot.slane %v12412_v28, 4  ;;  %v3560_v7 = vld [vmem:[#allocation3 + $0x12c] sm:$0xf]  ;;  %vm15881_vm3 = vmmov %vm15858_vm1 }
 0x3ae   : > { %6089 = vmatprep.subr.bf16.mxu0 %v9669_v2  ;;  %2285 = vrot.lane.b32.xlu1 %v12132_v25, %s10204_s10  ;;  %v10013_v25 = vld [vmem:[#allocation3 + $0xb4] ss:$76 sps:$4 sm:$0xff]   ;;  %v9463_v54 = vcombine.high %v2351_v42, %v2367_v36  ;;  %v15290_v30 = vrot.slane %v12373_v3, 4  ;;  %v15291_v55 = vrot.slane %v12170_v34, 4  ;;  %vm15884_vm15 = vmmov %vm15858_vm1 }
 0x3af   : > { %v12437_v59 = vpop.permute.xlu0 %3287  ;;  %6090 = vmatpush2.bf16.msra.mxu0 %v9668_v17  ;;  %6166 = vmatpush1.bf16.msra.mxu1 %v9494_v38  ;;  %v9462_v17 = vcombine.low %v2351_v42, %v2367_v36  ;;  %v2189_v36 = vld [vmem:[#allocation3 + $0xd8] sm:$0xf] }
 0x3b0   : > { %6091 = vmatprep.subr.bf16.mxu0 %v15870_v45  ;;  %6167 = vmatprep.subr.bf16.mxu1 %v9479_v39 }
 0x3b1   : > { %3973 = vrot.lane.b32.xlu0 %v12444_v60, %s10206_s12  ;;  %v12452_v4 = vpop.permute.xlu1 %3949 }
 0x3b2   : > { %2560 = vrot.lane.b32.xlu1 %v2480_v53, %s10206_s12  ;;  %v15879_v53 = vld [vmem:[#allocation44_spill] sm:$0xff] }
 0x3b3   : > { %v12454_v41 = vpop.permute.xlu0 %2979  ;;  %6092 = vmatpush2.bf16.msra.mxu0 %v15873_v35  ;;  %6168 = vmatpush1.bf16.msra.mxu1 %v9478_v6  ;;  %v15877_v6 = vld [vmem:[#allocation52_spill] sm:$0xff] }
 0x3b4   : > { %6093 = vmatprep.subr.bf16.mxu0 %v10013_v25  ;;  %6169 = vmatprep.subr.bf16.mxu1 %v9463_v54  ;;  %v15880_v54 = vrot.slane %v15879_v53, 4 }
 0x3b5   : > { %3629 = vrot.lane.b32.xlu0 %v12239_v58, %s10204_s10  ;;  %v12463_v2 = vpop.permute.xlu1 %2590  ;;  %v15874_v58 = vrot.slane %v12378_v11, 4 }
 0x3b6   : > { %2249 = vrot.lane.b32.xlu1 %v11876_v21, %s10204_s10  ;;  %v15875_v21 = vrot.slane %v12337_v8, 4 }
 0x3b7   : > { %v12466_v32 = vpop.permute.xlu0 %3967  ;;  %6094 = vmatpush2.bf16.msra.mxu0 %v10011_v12  ;;  %6170 = vmatpush1.bf16.msra.mxu1 %v9462_v17  ;;  %v3759_v38 = vsel %vm15858_vm1, %v15874_v58, %v15289_v24  ;;  %v3711_v17 = vsel %vm15881_vm3, %v15880_v54, %v15292_v56  ;;  %vm15886_vm1 = vmmov %vm15862_vm0  ;;  %v2171_v54 = vld [vmem:[#allocation3 + $0x40] sm:$0xf] }
 0x3b8   : > { %6095 = vmatprep.subr.bf16.mxu0 %v10016_v57  ;;  %6171 = vmatprep.subr.bf16.mxu1 %v10013_v25  ;;  %v3743_v45 = vsel %vm15876_vm6, %v15875_v21, %v15290_v30  ;;  %v15878_v25 = vcombine.high %v11953_v19, %v15877_v6  ;;  %v3760_v35 = vsel %vm15862_vm0, %v12378_v11, %v3759_v38  ;;  %v15293_v11 = vrot.slane %v12316_v29, 4  ;;  %v15888_v30 = vld [vmem:[#allocation63_spill] sm:$0xff]  ;;  %vm15891_vm6 = vmmov %vm15862_vm0 }
 0x3b9   : > { %3667 = vrot.lane.b32.xlu0 %v3560_v7, %s10204_s10  ;;  %v12478_v39 = vpop.permute.xlu1 %2281  ;;  %v15882_v7 = vld [vmem:[#allocation53_spill] sm:$0xff]  ;;  %v3744_v38 = vsel %vm15886_vm1, %v12337_v8, %v3743_v45  ;;  %v2507_v8 = vld [vmem:[#allocation3 + $0x124] sm:$0xf]  ;;  %v3712_v45 = vsel %vm15891_vm6, %v15879_v53, %v3711_v17  ;;  %v3319_v53 = vrot.slane %v12400_v9, 4  ;;  %v3328_v17 = vrot.slane %v12437_v59, 4  ;;  %vm15899_vm1 = vmmov %vm15881_vm3 }
 0x3ba   : > { %2287 = vrot.lane.b32.xlu1 %v2189_v36, %s10204_s10  ;;  %vm15905_vm6 = vmmov %vm15899_vm1 }
 0x3bb   : > { %v12485_v42 = vpop.permute.xlu0 %2608  ;;  %6096 = vmatpush2.bf16.msra.mxu0 %v10014_v43  ;;  %6172 = vmatpush1.bf16.msra.mxu1 %v10011_v12  ;;  %v15883_v12 = vrot.slane %v15882_v7, 4 }
 0x3bc   : > { %6097 = vmatprep.subr.bf16.mxu0 %v15878_v25  ;;  %6173 = vmatprep.subr.bf16.mxu1 %v10016_v57  ;;  %v15887_v25 = vcombine.low %v11953_v19, %v15877_v6  ;;  %v9670_v57 = vcombine.low %v3744_v38, %v3760_v35 }
 0x3bd   : > { %v3727_v58 = vsel %vm15884_vm15, %v15883_v12, %v15291_v55  ;;  %2612 = vrot.lane.b32.xlu0 %v12263_v22, %s10206_s12  ;;  %v12505_v21 = vpop.permute.xlu1 %3271  ;;  %v9671_v12 = vcombine.high %v3744_v38, %v3760_v35  ;;  %v15889_v55 = vld [vmem:[#allocation64_spill] sm:$0xff]  ;;  %vm15898_vm15 = vmmov %vm15881_vm3 }
 0x3be   : > { %15885 = vst [vmem:[#allocation42_spill] sm:$0xff] %v12505_v21  ;;  %2251 = vrot.lane.b32.xlu1 %v2171_v54, %s10204_s10  ;;  %v15890_v56 = vcombine.high %v15888_v30, %v15889_v55  ;;  %v3728_v19 = vsel %vm15862_vm0, %v15882_v7, %v3727_v58  ;;  %v15896_v38 = vcombine.low %v15888_v30, %v15889_v55  ;;  %v15900_v30 = vld [vmem:[#allocation51_spill] sm:$0xff]  ;;  %v15901_v55 = vld [vmem:[#allocation57_spill] sm:$0xff]  ;;  %vm15906_vm0 = vcmask 1031168  }
 0x3bf   : > { %v12510_v36 = vpop.permute.xlu0 %2299  ;;  %6098 = vmatpush2.bf16.msra.mxu0 %v15887_v25  ;;  %6174 = vmatpush1.bf16.msra.mxu1 %v10014_v43  ;;  %v15892_v43 = vld [vmem:[#allocation59_spill] sm:$0xff] }
 0x3c0   : > { %6099 = vmatprep.subr.bf16.mxu0 %v15890_v56  ;;  %v3301_v6 = vrot.slane %v15892_v43, 4  ;;  %6175 = vmatprep.subr.bf16.mxu1 %v9671_v12  ;;  %v15894_v56 = vrot.slane %v12208_v52, 4  ;;  %v9654_v12 = vcombine.low %v3712_v45, %v3728_v19 }
 0x3c1   : > { %2614 = vrot.lane.b32.xlu0 %v2507_v8, %s10206_s12  ;;  %v12528_v54 = vpop.permute.xlu1 %3235  ;;  %v9655_v8 = vcombine.high %v3712_v45, %v3728_v19  ;;  %v15903_v19 = vrot.slane %v12466_v32, 4 }
 0x3c2   : > { %15893 = vst [vmem:[#allocation60_spill] sm:$0xff] %v12528_v54  ;;  %v3357_v24 = vsel %vm15881_vm3, %v15894_v56, %v15293_v11  ;;  %v15296_v7 = vrot.slane %v12528_v54, 4  ;;  %v15897_v56 = vrot.slane %v12505_v21, 4  ;;  %3647 = vrot.lane.b32.xlu1 %v12318_v49, %s10204_s10  ;;  %vm15908_vm3 = vmmov %vm15906_vm0  ;;  %v15938_v21 = vrot.slane %v12208_v52, 4 }
 0x3c3   : > { %v12539_v35 = vpop.permute.xlu0 %3289  ;;  %6100 = vmatpush2.bf16.msra.mxu0 %v15896_v38  ;;  %6176 = vmatpush2.bf16.msra.mxu1 %v9670_v57  ;;  %v15902_v57 = vcombine.high %v15900_v30, %v15901_v55  ;;  %v15904_v38 = vrot.slane %v12270_v44, 4  ;;  %v12571_v49 = vsel %vm15908_vm3, %v12208_v52, %v3357_v24  ;;  %v15915_v24 = vrot.slane %v12267_v50, 4  ;;  %vm15919_vm3 = vmmov %vm15906_vm0  ;;  %v3533_v52 = vld [vmem:[#allocation3 + $0x48] sm:$0xf] }
 0x3c4   : > { %15895 = vst [vmem:[#allocation68_spill] sm:$0xff] %v12539_v35  ;;  %v3373_v11 = vsel %vm15898_vm15, %v3319_v53, %v15897_v56  ;;  %v3341_v29 = vsel %vm15899_vm1, %v3301_v6, %v15296_v7  ;;  %v15299_v58 = vrot.slane %v12539_v35, 4  ;;  %6177 = vmatprep.subr.bf16.mxu1 %v9655_v8  ;;  %15909 = vst [vmem:[#allocation49_spill] sm:$0xff] %v12571_v49  ;;  %v12626_v49 = vld [vmem:[#allocation3 + $0xb8] ss:$76 sps:$4 sm:$0xff]  }
 0x3c5   : > { %6101 = vmatprep.subr.bf16.mxu0 %v15902_v57  ;;  %v4067_v56 = vsel %vm15905_vm6, %v15904_v38, %v15903_v19  ;;  %2303 = vrot.lane.b32.xlu0 %v12263_v22, %s10204_s10  ;;  %v12567_v7 = vsel %vm15906_vm0, %v15892_v43, %v3341_v29  ;;  %v15910_v57 = vld [vmem:[#allocation43_spill] sm:$0xff]  ;;  %vm15912_vm15 = vmmov %vm15899_vm1  ;;  %v12579_v8 = vpop.permute.xlu1 %3915  ;;  %v15914_v43 = vrot.slane %v12452_v4, 4  ;;  %v12599_v22 = vsel %vm15906_vm0, %v12400_v9, %v3373_v11  ;;  %v3542_v35 = vld [vmem:[#allocation3 + $0x94] sm:$0xf] }
 0x3c6   : > { %15907 = vst [vmem:[#allocation67_spill] sm:$0xff] %v12567_v7  ;;  %v15911_v45 = vrot.slane %v15910_v57, 4  ;;  %v3389_v19 = vsel %vm15899_vm1, %v3328_v17, %v15299_v58  ;;  %15913 = vst [vmem:[#allocation54_spill] sm:$0xff] %v12579_v8  ;;  %3611 = vrot.lane.b32.xlu1 %v12329_v40, %s10204_s10  ;;  %v15926_v11 = vrot.slane %v11993_v10, 4 }
 0x3c7   : > { %vm15916_vm6 = vmmov %vm15899_vm1  ;;  %v12590_v54 = vpop.permute.xlu0 %3933  ;;  %6178 = vmatpush2.bf16.msra.mxu1 %v9654_v12  ;;  %15918 = vst [vmem:[#allocation50_spill] sm:$0xff] %v12599_v22  ;;  %v12603_v29 = vsel %vm15919_vm3, %v12437_v59, %v3389_v19  ;;  %v15925_v59 = vrot.slane %v12243_v48, 4  ;;  %v15927_v19 = vrot.slane %v12247_v1, 4 }
 0x3c8   : > { %v3387_v25 = vsel %vm15912_vm15, %v15911_v45, %v3328_v17  ;;  %v4051_v38 = vsel %vm15916_vm6, %v15915_v24, %v15914_v43  ;;  %v15917_v45 = vcombine.low %v15900_v30, %v15901_v55  ;;  %v12595_v17 = vld [vmem:[#allocation3 + $0xbc] ss:$76 sps:$4 sm:$0xff]   ;;  %15920 = vst [vmem:[#allocation46_spill] sm:$0xff] %v12603_v29  ;;  %v15921_v43 = vld [vmem:[#allocation65_spill] sm:$0xff]  ;;  %v2198_v30 = vld [vmem:[#allocation3 + $0x124] sm:$0xf] }
 0x3c9   : > { %v15922_v24 = vld [vmem:[#allocation66_spill] sm:$0xff]  ;;  %vm15924_vm15 = vmmov %vm15906_vm0  ;;  %v4019_v40 = vsel %vm15899_vm1, %v15926_v11, %v15925_v59  ;;  %6179 = vmatprep.subr.bf16.mxu1 %v12595_v17  ;;  %2305 = vrot.lane.b32.xlu0 %v2198_v30, %s10204_s10  ;;  %v12633_v7 = vpop.permute.xlu1 %2556  ;;  %v12635_v59 = vld [vmem:[#allocation3 + $0x24] ss:$76 sps:$4 sm:$0xff]   ;;  %v4052_v11 = vsel %vm15919_vm3, %v12267_v50, %v4051_v38 }
 0x3ca   : > { %6102 = vmatpush2.bf16.msra.mxu0 %v15917_v45  ;;  %v15923_v58 = vcombine.high %v15921_v43, %v15922_v24  ;;  %v4068_v12 = vsel %vm15924_vm15, %v12270_v44, %v4067_v56  ;;  %vm15929_vm6 = vmmov %vm15899_vm1  ;;  %v3551_v44 = vld [vmem:[#allocation3 + $0xe0] sm:$0xf]  ;;  %v15930_v56 = vld [vmem:[#allocation40_spill] sm:$0xff]  ;;  %v15936_v30 = vcombine.low %v15921_v43, %v15922_v24 }
 0x3cb   : > { %v15931_v55 = vrot.slane %v15930_v56, 4  ;;  %vm15932_vm0 = vmmov %vm15899_vm1  ;;  %v12642_v22 = vpop.permute.xlu0 %2574  ;;  %6180 = vmatpush2.bf16.msra.mxu1 %v12626_v49  ;;  %v15939_v50 = vld [vmem:[#allocation56_spill] sm:$0xff]  ;;  %3649 = vrot.lane.b32.xlu1 %v3551_v44, %s10204_s10 }
 0x3cc   : > { %6103 = vmatprep.subr.bf16.mxu0 %v15923_v58  ;;  %v15928_v58 = vrot.slane %v12011_v18, 4  ;;  %vm15935_vm15 = vmmov %vm15932_vm0  ;;  %v15940_v38 = vrot.slane %v15939_v50, 4  ;;  %6181 = vmatprep.subr.bf16.mxu1 %v12635_v59 }
 0x3cd   : > { %v3371_v9 = vsel %vm15932_vm0, %v15931_v55, %v3319_v53  ;;  %v9703_v53 = vcombine.high %v4052_v11, %v4068_v12  ;;  %vm15937_vm1 = vmmov %vm15919_vm3  ;;  %3631 = vrot.lane.b32.xlu0 %v3542_v35, %s10204_s10  ;;  %v12669_v44 = vpop.permute.xlu1 %2247 }
 0x3ce   : > { %v4035_v45 = vsel %vm15929_vm6, %v15928_v58, %v15927_v19  ;;  %v15933_v19 = vld [vmem:[#allocation61_spill] sm:$0xff]  ;;  %6104 = vmatpush2.bf16.msra.mxu0 %v15936_v30  ;;  %v3388_v55 = vsel %vm15937_vm1, %v15910_v57, %v3387_v25  ;;  %vm15941_vm6 = vmmov %vm15932_vm0  ;;  %v9702_v25 = vcombine.low %v4052_v11, %v4068_v12  ;;  %v15315_v57 = vrot.slane %v12433_v37, 4  ;;  %v12688_v30 = vld [vmem:[#allocation3 + $0x88] sm:$0xff] }
 0x3cf   : > { %v15934_v58 = vrot.slane %v15933_v19, 4  ;;  %v3355_v28 = vsel %vm15941_vm6, %v15940_v38, %v15938_v21  ;;  %vm15942_vm0 = vmmov %vm15937_vm1  ;;  %6214 = vmatprep.subr.bf16.mxu0 %v9703_v53  ;;  %v15319_v12 = vrot.slane %v12233_v47, 4  ;;  %3613 = vrot.lane.b32.xlu1 %v3533_v52, %s10204_s10  ;;  %v10025_v53 = vld [vmem:[#allocation3 + $0xc0] ss:$76 sps:$4 sm:$0xff]  }
 0x3d0   : > { %v4020_v43 = vsel %vm15942_vm0, %v11993_v10, %v4019_v40  ;;  %vm15943_vm3 = vmmov %vm15942_vm0  ;;  %v15316_v40 = vrot.slane %v12224_v20, 4  ;;  %v10023_v20 = vld [vmem:[#allocation3 + $0xbc] ss:$76 sps:$4 sm:$0xff]  }
 0x3d1   : > { %v3339_v29 = vsel %vm15935_vm15, %v15934_v58, %v3301_v6  ;;  %v15314_v6 = vrot.slane %v12454_v41, 4  ;;  %v4036_v24 = vsel %vm15943_vm3, %v12011_v18, %v4035_v45  ;;  %v12662_v58 = vld [vmem:[#allocation3 + $0x20] ss:$76 sps:$4 sm:$0xff]   ;;  %vm15944_vm15 = vmmov %vm15942_vm0  ;;  %6106 = vmatmul.mubr.bf16.vlgmr.msra.gmra.mxu0 %v12004_v5  ;;  %v12675_v45 = vpop.permute.xlu0 %2265  ;;  %3257 = vrot.lane.b32.xlu0 %v12688_v30, %s10206_s12 }
 0x3d2   : > { %v3372_v21 = vsel %vm15944_vm15, %v15930_v56, %v3371_v9  ;;  %vm15945_vm1 = vmmov %vm15942_vm0  ;;  %6182 = vmatpush2.bf16.msra.mxu1 %v12662_v58  ;;  %6215 = vmatpush1.bf16.msra.mxu0 %v9702_v25  ;;  %v9687_v35 = vcombine.high %v4020_v43, %v4036_v24  ;;  %v9686_v25 = vcombine.low %v4020_v43, %v4036_v24  ;;  %v15956_v24 = vld [vmem:[#allocation58_spill] sm:$0xff] }
 0x3d3   : > { %v9607_v10 = vcombine.high %v3372_v21, %v3388_v55  ;;  %v3340_v18 = vsel %vm15945_vm1, %v15933_v19, %v3339_v29  ;;  %vm15946_vm6 = vmmov %vm15942_vm0  ;;  %v15947_v29 = vld [vmem:[#allocation47_spill] sm:$0xff]  ;;  %vm15949_vm0 = vcmask 1043456   ;;  %v9606_v38 = vcombine.low %v3372_v21, %v3388_v55  ;;  %6234 = vmatprep.mubr.bf16.mxu0 %v15761_v15 }
 0x3d4   : > { %v3356_v9 = vsel %vm15946_vm6, %v15939_v50, %v3355_v28  ;;  %v15948_v11 = vrot.slane %v15947_v29, 4  ;;  %6216 = vmatprep.subr.bf16.mxu0 %v9687_v35  ;;  %v15950_v28 = vld [vmem:[#allocation41_spill] sm:$0xff]  ;;  %vm15952_vm3 = vmmov %vm15949_vm0  ;;  %v15957_v21 = vrot.slane %v15956_v24, 4  ;;  %vm15959_vm6 = vcmask 1039360  }
 0x3d5   : > { %6183 = vmatprep.subr.bf16.mxu1 %v9607_v10  ;;  %v15951_v50 = vrot.slane %v15950_v28, 4  ;;  %v9591_v52 = vcombine.high %v3340_v18, %v3356_v9  ;;  %v15953_v10 = vld [vmem:[#allocation62_spill] sm:$0xff]  ;;  %vm15955_vm15 = vmmov %vm15949_vm0  ;;  %3665 = vrot.lane.b32.xlu0 %v12444_v60, %s10204_s10  ;;  %v15974_v60 = vrot.slane %v12314_v23, 4 }
 0x3d6   : > { %v3079_v19 = vsel %vm15949_vm0, %v15948_v11, %v15314_v6  ;;  %v12698_v11 = vpop.permute.xlu1 %3607  ;;  %v15954_v55 = vrot.slane %v15953_v10, 4  ;;  %vm15958_vm1 = vmmov %vm15949_vm0  ;;  %6184 = vmatpush2.bf16.msra.mxu1 %v9606_v38  ;;  %6217 = vmatpush1.bf16.msra.mxu0 %v9686_v25  ;;  %v15965_v38 = vrot.slane %v12485_v42, 4  ;;  %v9590_v25 = vcombine.low %v3340_v18, %v3356_v9 }
 0x3d7   : > { %v3063_v56 = vsel %vm15952_vm3, %v15951_v50, %v15315_v57  ;;  %v3047_v35 = vsel %vm15958_vm1, %v15957_v21, %v15319_v12  ;;  %v12712_v50 = vpop.permute.xlu0 %3625  ;;  %v12714_v57 = vld [vmem:[#allocation3 + $0xd4] sm:$0xff]  ;;  %v3080_v5 = vsel %vm15959_vm6, %v15947_v29, %v3079_v19  ;;  %v15962_v21 = vrot.slane %v12255_v0, 4  ;;  %vm15964_vm3 = vmmov %vm15949_vm0  ;;  %6185 = vmatprep.subr.bf16.mxu1 %v9591_v52  ;;  %6245 = vmatprep.subr.bf16.mxu0 %v10025_v53 }
 0x3d8   : > { %v3031_v43 = vsel %vm15955_vm15, %v15954_v55, %v15316_v40  ;;  %v15960_v55 = vrot.slane %v12252_v46, 4  ;;  %v15961_v40 = vrot.slane %v12029_v26, 4  ;;  %v15963_v12 = vrot.slane %v12036_v62, 4  ;;  %3275 = vrot.lane.b32.xlu1 %v12714_v57, %s10206_s12  ;;  %vm15967_vm15 = vmmov %vm15949_vm0 }
 0x3d9   : > { %v15966_v29 = vrot.slane %v12327_v51, 4  ;;  %vm15968_vm1 = vmmov %vm15959_vm6  ;;  %vm15970_vm6 = vcmask 261120   ;;  %v15973_v9 = vrot.slane %v12463_v2, 4 }
 0x3da   : > { %v2661_v47 = vsel %vm15949_vm0, %v15961_v40, %v15960_v55  ;;  %v2677_v6 = vsel %vm15964_vm3, %v15963_v12, %v15962_v21  ;;  %v3064_v40 = vsel %vm15968_vm1, %v15950_v28, %v3063_v56  ;;  %v12739_v12 = vpop.permute.xlu1 %3609  ;;  %v12741_v55 = vld [vmem:[#allocation10 + $0x8] ss:$12 sps:$4 sm:$0xff]   ;;  %vm15971_vm0 = vmmov %vm15968_vm1  ;;  %6186 = vmatpush2.bf16.msra.mxu1 %v9590_v25  ;;  %v12756_v28 = vld [vmem:[#allocation3 + $0x3c] sm:$0xff]  ;;  %vm15976_vm1 = vcmask 1031168  }
 0x3db   : > { %v2709_v19 = vsel %vm15967_vm15, %v15966_v29, %v15965_v38  ;;  %15969 = vst [vmem:[#allocation70_spill] sm:$0xff] %v12739_v12  ;;  %9715 = vmatmul.mubr.msk.bf16.vlgmr.msra.gmra.mxu0 %vm15970_vm6, %v12741_v55  ;;  %v9575_v52 = vcombine.high %v3064_v40, %v3080_v5  ;;  %v3032_v21 = vsel %vm15971_vm0, %v15953_v10, %v3031_v43  ;;  %vm15972_vm3 = vmmov %vm15971_vm0  ;;  %v12754_v53 = vpop.permute.xlu0 %3627  ;;  %v10028_v38 = vld [vmem:[#allocation3 + $0x28] ss:$76 sps:$4 sm:$0xff]   ;;  %v15322_v43 = vrot.slane %v12293_v16, 4 }
 0x3dc   : > { %v3048_v18 = vsel %vm15972_vm3, %v15956_v24, %v3047_v35  ;;  %v2693_v56 = vsel %vm15967_vm15, %v15974_v60, %v15973_v9  ;;  %15975 = vst [vmem:[#allocation52_spill] sm:$0xff] %v12754_v53  ;;  %6246 = vmatpush1.bf16.msra.mxu0 %v10023_v20  ;;  %v12760_v29 = vsel %vm15976_vm1, %v12029_v26, %v2661_v47  ;;  %vm15977_vm6 = vmmov %vm15976_vm1  ;;  %v15323_v24 = vrot.slane %v12510_v36, 4  ;;  %v3188_v20 = vld [vmem:[#allocation3 + $0x128] sm:$0xf]  ;;  %v10026_v9 = vld [vmem:[#allocation3 + $0x24] ss:$76 sps:$4 sm:$0xff]  }
 0x3dd   : > { %v12764_v10 = vsel %vm15977_vm6, %v12036_v62, %v2677_v6  ;;  %3239 = vrot.lane.b32.xlu1 %v12756_v28, %s10206_s12  ;;  %6187 = vmatprep.subr.bf16.mxu1 %v9575_v52  ;;  %vm15978_vm0 = vmmov %vm15976_vm1  ;;  %v15328_v26 = vrot.slane %v12590_v54, 4  ;;  %v9574_v47 = vcombine.low %v3064_v40, %v3080_v5  ;;  %v9559_v35 = vcombine.high %v3032_v21, %v3048_v18  ;;  %v3179_v5 = vld [vmem:[#allocation3 + $0xdc] sm:$0xf] }
 0x3de   : > { %v2710_v25 = vsel %vm15978_vm0, %v12327_v51, %v2709_v19  ;;  %6247 = vmatprep.subr.bf16.mxu0 %v10028_v38  ;;  %3295 = vrot.lane.b32.xlu0 %v3188_v20, %s10206_s12  ;;  %v12777_v60 = vpop.permute.xlu1 %3951  ;;  %vm15979_vm3 = vmmov %vm15978_vm0  ;;  %v9558_v40 = vcombine.low %v3032_v21, %v3048_v18  ;;  %v9497_v20 = vcombine.high %v12760_v29, %v12764_v10  ;;  %v15980_v6 = vrot.slane %v12061_v33, 4  ;;  %v3170_v51 = vld [vmem:[#allocation3 + $0x90] sm:$0xf] }
 0x3df   : > { %v2694_v52 = vsel %vm15979_vm3, %v12314_v23, %v2693_v56  ;;  %6277 = vmatprep.mubr.bf16.mxu0 %v12355_v31  ;;  %v12783_v19 = vpop.permute.xlu0 %3969  ;;  %6188 = vmatpush2.bf16.msra.mxu1 %v9574_v47  ;;  %v15981_v56 = vrot.slane %v12351_v14, 4  ;;  %vm15982_vm1 = vmmov %vm15967_vm15  ;;  %v15983_v47 = vrot.slane %v12579_v8, 4  ;;  %v15984_v21 = vrot.slane %v12243_v48, 4 }
 0x3e0   : > { %6248 = vmatpush1.bf16.msra.mxu0 %v10026_v9  ;;  %v9513_v38 = vcombine.high %v2694_v52, %v2710_v25  ;;  %v2352_v23 = vsel %vm15967_vm15, %v15980_v6, %v15322_v43  ;;  %vm15985_vm6 = vmmov %vm15982_vm1  ;;  %v15337_v9 = vrot.slane %v12783_v19, 4  ;;  %6189 = vmatprep.subr.bf16.mxu1 %v9559_v35  ;;  %v15986_v6 = vrot.slane %v12247_v1, 4 }
 0x3e1   : > { %v2400_v62 = vsel %vm15982_vm1, %v15981_v56, %v15323_v24  ;;  %v4021_v18 = vsel %vm15985_vm6, %v15984_v21, %v15983_v47  ;;  %3277 = vrot.lane.b32.xlu1 %v3179_v5, %s10206_s12  ;;  %vm15987_vm0 = vmmov %vm15982_vm1  ;;  %v15988_v56 = vrot.slane %v12777_v60, 4  ;;  %v15989_v24 = vrot.slane %v12452_v4, 4 }
 0x3e2   : > { %v4037_v43 = vsel %vm15987_vm0, %v15986_v6, %v15328_v26  ;;  %vm15990_vm3 = vmmov %vm15987_vm0  ;;  %v9512_v3 = vcombine.low %v2694_v52, %v2710_v25  ;;  %6249 = vmatprep.subr.bf16.mxu0 %v9513_v38  ;;  %3259 = vrot.lane.b32.xlu0 %v3170_v51, %s10206_s12  ;;  %v15991_v5 = vrot.slane %v12302_v27, 4  ;;  %v15992_v35 = vrot.slane %v12073_v63, 4  ;;  %v12830_v52 = vpop.permute.xlu1 %2963 }
 0x3e3   : > { %v4053_v8 = vsel %vm15990_vm3, %v15989_v24, %v15988_v56  ;;  %vm15993_vm15 = vmmov %vm15987_vm0  ;;  %v15994_v21 = vrot.slane %v12478_v39, 4  ;;  %v15995_v6 = vrot.slane %v12324_v61, 4  ;;  %v15997_v24 = vrot.slane %v12466_v32, 4  ;;  %v12835_v56 = vpop.permute.xlu0 %2981  ;;  %6190 = vmatpush2.bf16.msra.mxu1 %v9558_v40 }
 0x3e4   : > { %v2368_v47 = vsel %vm15993_vm15, %v15992_v35, %v15991_v5  ;;  %vm15996_vm1 = vmmov %vm15987_vm0  ;;  %v15346_v38 = vrot.slane %v12830_v52, 4  ;;  %6250 = vmatpush1.bf16.msra.mxu0 %v9512_v3  ;;  %vm16001_vm15 = vcmask 1039360  }
 0x3e5   : > { %v2384_v26 = vsel %vm15996_vm1, %v15995_v6, %v15994_v21  ;;  %vm15998_vm6 = vmmov %vm15987_vm0  ;;  %vm15999_vm0 = vcmask 1031168   ;;  %v2401_v35 = vsel %vm16001_vm15, %v12351_v14, %v2400_v62  ;;  %v15338_v6 = vrot.slane %v12835_v56, 4  ;;  %2967 = vrot.lane.b32.xlu1 %v12714_v57, %s10204_s10  ;;  %6251 = vmatprep.subr.bf16.mxu0 %v9497_v20  ;;  %v12866_v20 = vld [vmem:[#allocation10] ss:$12 sps:$4 sm:$0xff]  }
 0x3e6   : > { %v4069_v25 = vsel %vm15998_vm6, %v15997_v24, %v15337_v9  ;;  %v4054_v51 = vsel %vm15999_vm0, %v12452_v4, %v4053_v8  ;;  %vm16000_vm3 = vmmov %vm15999_vm0  ;;  %2949 = vrot.lane.b32.xlu0 %v12688_v30, %s10204_s10  ;;  %6192 = vmatmul.mubr.bf16.vlgmr.msra.gmra.mxu1 %v12866_v20  ;;  %v10040_v9 = vld [vmem:[#allocation3 + $0x2c] ss:$76 sps:$4 sm:$0xff]  }
 0x3e7   : > { %v4070_v5 = vsel %vm16000_vm3, %v12466_v32, %v4069_v25  ;;  %vm16002_vm1 = vmmov %vm15999_vm0  ;;  %v16004_v32 = vrot.slane %v12433_v37, 4  ;;  %v12884_v25 = vld [vmem:[#allocation3 + $0x120] sm:$0xff]  ;;  %6320 = vmatprep.mubr.bf16.mxu1 %v15761_v15 }
 0x3e8   : > { %v4022_v21 = vsel %vm16002_vm1, %v12243_v48, %v4021_v18  ;;  %v9704_v4 = vcombine.low %v4054_v51, %v4070_v5  ;;  %v9705_v8 = vcombine.high %v4054_v51, %v4070_v5  ;;  %vm16003_vm6 = vmmov %vm15999_vm0  ;;  %vm16005_vm0 = vcmask 1043456  }
 0x3e9   : > { %v4038_v3 = vsel %vm16003_vm6, %v12247_v1, %v4037_v43  ;;  %v3065_v14 = vsel %vm16005_vm0, %v16004_v32, %v15346_v38  ;;  %v9496_v48 = vcombine.low %v12760_v29, %v12764_v10  ;;  %vm16006_vm3 = vmmov %vm16001_vm15  ;;  %v16008_v1 = vrot.slane %v12454_v41, 4  ;;  %v12869_v29 = vpop.permute.xlu1 %2592  ;;  %v10031_v32 = vld [vmem:[#allocation3 + $0xc8] ss:$76 sps:$4 sm:$0xff]  }
 0x3ea   : > { %v2385_v62 = vsel %vm16006_vm3, %v12324_v61, %v2384_v26  ;;  %vm16007_vm15 = vmmov %vm16006_vm3  ;;  %6300 = vmatprep.subr.bf16.mxu1 %v9705_v8  ;;  %v12875_v26 = vpop.permute.xlu0 %3255  ;;  %3293 = vrot.lane.b32.xlu0 %v12884_v25, %s10206_s12 }
 0x3eb   : > { %v2353_v40 = vsel %vm16007_vm15, %v12061_v33, %v2352_v23  ;;  %vm16009_vm1 = vmmov %vm16005_vm0  ;;  %v9481_v10 = vcombine.high %v2385_v62, %v2401_v35  ;;  %16011 = vst [vmem:[#allocation44_spill] sm:$0xff] %v12875_v26  ;;  %6252 = vmatpush1.bf16.msra.mxu0 %v9496_v48  ;;  %6301 = vmatpush1.bf16.msra.mxu1 %v9704_v4  ;;  %v3161_v33 = vld [vmem:[#allocation3 + $0x44] sm:$0xf]  ;;  %vm16014_vm15 = vcmask 261120  }
 0x3ec   : > { %v3081_v43 = vsel %vm16009_vm1, %v16008_v1, %v15338_v6  ;;  %vm16010_vm6 = vmmov %vm16006_vm3  ;;  %v9689_v23 = vcombine.high %v4022_v21, %v4038_v3  ;;  %3241 = vrot.lane.b32.xlu1 %v3161_v33, %s10206_s12  ;;  %v9480_v5 = vcombine.low %v2385_v62, %v2401_v35  ;;  %v9688_v4 = vcombine.low %v4022_v21, %v4038_v3  ;;  %v2880_v21 = vld [vmem:[#allocation3 + $0x128] sm:$0xf]  ;;  %v10029_v48 = vld [vmem:[#allocation3 + $0xc4] ss:$76 sps:$4 sm:$0xff]  }
 0x3ed   : > { %v12873_v61 = vsel %vm16010_vm6, %v12433_v37, %v3065_v14  ;;  %vm16012_vm0 = vmmov %vm16006_vm3  ;;  %6253 = vmatprep.subr.bf16.mxu0 %v9481_v10  ;;  %v15334_v14 = vrot.slane %v12642_v22, 4  ;;  %v15336_v35 = vrot.slane %v12869_v29, 4  ;;  %v16015_v1 = vrot.slane %v12252_v46, 4  ;;  %v10034_v33 = vld [vmem:[#allocation3 + $0x30] ss:$76 sps:$4 sm:$0xff]  }
 0x3ee   : > { %v2369_v18 = vsel %vm16012_vm0, %v12073_v63, %v2368_v47  ;;  %vm16013_vm3 = vmmov %vm16012_vm0  ;;  %6302 = vmatprep.subr.bf16.mxu1 %v9689_v23  ;;  %v12892_v63 = vpop.permute.xlu1 %2283  ;;  %v15335_v47 = vrot.slane %v12633_v7, 4  ;;  %v12896_v8 = vpop.permute.xlu0 %2945  ;;  %2987 = vrot.lane.b32.xlu0 %v2880_v21, %s10204_s10  ;;  %v16016_v23 = vrot.slane %v12255_v0, 4  ;;  %v3859_v21 = vld [vmem:[#allocation3 + $0xe0] sm:$0xf] }
 0x3ef   : > { %v12881_v24 = vsel %vm16013_vm3, %v12454_v41, %v3081_v43  ;;  %v9465_v41 = vcombine.high %v2353_v40, %v2369_v18  ;;  %6254 = vmatpush1.bf16.msra.mxu0 %v9480_v5  ;;  %6303 = vmatpush1.bf16.msra.mxu1 %v9688_v4  ;;  %v9464_v3 = vcombine.low %v2353_v40, %v2369_v18  ;;  %v2871_v40 = vld [vmem:[#allocation3 + $0xdc] sm:$0xf]  ;;  %vm16017_vm6 = vmmov %vm16009_vm1  ;;  %v16018_v5 = vrot.slane %v12463_v2, 4 }
 0x3f0   : > { %2931 = vrot.lane.b32.xlu1 %v12756_v28, %s10204_s10  ;;  %6331 = vmatprep.subr.bf16.mxu1 %v10031_v32  ;;  %v2663_v43 = vsel %vm16009_vm1, %v16015_v1, %v15335_v47  ;;  %v2679_v18 = vsel %vm16017_vm6, %v16016_v23, %v15334_v14  ;;  %vm16019_vm0 = vmmov %vm16009_vm1  ;;  %v10032_v32 = vld [vmem:[#allocation3 + $0x2c] ss:$76 sps:$4 sm:$0xff]  }
 0x3f1   : > { %6255 = vmatprep.subr.bf16.mxu0 %v9465_v41  ;;  %v2695_v4 = vsel %vm16019_vm0, %v16018_v5, %v15336_v35  ;;  %vm16021_vm3 = vmmov %vm16019_vm0  ;;  %v3868_v23 = vld [vmem:[#allocation3 + $0x12c] sm:$0xf] }
 0x3f2   : > { %v12903_v62 = vpop.permute.xlu1 %3643  ;;  %9716 = vmatmul.mubr.msk.bf16.vlgmr.msra.gmra.mxu1 %vm16014_vm15, %v12741_v55  ;;  %v12912_v10 = vpop.permute.xlu0 %2610  ;;  %2985 = vrot.lane.b32.xlu0 %v12884_v25, %s10204_s10  ;;  %vm16022_vm15 = vcmask 1031168   ;;  %v10035_v14 = vld [vmem:[#allocation3 + $0xc0] ss:$76 sps:$4 sm:$0xff]  }
 0x3f3   : > { %6256 = vmatpush1.bf16.msra.mxu0 %v9464_v3  ;;  %6332 = vmatpush1.bf16.msra.mxu1 %v10029_v48  ;;  %v15329_v41 = vrot.slane %v12912_v10, 4  ;;  %v16020_v3 = vrot.slane %v12485_v42, 4  ;;  %vm16024_vm1 = vmmov %vm16022_vm15 }
 0x3f4   : > { %2969 = vrot.lane.b32.xlu1 %v2871_v40, %s10204_s10  ;;  %6257 = vmatprep.subr.bf16.mxu0 %v12595_v17  ;;  %v2664_v40 = vsel %vm16022_vm15, %v12252_v46, %v2663_v43  ;;  %v15332_v17 = vrot.slane %v12669_v44, 4  ;;  %v2696_v5 = vsel %vm16024_vm1, %v12463_v2, %v2695_v4  ;;  %vm16025_vm6 = vmmov %vm16024_vm1  ;;  %v15330_v46 = vrot.slane %v12675_v45, 4 }
 0x3f5   : > { %6333 = vmatprep.subr.bf16.mxu1 %v10034_v33  ;;  %v2711_v48 = vsel %vm16021_vm3, %v16020_v3, %v15329_v41  ;;  %6363 = vmatprep.mubr.bf16.mxu1 %v12355_v31  ;;  %vm16026_vm0 = vmmov %vm16024_vm1  ;;  %v15333_v31 = vrot.slane %v12892_v63, 4 }
 0x3f6   : > { %v12934_v1 = vpop.permute.xlu1 %3645  ;;  %v12940_v33 = vpop.permute.xlu0 %2947  ;;  %v2712_v3 = vsel %vm16025_vm6, %v12485_v42, %v2711_v48  ;;  %v2680_v41 = vsel %vm16026_vm0, %v12255_v0, %v2679_v18  ;;  %3975 = vrot.lane.b32.xlu0 %v3868_v23, %s10206_s12  ;;  %v2853_v0 = vld [vmem:[#allocation3 + $0x44] sm:$0xf]  ;;  %v16028_v18 = vrot.slane %v12293_v16, 4  ;;  %vm16030_vm15 = vmmov %vm16021_vm3  ;;  %v16031_v48 = vrot.slane %v12478_v39, 4 }
 0x3f7   : > { %16023 = vst [vmem:[#allocation53_spill] sm:$0xff] %v12940_v33  ;;  %6258 = vmatpush1.bf16.msra.mxu0 %v12626_v49  ;;  %6334 = vmatpush1.bf16.msra.mxu1 %v10032_v32  ;;  %v9514_v43 = vcombine.low %v2696_v5, %v2712_v3  ;;  %v9515_v49 = vcombine.high %v2696_v5, %v2712_v3  ;;  %v16029_v32 = vrot.slane %v12302_v27, 4  ;;  %vm16032_vm1 = vmmov %vm16021_vm3  ;;  %v2862_v5 = vld [vmem:[#allocation3 + $0x90] sm:$0xf]  ;;  %vm16036_vm0 = vcmask 1039360  }
 0x3f8   : > { %3957 = vrot.lane.b32.xlu1 %v3859_v21, %s10206_s12  ;;  %6259 = vmatprep.subr.bf16.mxu0 %v12635_v59  ;;  %v9499_v4 = vcombine.high %v2664_v40, %v2680_v41  ;;  %v2354_v59 = vsel %vm16021_vm3, %v16028_v18, %v15332_v17  ;;  %v9498_v3 = vcombine.low %v2664_v40, %v2680_v41  ;;  %vm16034_vm6 = vmmov %vm16032_vm1  ;;  %v15341_v17 = vrot.slane %v12754_v53, 4 }
 0x3f9   : > { %6335 = vmatprep.subr.bf16.mxu1 %v9515_v49  ;;  %v2370_v21 = vsel %vm16030_vm15, %v16029_v32, %v15330_v46  ;;  %v16033_v49 = vrot.slane %v12510_v36, 4  ;;  %v3850_v46 = vld [vmem:[#allocation3 + $0x94] sm:$0xf]  ;;  %vm16037_vm3 = vmmov %vm16036_vm0 }
 0x3fa   : > { %v12954_v2 = vpop.permute.xlu1 %3273  ;;  %v12956_v42 = vpop.permute.xlu0 %2301  ;;  %2951 = vrot.lane.b32.xlu0 %v2862_v5, %s10204_s10  ;;  %vm16038_vm15 = vmmov %vm16036_vm0 }
 0x3fb   : > { %16027 = vst [vmem:[#allocation63_spill] sm:$0xff] %v12954_v2  ;;  %6260 = vmatpush1.bf16.msra.mxu0 %v12662_v58  ;;  %6336 = vmatpush1.bf16.msra.mxu1 %v9514_v43  ;;  %v2386_v58 = vsel %vm16032_vm1, %v16031_v48, %v15333_v31  ;;  %v15331_v23 = vrot.slane %v12956_v42, 4  ;;  %v3841_v43 = vld [vmem:[#allocation3 + $0x48] sm:$0xf]  ;;  %v2355_v40 = vsel %vm16038_vm15, %v12293_v16, %v2354_v59  ;;  %vm16039_vm1 = vmmov %vm16036_vm0  ;;  %v3692_v16 = vrot.slane %v12903_v62, 4 }
 0x3fc   : > { %2933 = vrot.lane.b32.xlu1 %v2853_v0, %s10204_s10  ;;  %6337 = vmatprep.subr.bf16.mxu1 %v9499_v4  ;;  %v2387_v4 = vsel %vm16036_vm0, %v12478_v39, %v2386_v58  ;;  %v2371_v0 = vsel %vm16039_vm1, %v12302_v27, %v2370_v21  ;;  %v3674_v39 = vrot.slane %v12698_v11, 4  ;;  %v16040_v27 = vld [vmem:[#allocation21_spill] sm:$0xff]  ;;  %v16041_v21 = vld [vmem:[#allocation22_spill] sm:$0xff]  ;;  %vm16045_vm0 = vmmov %vm16034_vm6 }
 0x3fd   : > { %v2402_v18 = vsel %vm16034_vm6, %v16033_v49, %v15331_v23  ;;  %v9467_v23 = vcombine.high %v2355_v40, %v2371_v0  ;;  %v9466_v59 = vcombine.low %v2355_v40, %v2371_v0  ;;  %vm16051_vm15 = vmmov %vm16045_vm0 }
 0x3fe   : > { %v12982_v32 = vpop.permute.xlu1 %3237  ;;  %v12984_v48 = vpop.permute.xlu0 %3935  ;;  %v2403_v41 = vsel %vm16037_vm3, %v12510_v36, %v2402_v18  ;;  %3939 = vrot.lane.b32.xlu0 %v3850_v46, %s10206_s12  ;;  %v3683_v36 = vrot.slane %v12712_v50, 4  ;;  %v16043_v18 = vrot.slane %v12150_v13, 4  ;;  %vm16048_vm3 = vmmov %vm16045_vm0 }
 0x3ff   : > { %16035 = vst [vmem:[#allocation64_spill] sm:$0xff] %v12982_v32  ;;  %6338 = vmatpush1.bf16.msra.mxu1 %v9498_v3  ;;  %v9482_v5 = vcombine.low %v2387_v4, %v2403_v41  ;;  %v9483_v49 = vcombine.high %v2387_v4, %v2403_v41  ;;  %v16044_v41 = vrot.slane %v12170_v34, 4  ;;  %vm16056_vm4 = vmmov %vm16039_vm1 }
 0x400   : > { %3921 = vrot.lane.b32.xlu1 %v3841_v43, %s10206_s12  ;;  %v10037_v43 = vld [vmem:[#allocation3 + $0xc4] ss:$76 sps:$4 sm:$0xff]   ;;  %v3713_v4 = vsel %vm16034_vm6, %v16043_v18, %v3674_v39  ;;  %vm16052_vm6 = vmmov %vm16039_vm1 }
 0x401   : > { %6339 = vmatprep.subr.bf16.mxu1 %v9483_v49  ;;  %v3729_v49 = vsel %vm16045_vm0, %v16044_v41, %v3683_v36  ;;  %v16049_v18 = vld [vmem:[#allocation39_spill] sm:$0xff]  ;;  %v3714_v37 = vsel %vm16039_vm1, %v12150_v13, %v3713_v4 }
 0x402   : > { %v12996_v3 = vpop.permute.xlu1 %2927  ;;  %v13000_v58 = vpop.permute.xlu0 %3937  ;;  %4440 = vperm.xlu0 %9971, %v16041_v21   ;;  %v15344_v21 = vrot.slane %v12934_v1, 4  ;;  %v16050_v47 = vrot.slane %v16049_v18, 4 }
 0x403   : > { %6340 = vmatpush1.bf16.msra.mxu1 %v9482_v5  ;;  %v15340_v5 = vrot.slane %v12739_v12, 4 }
 0x404   : > { %4435 = vperm.xlu1 %9972, %v16040_v27   ;;  %6341 = vmatprep.subr.bf16.mxu1 %v9467_v23  ;;  %v16046_v23 = vld [vmem:[#allocation55_spill] sm:$0xff] }
 0x405   : > { %v16047_v40 = vrot.slane %v16046_v23, 4 }
 0x406   : > { %v13005_v46 = vpop.permute.xlu1 %2965  ;;  %v3662_v27 = vpop.permute.xlu0 %3661 }
 0x407   : > { %16042 = vst [vmem:[#allocation59_spill] sm:$0xff] %v13005_v46  ;;  %6342 = vmatpush1.bf16.msra.mxu1 %v9466_v59  ;;  %v3745_v0 = vsel %vm16048_vm3, %v16047_v40, %v3692_v16  ;;  %v3701_v31 = vrot.slane %v3662_v27, 4  ;;  %v3730_v59 = vsel %vm16052_vm6, %v12170_v34, %v3729_v49  ;;  %v3715_v40 = vsel %vm16045_vm0, %v3674_v39, %v15340_v5  ;;  %vm16053_vm3 = vmmov %vm16045_vm0  ;;  %v10038_v5 = vld [vmem:[#allocation3 + $0x28] ss:$76 sps:$4 sm:$0xff]  }
 0x408   : > { %6343 = vmatprep.subr.bf16.mxu1 %v10037_v43  ;;  %v3731_v6 = vsel %vm16053_vm3, %v3683_v36, %v15341_v17  ;;  %vm16058_vm6 = vmmov %vm16045_vm0  ;;  %v16093_v12 = vrot.slane %v13005_v46, 4 }
 0x409   : > { %v3761_v35 = vsel %vm16051_vm15, %v16050_v47, %v3701_v31  ;;  %vm16055_vm15 = vmmov %vm16039_vm1 }
 0x40a   : > { %v13022_v41 = vpop.permute.xlu1 %3953  ;;  %v13034_v51 = vpop.permute.xlu0 %3663  ;;  %v3746_v47 = vsel %vm16055_vm15, %v16046_v23, %v3745_v0  ;;  %v3762_v13 = vsel %vm16056_vm4, %v16049_v18, %v3761_v35  ;;  %vm16057_vm1 = vmmov %vm16045_vm0  ;;  %v9657_v23 = vcombine.high %v3714_v37, %v3730_v59  ;;  %v3716_v35 = vsel %vm16056_vm4, %v12698_v11, %v3715_v40 }
 0x40b   : > { %16054 = vst [vmem:[#allocation51_spill] sm:$0xff] %v13034_v51  ;;  %6344 = vmatpush1.bf16.msra.mxu1 %v10035_v14  ;;  %v3747_v34 = vsel %vm16057_vm1, %v3692_v16, %v15344_v21  ;;  %v15342_v4 = vrot.slane %v13034_v51, 4  ;;  %v9672_v39 = vcombine.low %v3746_v47, %v3762_v13  ;;  %v9673_v49 = vcombine.high %v3746_v47, %v3762_v13  ;;  %vm16060_vm0 = vmmov %vm16056_vm4 }
 0x40c   : > { %6345 = vmatprep.subr.bf16.mxu1 %v10040_v9  ;;  %v3748_v16 = vsel %vm16060_vm0, %v12903_v62, %v3747_v34  ;;  %vm16061_vm3 = vmmov %vm16060_vm0 }
 0x40d   : > { %v3763_v36 = vsel %vm16058_vm6, %v3701_v31, %v15342_v4  ;;  %6261 = vmatprep.subr.bf16.mxu0 %v9673_v49  ;;  %vm16062_vm15 = vmmov %vm16060_vm0  ;;  %v9656_v49 = vcombine.low %v3714_v37, %v3730_v59  ;;  %v15345_v37 = vrot.slane %v12982_v32, 4  ;;  %v13071_v59 = vld [vmem:[#allocation3 + $0xc8] ss:$76 sps:$4 sm:$0xff]  }
 0x40e   : > { %v13047_v17 = vpop.permute.xlu1 %2929  ;;  %v13051_v0 = vpop.permute.xlu0 %2576  ;;  %6262 = vmatpush2.bf16.msra.mxu0 %v9672_v39  ;;  %v3764_v18 = vsel %vm16061_vm3, %v3662_v27, %v3763_v36  ;;  %v3732_v47 = vsel %vm16062_vm15, %v12712_v50, %v3731_v6  ;;  %v13064_v27 = vld [vmem:[#allocation3 + $0xcc] ss:$76 sps:$4 sm:$0xff]   ;;  %v15343_v6 = vrot.slane %v12954_v2, 4  ;;  %v13076_v36 = vld [vmem:[#allocation3 + $0x34] ss:$76 sps:$4 sm:$0xff]   ;;  %vm16069_vm6 = vmmov %vm16057_vm1  ;;  %vm16081_vm3 = vcmask 1031168  }
 0x40f   : > { %16059 = vst [vmem:[#allocation57_spill] sm:$0xff] %v13047_v17  ;;  %6346 = vmatpush1.bf16.msra.mxu1 %v10038_v5  ;;  %6263 = vmatprep.subr.bf16.mxu0 %v9657_v23  ;;  %v9674_v31 = vcombine.low %v3748_v16, %v3764_v18  ;;  %v9675_v13 = vcombine.high %v3748_v16, %v3764_v18  ;;  %16063 = vst [vmem:[#allocation43_spill] sm:$0xff] %v13076_v36  ;;  %v16067_v16 = vld [vmem:[#allocation60_spill] sm:$0xff] }
 0x410   : > { %v9659_v11 = vcombine.high %v3716_v35, %v3732_v47  ;;  %v9658_v62 = vcombine.low %v3716_v35, %v3732_v47  ;;  %v16068_v18 = vrot.slane %v16067_v16, 4  ;;  %vm16076_vm4 = vmmov %vm16057_vm1 }
 0x411   : > { %6347 = vmatprep.subr.bf16.mxu1 %v9675_v13  ;;  %vm16079_vm0 = vmmov %vm16057_vm1 }
 0x412   : > { %v13058_v4 = vpop.permute.xlu1 %3917  ;;  %v13060_v40 = vpop.permute.xlu0 %2578  ;;  %6264 = vmatpush2.bf16.msra.mxu0 %v9656_v49  ;;  %v3343_v47 = vsel %vm16069_vm6, %v16068_v18, %v15345_v37  ;;  %v16070_v49 = vld [vmem:[#allocation50_spill] sm:$0xff]  ;;  %v3003_v18 = vrot.slane %v12896_v8, 4  ;;  %v16077_v37 = vld [vmem:[#allocation68_spill] sm:$0xff]  ;;  %vm16082_vm15 = vmmov %vm16081_vm3 }
 0x413   : > { %6348 = vmatpush2.bf16.msra.mxu1 %v9674_v31  ;;  %6265 = vmatprep.subr.bf16.mxu0 %v10037_v43  ;;  %v15355_v43 = vrot.slane %v12875_v26, 4  ;;  %v2994_v31 = vrot.slane %v12996_v3, 4  ;;  %v16078_v38 = vrot.slane %v16077_v37, 4  ;;  %vm16086_vm6 = vmmov %vm16079_vm0 }
 0x414   : > { %6349 = vmatprep.subr.bf16.mxu1 %v9659_v11 }
 0x416   : > { %v13062_v34 = vpop.permute.xlu1 %3955  ;;  %v13066_v50 = vpop.permute.xlu0 %2267  ;;  %6266 = vmatpush2.bf16.msra.mxu0 %v10035_v14  ;;  %v16065_v14 = vld [vmem:[#allocation42_spill] sm:$0xff] }
 0x417   : > { %6350 = vmatpush2.bf16.msra.mxu1 %v9658_v62  ;;  %6267 = vmatprep.subr.bf16.mxu0 %v10040_v9  ;;  %v16066_v35 = vrot.slane %v16065_v14, 4  ;;  %v13097_v62 = vld [vmem:[#allocation3 + $0x30] ss:$76 sps:$4 sm:$0xff]  }
 0x418   : > { %6351 = vmatprep.subr.bf16.mxu1 %v13064_v27  ;;  %16073 = vst [vmem:[#allocation66_spill] sm:$0xff] %v13097_v62 }
 0x419   : > { %v3375_v9 = vsel %vm16057_vm1, %v16066_v35, %v15343_v6  ;;  %v16074_v35 = vld [vmem:[#allocation48_spill] sm:$0xff]  ;;  %vm16083_vm1 = vmmov %vm16081_vm3 }
 0x41a   : > { %v13074_v39 = vpop.permute.xlu1 %3919  ;;  %v13078_v23 = vpop.permute.xlu0 %3291  ;;  %6268 = vmatpush2.bf16.msra.mxu0 %v10038_v5  ;;  %v16071_v5 = vld [vmem:[#allocation46_spill] sm:$0xff]  ;;  %v16075_v6 = vrot.slane %v16074_v35, 4 }
 0x41b   : > { %16064 = vst [vmem:[#allocation65_spill] sm:$0xff] %v13078_v23  ;;  %6352 = vmatpush2.bf16.msra.mxu1 %v13071_v59  ;;  %v15356_v13 = vrot.slane %v13078_v23, 4  ;;  %v16072_v11 = vcombine.high %v16070_v49, %v16071_v5  ;;  %v16080_v26 = vcombine.low %v16070_v49, %v16071_v5  ;;  %v16088_v49 = vld [vmem:[#allocation49_spill] sm:$0xff] }
 0x41c   : > { %6353 = vmatprep.subr.bf16.mxu1 %v13076_v36  ;;  %v3359_v21 = vsel %vm16076_vm4, %v16075_v6, %v15355_v43  ;;  %v3376_v6 = vsel %vm16081_vm3, %v16065_v14, %v3375_v9  ;;  %v16087_v36 = vld [vmem:[#allocation67_spill] sm:$0xff]  ;;  %vm16090_vm4 = vmmov %vm16083_vm1 }
 0x41d   : > { %6269 = vmatprep.subr.bf16.mxu0 %v16072_v11  ;;  %v3391_v32 = vsel %vm16079_vm0, %v16078_v38, %v15356_v13  ;;  %v3344_v38 = vsel %vm16083_vm1, %v16067_v16, %v3343_v47  ;;  %v16084_v13 = vld [vmem:[#allocation45_spill] sm:$0xff]  ;;  %v4001_v47 = vrot.slane %v13022_v41, 4  ;;  %vm16095_vm3 = vmmov %vm16079_vm0 }
 0x41e   : > { %v13110_v2 = vpop.permute.xlu1 %2594  ;;  %v13113_v51 = vpop.permute.xlu0 %2269  ;;  %6270 = vmatpush2.bf16.msra.mxu0 %v16080_v26  ;;  %v3392_v43 = vsel %vm16082_vm15, %v16077_v37, %v3391_v32  ;;  %v16085_v23 = vrot.slane %v16084_v13, 4  ;;  %v16089_v26 = vcombine.high %v16087_v36, %v16088_v49  ;;  %v3360_v32 = vsel %vm16090_vm4, %v16074_v35, %v3359_v21  ;;  %v16091_v37 = vld [vmem:[#allocation69_spill] sm:$0xff]  ;;  %vm16100_vm1 = vmmov %vm16079_vm0 }
 0x41f   : > { %6354 = vmatpush2.bf16.msra.mxu1 %v13097_v62  ;;  %v9610_v5 = vcombine.low %v3376_v6, %v3392_v43  ;;  %v9611_v62 = vcombine.high %v3376_v6, %v3392_v43  ;;  %v16092_v9 = vrot.slane %v16091_v37, 4  ;;  %v9595_v53 = vcombine.high %v3344_v38, %v3360_v32 }
 0x420   : > { %v3033_v11 = vsel %vm16086_vm6, %v16085_v23, %v2994_v31  ;;  %6271 = vmatprep.subr.bf16.mxu0 %v16089_v26  ;;  %v16094_v26 = vrot.slane %v12830_v52, 4  ;;  %v3983_v6 = vrot.slane %v13058_v4, 4  ;;  %v16097_v21 = vcombine.low %v16087_v36, %v16088_v49  ;;  %vm16103_vm6 = vmmov %vm16079_vm0 }
 0x421   : > { %v3049_v16 = vsel %vm16079_vm0, %v16092_v9, %v3003_v18  ;;  %6355 = vmatprep.subr.bf16.mxu1 %v9611_v62  ;;  %vm16098_vm15 = vcmask 1039360   ;;  %v16099_v35 = vrot.slane %v13047_v17, 4  ;;  %v3992_v49 = vrot.slane %v12984_v48, 4 }
 0x422   : > { %v13139_v23 = vpop.permute.xlu1 %2558  ;;  %v3067_v43 = vsel %vm16095_vm3, %v16094_v26, %v16093_v12  ;;  %v13147_v14 = vpop.permute.xlu0 %2983  ;;  %6272 = vmatpush2.bf16.msra.mxu0 %v16097_v21  ;;  %v3034_v62 = vsel %vm16098_vm15, %v16084_v13, %v3033_v11  ;;  %v16101_v12 = vcombine.high %v12873_v61, %v12881_v24  ;;  %v16102_v26 = vrot.slane %v12940_v33, 4  ;;  %vm16104_vm4 = vmmov %vm16098_vm15 }
 0x423   : > { %16096 = vst [vmem:[#allocation40_spill] sm:$0xff] %v13147_v14  ;;  %6356 = vmatpush2.bf16.msra.mxu1 %v9610_v5  ;;  %v3035_v9 = vsel %vm16100_vm1, %v2994_v31, %v16099_v35  ;;  %v15367_v46 = vrot.slane %v13147_v14, 4  ;;  %v9594_v5 = vcombine.low %v3344_v38, %v3360_v32  ;;  %v3050_v13 = vsel %vm16104_vm4, %v16091_v37, %v3049_v16  ;;  %vm16107_vm3 = vmmov %vm16079_vm0  ;;  %v16109_v38 = vld [vmem:[#allocation54_spill] sm:$0xff] }
 0x424   : > { %6273 = vmatprep.subr.bf16.mxu0 %v16101_v12  ;;  %6357 = vmatprep.subr.bf16.mxu1 %v9595_v53  ;;  %v3051_v36 = vsel %vm16103_vm6, %v3003_v18, %v16102_v26  ;;  %v16105_v11 = vrot.slane %v12777_v60, 4  ;;  %v16106_v21 = vrot.slane %v12835_v56, 4  ;;  %v9561_v12 = vcombine.high %v3034_v62, %v3050_v13  ;;  %vm16108_vm15 = vmmov %vm16104_vm4 }
 0x425   : > { %v3068_v18 = vsel %vm16108_vm15, %v12830_v52, %v3067_v43  ;;  %v16110_v32 = vrot.slane %v16109_v38, 4  ;;  %vm16111_vm1 = vmmov %vm16079_vm0  ;;  %v3984_v52 = vrot.slane %v13074_v39, 4  ;;  %v16114_v16 = vrot.slane %v12590_v54, 4 }
 0x426   : > { %v4055_v31 = vsel %vm16079_vm0, %v16105_v11, %v4001_v47  ;;  %v3083_v53 = vsel %vm16107_vm3, %v16106_v21, %v15367_v46  ;;  %v13175_v35 = vpop.permute.xlu1 %2596  ;;  %v3972_v26 = vpop.permute.xlu0 %3971  ;;  %v16112_v11 = vcombine.low %v12873_v61, %v12881_v24  ;;  %vm16113_vm6 = vmmov %vm16104_vm4  ;;  %v3036_v46 = vsel %vm16104_vm4, %v12996_v3, %v3035_v9 }
 0x427   : > { %v4023_v37 = vsel %vm16111_vm1, %v16110_v32, %v3983_v6  ;;  %6358 = vmatpush2.bf16.msra.mxu1 %v9594_v5  ;;  %v3084_v21 = vsel %vm16113_vm6, %v12835_v56, %v3083_v53  ;;  %v4010_v43 = vrot.slane %v3972_v26, 4  ;;  %v4039_v33 = vsel %vm16079_vm0, %v16114_v16, %v3992_v49  ;;  %vm16115_vm3 = vmmov %vm16104_vm4 }
 0x428   : > { %6274 = vmatpush2.bf16.msra.mxu0 %v16112_v11  ;;  %v9578_v14 = vcombine.low %v3068_v18, %v3084_v21  ;;  %v9579_v32 = vcombine.high %v3068_v18, %v3084_v21  ;;  %v9560_v17 = vcombine.low %v3034_v62, %v3050_v13  ;;  %v3052_v61 = vsel %vm16115_vm3, %v12896_v8, %v3051_v36  ;;  %vm16117_vm15 = vmmov %vm16079_vm0 }
 0x429   : > { %6275 = vmatprep.subr.bf16.mxu0 %v9561_v12  ;;  %v3993_v24 = vrot.slane %v13000_v58, 4  ;;  %v16116_v56 = vrot.slane %v12783_v19, 4  ;;  %v9563_v5 = vcombine.high %v3036_v46, %v3052_v61  ;;  %vm16118_vm1 = vcmask 1031168   ;;  %vm16120_vm6 = vmmov %vm16079_vm0 }
 0x42a   : > { %6359 = vmatprep.subr.bf16.mxu1 %v9579_v32  ;;  %v13200_v9 = vpop.permute.xlu1 %2285  ;;  %v4056_v53 = vsel %vm16118_vm1, %v12777_v60, %v4055_v31  ;;  %v16119_v12 = vrot.slane %v13062_v34, 4  ;;  %v13207_v13 = vpop.permute.xlu0 %3973  ;;  %vm16121_vm4 = vmmov %vm16118_vm1 }
 0x42b   : > { %v4071_v3 = vsel %vm16117_vm15, %v16116_v56, %v4010_v43  ;;  %6360 = vmatpush2.bf16.msra.mxu1 %v9578_v14  ;;  %vm16122_vm0 = vmmov %vm16118_vm1  ;;  %v4011_v60 = vrot.slane %v13207_v13, 4 }
 0x42c   : > { %v4057_v62 = vsel %vm16120_vm6, %v4001_v47, %v16119_v12  ;;  %6276 = vmatpush2.bf16.msra.mxu0 %v9560_v17  ;;  %v4072_v8 = vsel %vm16121_vm4, %v12783_v19, %v4071_v3  ;;  %v4024_v36 = vsel %vm16122_vm0, %v16109_v38, %v4023_v37  ;;  %vm16123_vm3 = vmmov %vm16120_vm6  ;;  %6361 = vmatprep.subr.bf16.mxu1 %v9563_v5  ;;  %v10047_v3 = vld [vmem:[#allocation3 + $0xcc] ss:$76 sps:$4 sm:$0xff]  }
 0x42d   : > { %v4025_v18 = vsel %vm16123_vm3, %v3983_v6, %v3984_v52  ;;  %v9706_v31 = vcombine.low %v4056_v53, %v4072_v8  ;;  %v9707_v16 = vcombine.high %v4056_v53, %v4072_v8  ;;  %v9562_v47 = vcombine.low %v3036_v46, %v3052_v61  ;;  %vm16124_vm15 = vmmov %vm16122_vm0  ;;  %v10052_v53 = vld [vmem:[#allocation3 + $0x38] ss:$76 sps:$4 sm:$0xff]  }
 0x42e   : > { %v4040_v17 = vsel %vm16124_vm15, %v12590_v54, %v4039_v33  ;;  %vm16125_vm1 = vmmov %vm16123_vm3  ;;  %v13226_v6 = vpop.permute.xlu1 %2560  ;;  %v13228_v37 = vpop.permute.xlu0 %3629  ;;  %v9551_v12 = vcombine.high %v12714_v57, %v12884_v25 }
 0x42f   : > { %v4041_v19 = vsel %vm16125_vm1, %v3992_v49, %v3993_v24  ;;  %vm16126_vm6 = vmmov %vm16125_vm1  ;;  %6278 = vmatmul.mubr.bf16.vlgmr.msra.gmra.mxu0 %v12866_v20  ;;  %6386 = vmatprep.subr.bf16.mxu0 %v9707_v16  ;;  %v9691_v38 = vcombine.high %v4024_v36, %v4040_v17  ;;  %v9690_v21 = vcombine.low %v4024_v36, %v4040_v17  ;;  %vm16130_vm1 = vcmask 261120  }
 0x430   : > { %v4073_v14 = vsel %vm16126_vm6, %v4010_v43, %v4011_v60  ;;  %6362 = vmatpush2.bf16.msra.mxu1 %v9562_v47  ;;  %6387 = vmatpush1.bf16.msra.mxu0 %v9706_v31  ;;  %vm16127_vm4 = vmmov %vm16122_vm0  ;;  %v2642_v36 = vrot.slane %v13175_v35, 4  ;;  %v16132_v31 = vrot.slane %v12633_v7, 4  ;;  %v2624_v47 = vrot.slane %v13226_v6, 4 }
 0x431   : > { %v4058_v54 = vsel %vm16127_vm4, %v13022_v41, %v4057_v62  ;;  %v4074_v33 = vsel %vm16122_vm0, %v3972_v26, %v4073_v14  ;;  %vm16128_vm3 = vmmov %vm16122_vm0  ;;  %6388 = vmatprep.subr.bf16.mxu0 %v9691_v38  ;;  %6406 = vmatprep.mubr.bf16.mxu0 %v15761_v15  ;;  %v10049_v41 = vld [vmem:[#allocation3 + $0xd0] ss:$76 sps:$4 sm:$0xff]   ;;  %v2641_v26 = vrot.slane %v13110_v2, 4  ;;  %v16131_v62 = vrot.slane %v12869_v29, 4  ;;  %v10050_v14 = vld [vmem:[#allocation3 + $0x34] ss:$76 sps:$4 sm:$0xff]  }
 0x432   : > { %v4026_v46 = vsel %vm16128_vm3, %v13058_v4, %v4025_v18  ;;  %v9708_v49 = vcombine.low %v4058_v54, %v4074_v33  ;;  %v9709_v11 = vcombine.high %v4058_v54, %v4074_v33  ;;  %vm16129_vm15 = vmmov %vm16122_vm0  ;;  %v13239_v32 = vpop.permute.xlu1 %2249  ;;  %v13242_v56 = vpop.permute.xlu0 %3667  ;;  %v2623_v4 = vrot.slane %v13139_v23, 4  ;;  %v10119_v54 = vld [vmem:[#allocation10 + $0x4] ss:$12 sps:$4 sm:$0xff]  }
 0x433   : > { %v4042_v43 = vsel %vm16129_vm15, %v12984_v48, %v4041_v19  ;;  %6364 = vmatmul.mubr.bf16.vlgmr.msra.gmra.mxu1 %v12866_v20  ;;  %v2632_v20 = vrot.slane %v13051_v0, 4  ;;  %v2697_v8 = vsel %vm16126_vm6, %v16131_v62, %v2641_v26  ;;  %vm16133_vm4 = vmmov %vm16126_vm6  ;;  %v2633_v19 = vrot.slane %v13060_v40, 4 }
 0x434   : > { %6472 = vmatprep.subr.bf16.mxu1 %v9709_v11  ;;  %v9693_v61 = vcombine.high %v4026_v46, %v4042_v43  ;;  %6389 = vmatpush1.bf16.msra.mxu0 %v9690_v21  ;;  %v9692_v5 = vcombine.low %v4026_v46, %v4042_v43  ;;  %v2665_v16 = vsel %vm16133_vm4, %v16132_v31, %v2623_v4  ;;  %v16134_v33 = vrot.slane %v12642_v22, 4  ;;  %vm16135_vm0 = vmmov %vm16133_vm4 }
 0x435   : > { %6473 = vmatpush1.bf16.msra.mxu1 %v9708_v49  ;;  %6417 = vmatprep.subr.bf16.mxu0 %v10049_v41  ;;  %v9550_v38 = vcombine.low %v12714_v57, %v12884_v25  ;;  %v9535_v35 = vcombine.high %v12756_v28, %v12688_v30  ;;  %v2332_v6 = vrot.slane %v13200_v9, 4  ;;  %v16136_v49 = vrot.slane %v12912_v10, 4  ;;  %vm16137_vm3 = vmmov %vm16135_vm0 }
 0x436   : > { %6474 = vmatprep.subr.bf16.mxu1 %v9693_v61  ;;  %6492 = vmatprep.mubr.bf16.mxu1 %v15761_v15  ;;  %v13249_v48 = vpop.permute.xlu1 %2287  ;;  %v2613_v18 = vpop.permute.xlu0 %2612  ;;  %v2681_v46 = vsel %vm16135_vm0, %v16134_v33, %v2632_v20  ;;  %vm16138_vm15 = vmmov %vm16130_vm1  ;;  %v2314_v21 = vrot.slane %v13239_v32, 4  ;;  %v16145_v62 = vrot.slane %v12892_v63, 4  ;;  %v16148_v31 = vrot.slane %v12669_v44, 4 }
 0x437   : > { %9717 = vmatmul.mubr.msk.bf16.vlgmr.msra.gmra.mxu0 %vm16130_vm1, %v12741_v55  ;;  %v2650_v17 = vrot.slane %v2613_v18, 4  ;;  %vm16139_vm1 = vcmask 1031168   ;;  %vm16140_vm6 = vmmov %vm16135_vm0  ;;  %v2324_v33 = vrot.slane %v13113_v51, 4 }
 0x438   : > { %6418 = vmatpush1.bf16.msra.mxu0 %v10047_v3  ;;  %6449 = vmatprep.mubr.bf16.mxu0 %v10119_v54  ;;  %v2698_v57 = vsel %vm16139_vm1, %v12869_v29, %v2697_v8  ;;  %v2699_v25 = vsel %vm16140_vm6, %v2641_v26, %v2642_v36  ;;  %vm16141_vm4 = vmmov %vm16139_vm1  ;;  %v2667_v3 = vsel %vm16137_vm3, %v2623_v4, %v2624_v47  ;;  %v2323_v26 = vrot.slane %v13066_v50, 4 }
 0x439   : > { %6475 = vmatpush1.bf16.msra.mxu1 %v9692_v5  ;;  %6419 = vmatprep.subr.bf16.mxu0 %v10052_v53  ;;  %v2713_v11 = vsel %vm16137_vm3, %v16136_v49, %v2650_v17  ;;  %vm16142_vm0 = vmmov %vm16139_vm1 }
 0x43a   : > { %6503 = vmatprep.subr.bf16.mxu1 %v9551_v12  ;;  %v2252_v40 = vpop.permute.xlu1 %2251  ;;  %v2615_v43 = vpop.permute.xlu0 %2614  ;;  %v2714_v41 = vsel %vm16141_vm4, %v12912_v10, %v2713_v11  ;;  %v2666_v61 = vsel %vm16142_vm0, %v12633_v7, %v2665_v16  ;;  %v9534_v12 = vcombine.low %v12756_v28, %v12688_v30  ;;  %vm16144_vm1 = vmmov %vm16142_vm0  ;;  %v2356_v30 = vsel %vm16137_vm3, %v16148_v31, %v2314_v21 }
 0x43b   : > { %v2651_v5 = vrot.slane %v2615_v43, 4  ;;  %v9517_v53 = vcombine.high %v2698_v57, %v2714_v41  ;;  %v2682_v10 = vsel %vm16144_vm1, %v12642_v22, %v2681_v46  ;;  %vm16146_vm6 = vmmov %vm16137_vm3  ;;  %v2333_v28 = vrot.slane %v13249_v48, 4 }
 0x43c   : > { %9718 = vmatmul.mubr.msk.bf16.vlgmr.msra.gmra.mxu1 %vm16138_vm15, %v12741_v55  ;;  %6420 = vmatpush1.bf16.msra.mxu0 %v10050_v14  ;;  %v9516_v55 = vcombine.low %v2698_v57, %v2714_v41  ;;  %vm16143_vm15 = vmmov %vm16137_vm3  ;;  %v2388_v7 = vsel %vm16146_vm6, %v16145_v62, %v2332_v6  ;;  %v9501_v36 = vcombine.high %v2666_v61, %v2682_v10  ;;  %v16167_v31 = vrot.slane %v12934_v1, 4 }
 0x43d   : > { %6504 = vmatpush1.bf16.msra.mxu1 %v9550_v38  ;;  %6535 = vmatprep.mubr.bf16.mxu1 %v10119_v54  ;;  %v2683_v29 = vsel %vm16143_vm15, %v2632_v20, %v2633_v19  ;;  %vm16147_vm4 = vmmov %vm16137_vm3  ;;  %v2700_v20 = vsel %vm16142_vm0, %v13110_v2, %v2699_v25  ;;  %v16151_v2 = vrot.slane %v12675_v45, 4  ;;  %v9500_v54 = vcombine.low %v2666_v61, %v2682_v10 }
 0x43e   : > { %6505 = vmatprep.subr.bf16.mxu1 %v9535_v35  ;;  %v2715_v4 = vsel %vm16147_vm4, %v2650_v17, %v2651_v5  ;;  %6421 = vmatprep.subr.bf16.mxu0 %v9517_v53  ;;  %v13294_v8 = vpop.permute.xlu1 %3647  ;;  %v2304_v22 = vpop.permute.xlu0 %2303  ;;  %vm16149_vm15 = vmmov %vm16142_vm0  ;;  %v2315_v17 = vrot.slane %v2252_v40, 4 }
 0x43f   : > { %v2716_v16 = vsel %vm16149_vm15, %v2613_v18, %v2715_v4  ;;  %vm16150_vm1 = vmmov %vm16142_vm0  ;;  %v2341_v19 = vrot.slane %v2304_v22, 4  ;;  %v16154_v18 = vrot.slane %v12956_v42, 4  ;;  %v3694_v62 = vrot.slane %v13294_v8, 4 }
 0x440   : > { %6422 = vmatpush1.bf16.msra.mxu0 %v9516_v55  ;;  %v2668_v47 = vsel %vm16150_vm1, %v13139_v23, %v2667_v3  ;;  %v9518_v14 = vcombine.low %v2700_v20, %v2716_v16  ;;  %v9519_v38 = vcombine.high %v2700_v20, %v2716_v16  ;;  %vm16152_vm6 = vmmov %vm16137_vm3 }
 0x441   : > { %6506 = vmatpush1.bf16.msra.mxu1 %v9534_v12  ;;  %6423 = vmatprep.subr.bf16.mxu0 %v9501_v36  ;;  %v2372_v35 = vsel %vm16152_vm6, %v16151_v2, %v2323_v26  ;;  %vm16153_vm4 = vmmov %vm16142_vm0  ;;  %v16171_v2 = vld [vmem:[#allocation43_spill] sm:$0xff] }
 0x442   : > { %v2684_v48 = vsel %vm16153_vm4, %v13051_v0, %v2683_v29  ;;  %vm16155_vm0 = vmmov %vm16137_vm3  ;;  %6507 = vmatprep.subr.bf16.mxu1 %v9519_v38  ;;  %v13314_v23 = vpop.permute.xlu1 %3611  ;;  %vm16156_vm3 = vcmask 1039360   ;;  %v2306_v57 = vpop.permute.xlu0 %2305 }
 0x443   : > { %v2404_v46 = vsel %vm16155_vm0, %v16154_v18, %v2341_v19  ;;  %v9503_v49 = vcombine.high %v2668_v47, %v2684_v48  ;;  %v2389_v11 = vsel %vm16156_vm3, %v12892_v63, %v2388_v7  ;;  %vm16157_vm15 = vmmov %vm16155_vm0  ;;  %v2342_v43 = vrot.slane %v2306_v57, 4 }
 0x444   : > { %v2390_v40 = vsel %vm16157_vm15, %v2332_v6, %v2333_v28  ;;  %6424 = vmatpush1.bf16.msra.mxu0 %v9500_v54  ;;  %vm16158_vm1 = vmmov %vm16156_vm3  ;;  %v9502_v3 = vcombine.low %v2668_v47, %v2684_v48  ;;  %v3704_v47 = vrot.slane %v13242_v56, 4 }
 0x445   : > { %6508 = vmatpush1.bf16.msra.mxu1 %v9518_v14  ;;  %v2405_v0 = vsel %vm16158_vm1, %v12956_v42, %v2404_v46  ;;  %vm16159_vm6 = vmmov %vm16158_vm1  ;;  %v16177_v46 = vld [vmem:[#allocation51_spill] sm:$0xff] }
 0x446   : > { %v2357_v51 = vsel %vm16159_vm6, %v12669_v44, %v2356_v30  ;;  %vm16160_vm4 = vmmov %vm16155_vm0  ;;  %6509 = vmatprep.subr.bf16.mxu1 %v9503_v49  ;;  %v9484_v41 = vcombine.low %v2389_v11, %v2405_v0  ;;  %v9485_v61 = vcombine.high %v2389_v11, %v2405_v0  ;;  %v3650_v55 = vpop.permute.xlu1 %3649  ;;  %v3632_v53 = vpop.permute.xlu0 %3631  ;;  %v16178_v49 = vrot.slane %v16177_v46, 4  ;;  %v10062_v0 = vld [vmem:[#allocation3 + $0x3c] ss:$76 sps:$4 sm:$0xff]  }
 0x447   : > { %v2358_v25 = vsel %vm16160_vm4, %v2314_v21, %v2315_v17  ;;  %vm16161_vm0 = vmmov %vm16158_vm1  ;;  %v3695_v30 = vrot.slane %v3650_v55, 4  ;;  %v16168_v17 = vld [vmem:[#allocation70_spill] sm:$0xff]  ;;  %v3686_v56 = vrot.slane %v3632_v53, 4 }
 0x448   : > { %v2373_v63 = vsel %vm16161_vm0, %v12675_v45, %v2372_v35  ;;  %vm16162_vm3 = vmmov %vm16160_vm4  ;;  %6425 = vmatprep.subr.bf16.mxu0 %v9485_v61  ;;  %v16172_v35 = vld [vmem:[#allocation52_spill] sm:$0xff] }
 0x449   : > { %v2374_v6 = vsel %vm16162_vm3, %v2323_v26, %v2324_v33  ;;  %vm16163_vm15 = vmmov %vm16162_vm3  ;;  %v9469_v42 = vcombine.high %v2357_v51, %v2373_v63  ;;  %6426 = vmatpush1.bf16.msra.mxu0 %v9484_v41  ;;  %6510 = vmatpush1.bf16.msra.mxu1 %v9502_v3  ;;  %v9468_v26 = vcombine.low %v2357_v51, %v2373_v63  ;;  %v16173_v54 = vrot.slane %v16172_v35, 4  ;;  %v10057_v33 = vld [vmem:[#allocation3 + $0xd0] ss:$76 sps:$4 sm:$0xff]  }
 0x44a   : > { %v2406_v5 = vsel %vm16163_vm15, %v2341_v19, %v2342_v43  ;;  %vm16164_vm1 = vmmov %vm16161_vm0  ;;  %v2375_v10 = vsel %vm16161_vm0, %v13066_v50, %v2374_v6  ;;  %v3614_v7 = vpop.permute.xlu1 %3613  ;;  %v13336_v36 = vpop.permute.xlu0 %3257  ;;  %v3749_v50 = vsel %vm16162_vm3, %v16167_v31, %v3694_v62  ;;  %v16182_v43 = vld [vmem:[#allocation66_spill] sm:$0xff] }
 0x44b   : > { %v2391_v44 = vsel %vm16164_vm1, %v13200_v9, %v2390_v40  ;;  %vm16165_vm6 = vmmov %vm16161_vm0  ;;  %6427 = vmatprep.subr.bf16.mxu0 %v9469_v42  ;;  %v3676_v9 = vrot.slane %v13314_v23, 4  ;;  %v3677_v14 = vrot.slane %v3614_v7, 4 }
 0x44c   : > { %v2407_v21 = vsel %vm16165_vm6, %v2304_v22, %v2406_v5  ;;  %vm16166_vm4 = vmmov %vm16161_vm0  ;;  %v10059_v22 = vld [vmem:[#allocation3 + $0xd4] ss:$76 sps:$4 sm:$0xff]   ;;  %v10060_v5 = vld [vmem:[#allocation3 + $0x38] ss:$76 sps:$4 sm:$0xff]  }
 0x44d   : > { %v2359_v29 = vsel %vm16166_vm4, %v13239_v32, %v2358_v25  ;;  %v9486_v45 = vcombine.low %v2391_v44, %v2407_v21  ;;  %v9487_v12 = vcombine.high %v2391_v44, %v2407_v21  ;;  %6428 = vmatpush1.bf16.msra.mxu0 %v9468_v26  ;;  %v3685_v32 = vrot.slane %v13228_v37, 4  ;;  %vm16170_vm15 = vmmov %vm16162_vm3 }
 0x44e   : > { %v9471_v4 = vcombine.high %v2359_v29, %v2375_v10  ;;  %6429 = vmatprep.subr.bf16.mxu0 %v13064_v27  ;;  %v9470_v20 = vcombine.low %v2359_v29, %v2375_v10  ;;  %v13344_v28 = vpop.permute.xlu1 %3275  ;;  %v3666_v16 = vpop.permute.xlu0 %3665  ;;  %v16169_v27 = vrot.slane %v16168_v17, 4  ;;  %vm16174_vm1 = vmmov %vm16162_vm3 }
 0x44f   : > { %6511 = vmatprep.subr.bf16.mxu1 %v9487_v12  ;;  %v3703_v38 = vrot.slane %v3666_v16, 4  ;;  %v3733_v48 = vsel %vm16174_vm1, %v16173_v54, %v3685_v32  ;;  %vm16175_vm6 = vmmov %vm16161_vm0  ;;  %v3322_v10 = vrot.slane %v13344_v28, 4 }
 0x450   : > { %6512 = vmatpush1.bf16.msra.mxu1 %v9486_v45  ;;  %v3717_v19 = vsel %vm16170_vm15, %v16169_v27, %v3676_v9  ;;  %vm16176_vm4 = vmmov %vm16174_vm1 }
 0x451   : > { %6513 = vmatprep.subr.bf16.mxu1 %v9471_v4  ;;  %6430 = vmatpush1.bf16.msra.mxu0 %v13071_v59  ;;  %v3750_v59 = vsel %vm16175_vm6, %v12934_v1, %v3749_v50  ;;  %v3751_v18 = vsel %vm16176_vm4, %v3694_v62, %v3695_v30  ;;  %vm16179_vm0 = vmmov %vm16174_vm1 }
 0x452   : > { %6431 = vmatprep.subr.bf16.mxu0 %v16171_v2  ;;  %v3765_v11 = vsel %vm16179_vm0, %v16178_v49, %v3703_v38  ;;  %vm16180_vm3 = vmmov %vm16179_vm0  ;;  %v13362_v57 = vpop.permute.xlu1 %3239  ;;  %v3296_v25 = vpop.permute.xlu0 %3295  ;;  %v16196_v2 = vld [vmem:[#allocation44_spill] sm:$0xff] }
 0x453   : > { %v3767_v40 = vsel %vm16180_vm3, %v3703_v38, %v3704_v47  ;;  %vm16181_vm15 = vmmov %vm16175_vm6 }
 0x454   : > { %6514 = vmatpush1.bf16.msra.mxu1 %v9470_v20  ;;  %v3768_v51 = vsel %vm16181_vm15, %v3666_v16, %v3767_v40  ;;  %vm16183_vm1 = vmmov %vm16175_vm6  ;;  %v16191_v20 = vld [vmem:[#allocation63_spill] sm:$0xff]  ;;  %v10065_v16 = vld [vmem:[#allocation3 + $0xdc] ss:$76 sps:$4 sm:$0xff]  }
 0x455   : > { %6515 = vmatprep.subr.bf16.mxu1 %v10059_v22  ;;  %6432 = vmatpush1.bf16.msra.mxu0 %v16182_v43  ;;  %v3766_v1 = vsel %vm16183_vm1, %v16177_v46, %v3765_v11  ;;  %vm16184_vm6 = vmmov %vm16183_vm1  ;;  %v16192_v31 = vrot.slane %v16191_v20, 4  ;;  %v16201_v46 = vld [vmem:[#allocation65_spill] sm:$0xff] }
 0x456   : > { %v3718_v41 = vsel %vm16184_vm6, %v16168_v17, %v3717_v19  ;;  %vm16185_vm4 = vmmov %vm16179_vm0  ;;  %v9676_v3 = vcombine.low %v3750_v59, %v3766_v1  ;;  %v9677_v63 = vcombine.high %v3750_v59, %v3766_v1  ;;  %v3278_v53 = vpop.permute.xlu1 %3277  ;;  %v3260_v29 = vpop.permute.xlu0 %3259  ;;  %v16193_v17 = vld [vmem:[#allocation64_spill] sm:$0xff]  ;;  %v10063_v59 = vld [vmem:[#allocation3 + $0xd8] ss:$76 sps:$4 sm:$0xff]   ;;  %v16202_v49 = vrot.slane %v16201_v46, 4 }
 0x457   : > { %v3719_v61 = vsel %vm16185_vm4, %v3676_v9, %v3677_v14  ;;  %vm16186_vm0 = vmmov %vm16183_vm1  ;;  %v3304_v9 = vrot.slane %v13362_v57, 4  ;;  %v3323_v50 = vrot.slane %v3278_v53, 4  ;;  %v16194_v27 = vrot.slane %v16193_v17, 4 }
 0x458   : > { %6516 = vmatpush1.bf16.msra.mxu1 %v10057_v33  ;;  %v3752_v6 = vsel %vm16186_vm0, %v13294_v8, %v3751_v18  ;;  %vm16187_vm3 = vmmov %vm16186_vm0  ;;  %6433 = vmatprep.subr.bf16.mxu0 %v9677_v63  ;;  %v3332_v14 = vrot.slane %v3296_v25, 4 }
 0x459   : > { %6517 = vmatprep.subr.bf16.mxu1 %v10062_v0  ;;  %v3734_v55 = vsel %vm16187_vm3, %v16172_v35, %v3733_v48  ;;  %vm16188_vm15 = vmmov %vm16185_vm4  ;;  %v9679_v21 = vcombine.high %v3752_v6, %v3768_v51  ;;  %6434 = vmatpush2.bf16.msra.mxu0 %v9676_v3  ;;  %v9678_v12 = vcombine.low %v3752_v6, %v3768_v51  ;;  %v16197_v35 = vrot.slane %v16196_v2, 4  ;;  %v10068_v51 = vld [vmem:[#allocation3 + $0x44] ss:$76 sps:$4 sm:$0xff]  }
 0x45a   : > { %v3735_v42 = vsel %vm16188_vm15, %v3685_v32, %v3686_v56  ;;  %v9661_v44 = vcombine.high %v3718_v41, %v3734_v55  ;;  %vm16189_vm1 = vmmov %vm16186_vm0  ;;  %v9660_v8 = vcombine.low %v3718_v41, %v3734_v55  ;;  %v13381_v62 = vpop.permute.xlu1 %2967  ;;  %v13383_v4 = vpop.permute.xlu0 %2949  ;;  %v3314_v48 = vrot.slane %v3260_v29, 4 }
 0x45b   : > { %v3720_v45 = vsel %vm16189_vm1, %v13314_v23, %v3719_v61  ;;  %vm16190_vm6 = vmmov %vm16186_vm0  ;;  %v3313_v23 = vrot.slane %v13336_v36, 4  ;;  %vm16199_vm15 = vcmask 1031168   ;;  %v3014_v56 = vrot.slane %v13381_v62, 4  ;;  %v13413_v55 = vpop.f32.mrf.mxu1  ;;  %v13421_v29 = vpop.f32.mrf.mxu0 }
 0x45c   : > { %6518 = vmatpush1.bf16.msra.mxu1 %v10060_v5  ;;  %6435 = vmatprep.subr.bf16.mxu0 %v9661_v44  ;;  %v3736_v26 = vsel %vm16190_vm6, %v13228_v37, %v3735_v42  ;;  %v3377_v37 = vsel %vm16185_vm4, %v16192_v31, %v3322_v10  ;;  %vm16195_vm0 = vmmov %vm16185_vm4  ;;  %v3005_v53 = vrot.slane %v13383_v4, 4  ;;  %v10066_v44 = vld [vmem:[#allocation3 + $0x40] ss:$76 sps:$4 sm:$0xff]  }
 0x45d   : > { %6519 = vmatprep.subr.bf16.mxu1 %v9679_v21  ;;  %v9663_v7 = vcombine.high %v3720_v45, %v3736_v26  ;;  %6436 = vmatpush2.bf16.msra.mxu0 %v9660_v8  ;;  %v9662_v32 = vcombine.low %v3720_v45, %v3736_v26  ;;  %v3345_v19 = vsel %vm16195_vm0, %v16194_v27, %v3304_v9  ;;  %vm16198_vm3 = vmmov %vm16195_vm0  ;;  %v16210_v45 = vld [vmem:[#allocation59_spill] sm:$0xff] }
 0x45e   : > { %6437 = vmatprep.subr.bf16.mxu0 %v10059_v22  ;;  %v3242_v30 = vpop.permute.xlu1 %3241  ;;  %v3294_v47 = vpop.permute.xlu0 %3293  ;;  %v3361_v54 = vsel %vm16198_vm3, %v16197_v35, %v3313_v23  ;;  %v3378_v18 = vsel %vm16199_vm15, %v16191_v20, %v3377_v37  ;;  %vm16200_vm1 = vmmov %vm16195_vm0 }
 0x45f   : > { %v3305_v22 = vrot.slane %v3242_v30, 4  ;;  %v3331_v38 = vrot.slane %v3294_v47, 4  ;;  %vm16203_vm6 = vmmov %vm16195_vm0 }
 0x460   : > { %6520 = vmatpush2.bf16.msra.mxu1 %v9678_v12  ;;  %vm16204_vm4 = vmmov %vm16195_vm0  ;;  %v16211_v12 = vrot.slane %v16210_v45, 4 }
 0x461   : > { %6521 = vmatprep.subr.bf16.mxu1 %v9663_v7  ;;  %6438 = vmatpush2.bf16.msra.mxu0 %v10057_v33  ;;  %v3379_v33 = vsel %vm16200_vm1, %v3322_v10, %v3323_v50  ;;  %v3393_v11 = vsel %vm16203_vm6, %v16202_v49, %v3331_v38  ;;  %v3395_v40 = vsel %vm16204_vm4, %v3331_v38, %v3332_v14  ;;  %vm16205_vm0 = vmmov %vm16199_vm15  ;;  %v13445_v38 = vpop.f32.mrf.mxu0 }
 0x462   : > { %6439 = vmatprep.subr.bf16.mxu0 %v10062_v0  ;;  %v13404_v0 = vpop.permute.xlu1 %2931  ;;  %v3396_v25 = vsel %vm16205_vm0, %v3294_v47, %v3395_v40  ;;  %v2988_v1 = vpop.permute.xlu0 %2987  ;;  %vm16206_vm3 = vmmov %vm16205_vm0  ;;  %v3347_v3 = vsel %vm16200_vm1, %v3304_v9, %v3305_v22  ;;  %v3362_v21 = vsel %vm16205_vm0, %v16196_v2, %v3361_v54  ;;  %v16213_v9 = vld [vmem:[#allocation57_spill] sm:$0xff]  ;;  %v16223_v2 = vld [vmem:[#allocation40_spill] sm:$0xff] }
 0x463   : > { %v2996_v43 = vrot.slane %v13404_v0, 4  ;;  %v3394_v41 = vsel %vm16206_vm3, %v16201_v46, %v3393_v11  ;;  %vm16207_vm15 = vmmov %vm16205_vm0  ;;  %v3024_v37 = vrot.slane %v2988_v1, 4  ;;  %v13435_v47 = vpop.f32.mrf.mxu1  ;;  %v16224_v35 = vrot.slane %v16223_v2, 4 }
 0x464   : > { %6522 = vmatpush2.bf16.msra.mxu1 %v9662_v32  ;;  %v3346_v61 = vsel %vm16207_vm15, %v16193_v17, %v3345_v19  ;;  %v9612_v63 = vcombine.low %v3378_v18, %v3394_v41  ;;  %v9613_v6 = vcombine.high %v3378_v18, %v3394_v41  ;;  %vm16208_vm6 = vmmov %vm16200_vm1  ;;  %v16218_v17 = vld [vmem:[#allocation53_spill] sm:$0xff]  ;;  %v16231_v41 = vrot.slane %v13062_v34, 4 }
 0x465   : > { %6523 = vmatprep.subr.bf16.mxu1 %v10065_v16  ;;  %6440 = vmatpush2.bf16.msra.mxu0 %v10060_v5  ;;  %v3363_v42 = vsel %vm16208_vm6, %v3313_v23, %v3314_v48  ;;  %vm16209_vm4 = vmmov %vm16205_vm0  ;;  %v9597_v10 = vcombine.high %v3346_v61, %v3362_v21  ;;  %v16214_v23 = vrot.slane %v16213_v9, 4  ;;  %v9596_v30 = vcombine.low %v3346_v61, %v3362_v21  ;;  %v13458_v1 = vpop.f32.mrf.mxu1 }
 0x466   : > { %v3380_v5 = vsel %vm16209_vm4, %v13344_v28, %v3379_v33  ;;  %vm16212_vm3 = vmmov %vm16200_vm1  ;;  %6441 = vmatprep.subr.bf16.mxu0 %v9613_v6  ;;  %v2970_v26 = vpop.permute.xlu1 %2969  ;;  %v2986_v20 = vpop.permute.xlu0 %2985  ;;  %v16219_v27 = vrot.slane %v16218_v17, 4 }
 0x467   : > { %v3069_v8 = vsel %vm16212_vm3, %v16211_v12, %v3014_v56  ;;  %v9615_v7 = vcombine.high %v3380_v5, %v3396_v25  ;;  %vm16215_vm15 = vmmov %vm16200_vm1  ;;  %v3015_v32 = vrot.slane %v2970_v26, 4  ;;  %v3023_v50 = vrot.slane %v2986_v20, 4 }
 0x468   : > { %6524 = vmatpush2.bf16.msra.mxu1 %v10063_v59  ;;  %v3037_v28 = vsel %vm16215_vm15, %v16214_v23, %v2996_v43  ;;  %vm16216_vm1 = vmmov %vm16205_vm0  ;;  %v9614_v14 = vcombine.low %v3380_v5, %v3396_v25 }
 0x469   : > { %6525 = vmatprep.subr.bf16.mxu1 %v10068_v51  ;;  %6442 = vmatpush2.bf16.msra.mxu0 %v9612_v63  ;;  %v3348_v31 = vsel %vm16216_vm1, %v13362_v57, %v3347_v3  ;;  %vm16217_vm6 = vmmov %vm16205_vm0  ;;  %v13465_v63 = vpop.f32.mrf.mxu0 }
 0x46a   : > { %6443 = vmatprep.subr.bf16.mxu0 %v9597_v10  ;;  %v3364_v16 = vsel %vm16217_vm6, %v13336_v36, %v3363_v42  ;;  %vm16220_vm4 = vmmov %vm16212_vm3  ;;  %v3958_v48 = vpop.permute.xlu1 %3957  ;;  %v3976_v49 = vpop.permute.xlu0 %3975 }
 0x46b   : > { %v3053_v19 = vsel %vm16220_vm4, %v16219_v27, %v3005_v53  ;;  %vm16221_vm0 = vmmov %vm16212_vm3  ;;  %vm16222_vm3 = vcmask 1039360   ;;  %v9599_v59 = vcombine.high %v3348_v31, %v3364_v16  ;;  %v4003_v46 = vrot.slane %v3958_v48, 4  ;;  %v5984_v10 = vpop.f32.mrf.mxu1  ;;  %v5941_v23 = vpop.f32.mrf.mxu0 }
 0x46c   : > { %6526 = vmatpush2.bf16.msra.mxu1 %v10066_v44  ;;  %v3071_v22 = vsel %vm16221_vm0, %v3014_v56, %v3015_v32  ;;  %v3070_v57 = vsel %vm16222_vm3, %v16210_v45, %v3069_v8  ;;  %vm16225_vm15 = vmmov %vm16221_vm0  ;;  %v4012_v40 = vrot.slane %v3976_v49, 4 }
 0x46d   : > { %6527 = vmatprep.subr.bf16.mxu1 %v9615_v7  ;;  %v3085_v36 = vsel %vm16225_vm15, %v16224_v35, %v3023_v50  ;;  %vm16226_vm1 = vmmov %vm16221_vm0  ;;  %6444 = vmatpush2.bf16.msra.mxu0 %v9596_v30  ;;  %v6064_v27 = vpop.f32.mrf.mxu0 }
 0x46e   : > { %v3087_v54 = vsel %vm16226_vm1, %v3023_v50, %v3024_v37  ;;  %vm16227_vm6 = vmmov %vm16222_vm3  ;;  %v2934_v42 = vpop.permute.xlu1 %2933  ;;  %v2952_v45 = vpop.permute.xlu0 %2951 }
 0x46f   : > { %v3038_v18 = vsel %vm16227_vm6, %v16213_v9, %v3037_v28  ;;  %vm16228_vm4 = vmmov %vm16222_vm3  ;;  %v2997_v21 = vrot.slane %v2934_v42, 4  ;;  %v3006_v26 = vrot.slane %v2952_v45, 4 }
 0x470   : > { %v3072_v33 = vsel %vm16228_vm4, %v13381_v62, %v3071_v22  ;;  %vm16229_vm0 = vmmov %vm16222_vm3  ;;  %6528 = vmatpush2.bf16.msra.mxu1 %v9614_v14  ;;  %v9598_v62 = vcombine.low %v3348_v31, %v3364_v16  ;;  %vm16235_vm4 = vcmask 1031168  }
 0x471   : > { %v3088_v56 = vsel %vm16229_vm0, %v2986_v20, %v3087_v54  ;;  %vm16230_vm3 = vmmov %vm16229_vm0  ;;  %6529 = vmatprep.subr.bf16.mxu1 %v9599_v59 }
 0x472   : > { %v3086_v11 = vsel %vm16230_vm3, %v16223_v2, %v3085_v36  ;;  %vm16232_vm15 = vmmov %vm16226_vm1  ;;  %v9583_v44 = vcombine.high %v3072_v33, %v3088_v56  ;;  %v9582_v7 = vcombine.low %v3072_v33, %v3088_v56  ;;  %v3922_v32 = vpop.permute.xlu1 %3921  ;;  %v3940_v31 = vpop.permute.xlu0 %3939  ;;  %v10121_v36 = vld [vmem:[#allocation10 + $0x8] ss:$12 sps:$4 sm:$0xff]  }
 0x473   : > { %v9580_v51 = vcombine.low %v3070_v57, %v3086_v11  ;;  %v9581_v25 = vcombine.high %v3070_v57, %v3086_v11  ;;  %v4059_v61 = vsel %vm16232_vm15, %v16231_v41, %v4003_v46  ;;  %vm16233_vm1 = vmmov %vm16229_vm0  ;;  %v3985_v20 = vrot.slane %v3922_v32, 4  ;;  %v6066_v2 = vpop.f32.mrf.mxu0 }
 0x474   : > { %v3054_v3 = vsel %vm16233_vm1, %v16218_v17, %v3053_v19  ;;  %vm16234_vm6 = vmmov %vm16232_vm15  ;;  %6530 = vmatpush2.bf16.msra.mxu1 %v9598_v62  ;;  %v4060_v12 = vsel %vm16235_vm4, %v13062_v34, %v4059_v61  ;;  %v3994_v50 = vrot.slane %v3940_v31, 4  ;;  %v10120_v19 = vld [vmem:[#allocation10] ss:$12 sps:$4 sm:$0xff]  }
 0x475   : > { %v4075_v6 = vsel %vm16234_vm6, %v4011_v60, %v4012_v40  ;;  %6445 = vmatprep.subr.bf16.mxu0 %v9581_v25  ;;  %v9565_v5 = vcombine.high %v3038_v18, %v3054_v3  ;;  %vm16236_vm0 = vmmov %vm16235_vm4  ;;  %6531 = vmatprep.subr.bf16.mxu1 %v9583_v44  ;;  %v9564_v9 = vcombine.low %v3038_v18, %v3054_v3  ;;  %v6068_v35 = vpop.f32.mrf.mxu0 }
 0x476   : > { %6446 = vmatpush2.bf16.msra.mxu0 %v9580_v51  ;;  %v4076_v8 = vsel %vm16236_vm0, %v13207_v13, %v4075_v6  ;;  %vm16237_vm3 = vmmov %vm16234_vm6 }
 0x477   : > { %6447 = vmatprep.subr.bf16.mxu0 %v9565_v5  ;;  %v3039_v60 = vsel %vm16237_vm3, %v2996_v43, %v2997_v21  ;;  %vm16238_vm15 = vmmov %vm16237_vm3  ;;  %v9711_v34 = vcombine.high %v4060_v12, %v4076_v8  ;;  %v6021_v43 = vpop.f32.mrf.mxu1  ;;  %v9710_v17 = vcombine.low %v4060_v12, %v4076_v8  ;;  %v6070_v11 = vpop.f32.mrf.mxu0  ;;  %v16245_v12 = vld [vmem:[#allocation15_spill] sm:$0xff] }
 0x478   : > { %v3055_v28 = vsel %vm16238_vm15, %v3005_v53, %v3006_v26  ;;  %v3040_v13 = vsel %vm16233_vm1, %v13404_v0, %v3039_v60  ;;  %6532 = vmatpush2.bf16.msra.mxu1 %v9582_v7  ;;  %vm16239_vm6 = vmmov %vm16233_vm1  ;;  %vm16244_vm1 = vcmask 261120  }
 0x479   : > { %v3056_v37 = vsel %vm16239_vm6, %v13383_v4, %v3055_v28  ;;  %vm16240_vm4 = vmmov %vm16237_vm3  ;;  %v6023_v22 = vpop.f32.mrf.mxu1  ;;  %vm16246_vm6 = vcmp.lt.s32.totalorder %v16245_v12, 109 }
 0x47a   : > { %6448 = vmatpush2.bf16.msra.mxu0 %v9564_v9  ;;  %v9566_v30 = vcombine.low %v3040_v13, %v3056_v37  ;;  %v9567_v16 = vcombine.high %v3040_v13, %v3056_v37  ;;  %v4027_v53 = vsel %vm16240_vm4, %v3984_v52, %v3985_v20  ;;  %vm16241_vm0 = vmmov %vm16237_vm3  ;;  %vm16242_vm3 = vcmask 1031168  }
 0x47b   : > { %6558 = vmatprep.subr.bf16.mxu0 %v9711_v34  ;;  %v4043_v0 = vsel %vm16241_vm0, %v3993_v24, %v3994_v50  ;;  %v4028_v4 = vsel %vm16242_vm3, %v13074_v39, %v4027_v53  ;;  %vm16243_vm15 = vmmov %vm16242_vm3  ;;  %v6025_v24 = vpop.f32.mrf.mxu1  ;;  %vm16257_vm0 = vcmask 7168  }
 0x47c   : > { %6533 = vmatprep.subr.bf16.mxu1 %v9567_v16  ;;  %v4044_v14 = vsel %vm16243_vm15, %v13000_v58, %v4043_v0  ;;  %vm16248_vm4 = vmmov %vm16246_vm6  ;;  %vm16260_vm15 = vcmask 1043456  }
 0x47d   : > { %6450 = vmatmul.mubr.bf16.vlgmr.msra.gmra.mxu0 %v10120_v19  ;;  %6534 = vmatpush2.bf16.msra.mxu1 %v9566_v30  ;;  %v9694_v57 = vcombine.low %v4028_v4, %v4044_v14  ;;  %v9695_v52 = vcombine.high %v4028_v4, %v4044_v14  ;;  %v6027_v54 = vpop.f32.mrf.mxu1  ;;  %v13498_v48 = vpop.permute.xlu0 %4440  ;;  %vm16259_vm3 = vmmov %vm16257_vm0 }
 0x47e   : > { %6559 = vmatpush1.bf16.msra.mxu0 %v9710_v17  ;;  %6578 = vmatprep.mubr.bf16.mxu0 %v15761_v15  ;;  %v5940_v33 = vadd.f32 %v13465_v63, %v13498_v48  ;;  %v5942_v56 = vadd.f32 %v5941_v23, %v13498_v48  ;;  %v6026_v46 = vadd.f32 %v6025_v24, %v13498_v48 }
 0x47f   : > { %6560 = vmatprep.subr.bf16.mxu0 %v9695_v52  ;;  %v13496_v39 = vpop.permute.xlu1 %4435  ;;  %v6028_v49 = vadd.f32 %v6027_v54, %v13498_v48  ;;  %v6150_v31 = vpop.f32.mrf.mxu1 }
 0x480   : > { %6536 = vmatmul.mubr.bf16.vlgmr.msra.gmra.mxu1 %v10120_v19  ;;  %v5936_v58 = vadd.f32 %v13421_v29, %v13496_v39  ;;  %v5938_v15 = vadd.f32 %v13445_v38, %v13496_v39  ;;  %v6022_v59 = vadd.f32 %v6021_v43, %v13496_v39  ;;  %v6024_v18 = vadd.f32 %v6023_v22, %v13496_v39 }
 0x481   : > { %v5983_v25 = vadd.f32 %v13458_v1, %v5940_v33  ;;  %v5985_v41 = vadd.f32 %v5984_v10, %v5942_v56  ;;  %v6069_v61 = vadd.f32 %v6068_v35, %v6026_v46  ;;  %v6071_v62 = vadd.f32 %v6070_v11, %v6028_v49  ;;  %v6152_v37 = vpop.f32.mrf.mxu1 }
 0x482   : > { %6561 = vmatpush1.bf16.msra.mxu0 %v9694_v57  ;;  %v5979_v40 = vadd.f32 %v13413_v55, %v5936_v58  ;;  %v5981_v29 = vadd.f32 %v13435_v47, %v5938_v15  ;;  %v6065_v51 = vadd.f32 %v6064_v27, %v6022_v59  ;;  %v6067_v38 = vadd.f32 %v6066_v2, %v6024_v18 }
 0x483   : > { %v6605_v5 = vmax.f32 %v5983_v25, 0.0  ;;  %v6606_v44 = vmax.f32 %v5985_v41, 0.0  ;;  %v6607_v21 = vmax.f32 %v6069_v61, 0.0  ;;  %v6608_v45 = vmax.f32 %v6071_v62, 0.0  ;;  %v6154_v17 = vpop.f32.mrf.mxu1 }
 0x484   : > { %v6589_v3 = vmax.f32 %v5979_v40, 0.0  ;;  %v6590_v63 = vmax.f32 %v5981_v29, 0.0  ;;  %v6591_v6 = vmax.f32 %v6065_v51, 0.0  ;;  %v6592_v42 = vmax.f32 %v6067_v38, 0.0 }
 0x485   : > { %9719 = vmatmul.mubr.msk.bf16.vlgmr.msra.gmra.mxu0 %vm16244_vm1, %v10121_v36  ;;  %v6637_v1 = vsel %vm16248_vm4, %v6605_v5, 0.0  ;;  %v6638_v10 = vsel %vm15551_vm7, %v6606_v44, 0.0  ;;  %v6639_v9 = vsel %vm15552_vm8, %v6607_v21, 0.0  ;;  %v6640_v28 = vsel %vm15553_vm9, %v6608_v45, 0.0  ;;  %v6156_v2 = vpop.f32.mrf.mxu1  ;;  %vm16261_vm1 = vmmov %vm16257_vm0 }
 0x486   : > { %v6621_v55 = vsel %vm16246_vm6, %v6589_v3, 0.0  ;;  %v6622_v47 = vsel %vm15551_vm7, %v6590_v63, 0.0  ;;  %v9930_v7 = vpack.c.bf16 %v6638_v10, %v6637_v1  ;;  %v6623_v32 = vsel %vm15552_vm8, %v6591_v6, 0.0  ;;  %vm16262_vm6 = vmmov %vm16260_vm15 }
 0x487   : > { %v9922_v26 = vpack.c.bf16 %v6622_v47, %v6621_v55  ;;  %v6624_v34 = vsel %vm15553_vm9, %v6592_v42, 0.0  ;;  %v9931_v13 = vpack.c.bf16 %v6640_v28, %v6639_v9  ;;  %vm16263_vm4 = vmmov %vm16257_vm0  ;;  %vm15404_vm7 = vcmask 654336  }
 0x488   : > { %6749 = vrot.lane.b32.xlu0 %v9930_v7, %s10210_s14  ;;  %v9923_v20 = vpack.c.bf16 %v6624_v34, %v6623_v32  ;;  %vm15406_vm9 = vcmask 392192  }
 0x489   : > { %6733 = vrot.lane.b32.xlu1 %v9922_v26, %s10210_s14 }
 0x48c   : > { %6735 = vrot.lane.b32.xlu0 %v9923_v20, %s10210_s14 }
 0x48d   : > { %6751 = vrot.lane.b32.xlu1 %v9931_v13, %s10210_s14 }
 0x491   : > { %v6107_v50 = vpop.f32.mrf.mxu0 }
 0x492   : > { %v6108_v43 = vadd.f32 %v6107_v50, %v13496_v39 }
 0x493   : > { %v6109_v30 = vpop.f32.mrf.mxu0 }
 0x494   : > { %v6151_v16 = vadd.f32 %v6150_v31, %v6108_v43  ;;  %v6110_v53 = vadd.f32 %v6109_v30, %v13496_v39 }
 0x495   : > { %v6111_v27 = vpop.f32.mrf.mxu0 }
 0x496   : > { %v6593_v0 = vmax.f32 %v6151_v16, 0.0  ;;  %v6153_v19 = vadd.f32 %v6152_v37, %v6110_v53  ;;  %v6112_v4 = vadd.f32 %v6111_v27, %v13498_v48 }
 0x497   : > { %v6113_v14 = vpop.f32.mrf.mxu0 }
 0x498   : > { %v6594_v22 = vmax.f32 %v6153_v19, 0.0  ;;  %v6155_v57 = vadd.f32 %v6154_v17, %v6112_v4  ;;  %v6114_v52 = vadd.f32 %v6113_v14, %v13498_v48  ;;  %v6625_v35 = vsel %vm15557_vm10, %v6593_v0, 0.0 }
 0x49a   : > { %v6626_v54 = vsel %vm10356_vm11, %v6594_v22, 0.0  ;;  %v6609_v58 = vmax.f32 %v6155_v57, 0.0  ;;  %v6157_v15 = vadd.f32 %v6156_v2, %v6114_v52 }
 0x49b   : > { %v9924_v59 = vpack.c.bf16 %v6626_v54, %v6625_v35  ;;  %v6236_v49 = vpop.f32.mrf.mxu0 }
 0x49c   : > { %v6610_v18 = vmax.f32 %v6157_v15, 0.0  ;;  %v6641_v33 = vsel %vm15557_vm10, %v6609_v58, 0.0 }
 0x49d   : > { %6737 = vrot.lane.b32.xlu1 %v9924_v59, %s10210_s14  ;;  %v6238_v11 = vpop.f32.mrf.mxu0 }
 0x49e   : > { %v6642_v56 = vsel %vm10356_vm11, %v6610_v18, 0.0 }
 0x49f   : > { %v9932_v46 = vpack.c.bf16 %v6642_v56, %v6641_v33  ;;  %v6240_v38 = vpop.f32.mrf.mxu0 }
 0x4a1   : > { %6753 = vrot.lane.b32.xlu0 %v9932_v46, %s10210_s14  ;;  %v6242_v42 = vpop.f32.mrf.mxu0 }
 0x4a6   : > { %v6193_v40 = vpop.f32.mrf.mxu1 }
 0x4a7   : > { %v6194_v29 = vadd.f32 %v6193_v40, %v13496_v39 }
 0x4a8   : > { %v6195_v51 = vpop.f32.mrf.mxu1 }
 0x4a9   : > { %v6196_v25 = vadd.f32 %v6195_v51, %v13496_v39  ;;  %v6237_v41 = vadd.f32 %v6236_v49, %v6194_v29 }
 0x4aa   : > { %v6197_v61 = vpop.f32.mrf.mxu1 }
 0x4ab   : > { %v6595_v62 = vmax.f32 %v6237_v41, 0.0  ;;  %v6198_v3 = vadd.f32 %v6197_v61, %v13498_v48  ;;  %v6239_v63 = vadd.f32 %v6238_v11, %v6196_v25 }
 0x4ac   : > { %v6199_v6 = vpop.f32.mrf.mxu1 }
 0x4ad   : > { %v6596_v5 = vmax.f32 %v6239_v63, 0.0  ;;  %v6200_v44 = vadd.f32 %v6199_v6, %v13498_v48  ;;  %v6241_v21 = vadd.f32 %v6240_v38, %v6198_v3  ;;  %v6627_v12 = vsel %vm10360_vm12, %v6595_v62, 0.0 }
 0x4af   : > { %v6628_v8 = vsel %vm10364_vm13, %v6596_v5, 0.0  ;;  %v6611_v47 = vmax.f32 %v6241_v21, 0.0  ;;  %v6243_v26 = vadd.f32 %v6242_v42, %v6200_v44 }
 0x4b0   : > { %v9925_v1 = vpack.c.bf16 %v6628_v8, %v6627_v12 }
 0x4b1   : > { %v6612_v10 = vmax.f32 %v6243_v26, 0.0  ;;  %v6643_v7 = vsel %vm10360_vm12, %v6611_v47, 0.0 }
 0x4b2   : > { %6739 = vrot.lane.b32.xlu1 %v9925_v1, %s10210_s14  ;;  %v13562_v23 = vpop.f32.mrf.mxu1 }
 0x4b3   : > { %v6644_v60 = vsel %vm10364_vm13, %v6612_v10, 0.0 }
 0x4b4   : > { %v9933_v9 = vpack.c.bf16 %v6644_v60, %v6643_v7  ;;  %v13564_v28 = vpop.f32.mrf.mxu1 }
 0x4b6   : > { %6755 = vrot.lane.b32.xlu0 %v9933_v9, %s10210_s14  ;;  %v6326_v13 = vpop.f32.mrf.mxu1 }
 0x4b8   : > { %v6328_v30 = vpop.f32.mrf.mxu1 }
 0x4ef   : > { %v13566_v32 = vpop.f32.mrf.mxu0 }
 0x4f0   : > { %v6280_v9 = vadd.f32 %v13566_v32, %v13496_v39 }
 0x4f1   : > { %v13568_v34 = vpop.f32.mrf.mxu0 }
 0x4f2   : > { %v6282_v10 = vadd.f32 %v13568_v34, %v13496_v39  ;;  %v6323_v32 = vadd.f32 %v13562_v23, %v6280_v9 }
 0x4f3   : > { %v6283_v20 = vpop.f32.mrf.mxu0  ;;  %v13603_v51 = vpop.f32.mrf.mxu1 }
 0x4f4   : > { %v6284_v31 = vadd.f32 %v6283_v20, %v13498_v48 }
 0x4f5   : > { %v6285_v37 = vpop.f32.mrf.mxu0  ;;  %v6367_v6 = vpop.f32.mrf.mxu1 }
 0x4f6   : > { %v6327_v50 = vadd.f32 %v6326_v13, %v6284_v31  ;;  %v6286_v43 = vadd.f32 %v6285_v37, %v13498_v48 }
 0x4f7   : > { %v13619_v63 = vpop.f32.mrf.mxu0  ;;  %v6369_v12 = vpop.f32.mrf.mxu1 }
 0x4f8   : > { %v6613_v16 = vmax.f32 %v6327_v50, 0.0  ;;  %v6329_v53 = vadd.f32 %v6328_v30, %v6286_v43  ;;  %v6370_v13 = vadd.f32 %v6369_v12, %v13498_v48  ;;  %v6325_v50 = vadd.f32 %v13564_v28, %v6282_v10 }
 0x4f9   : > { %v13629_v44 = vpop.f32.mrf.mxu0  ;;  %v6371_v8 = vpop.f32.mrf.mxu1  ;;  %v6597_v28 = vmax.f32 %v6323_v32, 0.0 }
 0x4fa   : > { %v6614_v17 = vmax.f32 %v6329_v53, 0.0  ;;  %v6645_v0 = vsel %vm10368_vm14, %v6613_v16, 0.0  ;;  %v6750_v52 = vpop.permute.xlu0 %6749  ;;  %v6372_v7 = vadd.f32 %v6371_v8, %v13498_v48  ;;  %v6366_v8 = vadd.f32 %v13603_v51, %v13496_v39 }
 0x4fb   : > { %v6734_v14 = vpop.permute.xlu1 %6733  ;;  %v6773_v2 = vrot.slane %v6750_v52, 4  ;;  %v6412_v55 = vpop.f32.mrf.mxu0 }
 0x4fc   : > { %v6646_v4 = vsel %vm15558_vm5, %v6614_v17, 0.0  ;;  %v6765_v57 = vrot.slane %v6734_v14, 4  ;;  %v6413_v43 = vadd.f32 %v6412_v55, %v6370_v13  ;;  %v6598_v17 = vmax.f32 %v6325_v50, 0.0  ;;  %v6494_v12 = vpop.f32.mrf.mxu1 }
 0x4fd   : > { %v9934_v22 = vpack.c.bf16 %v6646_v4, %v6645_v0  ;;  %v6796_v36 = vsel %vm16259_vm3, %v6773_v2, %v6750_v52  ;;  %v6414_v26 = vpop.f32.mrf.mxu0  ;;  %vm16265_vm3 = vmmov %vm16261_vm1  ;;  %v16267_v4 = vld [vmem:[#allocation34_spill] sm:$0xff] }
 0x4fe   : > { %v6781_v24 = vsel %vm16257_vm0, %v6765_v57, %v6734_v14  ;;  %6838 = vst.msk [vmem:[#allocation4 + $0x50] sm:$0xff] %vm15566_vm2, %v6796_v36  ;;  %v6736_v15 = vpop.permute.xlu0 %6735  ;;  %vm16264_vm0 = vmmov %vm16262_vm6  ;;  %v6415_v20 = vadd.f32 %v6414_v26, %v6372_v7  ;;  %v6615_v0 = vmax.f32 %v6413_v43, 0.0  ;;  %v6630_v23 = vsel %vm15558_vm5, %v6598_v17, 0.0  ;;  %v6496_v10 = vpop.f32.mrf.mxu1 }
 0x4ff   : > { %6757 = vrot.lane.b32.xlu0 %v9934_v22, %s10210_s14  ;;  %6829 = vst.msk [vmem:[#allocation4 + $0x4] sm:$0xff] %vm15566_vm2, %v6781_v24  ;;  %v6752_v54 = vpop.permute.xlu1 %6751  ;;  %v6766_v59 = vrot.slane %v6736_v15, 4  ;;  %v16269_v22 = vld [vmem:[#allocation33_spill] sm:$0xff]  ;;  %v6409_v26 = vadd.f32 %v13619_v63, %v6366_v8  ;;  %vm16282_vm2 = vcmask 7168   ;;  %vm16472_vm5 = vcmask 130048  }
 0x500   : > { %v6774_v58 = vrot.slane %v6752_v54, 4  ;;  %v6616_v16 = vmax.f32 %v6415_v20, 0.0  ;;  %v6498_v7 = vpop.f32.mrf.mxu1 }
 0x501   : > { %v6782_v56 = vsel %vm16262_vm6, %v6765_v57, %v6766_v59  ;;  %vm16268_vm6 = vnez %v16267_v4 }
 0x502   : > { %v6797_v18 = vsel %vm16260_vm15, %v6773_v2, %v6774_v58  ;;  %v13590_v46 = vsel %vm16263_vm4, %v6782_v56, %v6736_v15  ;;  %vm16266_vm15 = vmmov %vm16264_vm0  ;;  %v6648_v14 = vsel %vm16268_vm6, %v6616_v16, 0.0  ;;  %vm16270_vm4 = vnez %v16269_v22 }
 0x503   : > { %v13585_v33 = vsel %vm16261_vm1, %v6797_v18, %v6752_v54  ;;  %6830 = vst [vmem:[#allocation4 + $0xc] sm:$0xff] %v13590_v46  ;;  %7411 = vrot.lane.b32.xlu0 %v13590_v46, %s10206_s12  ;;  %v6647_v57 = vsel %vm16270_vm4, %v6615_v0, 0.0  ;;  %v6629_v2 = vsel %vm10368_vm14, %v6597_v28, 0.0 }
 0x504   : > { %6839 = vst [vmem:[#allocation4 + $0x58] sm:$0xff] %v13585_v33  ;;  %v9935_v52 = vpack.c.bf16 %v6648_v14, %v6647_v57  ;;  %v9926_v36 = vpack.c.bf16 %v6630_v23, %v6629_v2 }
 0x505   : > { %v13607_v38 = vld [vmem:[#allocation4 + $0x50] sm:$0xff] }
 0x506   : > { %v13599_v40 = vld [vmem:[#allocation4 + $0x4] sm:$0xff]  ;;  %v13609_v25 = vld [vmem:[#allocation4 + $0x4c] sm:$0xff] }
 0x507   : > { %v13601_v29 = vld [vmem:[#allocation4] sm:$0xff]  ;;  %7409 = vrot.lane.b32.xlu1 %v13599_v40, %s10206_s12  ;;  %v9785_v41 = vcombine.low %v13599_v40, %v13607_v38  ;;  %v9786_v61 = vcombine.high %v13599_v40, %v13607_v38  ;;  %7257 = vrot.lane.b32.xlu0 %v13590_v46, %s10204_s10 }
 0x508   : > { %v9738_v3 = vcombine.high %v13601_v29, %v13609_v25 }
 0x50a   : > { %v13627_v5 = vld [vmem:[#allocation4 + $0x8] sm:$0xff] }
 0x50b   : > { %7255 = vrot.lane.b32.xlu1 %v13599_v40, %s10204_s10  ;;  %v13625_v42 = vld [vmem:[#allocation4 + $0x54] sm:$0xff]  ;;  %7071 = vrot.lane.b32.xlu0 %v13627_v5, %s10206_s12 }
 0x50c   : > { %v13635_v21 = vcombine.low %v13627_v5, %v13625_v42  ;;  %v13639_v45 = vcombine.high %v13627_v5, %v13625_v42 }
 0x50f   : > { %7069 = vrot.lane.b32.xlu1 %v13601_v29, %s10206_s12  ;;  %6917 = vrot.lane.b32.xlu0 %v13627_v5, %s10204_s10  ;;  %v6738_v47 = vpop.permute.xlu1 %6737 }
 0x510   : > { %v6767_v1 = vrot.slane %v6738_v47, 4 }
 0x512   : > { %v6784_v60 = vsel %vm16264_vm0, %v6766_v59, %v6767_v1  ;;  %v6368_v59 = vadd.f32 %v6367_v6, %v13496_v39 }
 0x513   : > { %6915 = vrot.lane.b32.xlu1 %v13601_v29, %s10204_s10  ;;  %7429 = vrot.lane.b32.xlu0 %v13585_v33, %s10206_s12  ;;  %v13659_v31 = vsel %vm16265_vm3, %v6784_v60, %v6738_v47  ;;  %v6754_v37 = vpop.permute.xlu0 %6753  ;;  %vm16271_vm3 = vmmov %vm16261_vm1 }
 0x514   : > { %6831 = vst [vmem:[#allocation4 + $0x14] sm:$0xff] %v13659_v31  ;;  %v6775_v34 = vrot.slane %v6754_v37, 4  ;;  %v6411_v47 = vadd.f32 %v13629_v44, %v6368_v59  ;;  %v6599_v44 = vmax.f32 %v6409_v26, 0.0  ;;  %v16273_v59 = vld [vmem:[#allocation36_spill] sm:$0xff]  ;;  %v16275_v26 = vld [vmem:[#allocation35_spill] sm:$0xff] }
 0x516   : > { %v6799_v30 = vsel %vm16266_vm15, %v6774_v58, %v6775_v34  ;;  %vm16272_vm15 = vmmov %vm16264_vm0  ;;  %v6600_v51 = vmax.f32 %v6411_v47, 0.0  ;;  %v6631_v60 = vsel %vm16270_vm4, %v6599_v44, 0.0 }
 0x517   : > { %7427 = vrot.lane.b32.xlu1 %v13607_v38, %s10206_s12  ;;  %7275 = vrot.lane.b32.xlu0 %v13585_v33, %s10204_s10  ;;  %v6800_v53 = vsel %vm16261_vm1, %v6799_v30, %v6754_v37 }
 0x518   : > { %6840 = vst [vmem:[#allocation4 + $0x60] sm:$0xff] %v6800_v53  ;;  %v6632_v63 = vsel %vm16268_vm6, %v6600_v51, 0.0  ;;  %vm9164_vm6 = vcmask 519170  }
 0x519   : > { %v9927_v37 = vpack.c.bf16 %v6632_v63, %v6631_v60 }
 0x51b   : > { %7273 = vrot.lane.b32.xlu1 %v13607_v38, %s10204_s10  ;;  %7089 = vrot.lane.b32.xlu0 %v13625_v42, %s10206_s12  ;;  %v13686_v24 = vld [vmem:[#allocation4 + $0x10] sm:$0xff] }
 0x51f   : > { %7087 = vrot.lane.b32.xlu1 %v13609_v25, %s10206_s12  ;;  %6935 = vrot.lane.b32.xlu0 %v13625_v42, %s10204_s10  ;;  %v13688_v35 = vld [vmem:[#allocation4 + $0x5c] sm:$0xff] }
 0x523   : > { %6933 = vrot.lane.b32.xlu1 %v13609_v25, %s10204_s10  ;;  %6759 = vrot.lane.b32.xlu0 %v9935_v52, %s10210_s14 }
 0x524   : > { %v13696_v58 = vpop.permute.xlu1 %6739 }
 0x525   : > { %v6768_v27 = vrot.slane %v13696_v58, 4 }
 0x527   : > { %6741 = vrot.lane.b32.xlu1 %v9926_v36, %s10210_s14  ;;  %7597 = vrot.lane.b32.xlu0 %v13686_v24, %s10204_s10  ;;  %v6786_v15 = vsel %vm16264_vm0, %v6767_v1, %v6768_v27  ;;  %vm16274_vm0 = vnez %v16273_v59 }
 0x528   : > { %v13709_v18 = vsel %vm16271_vm3, %v6786_v15, %v13696_v58  ;;  %v13711_v56 = vpop.permute.xlu0 %6755  ;;  %vm16276_vm3 = vnez %v16275_v26 }
 0x529   : > { %6832 = vst [vmem:[#allocation4 + $0x1c] sm:$0xff] %v13709_v18  ;;  %v6776_v55 = vrot.slane %v13711_v56, 4 }
 0x52b   : > { %7595 = vrot.lane.b32.xlu1 %v13627_v5, %s10204_s10  ;;  %7751 = vrot.lane.b32.xlu0 %v13686_v24, %s10206_s12  ;;  %v6801_v6 = vsel %vm16272_vm15, %v6775_v34, %v6776_v55  ;;  %v6500_v34 = vpop.f32.mrf.mxu1 }
 0x52c   : > { %v13728_v1 = vsel %vm16261_vm1, %v6801_v6, %v13711_v56 }
 0x52d   : > { %6841 = vst [vmem:[#allocation4 + $0x68] sm:$0xff] %v13728_v1 }
 0x52f   : > { %7749 = vrot.lane.b32.xlu1 %v13627_v5, %s10206_s12  ;;  %7615 = vrot.lane.b32.xlu0 %v13688_v35, %s10204_s10 }
 0x530   : > { %v13742_v13 = vld [vmem:[#allocation4 + $0x18] sm:$0xff] }
 0x533   : > { %7613 = vrot.lane.b32.xlu1 %v13625_v42, %s10204_s10  ;;  %7431 = vrot.lane.b32.xlu0 %v6800_v53, %s10206_s12 }
 0x534   : > { %v13744_v20 = vld [vmem:[#allocation4 + $0x64] sm:$0xff] }
 0x537   : > { %7767 = vrot.lane.b32.xlu1 %v13625_v42, %s10206_s12  ;;  %7277 = vrot.lane.b32.xlu0 %v6800_v53, %s10204_s10 }
 0x53b   : > { %6743 = vrot.lane.b32.xlu1 %v9927_v37, %s10210_s14  ;;  %7091 = vrot.lane.b32.xlu0 %v13688_v35, %s10206_s12 }
 0x53d   : > { %v6451_v5 = vpop.f32.mrf.mxu0 }
 0x53e   : > { %v6452_v23 = vadd.f32 %v6451_v5, %v13496_v39 }
 0x53f   : > { %v6453_v9 = vpop.f32.mrf.mxu0  ;;  %7413 = vrot.lane.b32.xlu1 %v13659_v31, %s10206_s12  ;;  %6937 = vrot.lane.b32.xlu0 %v13688_v35, %s10204_s10 }
 0x540   : > { %v6537_v32 = vpop.f32.mrf.mxu1  ;;  %v6454_v53 = vadd.f32 %v6453_v9, %v13496_v39  ;;  %v6495_v15 = vadd.f32 %v6494_v12, %v6452_v23 }
 0x541   : > { %v6455_v30 = vpop.f32.mrf.mxu0 }
 0x542   : > { %v6456_v42 = vadd.f32 %v6455_v30, %v13498_v48  ;;  %v6539_v14 = vpop.f32.mrf.mxu1  ;;  %v6497_v52 = vadd.f32 %v6496_v10, %v6454_v53  ;;  %v6601_v10 = vmax.f32 %v6495_v15, 0.0 }
 0x543   : > { %v6457_v16 = vpop.f32.mrf.mxu0  ;;  %7259 = vrot.lane.b32.xlu1 %v13659_v31, %s10204_s10  ;;  %7769 = vrot.lane.b32.xlu0 %v13688_v35, %s10206_s12  ;;  %v6540_v30 = vadd.f32 %v6539_v14, %v13496_v39  ;;  %v16279_v14 = vld [vmem:[#allocation37_spill] sm:$0xff] }
 0x544   : > { %v6458_v17 = vadd.f32 %v6457_v16, %v13498_v48  ;;  %v6499_v0 = vadd.f32 %v6498_v7, %v6456_v42  ;;  %v6541_v36 = vpop.f32.mrf.mxu1  ;;  %v6602_v6 = vmax.f32 %v6497_v52, 0.0  ;;  %v6633_v5 = vsel %vm16276_vm3, %v6601_v10, 0.0 }
 0x545   : > { %v6580_v28 = vpop.f32.mrf.mxu0  ;;  %v6542_v60 = vadd.f32 %v6541_v36, %v13498_v48  ;;  %v6538_v16 = vadd.f32 %v6537_v32, %v13496_v39  ;;  %vm16280_vm1 = vnez %v16279_v14 }
 0x546   : > { %v6501_v4 = vadd.f32 %v6500_v34, %v6458_v17  ;;  %v6617_v2 = vmax.f32 %v6499_v0, 0.0  ;;  %v6543_v7 = vpop.f32.mrf.mxu1  ;;  %v6634_v31 = vsel %vm16274_vm0, %v6602_v6, 0.0  ;;  %v16277_v0 = vld [vmem:[#allocation38_spill] sm:$0xff] }
 0x547   : > { %v6582_v57 = vpop.f32.mrf.mxu0  ;;  %7073 = vrot.lane.b32.xlu1 %v13686_v24, %s10206_s12  ;;  %v6544_v12 = vadd.f32 %v6543_v7, %v13498_v48  ;;  %v9928_v37 = vpack.c.bf16 %v6634_v31, %v6633_v5  ;;  %v6581_v48 = vadd.f32 %v6580_v28, %v6538_v16  ;;  %vm16278_vm15 = vnez %v16277_v0 }
 0x548   : > { %v6618_v22 = vmax.f32 %v6501_v4, 0.0  ;;  %v6649_v51 = vsel %vm16276_vm3, %v6617_v2, 0.0  ;;  %v6583_v17 = vadd.f32 %v6582_v57, %v6540_v30  ;;  %v13808_v2 = vld.sshfl [vmem:[#allocation12] sm:$0x33 pattern:$0x76325410] }
 0x549   : > { %v6584_v47 = vpop.f32.mrf.mxu0  ;;  %v6603_v39 = vmax.f32 %v6581_v48, 0.0  ;;  %v13814_v36 = vcombine.high %v13808_v2, %v13808_v2 }
 0x54a   : > { %v6650_v8 = vsel %vm16274_vm0, %v6618_v22, 0.0  ;;  %v6585_v34 = vadd.f32 %v6584_v47, %v6542_v60  ;;  %v6604_v23 = vmax.f32 %v6583_v17, 0.0  ;;  %vm15377_vm0 = vcmask 130048  }
 0x54b   : > { %v9936_v44 = vpack.c.bf16 %v6650_v8, %v6649_v51  ;;  %v6586_v63 = vpop.f32.mrf.mxu0  ;;  %6919 = vrot.lane.b32.xlu1 %v13686_v24, %s10204_s10  ;;  %v6635_v28 = vsel %vm16280_vm1, %v6603_v39, 0.0  ;;  %9881 = vmatprep.mubr.msk.bf16.mxu0 %vm15377_vm0, %v13814_v36 }
 0x54c   : > { %v6587_v9 = vadd.f32 %v6586_v63, %v6544_v12  ;;  %v6619_v53 = vmax.f32 %v6585_v34, 0.0  ;;  %v6636_v32 = vsel %vm16278_vm15, %v6604_v23, 0.0  ;;  %9882 = vmatprep.mubr.msk.bf16.mxu1 %vm15377_vm0, %v13814_v36 }
 0x54d   : > { %6761 = vrot.lane.b32.xlu0 %v9936_v44, %s10210_s14  ;;  %v9929_v57 = vpack.c.bf16 %v6636_v32, %v6635_v28 }
 0x54e   : > { %v6620_v42 = vmax.f32 %v6587_v9, 0.0  ;;  %v6651_v22 = vsel %vm16280_vm1, %v6619_v53, 0.0  ;;  %vm16281_vm1 = vcmask 1043456  }
 0x54f   : > { %6745 = vrot.lane.b32.xlu1 %v9928_v37, %s10210_s14 }
 0x550   : > { %v6652_v4 = vsel %vm16278_vm15, %v6620_v42, 0.0 }
 0x551   : > { %7617 = vrot.lane.b32.xlu0 %v13744_v20, %s10204_s10  ;;  %v9937_v52 = vpack.c.bf16 %v6652_v4, %v6651_v22 }
 0x553   : > { %7599 = vrot.lane.b32.xlu1 %v13742_v13, %s10204_s10 }
 0x555   : > { %7771 = vrot.lane.b32.xlu0 %v13744_v20, %s10206_s12 }
 0x557   : > { %7753 = vrot.lane.b32.xlu1 %v13742_v13, %s10206_s12 }
 0x559   : > { %7433 = vrot.lane.b32.xlu0 %v13728_v1, %s10206_s12 }
 0x55b   : > { %7415 = vrot.lane.b32.xlu1 %v13709_v18, %s10206_s12 }
 0x55d   : > { %6763 = vrot.lane.b32.xlu0 %v9937_v52, %s10210_s14 }
 0x55f   : > { %6747 = vrot.lane.b32.xlu1 %v9929_v57, %s10210_s14 }
 0x561   : > { %7279 = vrot.lane.b32.xlu0 %v13728_v1, %s10204_s10 }
 0x563   : > { %7261 = vrot.lane.b32.xlu1 %v13709_v18, %s10204_s10 }
 0x565   : > { %7093 = vrot.lane.b32.xlu0 %v13744_v20, %s10206_s12 }
 0x567   : > { %7075 = vrot.lane.b32.xlu1 %v13742_v13, %s10206_s12 }
 0x569   : > { %6939 = vrot.lane.b32.xlu0 %v13744_v20, %s10204_s10 }
 0x56b   : > { %6921 = vrot.lane.b32.xlu1 %v13742_v13, %s10204_s10 }
 0x571   : > { %v6758_v1 = vpop.permute.xlu0 %6757 }
 0x572   : > { %v6777_v15 = vrot.slane %v6758_v1, 4 }
 0x574   : > { %v6803_v18 = vsel %vm16281_vm1, %v6776_v55, %v6777_v15 }
 0x575   : > { %v6804_v59 = vsel %vm16282_vm2, %v6803_v18, %v6758_v1  ;;  %v13832_v8 = vpop.permute.xlu0 %7411  ;;  %vm16283_vm2 = vmmov %vm16281_vm1  ;;  %vm16284_vm1 = vcmask 7168  }
 0x576   : > { %6842 = vst [vmem:[#allocation4 + $0x70] sm:$0xff] %v6804_v59  ;;  %vm16285_vm0 = vmmov %vm16283_vm2  ;;  %v15383_v43 = vrot.slane %v13832_v8, 4 }
 0x577   : > { %vm16286_vm3 = vmmov %vm16284_vm1 }
 0x579   : > { %v13834_v47 = vpop.permute.xlu1 %7409  ;;  %v13836_v6 = vpop.permute.xlu0 %7257 }
 0x57d   : > { %v13838_v26 = vld [vmem:[#allocation4 + $0x6c] sm:$0xff]  ;;  %v13842_v51 = vpop.permute.xlu1 %7255  ;;  %v13844_v44 = vpop.permute.xlu0 %7071 }
 0x57e   : > { %7619 = vrot.lane.b32.xlu0 %v13838_v26, %s10204_s10 }
 0x581   : > { %v13847_v56 = vpop.permute.xlu1 %7069  ;;  %v13849_v55 = vpop.permute.xlu0 %6917 }
 0x582   : > { %7435 = vrot.lane.b32.xlu0 %v6804_v59, %s10206_s12 }
 0x585   : > { %v13852_v7 = vpop.permute.xlu1 %6915  ;;  %v13854_v10 = vpop.permute.xlu0 %7429 }
 0x586   : > { %7281 = vrot.lane.b32.xlu0 %v6804_v59, %s10204_s10 }
 0x589   : > { %v7428_v63 = vpop.permute.xlu1 %7427  ;;  %v13858_v31 = vpop.permute.xlu0 %7275 }
 0x58a   : > { %7095 = vrot.lane.b32.xlu0 %v13838_v26, %s10206_s12  ;;  %v7454_v58 = vrot.slane %v7428_v63, 4 }
 0x58d   : > { %v13862_v12 = vpop.permute.xlu1 %7273  ;;  %v13864_v5 = vpop.permute.xlu0 %7089 }
 0x58e   : > { %6941 = vrot.lane.b32.xlu0 %v13838_v26, %s10204_s10  ;;  %v7300_v11 = vrot.slane %v13862_v12, 4 }
 0x591   : > { %v13866_v60 = vpop.permute.xlu1 %7087  ;;  %v13868_v9 = vpop.permute.xlu0 %6935 }
 0x595   : > { %v13870_v37 = vpop.permute.xlu1 %6933  ;;  %v13872_v34 = vpop.permute.xlu0 %6759 }
 0x596   : > { %v6778_v30 = vrot.slane %v13872_v34, 4 }
 0x598   : > { %v6805_v17 = vsel %vm16283_vm2, %v6777_v15, %v6778_v30  ;;  %vm16288_vm2 = vcmask 1039360  }
 0x599   : > { %v6742_v42 = vpop.permute.xlu1 %6741  ;;  %v13880_v53 = vsel %vm16284_vm1, %v6805_v17, %v13872_v34  ;;  %v13882_v48 = vpop.permute.xlu0 %7597  ;;  %vm16289_vm1 = vmmov %vm16288_vm2 }
 0x59a   : > { %v6769_v16 = vrot.slane %v6742_v42, 4  ;;  %6843 = vst [vmem:[#allocation4 + $0x78] sm:$0xff] %v13880_v53  ;;  %v15379_v39 = vrot.slane %v13882_v48, 4 }
 0x59c   : > { %v6788_v0 = vsel %vm16285_vm0, %v6768_v27, %v6769_v16 }
 0x59d   : > { %v6789_v4 = vsel %vm16286_vm3, %v6788_v0, %v6742_v42  ;;  %v7596_v23 = vpop.permute.xlu1 %7595  ;;  %v13889_v14 = vpop.permute.xlu0 %7751  ;;  %v7445_v0 = vrot.slane %v13834_v47, 4  ;;  %vm16287_vm3 = vmmov %vm16285_vm0 }
 0x59e   : > { %6833 = vst [vmem:[#allocation4 + $0x24] sm:$0xff] %v6789_v4  ;;  %v7631_v22 = vrot.slane %v7596_v23, 4 }
 0x5a0   : > { %v7649_v27 = vsel %vm16285_vm0, %v7631_v22, %v15379_v39  ;;  %v15382_v22 = vrot.slane %v13854_v10, 4  ;;  %v7291_v39 = vrot.slane %v13842_v51, 4 }
 0x5a1   : > { %v13891_v52 = vpop.permute.xlu1 %7749  ;;  %v13894_v32 = vpop.permute.xlu0 %7615  ;;  %v13896_v28 = vld [vmem:[#allocation4 + $0x74] sm:$0xff]  ;;  %v7650_v59 = vsel %vm16288_vm2, %v7596_v23, %v7649_v27  ;;  %vm16291_vm2 = vcmask 1031168  }
 0x5a2   : > { %7621 = vrot.lane.b32.xlu0 %v13896_v28, %s10204_s10  ;;  %v7641_v18 = vrot.slane %v13894_v32, 4  ;;  %v7479_v19 = vsel %vm16285_vm0, %v7454_v58, %v15382_v22  ;;  %v15391_v22 = vrot.slane %v13844_v44, 4 }
 0x5a3   : > { %v7480_v58 = vsel %vm16291_vm2, %v7428_v63, %v7479_v19 }
 0x5a5   : > { %v7614_v57 = vpop.permute.xlu1 %7613  ;;  %v13903_v1 = vld [vmem:[#allocation4 + $0x20] sm:$0xff]  ;;  %v13912_v17 = vpop.permute.xlu0 %7431 }
 0x5a6   : > { %v7640_v15 = vrot.slane %v7614_v57, 4  ;;  %7601 = vrot.lane.b32.xlu1 %v13903_v1, %s10204_s10  ;;  %7773 = vrot.lane.b32.xlu0 %v13838_v26, %s10206_s12 }
 0x5a8   : > { %v7665_v50 = vsel %vm16287_vm3, %v7640_v15, %v7641_v18  ;;  %vm16290_vm3 = vmmov %vm16285_vm0 }
 0x5a9   : > { %v13922_v49 = vpop.permute.xlu1 %7767  ;;  %v7666_v42 = vsel %vm16289_vm1, %v7614_v57, %v7665_v50  ;;  %v13931_v62 = vpop.permute.xlu0 %7277  ;;  %v7463_v23 = vsel %vm16290_vm3, %v7445_v0, %v15383_v43  ;;  %v15380_v50 = vrot.slane %v13858_v31, 4  ;;  %v15381_v57 = vrot.slane %v13836_v6, 4  ;;  %vm16292_vm1 = vmmov %vm16285_vm0 }
 0x5aa   : > { %7417 = vrot.lane.b32.xlu1 %v6789_v4, %s10206_s12  ;;  %v9849_v15 = vcombine.low %v7650_v59, %v7666_v42  ;;  %v9850_v54 = vcombine.high %v7650_v59, %v7666_v42  ;;  %7775 = vrot.lane.b32.xlu0 %v13896_v28, %s10206_s12  ;;  %vm16293_vm0 = vmmov %vm16291_vm2 }
 0x5ab   : > { %v7325_v59 = vsel %vm16292_vm1, %v7300_v11, %v15380_v50  ;;  %v7464_v0 = vsel %vm16293_vm0, %v13834_v47, %v7463_v23  ;;  %vm16294_vm3 = vmmov %vm16292_vm1  ;;  %vm16297_vm0 = vcmask 1039360   ;;  %v7105_v50 = vrot.slane %v13847_v56, 4 }
 0x5ac   : > { %8751 = vmatprep.subr.bf16.mxu0 %v9850_v54  ;;  %v7309_v19 = vsel %vm16294_vm3, %v7291_v39, %v15381_v57  ;;  %vm16295_vm2 = vmmov %vm16292_vm1  ;;  %v9818_v11 = vcombine.high %v7464_v0, %v7480_v58  ;;  %vm16296_vm1 = vcmask 7168   ;;  %v7326_v47 = vsel %vm16297_vm0, %v13862_v12, %v7325_v59 }
 0x5ad   : > { %v13940_v27 = vpop.permute.xlu1 %6743  ;;  %8752 = vmatpush1.bf16.msra.mxu0 %v9849_v15  ;;  %v13950_v54 = vpop.permute.xlu0 %7091  ;;  %v7114_v39 = vrot.slane %v13866_v60, 4  ;;  %vm16298_vm3 = vmmov %vm16297_vm0  ;;  %v15384_v57 = vrot.slane %v13864_v5, 4  ;;  %vm16300_vm0 = vcmask 1031168  }
 0x5ae   : > { %v6770_v42 = vrot.slane %v13940_v27, 4  ;;  %7263 = vrot.lane.b32.xlu1 %v6789_v4, %s10204_s10  ;;  %8753 = vmatprep.subr.bf16.mxu0 %v13639_v45 }
 0x5af   : > { %7437 = vrot.lane.b32.xlu0 %v13880_v53, %s10206_s12 }
 0x5b0   : > { %v6790_v63 = vsel %vm16295_vm2, %v6769_v16, %v6770_v42  ;;  %v9817_v16 = vcombine.low %v7464_v0, %v7480_v58  ;;  %v6960_v58 = vrot.slane %v13870_v37, 4  ;;  %v7139_v0 = vsel %vm16295_vm2, %v7114_v39, %v15384_v57 }
 0x5b1   : > { %v13964_v4 = vsel %vm16296_vm1, %v6790_v63, %v13940_v27  ;;  %v13966_v15 = vpop.permute.xlu1 %7413  ;;  %8754 = vmatpush1.bf16.msra.mxu0 %v13635_v21  ;;  %v13975_v23 = vpop.permute.xlu0 %6937  ;;  %v7310_v63 = vsel %vm16298_vm3, %v13842_v51, %v7309_v19  ;;  %vm16299_vm1 = vmmov %vm16295_vm2 }
 0x5b2   : > { %6834 = vst [vmem:[#allocation4 + $0x2c] sm:$0xff] %v13964_v4  ;;  %7077 = vrot.lane.b32.xlu1 %v13903_v1, %s10206_s12  ;;  %8755 = vmatprep.subr.bf16.mxu0 %v9818_v11  ;;  %v9802_v12 = vcombine.high %v7310_v63, %v7326_v47  ;;  %v9801_v51 = vcombine.low %v7310_v63, %v7326_v47  ;;  %v15385_v63 = vrot.slane %v13849_v55, 4  ;;  %vm16301_vm3 = vmmov %vm16299_vm1 }
 0x5b3   : > { %7283 = vrot.lane.b32.xlu0 %v13880_v53, %s10204_s10  ;;  %v6951_v53 = vrot.slane %v13852_v7, 4  ;;  %v7123_v11 = vsel %vm16299_vm1, %v7105_v50, %v15391_v22  ;;  %v7140_v47 = vsel %vm16300_vm0, %v13866_v60, %v7139_v0  ;;  %vm16302_vm2 = vmmov %vm16300_vm0  ;;  %vm16303_vm0 = vcmask 1039360  }
 0x5b5   : > { %v13983_v59 = vpop.permute.xlu1 %7259  ;;  %8756 = vmatpush1.bf16.msra.mxu0 %v9817_v16  ;;  %v13992_v19 = vpop.permute.xlu0 %7769  ;;  %v15389_v16 = vrot.slane %v13868_v9, 4  ;;  %v6969_v60 = vsel %vm16299_vm1, %v6951_v53, %v15385_v63 }
 0x5b6   : > { %6923 = vrot.lane.b32.xlu1 %v13903_v1, %s10204_s10  ;;  %8757 = vmatprep.subr.bf16.mxu0 %v9802_v12 }
 0x5b7   : > { %7097 = vrot.lane.b32.xlu0 %v13896_v28, %s10206_s12  ;;  %v6985_v12 = vsel %vm16301_vm3, %v6960_v58, %v15389_v16  ;;  %vm16304_vm3 = vmmov %vm16299_vm1 }
 0x5b8   : > { %vm16306_vm1 = vmmov %vm16303_vm0 }
 0x5b9   : > { %v14001_v43 = vpop.permute.xlu1 %7073  ;;  %v14003_v39 = vld [vmem:[#allocation4 + $0x28] sm:$0xff]  ;;  %8758 = vmatpush1.bf16.msra.mxu0 %v9801_v51  ;;  %v7124_v51 = vsel %vm16302_vm2, %v13847_v56, %v7123_v11  ;;  %v15386_v56 = vrot.slane %v13992_v19, 4  ;;  %vm16305_vm2 = vcmask 7168  }
 0x5ba   : > { %7603 = vrot.lane.b32.xlu1 %v14003_v39, %s10204_s10  ;;  %8759 = vmatprep.subr.bf16.mxu0 %v9786_v61  ;;  %v9770_v57 = vcombine.high %v7124_v51, %v7140_v47  ;;  %v6986_v61 = vsel %vm16303_vm0, %v13870_v37, %v6985_v12  ;;  %v9769_v40 = vcombine.low %v7124_v51, %v7140_v47  ;;  %v7785_v37 = vrot.slane %v13891_v52, 4  ;;  %vm16307_vm0 = vmmov %vm16304_vm3 }
 0x5bb   : > { %v7794_v12 = vrot.slane %v13922_v49, 4 }
 0x5bd   : > { %v14024_v58 = vpop.permute.xlu1 %6919  ;;  %8760 = vmatpush1.bf16.msra.mxu0 %v9785_v41  ;;  %v6970_v41 = vsel %vm16306_vm1, %v13852_v7, %v6969_v60  ;;  %vm16310_vm1 = vcmask 7168  }
 0x5be   : > { %7755 = vrot.lane.b32.xlu1 %v13903_v1, %s10206_s12  ;;  %8761 = vmatprep.subr.bf16.mxu0 %v9770_v57  ;;  %v9754_v34 = vcombine.high %v6970_v41, %v6986_v61  ;;  %v7819_v57 = vsel %vm16307_vm0, %v7794_v12, %v15386_v56  ;;  %v9753_v51 = vcombine.low %v6970_v41, %v6986_v61  ;;  %v7447_v12 = vrot.slane %v13966_v15, 4 }
 0x5bf   : > { %v14016_v50 = vpop.permute.xlu0 %6761 }
 0x5c0   : > { %v6779_v0 = vrot.slane %v14016_v50, 4 }
 0x5c1   : > { %v14050_v63 = vpop.permute.xlu1 %6745  ;;  %8762 = vmatpush1.bf16.msra.mxu0 %v9769_v40 }
 0x5c2   : > { %v6807_v53 = vsel %vm16304_vm3, %v6778_v30, %v6779_v0  ;;  %v15388_v30 = vrot.slane %v13889_v14, 4  ;;  %v15392_v47 = vrot.slane %v14050_v63, 4  ;;  %7757 = vrot.lane.b32.xlu1 %v14003_v39, %s10206_s12  ;;  %8763 = vmatprep.subr.bf16.mxu0 %v9754_v34  ;;  %vm16308_vm3 = vmmov %vm16307_vm0 }
 0x5c3   : > { %v14041_v11 = vsel %vm16305_vm2, %v6807_v53, %v14016_v50  ;;  %v14043_v38 = vpop.permute.xlu0 %7617  ;;  %vm16309_vm2 = vmmov %vm16307_vm0  ;;  %vm16311_vm0 = vcmask 1031168   ;;  %v16331_v50 = vrot.slane %v13858_v31, 4 }
 0x5c4   : > { %6844 = vst [vmem:[#allocation4 + $0x80] sm:$0xff] %v14041_v11  ;;  %v15387_v7 = vrot.slane %v14043_v38, 4  ;;  %v7803_v53 = vsel %vm16308_vm3, %v7785_v37, %v15388_v30  ;;  %v6792_v40 = vsel %vm16309_vm2, %v6770_v42, %v15392_v47  ;;  %v7820_v61 = vsel %vm16311_vm0, %v13922_v49, %v7819_v57  ;;  %vm16312_vm3 = vmmov %vm16309_vm2 }
 0x5c5   : > { %v14073_v56 = vsel %vm16310_vm1, %v6792_v40, %v14050_v63  ;;  %v14075_v34 = vpop.permute.xlu1 %7599  ;;  %8764 = vmatpush1.bf16.msra.mxu0 %v9753_v51  ;;  %vm16313_vm2 = vmmov %vm16311_vm0  ;;  %v7456_v57 = vrot.slane %v13912_v17, 4  ;;  %v16314_v51 = vrot.slane %v13882_v48, 4 }
 0x5c6   : > { %6835 = vst [vmem:[#allocation4 + $0x34] sm:$0xff] %v14073_v56  ;;  %v15390_v41 = vrot.slane %v14075_v34, 4  ;;  %7419 = vrot.lane.b32.xlu1 %v13964_v4, %s10206_s12  ;;  %v7667_v27 = vsel %vm16312_vm3, %v7641_v18, %v15387_v7  ;;  %8765 = vmatprep.subr.bf16.mxu0 %v9738_v3  ;;  %v7804_v37 = vsel %vm16313_vm2, %v13891_v52, %v7803_v53  ;;  %vm16315_vm1 = vmmov %vm16312_vm3  ;;  %v16316_v7 = vrot.slane %v13832_v8, 4 }
 0x5c7   : > { %v14060_v60 = vpop.permute.xlu0 %7771  ;;  %v9866_v3 = vcombine.high %v7804_v37, %v7820_v61  ;;  %vm16317_vm0 = vmmov %vm16315_vm1  ;;  %vm16318_vm3 = vcmask 1039360  }
 0x5c8   : > { %v7651_v40 = vsel %vm16315_vm1, %v16314_v51, %v15390_v41  ;;  %v7465_v30 = vsel %vm16317_vm0, %v16316_v7, %v7447_v12  ;;  %vm16319_vm2 = vmmov %vm16318_vm3  ;;  %v16320_v51 = vcombine.low %v13601_v29, %v13609_v25  ;;  %v7293_v41 = vrot.slane %v13983_v59, 4 }
 0x5c9   : > { %v14109_v16 = vpop.permute.xlu1 %7753  ;;  %v7652_v52 = vsel %vm16318_vm3, %v13882_v48, %v7651_v40  ;;  %v7668_v53 = vsel %vm16319_vm2, %v13894_v32, %v7667_v27  ;;  %vm16321_vm1 = vmmov %vm16317_vm0  ;;  %v9865_v48 = vcombine.low %v7804_v37, %v7820_v61  ;;  %v16322_v32 = vrot.slane %v13854_v10, 4 }
 0x5ca   : > { %8766 = vmatpush1.bf16.msra.mxu0 %v16320_v51  ;;  %7265 = vrot.lane.b32.xlu1 %v13964_v4, %s10204_s10  ;;  %v9851_v22 = vcombine.low %v7652_v52, %v7668_v53  ;;  %v9852_v47 = vcombine.high %v7652_v52, %v7668_v53  ;;  %v7302_v29 = vrot.slane %v13931_v62, 4  ;;  %vm16323_vm3 = vcmask 1031168   ;;  %vm16325_vm2 = vmmov %vm16317_vm0 }
 0x5cb   : > { %v14091_v42 = vpop.permute.xlu0 %7433  ;;  %v14093_v49 = vld [vmem:[#allocation4 + $0x7c] sm:$0xff]  ;;  %8781 = vmatprep.subr.bf16.mxu0 %v9866_v3  ;;  %v7481_v27 = vsel %vm16317_vm0, %v16322_v32, %v7456_v57  ;;  %v7466_v61 = vsel %vm16323_vm3, %v13832_v8, %v7465_v30  ;;  %v16324_v37 = vrot.slane %v13836_v6, 4  ;;  %vm16329_vm3 = vcmask 7168  }
 0x5cc   : > { %v15394_v18 = vrot.slane %v14091_v42, 4  ;;  %7623 = vrot.lane.b32.xlu0 %v14093_v49, %s10204_s10  ;;  %8792 = vmatprep.subr.bf16.mxu1 %v9852_v47 }
 0x5cd   : > { %v14130_v4 = vpop.permute.xlu1 %7415  ;;  %8793 = vmatpush1.bf16.msra.mxu1 %v9851_v22  ;;  %v14132_v52 = vld [vmem:[#allocation4 + $0x30] sm:$0xff]  ;;  %v16326_v22 = vcombine.high %v13686_v24, %v13688_v35 }
 0x5ce   : > { %v7483_v7 = vsel %vm16321_vm1, %v7456_v57, %v15394_v18  ;;  %8782 = vmatpush2.bf16.msra.mxu0 %v9865_v48  ;;  %v7311_v57 = vsel %vm16325_vm2, %v16324_v37, %v7293_v41  ;;  %v7448_v47 = vrot.slane %v14130_v4, 4  ;;  %7079 = vrot.lane.b32.xlu1 %v14003_v39, %s10206_s12  ;;  %vm16327_vm1 = vmmov %vm16317_vm0  ;;  %vm16328_vm0 = vcmask 3072  }
 0x5cf   : > { %v6764_v40 = vpop.permute.xlu0 %6763  ;;  %8794 = vmatprep.subr.bf16.mxu1 %v16326_v22  ;;  %vm16330_vm2 = vcmask 1031168   ;;  %vm16332_vm4 = vmmov %vm16327_vm1  ;;  %v16348_v48 = vrot.slane %v13868_v9, 4 }
 0x5d0   : > { %v6780_v25 = vrot.slane %v6764_v40, 4  ;;  %7439 = vrot.lane.b32.xlu0 %v14041_v11, %s10206_s12  ;;  %v7482_v30 = vsel %vm16330_vm2, %v13854_v10, %v7481_v27  ;;  %v7107_v10 = vrot.slane %v14001_v43, 4 }
 0x5d1   : > { %v9820_v32 = vcombine.high %v7466_v61, %v7482_v30  ;;  %8784 = vmatmul.mubr.bf16.vlgmr.msra.gmra.mxu0 %v13808_v2  ;;  %v6748_v27 = vpop.permute.xlu1 %6747 }
 0x5d2   : > { %v6809_v3 = vsel %vm16327_vm1, %v6779_v0, %v6780_v25  ;;  %6846 = vst.msk [vmem:[#allocation4 + $0x90] sm:$0xf] %vm16328_vm0, %v6780_v25  ;;  %v7327_v0 = vsel %vm16332_vm4, %v16331_v50, %v7302_v29  ;;  %v16333_v25 = vcombine.low %v13686_v24, %v13688_v35  ;;  %vm16334_vm4 = vcmask 1039360   ;;  %vm16335_vm0 = vmmov %vm16330_vm2  ;;  %7605 = vrot.lane.b32.xlu1 %v14132_v52, %s10204_s10 }
 0x5d3   : > { %v14152_v8 = vsel %vm16329_vm3, %v6809_v3, %v6764_v40  ;;  %v14156_v53 = vpop.permute.xlu0 %7279  ;;  %v7467_v40 = vsel %vm16327_vm1, %v7447_v12, %v7448_v47  ;;  %v7312_v37 = vsel %vm16334_vm4, %v13836_v6, %v7311_v57  ;;  %vm16336_vm3 = vmmov %vm16335_vm0  ;;  %vm16337_vm2 = vcmask 130048  }
 0x5d4   : > { %6845 = vst [vmem:[#allocation4 + $0x88] sm:$0xff] %v14152_v8  ;;  %7285 = vrot.lane.b32.xlu0 %v14041_v11, %s10204_s10  ;;  %8795 = vmatpush1.bf16.msra.mxu1 %v16333_v25  ;;  %v14180_v12 = vsel %vm16335_vm0, %v13966_v15, %v7467_v40  ;;  %v14184_v22 = vsel %vm16336_vm3, %v13912_v17, %v7483_v7  ;;  %v6772_v11 = vrot.slane %v6748_v27, 4  ;;  %v15395_v24 = vrot.slane %v14156_v53, 4  ;;  %vm16338_vm1 = vmmov %vm16334_vm4 }
 0x5d5   : > { %9883 = vmatprep.mubr.msk.bf16.mxu0 %vm16337_vm2, %v13814_v36  ;;  %8796 = vmatprep.subr.bf16.mxu1 %v9820_v32  ;;  %v9821_v35 = vcombine.low %v14180_v12, %v14184_v22  ;;  %v9822_v6 = vcombine.high %v14180_v12, %v14184_v22  ;;  %v7116_v15 = vrot.slane %v13950_v54, 4  ;;  %v9819_v17 = vcombine.low %v7466_v61, %v7482_v30 }
 0x5d6   : > { %v7328_v7 = vsel %vm16338_vm1, %v13858_v31, %v7327_v0  ;;  %v6962_v3 = vrot.slane %v13975_v23, 4  ;;  %v16339_v50 = vrot.slane %v14050_v63, 4  ;;  %vm16340_vm4 = vcmask 1043456   ;;  %v14212_v31 = vpop.permute.xlu1 %7261  ;;  %7421 = vrot.lane.b32.xlu1 %v14073_v56, %s10206_s12 }
 0x5d7   : > { %v14198_v57 = vpop.permute.xlu0 %7093  ;;  %vm16341_vm0 = vcmask 3072   ;;  %v9804_v32 = vcombine.high %v7312_v37, %v7328_v7  ;;  %v16342_v25 = vrot.slane %v13844_v44, 4  ;;  %vm16343_vm3 = vmmov %vm16340_vm4  ;;  %v6953_v61 = vrot.slane %v14024_v58, 4 }
 0x5d8   : > { %v6794_v40 = vsel %vm16340_vm4, %v16339_v50, %v6772_v11  ;;  %6837 = vst.msk [vmem:[#allocation4 + $0x44] sm:$0xf] %vm16341_vm0, %v6772_v11  ;;  %vm16344_vm2 = vcmask 7168   ;;  %8797 = vmatpush1.bf16.msra.mxu1 %v9819_v17  ;;  %v15399_v0 = vrot.slane %v14198_v57, 4  ;;  %v15396_v63 = vrot.slane %v14212_v31, 4  ;;  %vm16345_vm1 = vmmov %vm16343_vm3 }
 0x5d9   : > { %v7125_v51 = vsel %vm16343_vm3, %v16342_v25, %v7107_v10  ;;  %v14210_v30 = vsel %vm16344_vm2, %v6794_v40, %v6748_v27  ;;  %v7329_v11 = vsel %vm16345_vm1, %v7302_v29, %v15395_v24  ;;  %8798 = vmatprep.subr.bf16.mxu1 %v9804_v32  ;;  %v16346_v27 = vrot.slane %v13864_v5, 4  ;;  %vm16347_vm4 = vmmov %vm16345_vm1 }
 0x5da   : > { %6836 = vst [vmem:[#allocation4 + $0x3c] sm:$0xff] %v14210_v30  ;;  %v9803_v40 = vcombine.low %v7312_v37, %v7328_v7  ;;  %vm16349_vm0 = vmmov %vm16345_vm1  ;;  %vm16351_vm2 = vcmask 1031168   ;;  %v16352_v7 = vrot.slane %v13849_v55, 4  ;;  %v14245_v24 = vpop.permute.xlu1 %7075  ;;  %7267 = vrot.lane.b32.xlu1 %v14073_v56, %s10204_s10 }
 0x5db   : > { %v7141_v50 = vsel %vm16347_vm4, %v16346_v27, %v7116_v15  ;;  %v14225_v17 = vpop.permute.xlu0 %6939  ;;  %v14227_v25 = vld [vmem:[#allocation4 + $0x84] sm:$0xff]  ;;  %v6987_v18 = vsel %vm16349_vm0, %v16348_v48, %v6962_v3  ;;  %vm16350_vm3 = vmmov %vm16349_vm0  ;;  %v7126_v37 = vsel %vm16351_vm2, %v13844_v44, %v7125_v51  ;;  %v7108_v44 = vrot.slane %v14245_v24, 4 }
 0x5dc   : > { %v7313_v29 = vsel %vm16350_vm3, %v7293_v41, %v15396_v63  ;;  %v15397_v32 = vrot.slane %v14225_v17, 4  ;;  %7625 = vrot.lane.b32.xlu0 %v14227_v25, %s10204_s10  ;;  %vm16353_vm1 = vmmov %vm16349_vm0  ;;  %8799 = vmatpush1.bf16.msra.mxu1 %v9803_v40  ;;  %v16357_v51 = vcombine.high %v13590_v46, %v13585_v33 }
 0x5dd   : > { %v6971_v27 = vsel %vm16353_vm1, %v16352_v7, %v6953_v61  ;;  %vm16354_vm4 = vmmov %vm16349_vm0  ;;  %vm16355_vm0 = vcmask 1039360   ;;  %v7787_v7 = vrot.slane %v14109_v16, 4 }
 0x5de   : > { %v7143_v48 = vsel %vm16354_vm4, %v7116_v15, %v15399_v0  ;;  %v14252_v41 = vsel %vm16355_vm0, %v13983_v59, %v7313_v29  ;;  %vm16356_vm3 = vmmov %vm16355_vm0  ;;  %8800 = vmatprep.subr.bf16.mxu1 %v16357_v51  ;;  %v14285_v51 = vpop.permute.xlu1 %6921 }
 0x5df   : > { %v14256_v63 = vsel %vm16356_vm3, %v13931_v62, %v7329_v11  ;;  %vm16358_vm2 = vmmov %vm16353_vm1  ;;  %vm16359_vm1 = vcmask 1031168  }
 0x5e0   : > { %v6989_v15 = vsel %vm16358_vm2, %v6962_v3, %v15397_v32  ;;  %v9805_v59 = vcombine.low %v14252_v41, %v14256_v63  ;;  %v9806_v62 = vcombine.high %v14252_v41, %v14256_v63  ;;  %v7142_v11 = vsel %vm16359_vm1, %v13864_v5, %v7141_v50  ;;  %vm16360_vm4 = vmmov %vm16355_vm0  ;;  %7099 = vrot.lane.b32.xlu0 %v14093_v49, %s10206_s12 }
 0x5e1   : > { %v14275_v56 = vsel %vm16360_vm4, %v13975_v23, %v6989_v15  ;;  %vm16361_vm0 = vmmov %vm16358_vm2  ;;  %v9772_v29 = vcombine.high %v7126_v37, %v7142_v11  ;;  %v6988_v3 = vsel %vm16356_vm3, %v13868_v9, %v6987_v18  ;;  %v14287_v5 = vld [vmem:[#allocation4 + $0x38] sm:$0xff]  ;;  %v16362_v23 = vcombine.low %v13590_v46, %v13585_v33  ;;  %v14294_v50 = vld [vmem:[#allocation4 + $0x40] sm:$0xff] }
 0x5e2   : > { %v7127_v40 = vsel %vm16361_vm0, %v7107_v10, %v7108_v44  ;;  %vm16363_vm2 = vmmov %vm16356_vm3  ;;  %v15398_v18 = vrot.slane %v14285_v51, 4  ;;  %7607 = vrot.lane.b32.xlu1 %v14287_v5, %s10204_s10  ;;  %v14307_v33 = vld [vmem:[#allocation4 + $0x8c] sm:$0xff] }
 0x5e3   : > { %8801 = vmatpush1.bf16.msra.mxu1 %v16362_v23  ;;  %v6972_v10 = vsel %vm16363_vm2, %v13849_v55, %v6971_v27  ;;  %v14298_v15 = vsel %vm16359_vm1, %v14001_v43, %v7127_v40  ;;  %vm16364_vm4 = vmmov %vm16359_vm1  ;;  %v9771_v27 = vcombine.low %v7126_v37, %v7142_v11  ;;  %v16366_v11 = vrot.slane %v13889_v14, 4 }
 0x5e4   : > { %v14302_v9 = vsel %vm16364_vm4, %v13950_v54, %v7143_v48  ;;  %8802 = vmatprep.subr.bf16.mxu1 %v9772_v29  ;;  %v7796_v29 = vrot.slane %v14060_v60, 4  ;;  %v6973_v23 = vsel %vm16361_vm0, %v6953_v61, %v15398_v18  ;;  %v9756_v32 = vcombine.high %v6972_v10, %v6988_v3  ;;  %6943 = vrot.lane.b32.xlu0 %v13896_v28, %s10204_s10  ;;  %vm16365_vm3 = vmmov %vm16363_vm2 }
 0x5e5   : > { %v9773_v46 = vcombine.low %v14298_v15, %v14302_v9  ;;  %v9774_v55 = vcombine.high %v14298_v15, %v14302_v9  ;;  %v14329_v37 = vsel %vm16365_vm3, %v14024_v58, %v6973_v23  ;;  %vm16367_vm2 = vmmov %vm16361_vm0  ;;  %v16368_v58 = vrot.slane %v13992_v19, 4 }
 0x5e6   : > { %v7805_v48 = vsel %vm16367_vm2, %v16366_v11, %v7787_v7  ;;  %7081 = vrot.lane.b32.xlu1 %v14132_v52, %s10206_s12  ;;  %v9757_v61 = vcombine.low %v14329_v37, %v14275_v56  ;;  %v9758_v28 = vcombine.high %v14329_v37, %v14275_v56  ;;  %vm16369_vm1 = vmmov %vm16361_vm0  ;;  %v7576_v11 = vld [vmem:[#allocation4 + $0x94] sm:$0xf]  ;;  %vm16371_vm3 = vcmask 130048  }
 0x5e7   : > { %8803 = vmatpush1.bf16.msra.mxu1 %v9771_v27  ;;  %v9755_v27 = vcombine.low %v6972_v10, %v6988_v3  ;;  %v7821_v23 = vsel %vm16369_vm1, %v16368_v58, %v7796_v29  ;;  %vm16370_vm0 = vmmov %vm16364_vm4  ;;  %v16389_v15 = vcombine.high %v13903_v1, %v13838_v26 }
 0x5e8   : > { %8804 = vmatprep.subr.bf16.mxu1 %v9756_v32  ;;  %6945 = vrot.lane.b32.xlu0 %v14093_v49, %s10204_s10  ;;  %v7806_v32 = vsel %vm16364_vm4, %v13889_v14, %v7805_v48  ;;  %v7822_v3 = vsel %vm16370_vm0, %v13992_v19, %v7821_v23  ;;  %v7390_v19 = vld [vmem:[#allocation4 + $0x90] sm:$0xf]  ;;  %vm16373_vm2 = vmmov %vm16369_vm1  ;;  %vm16374_vm1 = vcmask 1039360   ;;  %v7567_v23 = vld [vmem:[#allocation4 + $0x48] sm:$0xf] }
 0x5e9   : > { %v9868_v10 = vcombine.high %v7806_v32, %v7822_v3  ;;  %v9867_v14 = vcombine.low %v7806_v32, %v7822_v3  ;;  %v7236_v32 = vld [vmem:[#allocation4 + $0x90] sm:$0xf]  ;;  %vm16376_vm4 = vmmov %vm16373_vm2 }
 0x5ea   : > { %6925 = vrot.lane.b32.xlu1 %v14003_v39, %s10204_s10  ;;  %vm16377_vm0 = vmmov %vm16374_vm1 }
 0x5eb   : > { %8805 = vmatpush1.bf16.msra.mxu1 %v9755_v27 }
 0x5ec   : > { %8806 = vmatprep.subr.bf16.mxu1 %v13639_v45  ;;  %7777 = vrot.lane.b32.xlu0 %v14093_v49, %s10206_s12 }
 0x5ee   : > { %6927 = vrot.lane.b32.xlu1 %v14132_v52, %s10204_s10 }
 0x5ef   : > { %8807 = vmatpush1.bf16.msra.mxu1 %v13635_v21  ;;  %v16372_v21 = vrot.slane %v14043_v38, 4 }
 0x5f0   : > { %8822 = vmatprep.subr.bf16.mxu1 %v9868_v10  ;;  %7629 = vrot.lane.b32.xlu0 %v7576_v11, %s10204_s10  ;;  %v14364_v45 = vpop.permute.xlu0 %7619  ;;  %v7227_v11 = vld [vmem:[#allocation4 + $0x44] sm:$0xf] }
 0x5f1   : > { %v7643_v48 = vrot.slane %v14364_v45, 4 }
 0x5f2   : > { %7759 = vrot.lane.b32.xlu1 %v14132_v52, %s10206_s12 }
 0x5f3   : > { %8823 = vmatpush2.bf16.msra.mxu1 %v9867_v14  ;;  %v7669_v27 = vsel %vm16373_vm2, %v16372_v21, %v7643_v48  ;;  %v7050_v14 = vld [vmem:[#allocation4 + $0x8c] sm:$0xf] }
 0x5f4   : > { %7443 = vrot.lane.b32.xlu0 %v7390_v19, %s10206_s12  ;;  %v7670_v58 = vsel %vm16374_vm1, %v14043_v38, %v7669_v27  ;;  %v7381_v38 = vld [vmem:[#allocation4 + $0x44] sm:$0xf]  ;;  %v14392_v3 = vpop.permute.xlu0 %7435  ;;  %vm16382_vm1 = vmmov %vm16373_vm2 }
 0x5f6   : > { %8825 = vmatmul.mubr.bf16.vlgmr.msra.gmra.mxu1 %v13808_v2  ;;  %7761 = vrot.lane.b32.xlu1 %v14287_v5, %s10206_s12 }
 0x5f7   : > { %9884 = vmatprep.mubr.msk.bf16.mxu1 %vm16371_vm3, %v13814_v36  ;;  %vm16381_vm3 = vmmov %vm16373_vm2 }
 0x5f8   : > { %7779 = vrot.lane.b32.xlu0 %v14227_v25, %s10206_s12  ;;  %v14399_v10 = vpop.permute.xlu0 %7281 }
 0x5fa   : > { %7609 = vrot.lane.b32.xlu1 %v14294_v50, %s10204_s10 }
 0x5fc   : > { %7627 = vrot.lane.b32.xlu0 %v14307_v33, %s10204_s10  ;;  %v14405_v19 = vpop.permute.xlu0 %7095 }
 0x5fd   : > { %v7118_v37 = vrot.slane %v14405_v19, 4 }
 0x5fe   : > { %7611 = vrot.lane.b32.xlu1 %v7567_v23, %s10204_s10 }
 0x600   : > { %7289 = vrot.lane.b32.xlu0 %v7236_v32, %s10204_s10  ;;  %v14412_v21 = vpop.permute.xlu0 %6941 }
 0x602   : > { %7423 = vrot.lane.b32.xlu1 %v14210_v30, %s10206_s12 }
 0x604   : > { %7441 = vrot.lane.b32.xlu0 %v14152_v8, %s10206_s12 }
 0x606   : > { %7425 = vrot.lane.b32.xlu1 %v7381_v38, %s10206_s12  ;;  %v6887_v38 = vld [vmem:[#allocation4 + $0x40] sm:$0xf] }
 0x608   : > { %7287 = vrot.lane.b32.xlu0 %v14152_v8, %s10204_s10  ;;  %v7041_v8 = vld [vmem:[#allocation4 + $0x40] sm:$0xf] }
 0x60a   : > { %7269 = vrot.lane.b32.xlu1 %v14210_v30, %s10204_s10  ;;  %v6896_v30 = vld [vmem:[#allocation4 + $0x8c] sm:$0xf] }
 0x60c   : > { %7101 = vrot.lane.b32.xlu0 %v14227_v25, %s10206_s12 }
 0x60e   : > { %7271 = vrot.lane.b32.xlu1 %v7227_v11, %s10204_s10  ;;  %v7730_v11 = vld [vmem:[#allocation4 + $0x94] sm:$0xf] }
 0x610   : > { %7103 = vrot.lane.b32.xlu0 %v7050_v14, %s10206_s12  ;;  %v16375_v14 = vrot.slane %v14075_v34, 4 }
 0x612   : > { %7083 = vrot.lane.b32.xlu1 %v14287_v5, %s10206_s12 }
 0x614   : > { %6947 = vrot.lane.b32.xlu0 %v14227_v25, %s10204_s10  ;;  %v14417_v23 = vpop.permute.xlu0 %7621 }
 0x616   : > { %7085 = vrot.lane.b32.xlu1 %v7041_v8, %s10206_s12 }
 0x618   : > { %6949 = vrot.lane.b32.xlu0 %v6896_v30, %s10204_s10  ;;  %v7602_v27 = vpop.permute.xlu1 %7601  ;;  %v14432_v18 = vpop.permute.xlu0 %7773 }
 0x619   : > { %v7634_v32 = vrot.slane %v7602_v27, 4 }
 0x61a   : > { %6929 = vrot.lane.b32.xlu1 %v14287_v5, %s10204_s10 }
 0x61b   : > { %v7653_v8 = vsel %vm16376_vm4, %v16375_v14, %v7634_v32  ;;  %v16378_v14 = vcombine.high %v13742_v13, %v13744_v20  ;;  %vm16383_vm4 = vmmov %vm16377_vm0 }
 0x61c   : > { %7781 = vrot.lane.b32.xlu0 %v14307_v33, %s10206_s12  ;;  %v14425_v40 = vpop.permute.xlu1 %7417  ;;  %v7654_v30 = vsel %vm16377_vm0, %v14075_v34, %v7653_v8  ;;  %v16379_v34 = vcombine.low %v13742_v13, %v13744_v20  ;;  %v7644_v8 = vrot.slane %v14417_v23, 4  ;;  %v10079_v20 = vld [vmem:[#allocation4 + $0x18] ss:$76 sps:$4 sm:$0xff]  }
 0x61d   : > { %v9853_v43 = vcombine.low %v7654_v30, %v7670_v58  ;;  %v9854_v54 = vcombine.high %v7654_v30, %v7670_v58  ;;  %v7449_v30 = vrot.slane %v14425_v40, 4 }
 0x61e   : > { %6931 = vrot.lane.b32.xlu1 %v6887_v38, %s10204_s10  ;;  %v7721_v38 = vld [vmem:[#allocation4 + $0x48] sm:$0xf]  ;;  %v7671_v12 = vsel %vm16381_vm3, %v7643_v48, %v7644_v8  ;;  %vm16385_vm3 = vmmov %vm16382_vm1 }
 0x61f   : > { %8833 = vmatprep.subr.bf16.mxu0 %v9854_v54  ;;  %v7469_v63 = vsel %vm16382_vm1, %v7448_v47, %v7449_v30 }
 0x620   : > { %7783 = vrot.lane.b32.xlu0 %v7730_v11, %s10206_s12  ;;  %8834 = vmatpush1.bf16.msra.mxu0 %v9853_v43  ;;  %v14434_v0 = vpop.permute.xlu1 %7263  ;;  %v14445_v11 = vpop.permute.xlu0 %7775  ;;  %v16380_v43 = vld [vmem:[#allocation23_spill] sm:$0xff] }
 0x621   : > { %8835 = vmatprep.subr.bf16.mxu0 %v16378_v14  ;;  %v7672_v14 = vsel %vm16377_vm0, %v14364_v45, %v7671_v12  ;;  %v7797_v45 = vrot.slane %v14432_v18, 4 }
 0x622   : > { %7763 = vrot.lane.b32.xlu1 %v14294_v50, %s10206_s12 }
 0x624   : > { %8836 = vmatpush1.bf16.msra.mxu0 %v16379_v34  ;;  %v14443_v58 = vpop.permute.xlu1 %7077  ;;  %v14460_v13 = vpop.permute.xlu0 %7437  ;;  %v7295_v34 = vrot.slane %v14434_v0, 4 }
 0x625   : > { %8837 = vmatprep.subr.bf16.mxu0 %v9822_v6 }
 0x626   : > { %7765 = vrot.lane.b32.xlu1 %v7721_v38, %s10206_s12 }
 0x628   : > { %8838 = vmatpush1.bf16.msra.mxu0 %v9821_v35  ;;  %v14454_v54 = vpop.permute.xlu1 %6923  ;;  %v10077_v35 = vld [vmem:[#allocation4 + $0x14] ss:$76 sps:$4 sm:$0xff]   ;;  %v14483_v41 = vpop.permute.xlu0 %7283 }
 0x629   : > { %8839 = vmatprep.subr.bf16.mxu0 %v9806_v62  ;;  %v7458_v62 = vrot.slane %v14392_v3, 4 }
 0x62a   : > { %8014 = vperm.xlu1 %9972, %v16380_v43  }
 0x62c   : > { %8840 = vmatpush1.bf16.msra.mxu0 %v9805_v59  ;;  %v14466_v6 = vpop.permute.xlu1 %7603 }
 0x62d   : > { %v7635_v22 = vrot.slane %v14466_v6, 4  ;;  %8841 = vmatprep.subr.bf16.mxu0 %v10079_v20  ;;  %v16384_v20 = vrot.slane %v14091_v42, 4 }
 0x62f   : > { %v7655_v38 = vsel %vm16373_vm2, %v7634_v32, %v7635_v22  ;;  %vm16386_vm2 = vcmask 1031168  }
 0x630   : > { %8842 = vmatpush1.bf16.msra.mxu0 %v10077_v35  ;;  %v14485_v59 = vpop.permute.xlu1 %7755  ;;  %v7656_v48 = vsel %vm16383_vm4, %v7602_v27, %v7655_v38  ;;  %v7485_v35 = vsel %vm16385_vm3, %v16384_v20, %v7458_v62  ;;  %v7304_v27 = vrot.slane %v14399_v10, 4  ;;  %v16387_v38 = vrot.slane %v14212_v31, 4  ;;  %vm16388_vm4 = vmmov %vm16382_vm1 }
 0x631   : > { %v7788_v32 = vrot.slane %v14485_v59, 4  ;;  %8843 = vmatprep.subr.bf16.mxu0 %v9774_v55  ;;  %v9855_v43 = vcombine.low %v7656_v48, %v7672_v14  ;;  %v9856_v47 = vcombine.high %v7656_v48, %v7672_v14  ;;  %v7470_v55 = vsel %vm16386_vm2, %v14130_v4, %v7469_v63  ;;  %v14525_v4 = vpop.permute.xlu0 %7097  ;;  %vm16390_vm0 = vmmov %vm16386_vm2 }
 0x632   : > { %v7315_v48 = vsel %vm16382_vm1, %v16387_v38, %v7295_v34  ;;  %v7486_v9 = vsel %vm16390_vm0, %v14091_v42, %v7485_v35  ;;  %vm16392_vm3 = vmmov %vm16382_vm1  ;;  %v16394_v42 = vcombine.low %v13903_v1, %v13838_v26  ;;  %v10080_v38 = vld [vmem:[#allocation4 + $0x10] ss:$76 sps:$4 sm:$0xff]  }
 0x633   : > { %8874 = vmatprep.subr.bf16.mxu1 %v9856_v47  ;;  %v7807_v14 = vsel %vm16388_vm4, %v7787_v7, %v7788_v32  ;;  %vm16393_vm2 = vmmov %vm16382_vm1  ;;  %vm16396_vm4 = vcmask 1039360  }
 0x634   : > { %8844 = vmatpush1.bf16.msra.mxu0 %v9773_v46  ;;  %8875 = vmatpush1.bf16.msra.mxu1 %v9855_v43  ;;  %v14505_v12 = vpop.permute.xlu1 %7757  ;;  %v16391_v46 = vrot.slane %v14156_v53, 4  ;;  %v7823_v7 = vsel %vm16393_vm2, %v7796_v29, %v7797_v45  ;;  %v9824_v43 = vcombine.high %v7470_v55, %v7486_v9  ;;  %vm16395_vm1 = vmmov %vm16390_vm0  ;;  %v7316_v35 = vsel %vm16396_vm4, %v14212_v31, %v7315_v48 }
 0x635   : > { %8845 = vmatprep.subr.bf16.mxu0 %v9758_v28  ;;  %8876 = vmatprep.subr.bf16.mxu1 %v16389_v15  ;;  %v10082_v28 = vld [vmem:[#allocation4 + $0x14] ss:$76 sps:$4 sm:$0xff]   ;;  %v7808_v20 = vsel %vm16395_vm1, %v14109_v16, %v7807_v14  ;;  %v7109_v29 = vrot.slane %v14443_v58, 4  ;;  %v9823_v15 = vcombine.low %v7470_v55, %v7486_v9  ;;  %v7824_v56 = vsel %vm16390_vm0, %v14060_v60, %v7823_v7  ;;  %vm16399_vm1 = vmmov %vm16393_vm2 }
 0x636   : > { %v7331_v63 = vsel %vm16392_vm3, %v16391_v46, %v7304_v27  ;;  %vm16397_vm3 = vmmov %vm16396_vm4  ;;  %v9870_v16 = vcombine.high %v7808_v20, %v7824_v56  ;;  %v6955_v60 = vrot.slane %v14454_v54, 4  ;;  %v16398_v14 = vrot.slane %v14198_v57, 4 }
 0x637   : > { %v7332_v26 = vsel %vm16397_vm3, %v14156_v53, %v7331_v63  ;;  %v7129_v55 = vsel %vm16393_vm2, %v7108_v44, %v7109_v29  ;;  %v9869_v53 = vcombine.low %v7808_v20, %v7824_v56  ;;  %v6964_v46 = vrot.slane %v14412_v21, 4  ;;  %v10085_v63 = vld [vmem:[#allocation4 + $0x20] ss:$76 sps:$4 sm:$0xff]   ;;  %vm16400_vm4 = vmmov %vm16390_vm0 }
 0x638   : > { %8846 = vmatpush1.bf16.msra.mxu0 %v9757_v61  ;;  %8877 = vmatpush1.bf16.msra.mxu1 %v16394_v42  ;;  %v14545_v47 = vpop.permute.xlu1 %7419  ;;  %v9808_v61 = vcombine.high %v7316_v35, %v7332_v26  ;;  %v9807_v48 = vcombine.low %v7316_v35, %v7332_v26  ;;  %v7145_v9 = vsel %vm16399_vm1, %v16398_v14, %v7118_v37  ;;  %vm16402_vm0 = vmmov %vm16399_vm1  ;;  %v10083_v35 = vld [vmem:[#allocation4 + $0x1c] ss:$76 sps:$4 sm:$0xff]   ;;  %v7789_v26 = vrot.slane %v14505_v12, 4 }
 0x639   : > { %8847 = vmatprep.subr.bf16.mxu0 %v10082_v28  ;;  %8878 = vmatprep.subr.bf16.mxu1 %v9824_v43  ;;  %v7130_v44 = vsel %vm16400_vm4, %v14245_v24, %v7129_v55  ;;  %v16401_v43 = vrot.slane %v14285_v51, 4  ;;  %vm16403_vm3 = vmmov %vm16400_vm4  ;;  %vm16406_vm1 = vcmask 1039360   ;;  %vm16407_vm4 = vcmask 130048  }
 0x63a   : > { %vm16405_vm2 = vmmov %vm16402_vm0 }
 0x63b   : > { %v6975_v42 = vsel %vm16402_vm0, %v16401_v43, %v6955_v60 }
 0x63c   : > { %8848 = vmatpush1.bf16.msra.mxu0 %v10080_v38  ;;  %8879 = vmatpush1.bf16.msra.mxu1 %v9823_v15  ;;  %v14559_v31 = vpop.permute.xlu1 %7265  ;;  %v7146_v38 = vsel %vm16403_vm3, %v14198_v57, %v7145_v9  ;;  %v16404_v15 = vrot.slane %v14225_v17, 4  ;;  %v7450_v57 = vrot.slane %v14545_v47, 4  ;;  %vm16408_vm3 = vmmov %vm16406_vm1  ;;  %v7459_v9 = vrot.slane %v14460_v13, 4 }
 0x63d   : > { %8863 = vmatprep.subr.bf16.mxu0 %v9870_v16  ;;  %8880 = vmatprep.subr.bf16.mxu1 %v9808_v61  ;;  %v9776_v56 = vcombine.high %v7130_v44, %v7146_v38  ;;  %v6976_v61 = vsel %vm16406_vm1, %v14285_v51, %v6975_v42  ;;  %v7798_v51 = vrot.slane %v14445_v11, 4  ;;  %vm16410_vm1 = vmmov %vm16402_vm0 }
 0x63e   : > { %v14556_v1 = vpop.permute.xlu0 %7623  ;;  %v6991_v24 = vsel %vm16405_vm2, %v16404_v15, %v6964_v46  ;;  %vm16409_vm2 = vmmov %vm16402_vm0 }
 0x63f   : > { %v7645_v20 = vrot.slane %v14556_v1, 4 }
 0x640   : > { %8864 = vmatpush2.bf16.msra.mxu0 %v9869_v53  ;;  %8881 = vmatpush1.bf16.msra.mxu1 %v9807_v48  ;;  %v14573_v7 = vpop.permute.xlu1 %7079  ;;  %v9775_v53 = vcombine.low %v7130_v44, %v7146_v38  ;;  %v6992_v48 = vsel %vm16408_vm3, %v14225_v17, %v6991_v24  ;;  %v14633_v24 = vld [vmem:[#allocation4 + $0x74] sm:$0xff] }
 0x641   : > { %8882 = vmatprep.subr.bf16.mxu1 %v10085_v63  ;;  %v9760_v43 = vcombine.high %v6976_v61, %v6992_v48  ;;  %v9759_v15 = vcombine.low %v6976_v61, %v6992_v48  ;;  %v10088_v61 = vld [vmem:[#allocation4 + $0x1c] ss:$76 sps:$4 sm:$0xff]  }
 0x642   : > { %v14577_v28 = vpop.permute.xlu0 %7439 }
 0x643   : > { %8866 = vmatmul.mubr.bf16.vlgmr.msra.gmra.mxu0 %v13808_v2  ;;  %v7673_v2 = vsel %vm16402_vm0, %v7644_v8, %v7645_v20  ;;  %v7809_v8 = vsel %vm16410_vm1, %v7788_v32, %v7789_v26  ;;  %vm16412_vm0 = vmmov %vm16408_vm3 }
 0x644   : > { %8883 = vmatpush1.bf16.msra.mxu1 %v10083_v35  ;;  %v14594_v16 = vpop.permute.xlu1 %7605  ;;  %9885 = vmatprep.mubr.msk.bf16.mxu0 %vm16407_vm4, %v13814_v36  ;;  %vm16411_vm4 = vmmov %vm16408_vm3  ;;  %v7674_v42 = vsel %vm16412_vm0, %v14417_v23, %v7673_v2  ;;  %v7296_v35 = vrot.slane %v14559_v31, 4  ;;  %v9842_v2 = vcombine.high %v14003_v39, %v14633_v24 }
 0x645   : > { %v7636_v55 = vrot.slane %v14594_v16, 4  ;;  %8884 = vmatprep.subr.bf16.mxu1 %v9776_v56  ;;  %vm16413_vm3 = vmmov %vm16410_vm1 }
 0x646   : > { %v14609_v14 = vpop.permute.xlu0 %7285 }
 0x647   : > { %v7657_v63 = vsel %vm16409_vm2, %v7635_v22, %v7636_v55  ;;  %v7471_v22 = vsel %vm16413_vm3, %v7449_v30, %v7450_v57  ;;  %vm16414_vm2 = vmmov %vm16410_vm1  ;;  %v7487_v30 = vsel %vm16410_vm1, %v7458_v62, %v7459_v9 }
 0x648   : > { %8885 = vmatpush1.bf16.msra.mxu1 %v9775_v53  ;;  %v14621_v44 = vpop.permute.xlu1 %7421  ;;  %v7658_v17 = vsel %vm16411_vm4, %v14466_v6, %v7657_v63  ;;  %v7825_v23 = vsel %vm16414_vm2, %v7797_v45, %v7798_v51  ;;  %v7305_v6 = vrot.slane %v14483_v41, 4  ;;  %vm16415_vm4 = vcmask 1031168   ;;  %vm16417_vm3 = vmmov %vm16410_vm1 }
 0x649   : > { %8886 = vmatprep.subr.bf16.mxu1 %v9760_v43  ;;  %v9857_v38 = vcombine.low %v7658_v17, %v7674_v42  ;;  %v9858_v32 = vcombine.high %v7658_v17, %v7674_v42  ;;  %v7810_v45 = vsel %vm16415_vm4, %v14485_v59, %v7809_v8  ;;  %vm16416_vm0 = vmmov %vm16415_vm4  ;;  %v7317_v62 = vsel %vm16417_vm3, %v7295_v34, %v7296_v35  ;;  %v10086_v43 = vld [vmem:[#allocation4 + $0x18] ss:$76 sps:$4 sm:$0xff]  }
 0x64a   : > { %v7472_v48 = vsel %vm16416_vm0, %v14425_v40, %v7471_v22  ;;  %v9841_v17 = vcombine.low %v14003_v39, %v14633_v24  ;;  %vm16418_vm2 = vmmov %vm16416_vm0 }
 0x64b   : > { %8915 = vmatprep.subr.bf16.mxu0 %v9858_v32  ;;  %v7826_v59 = vsel %vm16418_vm2, %v14432_v18, %v7825_v23  ;;  %vm16419_vm1 = vmmov %vm16416_vm0  ;;  %vm16421_vm0 = vcmask 1039360  }
 0x64c   : > { %8887 = vmatpush1.bf16.msra.mxu1 %v9759_v15  ;;  %8916 = vmatpush1.bf16.msra.mxu0 %v9857_v38  ;;  %v14650_v53 = vpop.permute.xlu1 %7267  ;;  %v7488_v40 = vsel %vm16419_vm1, %v14392_v3, %v7487_v30  ;;  %vm16420_vm4 = vmmov %vm16417_vm3  ;;  %v9872_v42 = vcombine.high %v7810_v45, %v7826_v59  ;;  %v7110_v38 = vrot.slane %v14573_v7, 4  ;;  %v7318_v18 = vsel %vm16421_vm0, %v14434_v0, %v7317_v62 }
 0x64d   : > { %8888 = vmatprep.subr.bf16.mxu1 %v10088_v61  ;;  %8917 = vmatprep.subr.bf16.mxu0 %v9842_v2  ;;  %v7333_v34 = vsel %vm16420_vm4, %v7304_v27, %v7305_v6  ;;  %v9826_v22 = vcombine.high %v7472_v48, %v7488_v40  ;;  %v7451_v3 = vrot.slane %v14621_v44, 4  ;;  %v9871_v15 = vcombine.low %v7810_v45, %v7826_v59  ;;  %vm16422_vm2 = vmmov %vm16421_vm0 }
 0x64e   : > { %v14635_v56 = vpop.permute.xlu0 %7625  ;;  %v9825_v23 = vcombine.low %v7472_v48, %v7488_v40  ;;  %v7334_v30 = vsel %vm16422_vm2, %v14399_v10, %v7333_v34  ;;  %v7119_v0 = vrot.slane %v14525_v4, 4  ;;  %v7460_v2 = vrot.slane %v14577_v28, 4  ;;  %vm16423_vm1 = vmmov %vm16417_vm3 }
 0x64f   : > { %v7646_v63 = vrot.slane %v14635_v56, 4  ;;  %vm16424_vm4 = vmmov %vm16423_vm1  ;;  %v7306_v40 = vrot.slane %v14609_v14, 4  ;;  %v9809_v34 = vcombine.low %v7318_v18, %v7334_v30 }
 0x650   : > { %8889 = vmatpush1.bf16.msra.mxu1 %v10086_v43  ;;  %8918 = vmatpush1.bf16.msra.mxu0 %v9841_v17  ;;  %v9810_v43 = vcombine.high %v7318_v18, %v7334_v30  ;;  %vm16426_vm2 = vmmov %vm16423_vm1  ;;  %v7297_v17 = vrot.slane %v14650_v53, 4  ;;  %v16431_v30 = vcombine.high %v14132_v52, %v14093_v49 }
 0x651   : > { %8904 = vmatprep.subr.bf16.mxu1 %v9872_v42  ;;  %8919 = vmatprep.subr.bf16.mxu0 %v9826_v22  ;;  %v7675_v27 = vsel %vm16417_vm3, %v7645_v20, %v7646_v63  ;;  %v7131_v20 = vsel %vm16424_vm4, %v7109_v29, %v7110_v38  ;;  %vm16425_vm3 = vmmov %vm16421_vm0  ;;  %v10091_v22 = vld [vmem:[#allocation4 + $0x28] ss:$76 sps:$4 sm:$0xff]  }
 0x652   : > { %v14668_v8 = vpop.permute.xlu0 %7099  ;;  %v7676_v48 = vsel %vm16425_vm3, %v14556_v1, %v7675_v27  ;;  %v7147_v1 = vsel %vm16423_vm1, %v7118_v37, %v7119_v0  ;;  %vm16427_vm4 = vmmov %vm16423_vm1 }
 0x654   : > { %v14676_v39 = vpop.permute.xlu1 %7607  ;;  %8905 = vmatpush2.bf16.msra.mxu1 %v9871_v15  ;;  %8920 = vmatpush1.bf16.msra.mxu0 %v9825_v23 }
 0x655   : > { %v7637_v32 = vrot.slane %v14676_v39, 4  ;;  %8921 = vmatprep.subr.bf16.mxu0 %v9810_v43 }
 0x656   : > { %v14689_v61 = vpop.permute.xlu0 %6943 }
 0x657   : > { %v7659_v62 = vsel %vm16423_vm1, %v7636_v55, %v7637_v32  ;;  %v7473_v55 = vsel %vm16426_vm2, %v7450_v57, %v7451_v3  ;;  %v14726_v57 = vld.sshfl [vmem:[#allocation12] sm:$0x33 pattern:$0x76325410]  ;;  %v6965_v18 = vrot.slane %v14689_v61, 4  ;;  %vm16430_vm2 = vmmov %vm16423_vm1 }
 0x658   : > { %v14701_v10 = vpop.permute.xlu1 %7081  ;;  %v7660_v45 = vsel %vm16421_vm0, %v14594_v16, %v7659_v62  ;;  %v7489_v16 = vsel %vm16427_vm4, %v7459_v9, %v7460_v2  ;;  %8907 = vmatmul.mubr.bf16.vlgmr.msra.gmra.mxu1 %v14726_v57  ;;  %8922 = vmatpush1.bf16.msra.mxu0 %v9809_v34  ;;  %vm16428_vm0 = vcmask 1031168   ;;  %v7319_v9 = vsel %vm16430_vm2, %v7296_v35, %v7297_v17  ;;  %vm16434_vm2 = vmmov %vm16423_vm1 }
 0x659   : > { %v9859_v29 = vcombine.low %v7660_v45, %v7676_v48  ;;  %v9860_v59 = vcombine.high %v7660_v45, %v7676_v48  ;;  %v7132_v37 = vsel %vm16428_vm0, %v14443_v58, %v7131_v20  ;;  %vm16429_vm3 = vmmov %vm16428_vm0  ;;  %8923 = vmatprep.subr.bf16.mxu0 %v10091_v22  ;;  %v7335_v58 = vsel %vm16423_vm1, %v7305_v6, %v7306_v40 }
 0x65a   : > { %v14714_v42 = vpop.permute.xlu0 %6945  ;;  %v7474_v15 = vsel %vm16429_vm3, %v14545_v47, %v7473_v55  ;;  %v10089_v47 = vld [vmem:[#allocation4 + $0x24] ss:$76 sps:$4 sm:$0xff]   ;;  %vm16432_vm4 = vmmov %vm16428_vm0  ;;  %v7490_v35 = vsel %vm16428_vm0, %v14460_v13, %v7489_v16  ;;  %vm16433_vm3 = vcmask 130048   ;;  %v6993_v6 = vsel %vm16423_vm1, %v6964_v46, %v6965_v18 }
 0x65b   : > { %8956 = vmatprep.subr.bf16.mxu1 %v9860_v59  ;;  %v7148_v62 = vsel %vm16432_vm4, %v14405_v19, %v7147_v1  ;;  %9886 = vmatprep.mubr.msk.bf16.mxu1 %vm16433_vm3, %v13814_v36  ;;  %v9828_v19 = vcombine.high %v7474_v15, %v7490_v35  ;;  %v16435_v13 = vcombine.low %v14132_v52, %v14093_v49  ;;  %vm16436_vm4 = vcmask 1039360  }
 0x65c   : > { %v14730_v27 = vpop.permute.xlu1 %6925  ;;  %8957 = vmatpush1.bf16.msra.mxu1 %v9859_v29  ;;  %v9778_v45 = vcombine.high %v7132_v37, %v7148_v62  ;;  %8924 = vmatpush1.bf16.msra.mxu0 %v10089_v47  ;;  %vm16437_vm0 = vmmov %vm16436_vm4  ;;  %v7111_v29 = vrot.slane %v14701_v10, 4  ;;  %v9777_v46 = vcombine.low %v7132_v37, %v7148_v62  ;;  %v9827_v59 = vcombine.low %v7474_v15, %v7490_v35  ;;  %v10094_v35 = vld [vmem:[#allocation4 + $0x24] ss:$76 sps:$4 sm:$0xff]  }
 0x65d   : > { %v6956_v23 = vrot.slane %v14730_v27, 4  ;;  %8958 = vmatprep.subr.bf16.mxu1 %v16431_v30  ;;  %vm16438_vm3 = vmmov %vm16437_vm0  ;;  %v7120_v52 = vrot.slane %v14668_v8, 4  ;;  %v6966_v47 = vrot.slane %v14714_v42, 4 }
 0x65e   : > { %v14754_v43 = vpop.permute.xlu0 %7777  ;;  %8925 = vmatprep.subr.bf16.mxu0 %v9778_v45  ;;  %v6994_v34 = vsel %vm16438_vm3, %v14412_v21, %v6993_v6  ;;  %v7133_v21 = vsel %vm16423_vm1, %v7110_v38, %v7111_v29 }
 0x65f   : > { %v6977_v20 = vsel %vm16434_vm2, %v6955_v60, %v6956_v23  ;;  %v7320_v60 = vsel %vm16437_vm0, %v14559_v31, %v7319_v9  ;;  %vm16439_vm2 = vmmov %vm16437_vm0  ;;  %v7799_v16 = vrot.slane %v14754_v43, 4 }
 0x660   : > { %v14766_v48 = vpop.permute.xlu1 %6927  ;;  %8959 = vmatpush1.bf16.msra.mxu1 %v16435_v13  ;;  %v6978_v55 = vsel %vm16436_vm4, %v14454_v54, %v6977_v20  ;;  %v7336_v1 = vsel %vm16439_vm2, %v14483_v41, %v7335_v58  ;;  %8926 = vmatpush1.bf16.msra.mxu0 %v9777_v46  ;;  %vm16440_vm4 = vmmov %vm16423_vm1  ;;  %v10097_v20 = vld [vmem:[#allocation4 + $0x30] ss:$76 sps:$4 sm:$0xff]   ;;  %vm16443_vm2 = vcmask 1031168  }
 0x661   : > { %8960 = vmatprep.subr.bf16.mxu1 %v9828_v19  ;;  %v9762_v54 = vcombine.high %v6978_v55, %v6994_v34  ;;  %v9812_v31 = vcombine.high %v7320_v60, %v7336_v1  ;;  %v6957_v41 = vrot.slane %v14766_v48, 4  ;;  %v9761_v15 = vcombine.low %v6978_v55, %v6994_v34  ;;  %vm16441_vm0 = vmmov %vm16423_vm1  ;;  %v10092_v19 = vld [vmem:[#allocation4 + $0x20] ss:$76 sps:$4 sm:$0xff]  }
 0x662   : > { %v14780_v49 = vpop.permute.xlu0 %7629  ;;  %v9811_v9 = vcombine.low %v7320_v60, %v7336_v1  ;;  %v7149_v58 = vsel %vm16440_vm4, %v7119_v0, %v7120_v52  ;;  %vm16442_vm3 = vmmov %vm16441_vm0 }
 0x663   : > { %8927 = vmatprep.subr.bf16.mxu0 %v9762_v54  ;;  %v7827_v62 = vsel %vm16442_vm3, %v7798_v51, %v7799_v16  ;;  %vm16444_vm1 = vmmov %vm16443_vm2  ;;  %v10095_v51 = vld [vmem:[#allocation4 + $0x2c] ss:$76 sps:$4 sm:$0xff]  }
 0x664   : > { %v14784_v22 = vpop.permute.xlu1 %7759  ;;  %8961 = vmatpush1.bf16.msra.mxu1 %v9827_v59  ;;  %8928 = vmatpush1.bf16.msra.mxu0 %v9761_v15  ;;  %v7134_v0 = vsel %vm16444_vm1, %v14573_v7, %v7133_v21  ;;  %vm16445_vm4 = vmmov %vm16441_vm0 }
 0x665   : > { %v7790_v37 = vrot.slane %v14784_v22, 4  ;;  %8962 = vmatprep.subr.bf16.mxu1 %v9812_v31  ;;  %8929 = vmatprep.subr.bf16.mxu0 %v10094_v35 }
 0x666   : > { %v14793_v30 = vpop.permute.xlu0 %7443 }
 0x667   : > { %v7811_v38 = vsel %vm16441_vm0, %v7789_v26, %v7790_v37  ;;  %v6979_v26 = vsel %vm16445_vm4, %v6956_v23, %v6957_v41  ;;  %vm16446_vm0 = vmmov %vm16444_vm1  ;;  %vm16449_vm1 = vcmask 1039360  }
 0x668   : > { %v14807_v6 = vpop.permute.xlu1 %7761  ;;  %8963 = vmatpush1.bf16.msra.mxu1 %v9811_v9  ;;  %v7812_v45 = vsel %vm16443_vm2, %v14505_v12, %v7811_v38  ;;  %v7828_v13 = vsel %vm16446_vm0, %v14445_v11, %v7827_v62  ;;  %vm16447_vm3 = vmmov %vm16446_vm0  ;;  %8930 = vmatpush1.bf16.msra.mxu0 %v10092_v19  ;;  %v6980_v59 = vsel %vm16449_vm1, %v14730_v27, %v6979_v26 }
 0x669   : > { %8964 = vmatprep.subr.bf16.mxu1 %v10097_v20  ;;  %v7150_v55 = vsel %vm16447_vm3, %v14525_v4, %v7149_v58  ;;  %vm16448_vm2 = vmmov %vm16445_vm4  ;;  %v9874_v7 = vcombine.high %v7812_v45, %v7828_v13  ;;  %v9873_v34 = vcombine.low %v7812_v45, %v7828_v13  ;;  %v6852_v58 = vld [vmem:[#allocation4 + $0x28] sm:$0xff] }
 0x66a   : > { %v14820_v60 = vpop.permute.xlu0 %7779  ;;  %v6995_v12 = vsel %vm16448_vm2, %v6965_v18, %v6966_v47  ;;  %v9780_v23 = vcombine.high %v7134_v0, %v7150_v55  ;;  %v9779_v1 = vcombine.low %v7134_v0, %v7150_v55  ;;  %vm16450_vm4 = vmmov %vm16449_vm1  ;;  %v7791_v18 = vrot.slane %v14807_v6, 4 }
 0x66b   : > { %8945 = vmatprep.subr.bf16.mxu0 %v9874_v7  ;;  %v7800_v4 = vrot.slane %v14820_v60, 4  ;;  %v6996_v54 = vsel %vm16450_vm4, %v14689_v61, %v6995_v12  ;;  %vm16451_vm0 = vmmov %vm16448_vm2 }
 0x66c   : > { %v7610_v46 = vpop.permute.xlu1 %7609  ;;  %8965 = vmatpush1.bf16.msra.mxu1 %v10095_v51  ;;  %v9764_v15 = vcombine.high %v6980_v59, %v6996_v54  ;;  %8946 = vmatpush2.bf16.msra.mxu0 %v9873_v34  ;;  %vm16452_vm3 = vmmov %vm16451_vm0  ;;  %v9763_v35 = vcombine.low %v6980_v59, %v6996_v54  ;;  %v7813_v0 = vsel %vm16451_vm0, %v7790_v37, %v7791_v18 }
 0x66d   : > { %v7638_v11 = vrot.slane %v7610_v46, 4  ;;  %8966 = vmatprep.subr.bf16.mxu1 %v9780_v23  ;;  %v7829_v62 = vsel %vm16452_vm3, %v7799_v16, %v7800_v4  ;;  %vm16453_vm2 = vmmov %vm16451_vm0  ;;  %v9748_v16 = vcombine.high %v6852_v58, %v14633_v24  ;;  %vm16455_vm3 = vcmask 1031168  }
 0x66e   : > { %v7628_v31 = vpop.permute.xlu0 %7627  ;;  %vm16454_vm4 = vmmov %vm16449_vm1  ;;  %v7830_v51 = vsel %vm16455_vm3, %v14754_v43, %v7829_v62  ;;  %v9747_v37 = vcombine.low %v6852_v58, %v14633_v24  ;;  %v16460_v59 = vcombine.high %v14287_v5, %v14227_v25 }
 0x66f   : > { %v7661_v21 = vsel %vm16451_vm0, %v7637_v32, %v7638_v11  ;;  %v7647_v9 = vrot.slane %v7628_v31, 4  ;;  %8948 = vmatmul.mubr.bf16.vlgmr.msra.gmra.mxu0 %v14726_v57 }
 0x670   : > { %v7612_v27 = vpop.permute.xlu1 %7611  ;;  %8967 = vmatpush1.bf16.msra.mxu1 %v9779_v1  ;;  %v7662_v32 = vsel %vm16449_vm1, %v14676_v39, %v7661_v21  ;;  %vm16457_vm1 = vmmov %vm16451_vm0  ;;  %v16464_v21 = vcombine.low %v14287_v5, %v14227_v25 }
 0x671   : > { %v7639_v38 = vrot.slane %v7612_v27, 4  ;;  %8968 = vmatprep.subr.bf16.mxu1 %v9764_v15  ;;  %v7677_v61 = vsel %vm16453_vm2, %v7646_v63, %v7647_v9  ;;  %vm16456_vm2 = vcmask 130048  }
 0x672   : > { %v14842_v20 = vpop.permute.xlu0 %7289  ;;  %v7678_v45 = vsel %vm16454_vm4, %v14635_v56, %v7677_v61  ;;  %9887 = vmatprep.mubr.msk.bf16.mxu0 %vm16456_vm2, %v13814_v36  ;;  %v7648_v56 = vrot.slane %v14780_v49, 4  ;;  %vm16458_vm4 = vmmov %vm16455_vm3  ;;  %vm16461_vm2 = vcmask 1039360  }
 0x673   : > { %v9861_v26 = vcombine.low %v7662_v32, %v7678_v45  ;;  %v9862_v19 = vcombine.high %v7662_v32, %v7678_v45  ;;  %v7663_v39 = vsel %vm16457_vm1, %v7638_v11, %v7639_v38  ;;  %v7814_v55 = vsel %vm16458_vm4, %v14784_v22, %v7813_v0  ;;  %vm16459_vm3 = vmmov %vm16451_vm0 }
 0x674   : > { %v7424_v63 = vpop.permute.xlu1 %7423  ;;  %8969 = vmatpush1.bf16.msra.mxu1 %v9763_v35  ;;  %v7679_v7 = vsel %vm16459_vm3, %v7647_v9, %v7648_v56  ;;  %v9876_v23 = vcombine.high %v7814_v55, %v7830_v51  ;;  %v7664_v11 = vsel %vm16461_vm2, %v7610_v46, %v7663_v39  ;;  %vm16462_vm1 = vmmov %vm16451_vm0  ;;  %v9875_v1 = vcombine.low %v7814_v55, %v7830_v51  ;;  %v10106_v39 = vld [vmem:[#allocation4 + $0x38] ss:$76 sps:$4 sm:$0xff]  }
 0x675   : > { %v7452_v13 = vrot.slane %v7424_v63, 4  ;;  %8970 = vmatprep.subr.bf16.mxu1 %v9748_v16  ;;  %8997 = vmatprep.subr.bf16.mxu0 %v9862_v19  ;;  %vm16463_vm4 = vmmov %vm16461_vm2  ;;  %v16473_v16 = vcombine.high %v14294_v50, %v14307_v33 }
 0x676   : > { %v7442_v12 = vpop.permute.xlu0 %7441  ;;  %8998 = vmatpush1.bf16.msra.mxu0 %v9861_v26  ;;  %vm16467_vm2 = vmmov %vm16462_vm1 }
 0x677   : > { %v7475_v43 = vsel %vm16451_vm0, %v7451_v3, %v7452_v13  ;;  %v7461_v49 = vrot.slane %v7442_v12, 4  ;;  %8999 = vmatprep.subr.bf16.mxu0 %v16460_v59  ;;  %v7680_v3 = vsel %vm16463_vm4, %v7628_v31, %v7679_v7  ;;  %vm16465_vm0 = vcmask 1031168   ;;  %vm16468_vm4 = vmmov %vm16462_vm1 }
 0x678   : > { %v7426_v24 = vpop.permute.xlu1 %7425  ;;  %8971 = vmatpush1.bf16.msra.mxu1 %v9747_v37  ;;  %v7476_v15 = vsel %vm16465_vm0, %v14621_v44, %v7475_v43  ;;  %vm16466_vm3 = vmmov %vm16465_vm0  ;;  %v9864_v9 = vcombine.high %v7664_v11, %v7680_v3  ;;  %v9863_v5 = vcombine.low %v7664_v11, %v7680_v3  ;;  %v16477_v37 = vcombine.low %v14294_v50, %v14307_v33 }
 0x679   : > { %v7453_v34 = vrot.slane %v7426_v24, 4  ;;  %8986 = vmatprep.subr.bf16.mxu1 %v9876_v23  ;;  %v7491_v22 = vsel %vm16462_vm1, %v7460_v2, %v7461_v49  ;;  %v7462_v2 = vrot.slane %v14793_v30, 4  ;;  %vm16469_vm0 = vmmov %vm16462_vm1  ;;  %v7308_v30 = vrot.slane %v14842_v20, 4  ;;  %v10104_v23 = vld [vmem:[#allocation4 + $0x34] ss:$76 sps:$4 sm:$0xff]  }
 0x67a   : > { %v7288_v54 = vpop.permute.xlu0 %7287  ;;  %9000 = vmatpush1.bf16.msra.mxu0 %v16464_v21  ;;  %v7492_v46 = vsel %vm16466_vm3, %v14577_v28, %v7491_v22 }
 0x67b   : > { %v7307_v27 = vrot.slane %v7288_v54, 4  ;;  %v9829_v58 = vcombine.low %v7476_v15, %v7492_v46  ;;  %v9830_v38 = vcombine.high %v7476_v15, %v7492_v46  ;;  %v7477_v31 = vsel %vm16467_vm2, %v7452_v13, %v7453_v34  ;;  %v10109_v46 = vld [vmem:[#allocation4 + $0x40] ss:$76 sps:$4 sm:$0xff]  }
 0x67c   : > { %v7270_v62 = vpop.permute.xlu1 %7269  ;;  %8987 = vmatpush2.bf16.msra.mxu1 %v9875_v1  ;;  %v7493_v35 = vsel %vm16469_vm0, %v7461_v49, %v7462_v2  ;;  %v7478_v32 = vsel %vm16466_vm3, %v7424_v63, %v7477_v31  ;;  %vm16470_vm2 = vcmask 1039360  }
 0x67d   : > { %v7298_v61 = vrot.slane %v7270_v62, 4  ;;  %9038 = vmatprep.subr.bf16.mxu1 %v9864_v9  ;;  %v7337_v25 = vsel %vm16462_vm1, %v7306_v40, %v7307_v27  ;;  %9001 = vmatprep.subr.bf16.mxu0 %v9830_v38  ;;  %vm16471_vm1 = vmmov %vm16470_vm2 }
 0x67e   : > { %v14886_v44 = vpop.permute.xlu0 %7101  ;;  %9002 = vmatpush1.bf16.msra.mxu0 %v9829_v58  ;;  %v7338_v0 = vsel %vm16471_vm1, %v14609_v14, %v7337_v25 }
 0x67f   : > { %v7321_v28 = vsel %vm16468_vm4, %v7297_v17, %v7298_v61  ;;  %8989 = vmatmul.mubr.bf16.vlgmr.msra.gmra.mxu1 %v14726_v57  ;;  %v7121_v20 = vrot.slane %v14886_v44, 4  ;;  %vm16474_vm4 = vmmov %vm16466_vm3 }
 0x680   : > { %v7272_v45 = vpop.permute.xlu1 %7271  ;;  %9039 = vmatpush1.bf16.msra.mxu1 %v9863_v5  ;;  %v7322_v40 = vsel %vm16470_vm2, %v14650_v53, %v7321_v28  ;;  %9888 = vmatprep.mubr.msk.bf16.mxu1 %vm16472_vm5, %v13814_v36  ;;  %v7494_v63 = vsel %vm16474_vm4, %v7442_v12, %v7493_v35  ;;  %vm16475_vm3 = vmmov %vm16469_vm0 }
 0x681   : > { %v7299_v17 = vrot.slane %v7272_v45, 4  ;;  %9040 = vmatprep.subr.bf16.mxu1 %v16473_v16  ;;  %v9813_v26 = vcombine.low %v7322_v40, %v7338_v0  ;;  %v9814_v19 = vcombine.high %v7322_v40, %v7338_v0  ;;  %v9832_v56 = vcombine.high %v7478_v32, %v7494_v63  ;;  %vm16476_vm5 = vmmov %vm16471_vm1  ;;  %v10112_v0 = vld [vmem:[#allocation4 + $0x34] ss:$76 sps:$4 sm:$0xff]  }
 0x682   : > { %v7104_v51 = vpop.permute.xlu0 %7103  ;;  %v7339_v14 = vsel %vm16475_vm3, %v7307_v27, %v7308_v30  ;;  %vm16478_vm2 = vmmov %vm16469_vm0  ;;  %v9831_v43 = vcombine.low %v7478_v32, %v7494_v63 }
 0x683   : > { %v7323_v53 = vsel %vm16469_vm0, %v7298_v61, %v7299_v17  ;;  %9003 = vmatprep.subr.bf16.mxu0 %v9814_v19  ;;  %v7151_v12 = vsel %vm16478_vm2, %v7120_v52, %v7121_v20  ;;  %v7340_v7 = vsel %vm16471_vm1, %v7288_v54, %v7339_v14  ;;  %vm16479_vm4 = vmmov %vm16469_vm0  ;;  %v7122_v50 = vrot.slane %v7104_v51, 4 }
 0x684   : > { %v7324_v36 = vsel %vm16476_vm5, %v7270_v62, %v7323_v53  ;;  %v7084_v13 = vpop.permute.xlu1 %7083  ;;  %9041 = vmatpush1.bf16.msra.mxu1 %v16477_v37  ;;  %9004 = vmatpush1.bf16.msra.mxu0 %v9813_v26  ;;  %vm16480_vm0 = vcmask 1031168   ;;  %vm16482_vm5 = vmmov %vm16478_vm2  ;;  %v10107_v62 = vld [vmem:[#allocation4 + $0x3c] ss:$76 sps:$4 sm:$0xff]  }
 0x685   : > { %v7112_v55 = vrot.slane %v7084_v13, 4  ;;  %9042 = vmatprep.subr.bf16.mxu1 %v9832_v56  ;;  %9005 = vmatprep.subr.bf16.mxu0 %v10106_v39  ;;  %v9816_v59 = vcombine.high %v7324_v36, %v7340_v7  ;;  %vm16481_vm3 = vmmov %vm16480_vm0  ;;  %v9815_v54 = vcombine.low %v7324_v36, %v7340_v7  ;;  %v10110_v56 = vld [vmem:[#allocation4 + $0x30] ss:$76 sps:$4 sm:$0xff]  }
 0x686   : > { %v6948_v49 = vpop.permute.xlu0 %6947  ;;  %v7152_v52 = vsel %vm16481_vm3, %v14668_v8, %v7151_v12  ;;  %vm16483_vm1 = vmmov %vm16480_vm0  ;;  %v10115_v39 = vld [vmem:[#allocation4 + $0x3c] ss:$76 sps:$4 sm:$0xff]  }
 0x687   : > { %v7135_v11 = vsel %vm16479_vm4, %v7111_v29, %v7112_v55  ;;  %v6967_v22 = vrot.slane %v6948_v49, 4  ;;  %v7153_v29 = vsel %vm16478_vm2, %v7121_v20, %v7122_v50  ;;  %vm16484_vm4 = vmmov %vm16478_vm2  ;;  %v10211_v50 = vmov 1983009808  }
 0x688   : > { %v7086_v33 = vpop.permute.xlu1 %7085  ;;  %9043 = vmatpush1.bf16.msra.mxu1 %v9831_v43  ;;  %9006 = vmatpush1.bf16.msra.mxu0 %v10104_v23  ;;  %v7136_v24 = vsel %vm16480_vm0, %v14701_v10, %v7135_v11  ;;  %v7154_v38 = vsel %vm16480_vm0, %v14886_v44, %v7153_v29  ;;  %vm16485_vm3 = vmmov %vm16478_vm2  ;;  %v10113_v23 = vld [vmem:[#allocation4 + $0x38] ss:$76 sps:$4 sm:$0xff]  }
 0x689   : > { %v7113_v34 = vrot.slane %v7086_v33, 4  ;;  %9044 = vmatprep.subr.bf16.mxu1 %v9816_v59  ;;  %v9781_v3 = vcombine.low %v7136_v24, %v7152_v52  ;;  %v9782_v1 = vcombine.high %v7136_v24, %v7152_v52  ;;  %v6997_v8 = vsel %vm16484_vm4, %v6966_v47, %v6967_v22 }
 0x68a   : > { %v6950_v21 = vpop.permute.xlu0 %6949  ;;  %v9115_v33 = vunpack.c.l.s4 %v10211_v50  ;;  %v16500_v52 = vlaneseq }
 0x68b   : > { %v7137_v15 = vsel %vm16482_vm5, %v7112_v55, %v7113_v34  ;;  %9007 = vmatprep.subr.bf16.mxu0 %v9782_v1  ;;  %v6968_v58 = vrot.slane %v6950_v21, 4  ;;  %vm16486_vm5 = vcmask 1039360  }
 0x68c   : > { %v7138_v9 = vsel %vm16483_vm1, %v7084_v13, %v7137_v15  ;;  %v6930_v27 = vpop.permute.xlu1 %6929  ;;  %9045 = vmatpush1.bf16.msra.mxu1 %v9815_v54  ;;  %9008 = vmatpush1.bf16.msra.mxu0 %v9781_v3  ;;  %vm16487_vm2 = vmmov %vm16486_vm5  ;;  %v9116_v24 = vunpack.c.0.s8 %v9115_v33  ;;  %v9118_v34 = vshrl.u32 %v16500_v52, 7 }
 0x68d   : > { %v6958_v10 = vrot.slane %v6930_v27, 4  ;;  %9046 = vmatprep.subr.bf16.mxu1 %v10109_v46  ;;  %v9784_v61 = vcombine.high %v7138_v9, %v7154_v38  ;;  %v6998_v47 = vsel %vm16487_vm2, %v14714_v42, %v6997_v8  ;;  %vm16488_vm1 = vmmov %vm16485_vm3  ;;  %v9783_v45 = vcombine.low %v7138_v9, %v7154_v38 }
 0x68e   : > { %v7782_v2 = vpop.permute.xlu0 %7781  ;;  %v6999_v30 = vsel %vm16488_vm1, %v6967_v22, %v6968_v58  ;;  %vm16489_vm4 = vmmov %vm16488_vm1  ;;  %v14963_v21 = vsub.s32 %v9116_v24, %v9118_v34 }
 0x68f   : > { %v6981_v31 = vsel %vm16485_vm3, %v6957_v41, %v6958_v10  ;;  %v7801_v28 = vrot.slane %v7782_v2, 4  ;;  %vm16490_vm0 = vmmov %vm16487_vm2 }
 0x690   : > { %v6932_v25 = vpop.permute.xlu1 %6931  ;;  %9047 = vmatpush1.bf16.msra.mxu1 %v10107_v62  ;;  %v6982_v5 = vsel %vm16486_vm5, %v14766_v48, %v6981_v31  ;;  %vm16491_vm3 = vmmov %vm16490_vm0 }
 0x691   : > { %v6959_v35 = vrot.slane %v6932_v25, 4  ;;  %9048 = vmatprep.subr.bf16.mxu1 %v9784_v61  ;;  %v9765_v44 = vcombine.low %v6982_v5, %v6998_v47  ;;  %v9766_v32 = vcombine.high %v6982_v5, %v6998_v47  ;;  %v7000_v48 = vsel %vm16491_vm3, %v6948_v49, %v6999_v30  ;;  %vm16492_vm5 = vmmov %vm16488_vm1  ;;  %v8785_v20 = vpop.f32.mrf.mxu0 }
 0x692   : > { %v7784_v40 = vpop.permute.xlu0 %7783  ;;  %v7831_v42 = vsel %vm16492_vm5, %v7800_v4, %v7801_v28  ;;  %vm16493_vm2 = vmmov %vm16488_vm1  ;;  %vm16494_vm1 = vcmask 1031168  }
 0x693   : > { %v6983_v41 = vsel %vm16489_vm4, %v6958_v10, %v6959_v35  ;;  %9009 = vmatprep.subr.bf16.mxu0 %v9766_v32  ;;  %v7802_v51 = vrot.slane %v7784_v40, 4  ;;  %v8787_v53 = vpop.f32.mrf.mxu0  ;;  %vm16495_vm4 = vmmov %vm16494_vm1 }
 0x694   : > { %v6984_v17 = vsel %vm16490_vm0, %v6930_v27, %v6983_v41  ;;  %v7764_v16 = vpop.permute.xlu1 %7763  ;;  %9010 = vmatpush1.bf16.msra.mxu0 %v9765_v44  ;;  %9049 = vmatpush1.bf16.msra.mxu1 %v9783_v45  ;;  %v7832_v13 = vsel %vm16495_vm4, %v14820_v60, %v7831_v42  ;;  %vm16496_vm0 = vmmov %vm16493_vm2  ;;  %vm9127_vm4 = vcmask 1042304  }
 0x695   : > { %v9767_v26 = vcombine.low %v6984_v17, %v7000_v48  ;;  %v7792_v19 = vrot.slane %v7764_v16, 4  ;;  %9011 = vmatprep.subr.bf16.mxu0 %v10112_v0  ;;  %v9768_v63 = vcombine.high %v6984_v17, %v7000_v48  ;;  %v8789_v37 = vpop.f32.mrf.mxu0  ;;  %v7833_v12 = vsel %vm16496_vm0, %v7801_v28, %v7802_v51  ;;  %vm16497_vm3 = vmmov %vm16496_vm0 }
 0x696   : > { %vm16498_vm5 = vmmov %vm16494_vm1  ;;  %vm9128_vm0 = vcmask 781314  }
 0x697   : > { %v7815_v14 = vsel %vm16493_vm2, %v7791_v18, %v7792_v19  ;;  %9050 = vmatprep.subr.bf16.mxu1 %v9768_v63  ;;  %v8790_v18 = vpop.f32.mrf.mxu0  ;;  %vm16499_vm2 = vmmov %vm16494_vm1 }
 0x698   : > { %v7766_v36 = vpop.permute.xlu1 %7765  ;;  %9012 = vmatpush1.bf16.msra.mxu0 %v10110_v56  ;;  %9051 = vmatpush1.bf16.msra.mxu1 %v9767_v26  ;;  %v7816_v4 = vsel %vm16494_vm1, %v14807_v6, %v7815_v14  ;;  %v7834_v11 = vsel %vm16499_vm2, %v7782_v2, %v7833_v12  ;;  %vm15401_vm1 = vcmask 910336   ;;  %vm9145_vm2 = vcmask 1042176  }
 0x699   : > { %v7793_v55 = vrot.slane %v7766_v36, 4  ;;  %9052 = vmatprep.subr.bf16.mxu1 %v10115_v39  ;;  %v9877_v43 = vcombine.low %v7816_v4, %v7832_v13  ;;  %v9878_v7 = vcombine.high %v7816_v4, %v7832_v13 }
 0x69b   : > { %v7817_v49 = vsel %vm16497_vm3, %v7792_v19, %v7793_v55  ;;  %9027 = vmatprep.subr.bf16.mxu0 %v9878_v7  ;;  %vm15402_vm3 = vcmask 916480  }
 0x69c   : > { %v7818_v59 = vsel %vm16498_vm5, %v7764_v16, %v7817_v49  ;;  %9028 = vmatpush2.bf16.msra.mxu0 %v9877_v43  ;;  %9053 = vmatpush1.bf16.msra.mxu1 %v10113_v23  ;;  %vm14982_vm5 = vmor %vm9128_vm0, %vm9127_vm4  ;;  %vm9146_vm4 = vcmask 650242   ;;  %vm15405_vm0 = vcmask 785408  }
 0x69d   : > { %v9879_v6 = vcombine.low %v7818_v59, %v7834_v11  ;;  %v9880_v60 = vcombine.high %v7818_v59, %v7834_v11 }
 0x69f   : > { %9030 = vmatmul.mubr.bf16.vlgmr.msra.gmra.mxu0 %v14726_v57  ;;  %9068 = vmatprep.subr.bf16.mxu1 %v9880_v60 }
 0x6a0   : > { %9069 = vmatpush2.bf16.msra.mxu1 %v9879_v6 }
 0x6a3   : > { %9071 = vmatmul.mubr.bf16.vlgmr.msra.gmra.mxu1 %v14726_v57 }
 0x6a5   : > { %v14959_v22 = vpop.permute.xlu1 %8014 }
 0x6a6   : > { %v8788_v3 = vadd.f32 %v8787_v53, %v14959_v22  ;;  %v8786_v1 = vadd.f32 %v8785_v20, %v14959_v22 }
 0x6a8   : > { %v9080_v54 = vmax.f32 %v8788_v3, 0.0  ;;  %v9079_v15 = vmax.f32 %v8786_v1, 0.0 }
 0x6aa   : > { %v9096_v29 = vpack.c.bf16 %v9080_v54, %v9080_v54  ;;  %v9095_v46 = vpack.c.bf16 %v9079_v15, %v9079_v15 }
 0x6ac   : > { %v9120_v9 = vrot.slane %v9096_v29, %v14963_v21  ;;  %9112 = vst.msk [vmem:[#allocation7] sm:$0x3] %vm15401_vm1, %v9095_v46  ;;  %vm14993_vm1 = vmor %vm9146_vm4, %vm9145_vm2  ;;  %vm16507_vm2 = vcmask 910336   ;;  %vm15407_vm4 = vcmask 523264  }
 0x6ae   : > { %9121 = vrot.lane.b32.xlu0 %v9120_v9, %s10212_s15 }
 0x6b6   : > { %v8826_v57 = vpop.f32.mrf.mxu1 }
 0x6b7   : > { %v8827_v27 = vadd.f32 %v8826_v57, %v14959_v22 }
 0x6b8   : > { %v8828_v10 = vpop.f32.mrf.mxu1 }
 0x6b9   : > { %v9081_v8 = vmax.f32 %v8827_v27, 0.0  ;;  %v8829_v58 = vadd.f32 %v8828_v10, %v14959_v22 }
 0x6ba   : > { %v8830_v38 = vpop.f32.mrf.mxu1 }
 0x6bb   : > { %v9097_v62 = vpack.c.bf16 %v9081_v8, %v9081_v8  ;;  %v9082_v2 = vmax.f32 %v8829_v58, 0.0 }
 0x6bc   : > { %v8831_v31 = vpop.f32.mrf.mxu1 }
 0x6bd   : > { %v9138_v61 = vrot.slane %v9097_v62, %v14963_v21  ;;  %v9098_v25 = vpack.c.bf16 %v9082_v2, %v9082_v2 }
 0x6bf   : > { %9139 = vrot.lane.b32.xlu0 %v9138_v61, %s10213_s16  ;;  %v9156_v5 = vrot.slane %v9098_v25, %v14963_v21 }
 0x6c3   : > { %9157 = vrot.lane.b32.xlu0 %v9156_v5, %s10214_s3 }
 0x703   : > { %v8867_v47 = vpop.f32.mrf.mxu0 }
 0x704   : > { %v8868_v28 = vadd.f32 %v8867_v47, %v14959_v22 }
 0x705   : > { %v8869_v35 = vpop.f32.mrf.mxu0 }
 0x706   : > { %v9083_v30 = vmax.f32 %v8868_v28, 0.0  ;;  %v8870_v44 = vadd.f32 %v8869_v35, %v14959_v22 }
 0x707   : > { %v8871_v32 = vpop.f32.mrf.mxu0 }
 0x708   : > { %v9099_v45 = vpack.c.bf16 %v9083_v30, %v9083_v30  ;;  %v9084_v40 = vmax.f32 %v8870_v44, 0.0 }
 0x709   : > { %v8872_v41 = vpop.f32.mrf.mxu0 }
 0x70a   : > { %v9174_v0 = vrot.slane %v9099_v45, %v14963_v21  ;;  %v9100_v17 = vpack.c.bf16 %v9084_v40, %v9084_v40 }
 0x70c   : > { %9175 = vrot.lane.b32.xlu0 %v9174_v0, %s10215_s17  ;;  %v9192_v48 = vrot.slane %v9100_v17, %v14963_v21 }
 0x710   : > { %9193 = vrot.lane.b32.xlu0 %v9192_v48, %s10216_s18 }
 0x718   : > { %v8908_v16 = vpop.f32.mrf.mxu1 }
 0x719   : > { %v8909_v42 = vadd.f32 %v8908_v16, %v14959_v22 }
 0x71a   : > { %v8910_v20 = vpop.f32.mrf.mxu1 }
 0x71b   : > { %v9085_v26 = vmax.f32 %v8909_v42, 0.0  ;;  %v8911_v19 = vadd.f32 %v8910_v20, %v14959_v22 }
 0x71c   : > { %v8912_v63 = vpop.f32.mrf.mxu1 }
 0x71d   : > { %v9101_v51 = vpack.c.bf16 %v9085_v26, %v9085_v26  ;;  %v9086_v56 = vmax.f32 %v8911_v19, 0.0 }
 0x71e   : > { %v8913_v36 = vpop.f32.mrf.mxu1 }
 0x71f   : > { %v9210_v4 = vrot.slane %v9101_v51, %v14963_v21  ;;  %v9102_v13 = vpack.c.bf16 %v9086_v56, %v9086_v56 }
 0x720   : > { %v9122_v53 = vpop.permute.xlu0 %9121 }
 0x721   : > { %v9123_v39 = vrot.slane %v9122_v53, 6  ;;  %9211 = vrot.lane.b32.xlu0 %v9210_v4, %s10217_s1  ;;  %v9228_v55 = vrot.slane %v9102_v13, %v14963_v21 }
 0x723   : > { %v9125_v37 = vsel %vm15402_vm3, %v9123_v39, %v9122_v53  ;;  %vm9163_vm3 = vcmask 1042048  }
 0x724   : > { %9130 = vst.msk [vmem:[#allocation7] sm:$0xf] %vm14982_vm5, %v9125_v37  ;;  %vm15001_vm8 = vmor %vm9164_vm6, %vm9163_vm3  ;;  %vm9181_vm6 = vcmask 1041920   ;;  %vm9182_vm3 = vcmask 388098  }
 0x725   : > { %9229 = vrot.lane.b32.xlu0 %v9228_v55, %s10218_s5 }
 0x72f   : > { %v8949_v18 = vpop.f32.mrf.mxu0 }
 0x730   : > { %v8950_v59 = vadd.f32 %v8949_v18, %v14959_v22 }
 0x731   : > { %v9140_v12 = vpop.permute.xlu0 %9139  ;;  %v8951_v60 = vpop.f32.mrf.mxu0 }
 0x732   : > { %v9141_v7 = vrot.slane %v9140_v12, 6  ;;  %v9087_v50 = vmax.f32 %v8950_v59, 0.0  ;;  %v8952_v33 = vadd.f32 %v8951_v60, %v14959_v22 }
 0x733   : > { %v8953_v52 = vpop.f32.mrf.mxu0 }
 0x734   : > { %v9143_v23 = vsel %vm15405_vm0, %v9141_v7, %v9140_v12  ;;  %v9103_v34 = vpack.c.bf16 %v9087_v50, %v9087_v50  ;;  %v9088_v3 = vmax.f32 %v8952_v33, 0.0  ;;  %vm9200_vm0 = vcmask 257026  }
 0x735   : > { %9148 = vst.msk [vmem:[#allocation7 + $0x2] sm:$0xf] %vm14993_vm1, %v9143_v23  ;;  %v9158_v49 = vpop.permute.xlu0 %9157  ;;  %v8954_v1 = vpop.f32.mrf.mxu0 }
 0x736   : > { %v9159_v6 = vrot.slane %v9158_v49, 6  ;;  %9234 = vst.msk [vmem:[#allocation7 + $0xe] sm:$0x3] %vm16507_vm2, %v9103_v34  ;;  %v9104_v54 = vpack.c.bf16 %v9088_v3, %v9088_v3  ;;  %vm15030_vm2 = vmor %vm9182_vm3, %vm9181_vm6  ;;  %vm9217_vm6 = vcmask 1041664   ;;  %vm9218_vm3 = vcmask 125954  }
 0x738   : > { %v9161_v24 = vsel %vm15404_vm7, %v9159_v6, %v9158_v49  ;;  %v9242_v15 = vrot.slane %v9104_v54, %v14963_v21  ;;  %vm9199_vm7 = vcmask 1041792  }
 0x739   : > { %9166 = vst.msk [vmem:[#allocation7 + $0x4] sm:$0xf] %vm15001_vm8, %v9161_v24  ;;  %vm15038_vm10 = vmor %vm9200_vm0, %vm9199_vm7  ;;  %vm9232_vm0 = vcmask 1041536  }
 0x73a   : > { %9243 = vrot.lane.b32.xlu1 %v9242_v15, %s10212_s15  ;;  %vm15051_vm7 = vmor %vm9218_vm3, %vm9217_vm6  ;;  %vm16516_vm6 = vcmask 785408  }
 0x73f   : > { %v8990_v29 = vpop.f32.mrf.mxu1 }
 0x740   : > { %v8991_v46 = vadd.f32 %v8990_v29, %v14959_v22 }
 0x741   : > { %v8992_v9 = vpop.f32.mrf.mxu1 }
 0x742   : > { %v9089_v57 = vmax.f32 %v8991_v46, 0.0  ;;  %v8993_v27 = vadd.f32 %v8992_v9, %v14959_v22 }
 0x743   : > { %v8994_v10 = vpop.f32.mrf.mxu1 }
 0x744   : > { %v9105_v8 = vpack.c.bf16 %v9089_v57, %v9089_v57  ;;  %v9090_v58 = vmax.f32 %v8993_v27, 0.0 }
 0x745   : > { %v8995_v38 = vpop.f32.mrf.mxu1 }
 0x746   : > { %v9256_v62 = vrot.slane %v9105_v8, %v14963_v21  ;;  %v9106_v2 = vpack.c.bf16 %v9090_v58, %v9090_v58 }
 0x748   : > { %9257 = vrot.lane.b32.xlu1 %v9256_v62, %s10213_s16  ;;  %v9270_v31 = vrot.slane %v9106_v2, %v14963_v21 }
 0x74c   : > { %9271 = vrot.lane.b32.xlu1 %v9270_v31, %s10214_s3 }
 0x75f   : > { %v9031_v61 = vpop.f32.mrf.mxu0 }
 0x760   : > { %v9032_v25 = vadd.f32 %v9031_v61, %v14959_v22 }
 0x761   : > { %v9033_v5 = vpop.f32.mrf.mxu0 }
 0x762   : > { %v9091_v47 = vmax.f32 %v9032_v25, 0.0  ;;  %v9034_v28 = vadd.f32 %v9033_v5, %v14959_v22 }
 0x763   : > { %v9035_v35 = vpop.f32.mrf.mxu0  ;;  %v9072_v30 = vpop.f32.mrf.mxu1 }
 0x764   : > { %v9107_v44 = vpack.c.bf16 %v9091_v47, %v9091_v47  ;;  %v9092_v32 = vmax.f32 %v9034_v28, 0.0  ;;  %v9073_v45 = vadd.f32 %v9072_v30, %v14959_v22 }
 0x765   : > { %v9036_v40 = vpop.f32.mrf.mxu0  ;;  %v9074_v41 = vpop.f32.mrf.mxu1 }
 0x766   : > { %v9284_v0 = vrot.slane %v9107_v44, %v14963_v21  ;;  %v9108_v17 = vpack.c.bf16 %v9092_v32, %v9092_v32  ;;  %v9093_v48 = vmax.f32 %v9073_v45, 0.0  ;;  %v9075_v16 = vadd.f32 %v9074_v41, %v14959_v22 }
 0x767   : > { %v9076_v42 = vpop.f32.mrf.mxu1 }
 0x768   : > { %9285 = vrot.lane.b32.xlu1 %v9284_v0, %s10215_s17  ;;  %v9298_v26 = vrot.slane %v9108_v17, %v14963_v21  ;;  %v9109_v19 = vpack.c.bf16 %v9093_v48, %v9093_v48  ;;  %v9094_v63 = vmax.f32 %v9075_v16, 0.0 }
 0x769   : > { %v9077_v20 = vpop.f32.mrf.mxu1 }
 0x76a   : > { %v9312_v51 = vrot.slane %v9109_v19, %v14963_v21  ;;  %v9110_v56 = vpack.c.bf16 %v9094_v63, %v9094_v63 }
 0x76c   : > { %9299 = vrot.lane.b32.xlu1 %v9298_v26, %s10216_s18  ;;  %v9326_v53 = vrot.slane %v9110_v56, %v14963_v21 }
 0x770   : > { %9313 = vrot.lane.b32.xlu1 %v9312_v51, %s10217_s1 }
 0x774   : > { %9327 = vrot.lane.b32.xlu1 %v9326_v53, %s10218_s5 }
 0x77e   : > { %v9176_v22 = vpop.permute.xlu0 %9175 }
 0x77f   : > { %v9177_v36 = vrot.slane %v9176_v22, 6 }
 0x781   : > { %v9179_v4 = vsel %vm15407_vm4, %v9177_v36, %v9176_v22  ;;  %vm16515_vm4 = vcmask 916480  }
 0x782   : > { %9184 = vst.msk [vmem:[#allocation7 + $0x6] sm:$0xf] %vm15030_vm2, %v9179_v4  ;;  %v9194_v21 = vpop.permute.xlu0 %9193 }
 0x783   : > { %v9195_v37 = vrot.slane %v9194_v21, 6 }
 0x785   : > { %v9197_v55 = vsel %vm15406_vm9, %v9195_v37, %v9194_v21  ;;  %vm16514_vm9 = vcmask 261120  }
 0x786   : > { %9202 = vst.msk [vmem:[#allocation7 + $0x8] sm:$0xf] %vm15038_vm10, %v9197_v55 }
 0x789   : > { %v9331_v12 = vld [vmem:[#allocation7] sm:$0xff] }
 0x78a   : > { %9338 = vst [vmem:[%s15048_s22] sm:$0xff] %v9331_v12 }
 0x793   : > { %v9212_v7 = vpop.permute.xlu0 %9211 }
 0x794   : > { %v9213_v23 = vrot.slane %v9212_v7, 6 }
 0x796   : > { %v9215_v49 = vsel %vm16514_vm9, %v9213_v23, %v9212_v7  ;;  %vm16517_vm9 = vcmask 654336  }
 0x797   : > { %v9230_v59 = vpop.permute.xlu0 %9229  ;;  %9220 = vst.msk [vmem:[#allocation7 + $0xa] sm:$0xf] %vm15051_vm7, %v9215_v49 }
 0x798   : > { %9233 = vst.msk [vmem:[#allocation7 + $0xc] sm:$0x3] %vm9232_vm0, %v9230_v59 }
 0x7ac   : > { %v9244_v6 = vpop.permute.xlu1 %9243 }
 0x7ad   : > { %v9245_v60 = vrot.slane %v9244_v6, 6 }
 0x7af   : > { %v9246_v50 = vsel %vm16515_vm4, %v9245_v60, %v9244_v6  ;;  %vm16519_vm4 = vcmask 392192  }
 0x7b0   : > { %9248 = vst.msk [vmem:[#allocation7 + $0xe] sm:$0xf] %vm14982_vm5, %v9246_v50  ;;  %vm16518_vm5 = vcmask 523264  }
 0x7b7   : > { %v9332_v24 = vld [vmem:[#allocation7 + $0x8] sm:$0xff] }
 0x7b8   : > { %9339 = vst [vmem:[%s15048_s22 + $0x8] sm:$0xff] %v9332_v24 }
 0x7ba   : > { %v9258_v33 = vpop.permute.xlu1 %9257 }
 0x7bb   : > { %v9259_v52 = vrot.slane %v9258_v33, 6 }
 0x7bd   : > { %v9260_v34 = vsel %vm16516_vm6, %v9259_v52, %v9258_v33 }
 0x7be   : > { %9262 = vst.msk [vmem:[#allocation7 + $0x10] sm:$0xf] %vm14993_vm1, %v9260_v34  ;;  %v9272_v3 = vpop.permute.xlu1 %9271  ;;  %vm16520_vm1 = vcmask 261120  }
 0x7bf   : > { %v9273_v1 = vrot.slane %v9272_v3, 6 }
 0x7c1   : > { %v9274_v54 = vsel %vm16517_vm9, %v9273_v1, %v9272_v3 }
 0x7c2   : > { %9276 = vst.msk [vmem:[#allocation7 + $0x12] sm:$0xf] %vm15001_vm8, %v9274_v54 }
 0x7da   : > { %v9286_v15 = vpop.permute.xlu1 %9285 }
 0x7db   : > { %v9287_v14 = vrot.slane %v9286_v15, 6 }
 0x7dd   : > { %v9288_v29 = vsel %vm16518_vm5, %v9287_v14, %v9286_v15 }
 0x7de   : > { %9290 = vst.msk [vmem:[#allocation7 + $0x14] sm:$0xf] %vm15030_vm2, %v9288_v29  ;;  %v9300_v46 = vpop.permute.xlu1 %9299 }
 0x7df   : > { %v9301_v9 = vrot.slane %v9300_v46, 6 }
 0x7e1   : > { %v9302_v43 = vsel %vm16519_vm4, %v9301_v9, %v9300_v46 }
 0x7e2   : > { %9304 = vst.msk [vmem:[#allocation7 + $0x16] sm:$0xf] %vm15038_vm10, %v9302_v43  ;;  %v9314_v57 = vpop.permute.xlu1 %9313 }
 0x7e3   : > { %v9315_v27 = vrot.slane %v9314_v57, 6 }
 0x7e5   : > { %v9316_v11 = vsel %vm16520_vm1, %v9315_v27, %v9314_v57 }
 0x7e6   : > { %9318 = vst.msk [vmem:[#allocation7 + $0x18] sm:$0xf] %vm15051_vm7, %v9316_v11  ;;  %v9328_v10 = vpop.permute.xlu1 %9327 }
 0x7e7   : > { %9330 = vst.msk [vmem:[#allocation7 + $0x1a] sm:$0x3] %vm9232_vm0, %v9328_v10 }
 0x7e9   : > { %v9333_v8 = vld [vmem:[#allocation7 + $0x10] sm:$0xff] }
 0x7ea   : > { %9340 = vst [vmem:[%s15048_s22 + $0x10] sm:$0xff] %v9333_v8 }
 0x7eb   :  { %336 = sbr.rel (!%p334_p1) target bundleno = 68 (0x44), region = 118 }
 0x7ee   : > { %v9334_v58 = vld [vmem:[#allocation7 + $0x18] sm:$0xf] }
 0x7ef   : > { %9341 = vst [vmem:[%s15048_s22 + $0x18] sm:$0xf] %v9334_v58 }
 0x7f0   :  { %9346 = vsyncpa [#allocation9], 1 }
 0x7f1   :  { %9347 = vsyncpa [#allocation11], 1 }

</bundles_post_ra>
